<compile_context>
chip_gen: v7x
topology: tpu7x:2x2x1
jax: 0.10.0
libtpu: 0.0.40
codegen_flags: <defaults>
</compile_context>

<pallas_src>
import math
import numpy as np
import jax
import jax.numpy as jnp
from jax.experimental import pallas as pl
from jax.experimental.pallas import tpu as pltpu

# scaled-down hyper-parameters (module: bandwidth=30, b_l1=15, b_l2=10, f1=20, f2=40, f_out=10)
B_IN, B_L1, B_L2 = 6, 3, 2
F1, F2, F_OUT = 20, 40, 10
BATCH = 2

S0 = (2 * B_IN) ** 2                                   # 144  S^2 grid points
K1 = B_L1 ** 2                                         # 9    S^2 spectral coeffs (l < B_L1)
S1 = (2 * B_L1) ** 3                                   # 216  SO(3) grid points after conv1
S1P = 256                                              # S1 padded to a lane multiple (128)
K2 = sum((2 * l + 1) ** 2 for l in range(B_L2))        # 10   SO(3) spectral coeffs (l < B_L2)
S2 = (2 * B_L2) ** 3                                   # 64   SO(3) grid points after conv2


# --------------------------------------------------------------------------------------
# numpy setup helpers (Wigner functions, Driscoll-Healy quadrature, spectral operators)
# --------------------------------------------------------------------------------------
def _small_d(l, m, n, beta):
    """Wigner small-d d^l_{m,n}(beta), quantum / Condon-Shortley convention."""
    beta = np.asarray(beta, dtype=np.float64)
    c, s = np.cos(beta / 2.0), np.sin(beta / 2.0)
    kmin, kmax = max(0, m - n), min(l + m, l - n)
    pref = math.sqrt(math.factorial(l + m) * math.factorial(l - m)
                     * math.factorial(l + n) * math.factorial(l - n))
    acc = np.zeros_like(beta)
    for k in range(kmin, kmax + 1):
        den = (math.factorial(l + m - k) * math.factorial(l - n - k)
               * math.factorial(k) * math.factorial(k + n - m))
        acc = acc + ((-1.0) ** k) * (c ** (2 * l + m - n - 2 * k)) * (s ** (2 * k + n - m)) / den
    return pref * acc


def _wigner_D(l, m, n, alpha, beta, gamma):
    return np.exp(-1j * m * alpha) * _small_d(l, m, n, beta) * np.exp(-1j * n * gamma)


def _sph_basis(l, m, beta, alpha):
    return math.sqrt((2 * l + 1) / (4.0 * np.pi)) * _small_d(l, m, 0, beta) * np.exp(1j * m * alpha)


def _dh_weights(b):
    """Driscoll-Healy quadrature weights a_j (sum_j a_j = 2) and beta grid."""
    j = np.arange(2 * b)
    beta = np.pi * (2 * j + 1) / (4.0 * b)
    k = np.arange(b)
    w = np.array([(2.0 / b) * np.sin(beta[jj])
                  * np.sum(np.sin((2 * jj + 1) * (2 * k + 1) * np.pi / (4.0 * b)) / (2 * k + 1))
                  for jj in range(2 * b)])
    return w, beta


def _s2_idx(b):
    return [(l, m) for l in range(b) for m in range(-l, l + 1)]


def _so3_idx(b):
    return [(l, m, n) for l in range(b) for m in range(-l, l + 1) for n in range(-l, l + 1)]


def _build_s2_analysis(b_in, b_out):
    w, beta = _dh_weights(b_in)
    alpha = 2.0 * np.pi * np.arange(2 * b_in) / (2 * b_in)
    Bg, Ag = np.meshgrid(beta, alpha, indexing="ij")
    Wg = np.broadcast_to((w * np.pi / b_in)[:, None], Bg.shape)
    rows = [(np.conj(_sph_basis(l, m, Bg, Ag)) * Wg).reshape(-1) for (l, m) in _s2_idx(b_out)]
    return np.stack(rows, axis=0)                       # [b_out^2, (2 b_in)^2] complex


def _build_so3_synthesis(b):
    j = np.arange(2 * b)
    beta = np.pi * (2 * j + 1) / (4.0 * b)
    alpha = 2.0 * np.pi * np.arange(2 * b) / (2 * b)
    Bg, Ag, Gg = np.meshgrid(beta, alpha, alpha, indexing="ij")
    cols = [((2 * l + 1) * _wigner_D(l, m, n, Ag, Bg, Gg)).reshape(-1) for (l, m, n) in _so3_idx(b)]
    return np.stack(cols, axis=1)                       # [(2b)^3, sum(2l+1)^2] complex


def _build_so3_analysis(b_in, b_out):
    w, beta = _dh_weights(b_in)
    alpha = 2.0 * np.pi * np.arange(2 * b_in) / (2 * b_in)
    Bg, Ag, Gg = np.meshgrid(beta, alpha, alpha, indexing="ij")
    Wg = np.broadcast_to((w / (2.0 * (2 * b_in) ** 2))[:, None, None], Bg.shape)
    rows = [(np.conj(_wigner_D(l, m, n, Ag, Bg, Gg)) * Wg).reshape(-1) for (l, m, n) in _so3_idx(b_out)]
    return np.stack(rows, axis=0)                       # [sum(2l+1)^2, (2 b_in)^3] complex


def _s2_near_identity_grid(max_beta=np.pi / 8, n_alpha=8, n_beta=3):
    beta = np.arange(1, n_beta + 1) * max_beta / n_beta
    alpha = np.linspace(0.0, 2.0 * np.pi, n_alpha, endpoint=False)
    Bg, Ag = np.meshgrid(beta, alpha, indexing="ij")
    return Bg.reshape(-1), Ag.reshape(-1)


def _so3_near_identity_grid(max_beta=np.pi / 8, max_gamma=2.0 * np.pi, n_alpha=8, n_beta=3, n_gamma=8):
    beta = np.arange(1, n_beta + 1) * max_beta / n_beta
    alpha = np.linspace(0.0, 2.0 * np.pi, n_alpha, endpoint=False)
    gamma = np.linspace(0.0, max_gamma, n_gamma, endpoint=False)
    Bg, Ag, Gg = np.meshgrid(beta, alpha, gamma, indexing="ij")
    return Ag.reshape(-1), Bg.reshape(-1), Gg.reshape(-1)


def _s2_kernel_spectra(kappa, b_out, g_beta, g_alpha, scaling):
    rows = [((kappa[0] * scaling) @ np.conj(_sph_basis(l, n, g_beta, g_alpha)))
            for (l, n) in _s2_idx(b_out)]
    return np.stack(rows, axis=0)                       # [b_out^2, f_out]


def _so3_kernel_spectra(kappa, b_out, g_alpha, g_beta, g_gamma, scaling):
    rows = [np.einsum("iog,g->io", kappa * scaling,
                      np.conj(_wigner_D(l, n, npr, g_alpha, g_beta, g_gamma)))
            for (l, n, npr) in _so3_idx(b_out)]
    return np.stack(rows, axis=0)                       # [sum(2l+1)^2, f_in, f_out]


def build_constants(key):
    # --- deterministic synthetic parameters (shapes match the s2cnn layer __init__'s)
    kg_beta, kg_alpha = _s2_near_identity_grid()
    sg_alpha, sg_beta, sg_gamma = _so3_near_identity_grid()
    n_g1, n_g2 = kg_beta.size, sg_beta.size
    k1, k2, k3, k4 = jax.random.split(key, 4)
    kappa1 = np.asarray(jax.random.uniform(k1, (1, F1, n_g1), minval=-1.0, maxval=1.0), np.float64)
    kappa2 = np.asarray(jax.random.uniform(k2, (F1, F2, n_g2), minval=-1.0, maxval=1.0), np.float64)
    bound = 1.0 / math.sqrt(F2)
    w_lin = np.asarray(jax.random.uniform(k3, (F2, F_OUT), minval=-bound, maxval=bound), np.float64)
    b_lin = np.asarray(jax.random.uniform(k4, (1, F_OUT), minval=-bound, maxval=bound), np.float64)

    scaling1 = 1.0 / math.sqrt(n_g1 * 1 * (B_L1 ** 3) / (B_IN ** 3))
    scaling2 = 1.0 / math.sqrt(n_g2 * F1 * (B_L2 ** 3) / (B_L1 ** 3))

    # --- fixed spectral operators
    A1 = _build_s2_analysis(B_IN, B_L1)                 # [K1, S0]
    B1 = _build_so3_synthesis(B_L1)                     # [S1, sum(2l+1)^2 | l<B_L1]
    A2 = _build_so3_analysis(B_L1, B_L2)                # [K2, S1]
    B2 = _build_so3_synthesis(B_L2)                     # [S2, K2]

    psi1 = _s2_kernel_spectra(kappa1, B_L1, kg_beta, kg_alpha, scaling1)              # [K1, F1]
    psi2 = _so3_kernel_spectra(kappa2, B_L2, sg_alpha, sg_beta, sg_gamma, scaling2)   # [K2, F1, F2]

    # fold (filter spectra x SO(3) synthesis) into dense per-layer operators C1, C2
    C1 = np.zeros((K1, F1, S1), dtype=np.complex128)
    off_s2 = off_so3 = 0
    for l in range(B_L1):
        dl = 2 * l + 1
        B1l = B1[:, off_so3:off_so3 + dl * dl].reshape(S1, dl, dl)       # [s, m, n]
        C1[off_s2:off_s2 + dl] = np.einsum("smn,nf->mfs", B1l, psi1[off_s2:off_s2 + dl])
        off_s2 += dl
        off_so3 += dl * dl

    C2 = np.zeros((F1, K2, F2, S2), dtype=np.complex128)
    off = 0
    for l in range(B_L2):
        dl = 2 * l + 1
        B2l = B2[:, off:off + dl * dl].reshape(S2, dl, dl)               # [s, m, n]
        psil = psi2[off:off + dl * dl].reshape(dl, dl, F1, F2)           # [n, n', fi, fo]
        tmp = np.einsum("smn,npif->impfs", B2l, psil)                    # [fi, m, n', fo, s]
        C2[:, off:off + dl * dl] = tmp.reshape(F1, dl * dl, F2, S2)
        off += dl * dl
    C2f = C2.reshape(F1, K2, F2 * S2)

    # build-time realness check: a real input must synthesize to a (numerically) real
    # signal, so the kernel may keep only the real part of every spectral product.
    rng = np.random.default_rng(0)
    xt = rng.standard_normal((1, S0))
    h1c = (xt @ A1.T) @ C1.reshape(K1, F1 * S1)
    assert np.max(np.abs(h1c.imag)) < 1e-6 * (np.max(np.abs(h1c.real)) + 1e-30)
    ht = rng.standard_normal((1, F1 * S1))
    h2c = np.zeros((1, F2 * S2), dtype=np.complex128)
    for f in range(F1):
        h2c = h2c + (ht[:, f * S1:(f + 1) * S1] @ A2.T) @ C2f[f]
    assert np.max(np.abs(h2c.imag)) < 1e-6 * (np.max(np.abs(h2c.real)) + 1e-30)

    # ---- pack into the real, lane-friendly operators the kernel consumes ----
    # layer 1: analysis real/imag stacked on columns, mixing stacked on rows so that
    #   Re((xr + i*xi) @ C1) == [xr | xi] @ [[C1r], [-C1i]]
    a1ri = np.concatenate([A1.real.T, A1.imag.T], axis=1)                 # [S0, 2*K1]
    C1p = np.zeros((K1, F1, S1P), dtype=np.complex128)
    C1p[:, :, :S1] = C1                                                   # pad S1 216 -> 256
    C1flat = C1p.reshape(K1, F1 * S1P)
    c1stack = np.concatenate([C1flat.real, -C1flat.imag], axis=0)         # [2*K1, F1*S1P]

    # layer 2: small per-feature analysis factor (replaces dense kron(eye(F1), A2.T))
    a2ri = np.zeros((S1P, 2 * K2))
    a2ri[:S1, :K2] = A2.real.T
    a2ri[:S1, K2:] = A2.imag.T                                            # [S1P, 2*K2]
    c2stack = np.concatenate([C2f.real, -C2f.imag], axis=1).reshape(F1 * 2 * K2, F2 * S2)

    # so3_integrate folded with the out_layer Linear: Wout[f2*S2+s, o] = w_haar[s]*w_lin[f2, o]
    w_int, _ = _dh_weights(B_L2)
    w_int = w_int / (2.0 * (2 * B_L2) ** 2)                               # normalized Haar
    wint_flat = np.repeat(w_int, (2 * B_L2) ** 2)                         # [S2]
    wout = (w_lin[:, None, :] * wint_flat[None, :, None]).reshape(F2 * S2, F_OUT)

    bias1 = np.zeros((1, F1 * S1P))                                       # s2cnn inits conv biases to 0
    bias2 = np.zeros((1, F2 * S2))

    f32 = lambda a: jnp.asarray(np.asarray(a), dtype=jnp.float32)
    bf16 = lambda a: jnp.asarray(np.asarray(a), dtype=jnp.bfloat16)       # weights-only bf16
    return (
        bf16(a1ri),                  # S2 analysis (re|im)        [S0, 2*K1]
        bf16(c1stack), f32(bias1),   # mix + SO(3) synthesis      [2*K1, F1*S1P], bias
        bf16(a2ri),                  # SO(3) analysis factor      [S1P, 2*K2]
        bf16(c2stack), f32(bias2),   # mix + SO(3) synthesis      [F1*2*K2, F2*S2], bias
        bf16(wout), f32(b_lin),      # so3_integrate ∘ Linear     [F2*S2, F_OUT], bias
    )


# --------------------------------------------------------------------------------------
# Pallas kernel: entire forward pass as a chain of 2-D matmuls (single program, all VMEM)
# --------------------------------------------------------------------------------------
def _s2convnet_kernel(x_ref, a1_ref, c1_ref, b1_ref, a2_ref, c2_ref, b2_ref,
                      wo_ref, bo_ref, out_ref):
    f32 = jnp.float32
    dot = lambda a, b: jnp.dot(a, b.astype(f32), preferred_element_type=f32)
    x = x_ref[...]                                                   # [B, S0] f32
    # ---- S2Convolution: S2 analysis (re|im stacked) -> mixing fused with SO(3) synthesis
    xri = dot(x, a1_ref[...])                                        # [B, 2*K1]
    h1 = jnp.maximum(dot(xri, c1_ref[...]) + b1_ref[...], 0.0)       # [B, F1*S1P], F.relu
    # ---- SO3Convolution: per-feature SO(3) analysis with the small A2 factor, then
    #      mixing fused with SO(3) synthesis, accumulated over input features.
    a2 = a2_ref[...].astype(f32)                                     # [S1P, 2*K2]
    pre2 = jnp.zeros((x.shape[0], F2 * S2), f32)
    for f in range(F1):                                              # unrolled, static slices
        hf = h1[:, f * S1P:(f + 1) * S1P]                            # [B, S1P], lane-aligned
        fri = jnp.dot(hf, a2, preferred_element_type=f32)            # [B, 2*K2] = [Re | Im]
        slab = c2_ref[f * 2 * K2:(f + 1) * 2 * K2, :]                # [2*K2, F2*S2]
        pre2 = pre2 + dot(fri, slab)
    h2 = jnp.maximum(pre2 + b2_ref[...], 0.0)                        # F.relu
    # ---- so3_integrate folded with out_layer (nn.Linear)
    out_ref[...] = dot(h2, wo_ref[...]) + bo_ref[...]


def s2convnet_forward(x, consts):
    b = x.shape[0]
    x2d = x.reshape(b, -1).astype(jnp.float32)                       # [B, (2*B_IN)^2], channel=1 folded
    args = (x2d,) + tuple(consts)
    return pl.pallas_call(
        _s2convnet_kernel,
        out_shape=jax.ShapeDtypeStruct((b, F_OUT), jnp.float32),
        in_specs=[pl.BlockSpec(memory_space=pltpu.MemorySpace.VMEM) for _ in args],
        out_specs=pl.BlockSpec(memory_space=pltpu.MemorySpace.VMEM),
    )(*args)


def _reference_forward(x2d, consts):
    a1ri, c1s, b1e, a2ri, c2s, b2e, wout, bo = consts
    f32 = jnp.float32
    xri = x2d @ a1ri.astype(f32)
    h1 = jnp.maximum(xri @ c1s.astype(f32) + b1e, 0.0)
    h1r = h1.reshape(-1, F1, S1P)
    fri = jnp.einsum("bfs,sk->bfk", h1r, a2ri.astype(f32))
    pre2 = jnp.einsum("bfk,fkn->bn", fri, c2s.astype(f32).reshape(F1, 2 * K2, F2 * S2))
    h2 = jnp.maximum(pre2 + b2e, 0.0)
    return h2 @ wout.astype(f32) + bo


if __name__ == "__main__":
    key = jax.random.PRNGKey(0)
    k_params, k_x = jax.random.split(key)
    consts = build_constants(k_params)
    # input: [batch, channel=1, beta, alpha] on the 2*B_IN x 2*B_IN Driscoll-Healy grid
    x = jax.random.normal(k_x, (BATCH, 1, 2 * B_IN, 2 * B_IN), dtype=jnp.float32)

    fwd = jax.jit(s2convnet_forward)
    out = jax.block_until_ready(fwd(x, consts))

    ref = np.asarray(jax.block_until_ready(_reference_forward(x.reshape(BATCH, -1), consts)))
    o = np.asarray(out)
    assert o.shape == (BATCH, F_OUT) and np.all(np.isfinite(o))
    tol = 0.05 * float(np.max(np.abs(ref))) + 1e-4
    np.testing.assert_allclose(o, ref, rtol=0.05, atol=tol)
    print("KERNEL_OK")
</pallas_src>

<mosaic_0001>
module attributes {stable_mosaic.version = 11 : i64} {
  func.func @_s2convnet_kernel(%arg0: memref<2x144xf32, #tpu.memory_space<vmem>>, %arg1: memref<144x18xbf16, #tpu.memory_space<vmem>>, %arg2: memref<18x5120xbf16, #tpu.memory_space<vmem>>, %arg3: memref<1x5120xf32, #tpu.memory_space<vmem>>, %arg4: memref<256x20xbf16, #tpu.memory_space<vmem>>, %arg5: memref<400x2560xbf16, #tpu.memory_space<vmem>>, %arg6: memref<1x2560xf32, #tpu.memory_space<vmem>>, %arg7: memref<2560x10xbf16, #tpu.memory_space<vmem>>, %arg8: memref<1x10xf32, #tpu.memory_space<vmem>>, %arg9: memref<2x10xf32, #tpu.memory_space<vmem>>) attributes {dimension_semantics = [], scalar_prefetch = 0 : i64, scratch_operands = 0 : i64, tpu.core_type = #tpu.core_type<tc>} {
    %c0 = arith.constant 0 : index
    %c0_0 = arith.constant 0 : index
    %0 = vector.load %arg0[%c0, %c0_0] : memref<2x144xf32, #tpu.memory_space<vmem>>, vector<2x144xf32>
    %c0_1 = arith.constant 0 : index
    %c0_2 = arith.constant 0 : index
    %1 = vector.load %arg1[%c0_1, %c0_2] : memref<144x18xbf16, #tpu.memory_space<vmem>>, vector<144x18xbf16>
    %2 = arith.extf %1 : vector<144x18xbf16> to vector<144x18xf32>
    %cst = arith.constant dense<0.000000e+00> : vector<2x18xf32>
    %3 = tpu.matmul %0, %2, %cst {dimension_numbers = #tpu.dot_dimension_numbers<[1], [0], [0], [1], [0, 0, 1, 1], [], []>} : vector<2x144xf32>, vector<144x18xf32>, vector<2x18xf32> -> vector<2x18xf32>
    %c0_3 = arith.constant 0 : index
    %c0_4 = arith.constant 0 : index
    %4 = vector.load %arg2[%c0_3, %c0_4] : memref<18x5120xbf16, #tpu.memory_space<vmem>>, vector<18x5120xbf16>
    %5 = arith.extf %4 : vector<18x5120xbf16> to vector<18x5120xf32>
    %cst_5 = arith.constant dense<0.000000e+00> : vector<2x5120xf32>
    %6 = tpu.matmul %3, %5, %cst_5 {dimension_numbers = #tpu.dot_dimension_numbers<[1], [0], [0], [1], [0, 0, 1, 1], [], []>} : vector<2x18xf32>, vector<18x5120xf32>, vector<2x5120xf32> -> vector<2x5120xf32>
    %c0_6 = arith.constant 0 : index
    %c0_7 = arith.constant 0 : index
    %7 = vector.load %arg3[%c0_6, %c0_7] : memref<1x5120xf32, #tpu.memory_space<vmem>>, vector<1x5120xf32>
    %8 = vector.broadcast %7 : vector<1x5120xf32> to vector<2x5120xf32>
    %9 = arith.addf %6, %8 : vector<2x5120xf32>
    %cst_8 = arith.constant 0.000000e+00 : f32
    %10 = vector.broadcast %cst_8 : f32 to vector<2x5120xf32>
    %11 = arith.maximumf %9, %10 : vector<2x5120xf32>
    %c0_9 = arith.constant 0 : index
    %c0_10 = arith.constant 0 : index
    %12 = vector.load %arg4[%c0_9, %c0_10] : memref<256x20xbf16, #tpu.memory_space<vmem>>, vector<256x20xbf16>
    %13 = arith.extf %12 : vector<256x20xbf16> to vector<256x20xf32>
    %cst_11 = arith.constant 0.000000e+00 : f32
    %14 = vector.broadcast %cst_11 : f32 to vector<2x2560xf32>
    %15 = vector.extract_strided_slice %11 {offsets = [0, 0], sizes = [2, 256], strides = [1, 1]} : vector<2x5120xf32> to vector<2x256xf32>
    %cst_12 = arith.constant dense<0.000000e+00> : vector<2x20xf32>
    %16 = tpu.matmul %15, %13, %cst_12 {dimension_numbers = #tpu.dot_dimension_numbers<[1], [0], [0], [1], [0, 0, 1, 1], [], []>} : vector<2x256xf32>, vector<256x20xf32>, vector<2x20xf32> -> vector<2x20xf32>
    %c0_13 = arith.constant 0 : index
    %c0_14 = arith.constant 0 : index
    %17 = vector.load %arg5[%c0_13, %c0_14] : memref<400x2560xbf16, #tpu.memory_space<vmem>>, vector<20x2560xbf16>
    %18 = arith.extf %17 : vector<20x2560xbf16> to vector<20x2560xf32>
    %cst_15 = arith.constant dense<0.000000e+00> : vector<2x2560xf32>
    %19 = tpu.matmul %16, %18, %cst_15 {dimension_numbers = #tpu.dot_dimension_numbers<[1], [0], [0], [1], [0, 0, 1, 1], [], []>} : vector<2x20xf32>, vector<20x2560xf32>, vector<2x2560xf32> -> vector<2x2560xf32>
    %20 = arith.addf %14, %19 : vector<2x2560xf32>
    %21 = vector.extract_strided_slice %11 {offsets = [0, 256], sizes = [2, 256], strides = [1, 1]} : vector<2x5120xf32> to vector<2x256xf32>
    %cst_16 = arith.constant dense<0.000000e+00> : vector<2x20xf32>
    %22 = tpu.matmul %21, %13, %cst_16 {dimension_numbers = #tpu.dot_dimension_numbers<[1], [0], [0], [1], [0, 0, 1, 1], [], []>} : vector<2x256xf32>, vector<256x20xf32>, vector<2x20xf32> -> vector<2x20xf32>
    %c20 = arith.constant 20 : index
    %c0_17 = arith.constant 0 : index
    %23 = vector.load %arg5[%c20, %c0_17] : memref<400x2560xbf16, #tpu.memory_space<vmem>>, vector<20x2560xbf16>
    %24 = arith.extf %23 : vector<20x2560xbf16> to vector<20x2560xf32>
    %cst_18 = arith.constant dense<0.000000e+00> : vector<2x2560xf32>
    %25 = tpu.matmul %22, %24, %cst_18 {dimension_numbers = #tpu.dot_dimension_numbers<[1], [0], [0], [1], [0, 0, 1, 1], [], []>} : vector<2x20xf32>, vector<20x2560xf32>, vector<2x2560xf32> -> vector<2x2560xf32>
    %26 = arith.addf %20, %25 : vector<2x2560xf32>
    %27 = vector.extract_strided_slice %11 {offsets = [0, 512], sizes = [2, 256], strides = [1, 1]} : vector<2x5120xf32> to vector<2x256xf32>
    %cst_19 = arith.constant dense<0.000000e+00> : vector<2x20xf32>
    %28 = tpu.matmul %27, %13, %cst_19 {dimension_numbers = #tpu.dot_dimension_numbers<[1], [0], [0], [1], [0, 0, 1, 1], [], []>} : vector<2x256xf32>, vector<256x20xf32>, vector<2x20xf32> -> vector<2x20xf32>
    %c40 = arith.constant 40 : index
    %c0_20 = arith.constant 0 : index
    %29 = vector.load %arg5[%c40, %c0_20] : memref<400x2560xbf16, #tpu.memory_space<vmem>>, vector<20x2560xbf16>
    %30 = arith.extf %29 : vector<20x2560xbf16> to vector<20x2560xf32>
    %cst_21 = arith.constant dense<0.000000e+00> : vector<2x2560xf32>
    %31 = tpu.matmul %28, %30, %cst_21 {dimension_numbers = #tpu.dot_dimension_numbers<[1], [0], [0], [1], [0, 0, 1, 1], [], []>} : vector<2x20xf32>, vector<20x2560xf32>, vector<2x2560xf32> -> vector<2x2560xf32>
    %32 = arith.addf %26, %31 : vector<2x2560xf32>
    %33 = vector.extract_strided_slice %11 {offsets = [0, 768], sizes = [2, 256], strides = [1, 1]} : vector<2x5120xf32> to vector<2x256xf32>
    %cst_22 = arith.constant dense<0.000000e+00> : vector<2x20xf32>
    %34 = tpu.matmul %33, %13, %cst_22 {dimension_numbers = #tpu.dot_dimension_numbers<[1], [0], [0], [1], [0, 0, 1, 1], [], []>} : vector<2x256xf32>, vector<256x20xf32>, vector<2x20xf32> -> vector<2x20xf32>
    %c60 = arith.constant 60 : index
    %c0_23 = arith.constant 0 : index
    %35 = vector.load %arg5[%c60, %c0_23] : memref<400x2560xbf16, #tpu.memory_space<vmem>>, vector<20x2560xbf16>
    %36 = arith.extf %35 : vector<20x2560xbf16> to vector<20x2560xf32>
    %cst_24 = arith.constant dense<0.000000e+00> : vector<2x2560xf32>
    %37 = tpu.matmul %34, %36, %cst_24 {dimension_numbers = #tpu.dot_dimension_numbers<[1], [0], [0], [1], [0, 0, 1, 1], [], []>} : vector<2x20xf32>, vector<20x2560xf32>, vector<2x2560xf32> -> vector<2x2560xf32>
    %38 = arith.addf %32, %37 : vector<2x2560xf32>
    %39 = vector.extract_strided_slice %11 {offsets = [0, 1024], sizes = [2, 256], strides = [1, 1]} : vector<2x5120xf32> to vector<2x256xf32>
    %cst_25 = arith.constant dense<0.000000e+00> : vector<2x20xf32>
    %40 = tpu.matmul %39, %13, %cst_25 {dimension_numbers = #tpu.dot_dimension_numbers<[1], [0], [0], [1], [0, 0, 1, 1], [], []>} : vector<2x256xf32>, vector<256x20xf32>, vector<2x20xf32> -> vector<2x20xf32>
    %c80 = arith.constant 80 : index
    %c0_26 = arith.constant 0 : index
    %41 = vector.load %arg5[%c80, %c0_26] : memref<400x2560xbf16, #tpu.memory_space<vmem>>, vector<20x2560xbf16>
    %42 = arith.extf %41 : vector<20x2560xbf16> to vector<20x2560xf32>
    %cst_27 = arith.constant dense<0.000000e+00> : vector<2x2560xf32>
    %43 = tpu.matmul %40, %42, %cst_27 {dimension_numbers = #tpu.dot_dimension_numbers<[1], [0], [0], [1], [0, 0, 1, 1], [], []>} : vector<2x20xf32>, vector<20x2560xf32>, vector<2x2560xf32> -> vector<2x2560xf32>
    %44 = arith.addf %38, %43 : vector<2x2560xf32>
    %45 = vector.extract_strided_slice %11 {offsets = [0, 1280], sizes = [2, 256], strides = [1, 1]} : vector<2x5120xf32> to vector<2x256xf32>
    %cst_28 = arith.constant dense<0.000000e+00> : vector<2x20xf32>
    %46 = tpu.matmul %45, %13, %cst_28 {dimension_numbers = #tpu.dot_dimension_numbers<[1], [0], [0], [1], [0, 0, 1, 1], [], []>} : vector<2x256xf32>, vector<256x20xf32>, vector<2x20xf32> -> vector<2x20xf32>
    %c100 = arith.constant 100 : index
    %c0_29 = arith.constant 0 : index
    %47 = vector.load %arg5[%c100, %c0_29] : memref<400x2560xbf16, #tpu.memory_space<vmem>>, vector<20x2560xbf16>
    %48 = arith.extf %47 : vector<20x2560xbf16> to vector<20x2560xf32>
    %cst_30 = arith.constant dense<0.000000e+00> : vector<2x2560xf32>
    %49 = tpu.matmul %46, %48, %cst_30 {dimension_numbers = #tpu.dot_dimension_numbers<[1], [0], [0], [1], [0, 0, 1, 1], [], []>} : vector<2x20xf32>, vector<20x2560xf32>, vector<2x2560xf32> -> vector<2x2560xf32>
    %50 = arith.addf %44, %49 : vector<2x2560xf32>
    %51 = vector.extract_strided_slice %11 {offsets = [0, 1536], sizes = [2, 256], strides = [1, 1]} : vector<2x5120xf32> to vector<2x256xf32>
    %cst_31 = arith.constant dense<0.000000e+00> : vector<2x20xf32>
    %52 = tpu.matmul %51, %13, %cst_31 {dimension_numbers = #tpu.dot_dimension_numbers<[1], [0], [0], [1], [0, 0, 1, 1], [], []>} : vector<2x256xf32>, vector<256x20xf32>, vector<2x20xf32> -> vector<2x20xf32>
    %c120 = arith.constant 120 : index
    %c0_32 = arith.constant 0 : index
    %53 = vector.load %arg5[%c120, %c0_32] : memref<400x2560xbf16, #tpu.memory_space<vmem>>, vector<20x2560xbf16>
    %54 = arith.extf %53 : vector<20x2560xbf16> to vector<20x2560xf32>
    %cst_33 = arith.constant dense<0.000000e+00> : vector<2x2560xf32>
    %55 = tpu.matmul %52, %54, %cst_33 {dimension_numbers = #tpu.dot_dimension_numbers<[1], [0], [0], [1], [0, 0, 1, 1], [], []>} : vector<2x20xf32>, vector<20x2560xf32>, vector<2x2560xf32> -> vector<2x2560xf32>
    %56 = arith.addf %50, %55 : vector<2x2560xf32>
    %57 = vector.extract_strided_slice %11 {offsets = [0, 1792], sizes = [2, 256], strides = [1, 1]} : vector<2x5120xf32> to vector<2x256xf32>
    %cst_34 = arith.constant dense<0.000000e+00> : vector<2x20xf32>
    %58 = tpu.matmul %57, %13, %cst_34 {dimension_numbers = #tpu.dot_dimension_numbers<[1], [0], [0], [1], [0, 0, 1, 1], [], []>} : vector<2x256xf32>, vector<256x20xf32>, vector<2x20xf32> -> vector<2x20xf32>
    %c140 = arith.constant 140 : index
    %c0_35 = arith.constant 0 : index
    %59 = vector.load %arg5[%c140, %c0_35] : memref<400x2560xbf16, #tpu.memory_space<vmem>>, vector<20x2560xbf16>
    %60 = arith.extf %59 : vector<20x2560xbf16> to vector<20x2560xf32>
    %cst_36 = arith.constant dense<0.000000e+00> : vector<2x2560xf32>
    %61 = tpu.matmul %58, %60, %cst_36 {dimension_numbers = #tpu.dot_dimension_numbers<[1], [0], [0], [1], [0, 0, 1, 1], [], []>} : vector<2x20xf32>, vector<20x2560xf32>, vector<2x2560xf32> -> vector<2x2560xf32>
    %62 = arith.addf %56, %61 : vector<2x2560xf32>
    %63 = vector.extract_strided_slice %11 {offsets = [0, 2048], sizes = [2, 256], strides = [1, 1]} : vector<2x5120xf32> to vector<2x256xf32>
    %cst_37 = arith.constant dense<0.000000e+00> : vector<2x20xf32>
    %64 = tpu.matmul %63, %13, %cst_37 {dimension_numbers = #tpu.dot_dimension_numbers<[1], [0], [0], [1], [0, 0, 1, 1], [], []>} : vector<2x256xf32>, vector<256x20xf32>, vector<2x20xf32> -> vector<2x20xf32>
    %c160 = arith.constant 160 : index
    %c0_38 = arith.constant 0 : index
    %65 = vector.load %arg5[%c160, %c0_38] : memref<400x2560xbf16, #tpu.memory_space<vmem>>, vector<20x2560xbf16>
    %66 = arith.extf %65 : vector<20x2560xbf16> to vector<20x2560xf32>
    %cst_39 = arith.constant dense<0.000000e+00> : vector<2x2560xf32>
    %67 = tpu.matmul %64, %66, %cst_39 {dimension_numbers = #tpu.dot_dimension_numbers<[1], [0], [0], [1], [0, 0, 1, 1], [], []>} : vector<2x20xf32>, vector<20x2560xf32>, vector<2x2560xf32> -> vector<2x2560xf32>
    %68 = arith.addf %62, %67 : vector<2x2560xf32>
    %69 = vector.extract_strided_slice %11 {offsets = [0, 2304], sizes = [2, 256], strides = [1, 1]} : vector<2x5120xf32> to vector<2x256xf32>
    %cst_40 = arith.constant dense<0.000000e+00> : vector<2x20xf32>
    %70 = tpu.matmul %69, %13, %cst_40 {dimension_numbers = #tpu.dot_dimension_numbers<[1], [0], [0], [1], [0, 0, 1, 1], [], []>} : vector<2x256xf32>, vector<256x20xf32>, vector<2x20xf32> -> vector<2x20xf32>
    %c180 = arith.constant 180 : index
    %c0_41 = arith.constant 0 : index
    %71 = vector.load %arg5[%c180, %c0_41] : memref<400x2560xbf16, #tpu.memory_space<vmem>>, vector<20x2560xbf16>
    %72 = arith.extf %71 : vector<20x2560xbf16> to vector<20x2560xf32>
    %cst_42 = arith.constant dense<0.000000e+00> : vector<2x2560xf32>
    %73 = tpu.matmul %70, %72, %cst_42 {dimension_numbers = #tpu.dot_dimension_numbers<[1], [0], [0], [1], [0, 0, 1, 1], [], []>} : vector<2x20xf32>, vector<20x2560xf32>, vector<2x2560xf32> -> vector<2x2560xf32>
    %74 = arith.addf %68, %73 : vector<2x2560xf32>
    %75 = vector.extract_strided_slice %11 {offsets = [0, 2560], sizes = [2, 256], strides = [1, 1]} : vector<2x5120xf32> to vector<2x256xf32>
    %cst_43 = arith.constant dense<0.000000e+00> : vector<2x20xf32>
    %76 = tpu.matmul %75, %13, %cst_43 {dimension_numbers = #tpu.dot_dimension_numbers<[1], [0], [0], [1], [0, 0, 1, 1], [], []>} : vector<2x256xf32>, vector<256x20xf32>, vector<2x20xf32> -> vector<2x20xf32>
    %c200 = arith.constant 200 : index
    %c0_44 = arith.constant 0 : index
    %77 = vector.load %arg5[%c200, %c0_44] : memref<400x2560xbf16, #tpu.memory_space<vmem>>, vector<20x2560xbf16>
    %78 = arith.extf %77 : vector<20x2560xbf16> to vector<20x2560xf32>
    %cst_45 = arith.constant dense<0.000000e+00> : vector<2x2560xf32>
    %79 = tpu.matmul %76, %78, %cst_45 {dimension_numbers = #tpu.dot_dimension_numbers<[1], [0], [0], [1], [0, 0, 1, 1], [], []>} : vector<2x20xf32>, vector<20x2560xf32>, vector<2x2560xf32> -> vector<2x2560xf32>
    %80 = arith.addf %74, %79 : vector<2x2560xf32>
    %81 = vector.extract_strided_slice %11 {offsets = [0, 2816], sizes = [2, 256], strides = [1, 1]} : vector<2x5120xf32> to vector<2x256xf32>
    %cst_46 = arith.constant dense<0.000000e+00> : vector<2x20xf32>
    %82 = tpu.matmul %81, %13, %cst_46 {dimension_numbers = #tpu.dot_dimension_numbers<[1], [0], [0], [1], [0, 0, 1, 1], [], []>} : vector<2x256xf32>, vector<256x20xf32>, vector<2x20xf32> -> vector<2x20xf32>
    %c220 = arith.constant 220 : index
    %c0_47 = arith.constant 0 : index
    %83 = vector.load %arg5[%c220, %c0_47] : memref<400x2560xbf16, #tpu.memory_space<vmem>>, vector<20x2560xbf16>
    %84 = arith.extf %83 : vector<20x2560xbf16> to vector<20x2560xf32>
    %cst_48 = arith.constant dense<0.000000e+00> : vector<2x2560xf32>
    %85 = tpu.matmul %82, %84, %cst_48 {dimension_numbers = #tpu.dot_dimension_numbers<[1], [0], [0], [1], [0, 0, 1, 1], [], []>} : vector<2x20xf32>, vector<20x2560xf32>, vector<2x2560xf32> -> vector<2x2560xf32>
    %86 = arith.addf %80, %85 : vector<2x2560xf32>
    %87 = vector.extract_strided_slice %11 {offsets = [0, 3072], sizes = [2, 256], strides = [1, 1]} : vector<2x5120xf32> to vector<2x256xf32>
    %cst_49 = arith.constant dense<0.000000e+00> : vector<2x20xf32>
    %88 = tpu.matmul %87, %13, %cst_49 {dimension_numbers = #tpu.dot_dimension_numbers<[1], [0], [0], [1], [0, 0, 1, 1], [], []>} : vector<2x256xf32>, vector<256x20xf32>, vector<2x20xf32> -> vector<2x20xf32>
    %c240 = arith.constant 240 : index
    %c0_50 = arith.constant 0 : index
    %89 = vector.load %arg5[%c240, %c0_50] : memref<400x2560xbf16, #tpu.memory_space<vmem>>, vector<20x2560xbf16>
    %90 = arith.extf %89 : vector<20x2560xbf16> to vector<20x2560xf32>
    %cst_51 = arith.constant dense<0.000000e+00> : vector<2x2560xf32>
    %91 = tpu.matmul %88, %90, %cst_51 {dimension_numbers = #tpu.dot_dimension_numbers<[1], [0], [0], [1], [0, 0, 1, 1], [], []>} : vector<2x20xf32>, vector<20x2560xf32>, vector<2x2560xf32> -> vector<2x2560xf32>
    %92 = arith.addf %86, %91 : vector<2x2560xf32>
    %93 = vector.extract_strided_slice %11 {offsets = [0, 3328], sizes = [2, 256], strides = [1, 1]} : vector<2x5120xf32> to vector<2x256xf32>
    %cst_52 = arith.constant dense<0.000000e+00> : vector<2x20xf32>
    %94 = tpu.matmul %93, %13, %cst_52 {dimension_numbers = #tpu.dot_dimension_numbers<[1], [0], [0], [1], [0, 0, 1, 1], [], []>} : vector<2x256xf32>, vector<256x20xf32>, vector<2x20xf32> -> vector<2x20xf32>
    %c260 = arith.constant 260 : index
    %c0_53 = arith.constant 0 : index
    %95 = vector.load %arg5[%c260, %c0_53] : memref<400x2560xbf16, #tpu.memory_space<vmem>>, vector<20x2560xbf16>
    %96 = arith.extf %95 : vector<20x2560xbf16> to vector<20x2560xf32>
    %cst_54 = arith.constant dense<0.000000e+00> : vector<2x2560xf32>
    %97 = tpu.matmul %94, %96, %cst_54 {dimension_numbers = #tpu.dot_dimension_numbers<[1], [0], [0], [1], [0, 0, 1, 1], [], []>} : vector<2x20xf32>, vector<20x2560xf32>, vector<2x2560xf32> -> vector<2x2560xf32>
    %98 = arith.addf %92, %97 : vector<2x2560xf32>
    %99 = vector.extract_strided_slice %11 {offsets = [0, 3584], sizes = [2, 256], strides = [1, 1]} : vector<2x5120xf32> to vector<2x256xf32>
    %cst_55 = arith.constant dense<0.000000e+00> : vector<2x20xf32>
    %100 = tpu.matmul %99, %13, %cst_55 {dimension_numbers = #tpu.dot_dimension_numbers<[1], [0], [0], [1], [0, 0, 1, 1], [], []>} : vector<2x256xf32>, vector<256x20xf32>, vector<2x20xf32> -> vector<2x20xf32>
    %c280 = arith.constant 280 : index
    %c0_56 = arith.constant 0 : index
    %101 = vector.load %arg5[%c280, %c0_56] : memref<400x2560xbf16, #tpu.memory_space<vmem>>, vector<20x2560xbf16>
    %102 = arith.extf %101 : vector<20x2560xbf16> to vector<20x2560xf32>
    %cst_57 = arith.constant dense<0.000000e+00> : vector<2x2560xf32>
    %103 = tpu.matmul %100, %102, %cst_57 {dimension_numbers = #tpu.dot_dimension_numbers<[1], [0], [0], [1], [0, 0, 1, 1], [], []>} : vector<2x20xf32>, vector<20x2560xf32>, vector<2x2560xf32> -> vector<2x2560xf32>
    %104 = arith.addf %98, %103 : vector<2x2560xf32>
    %105 = vector.extract_strided_slice %11 {offsets = [0, 3840], sizes = [2, 256], strides = [1, 1]} : vector<2x5120xf32> to vector<2x256xf32>
    %cst_58 = arith.constant dense<0.000000e+00> : vector<2x20xf32>
    %106 = tpu.matmul %105, %13, %cst_58 {dimension_numbers = #tpu.dot_dimension_numbers<[1], [0], [0], [1], [0, 0, 1, 1], [], []>} : vector<2x256xf32>, vector<256x20xf32>, vector<2x20xf32> -> vector<2x20xf32>
    %c300 = arith.constant 300 : index
    %c0_59 = arith.constant 0 : index
    %107 = vector.load %arg5[%c300, %c0_59] : memref<400x2560xbf16, #tpu.memory_space<vmem>>, vector<20x2560xbf16>
    %108 = arith.extf %107 : vector<20x2560xbf16> to vector<20x2560xf32>
    %cst_60 = arith.constant dense<0.000000e+00> : vector<2x2560xf32>
    %109 = tpu.matmul %106, %108, %cst_60 {dimension_numbers = #tpu.dot_dimension_numbers<[1], [0], [0], [1], [0, 0, 1, 1], [], []>} : vector<2x20xf32>, vector<20x2560xf32>, vector<2x2560xf32> -> vector<2x2560xf32>
    %110 = arith.addf %104, %109 : vector<2x2560xf32>
    %111 = vector.extract_strided_slice %11 {offsets = [0, 4096], sizes = [2, 256], strides = [1, 1]} : vector<2x5120xf32> to vector<2x256xf32>
    %cst_61 = arith.constant dense<0.000000e+00> : vector<2x20xf32>
    %112 = tpu.matmul %111, %13, %cst_61 {dimension_numbers = #tpu.dot_dimension_numbers<[1], [0], [0], [1], [0, 0, 1, 1], [], []>} : vector<2x256xf32>, vector<256x20xf32>, vector<2x20xf32> -> vector<2x20xf32>
    %c320 = arith.constant 320 : index
    %c0_62 = arith.constant 0 : index
    %113 = vector.load %arg5[%c320, %c0_62] : memref<400x2560xbf16, #tpu.memory_space<vmem>>, vector<20x2560xbf16>
    %114 = arith.extf %113 : vector<20x2560xbf16> to vector<20x2560xf32>
    %cst_63 = arith.constant dense<0.000000e+00> : vector<2x2560xf32>
    %115 = tpu.matmul %112, %114, %cst_63 {dimension_numbers = #tpu.dot_dimension_numbers<[1], [0], [0], [1], [0, 0, 1, 1], [], []>} : vector<2x20xf32>, vector<20x2560xf32>, vector<2x2560xf32> -> vector<2x2560xf32>
    %116 = arith.addf %110, %115 : vector<2x2560xf32>
    %117 = vector.extract_strided_slice %11 {offsets = [0, 4352], sizes = [2, 256], strides = [1, 1]} : vector<2x5120xf32> to vector<2x256xf32>
    %cst_64 = arith.constant dense<0.000000e+00> : vector<2x20xf32>
    %118 = tpu.matmul %117, %13, %cst_64 {dimension_numbers = #tpu.dot_dimension_numbers<[1], [0], [0], [1], [0, 0, 1, 1], [], []>} : vector<2x256xf32>, vector<256x20xf32>, vector<2x20xf32> -> vector<2x20xf32>
    %c340 = arith.constant 340 : index
    %c0_65 = arith.constant 0 : index
    %119 = vector.load %arg5[%c340, %c0_65] : memref<400x2560xbf16, #tpu.memory_space<vmem>>, vector<20x2560xbf16>
    %120 = arith.extf %119 : vector<20x2560xbf16> to vector<20x2560xf32>
    %cst_66 = arith.constant dense<0.000000e+00> : vector<2x2560xf32>
    %121 = tpu.matmul %118, %120, %cst_66 {dimension_numbers = #tpu.dot_dimension_numbers<[1], [0], [0], [1], [0, 0, 1, 1], [], []>} : vector<2x20xf32>, vector<20x2560xf32>, vector<2x2560xf32> -> vector<2x2560xf32>
    %122 = arith.addf %116, %121 : vector<2x2560xf32>
    %123 = vector.extract_strided_slice %11 {offsets = [0, 4608], sizes = [2, 256], strides = [1, 1]} : vector<2x5120xf32> to vector<2x256xf32>
    %cst_67 = arith.constant dense<0.000000e+00> : vector<2x20xf32>
    %124 = tpu.matmul %123, %13, %cst_67 {dimension_numbers = #tpu.dot_dimension_numbers<[1], [0], [0], [1], [0, 0, 1, 1], [], []>} : vector<2x256xf32>, vector<256x20xf32>, vector<2x20xf32> -> vector<2x20xf32>
    %c360 = arith.constant 360 : index
    %c0_68 = arith.constant 0 : index
    %125 = vector.load %arg5[%c360, %c0_68] : memref<400x2560xbf16, #tpu.memory_space<vmem>>, vector<20x2560xbf16>
    %126 = arith.extf %125 : vector<20x2560xbf16> to vector<20x2560xf32>
    %cst_69 = arith.constant dense<0.000000e+00> : vector<2x2560xf32>
    %127 = tpu.matmul %124, %126, %cst_69 {dimension_numbers = #tpu.dot_dimension_numbers<[1], [0], [0], [1], [0, 0, 1, 1], [], []>} : vector<2x20xf32>, vector<20x2560xf32>, vector<2x2560xf32> -> vector<2x2560xf32>
    %128 = arith.addf %122, %127 : vector<2x2560xf32>
    %129 = vector.extract_strided_slice %11 {offsets = [0, 4864], sizes = [2, 256], strides = [1, 1]} : vector<2x5120xf32> to vector<2x256xf32>
    %cst_70 = arith.constant dense<0.000000e+00> : vector<2x20xf32>
    %130 = tpu.matmul %129, %13, %cst_70 {dimension_numbers = #tpu.dot_dimension_numbers<[1], [0], [0], [1], [0, 0, 1, 1], [], []>} : vector<2x256xf32>, vector<256x20xf32>, vector<2x20xf32> -> vector<2x20xf32>
    %c380 = arith.constant 380 : index
    %c0_71 = arith.constant 0 : index
    %131 = vector.load %arg5[%c380, %c0_71] : memref<400x2560xbf16, #tpu.memory_space<vmem>>, vector<20x2560xbf16>
    %132 = arith.extf %131 : vector<20x2560xbf16> to vector<20x2560xf32>
    %cst_72 = arith.constant dense<0.000000e+00> : vector<2x2560xf32>
    %133 = tpu.matmul %130, %132, %cst_72 {dimension_numbers = #tpu.dot_dimension_numbers<[1], [0], [0], [1], [0, 0, 1, 1], [], []>} : vector<2x20xf32>, vector<20x2560xf32>, vector<2x2560xf32> -> vector<2x2560xf32>
    %134 = arith.addf %128, %133 : vector<2x2560xf32>
    %c0_73 = arith.constant 0 : index
    %c0_74 = arith.constant 0 : index
    %135 = vector.load %arg6[%c0_73, %c0_74] : memref<1x2560xf32, #tpu.memory_space<vmem>>, vector<1x2560xf32>
    %136 = vector.broadcast %135 : vector<1x2560xf32> to vector<2x2560xf32>
    %137 = arith.addf %134, %136 : vector<2x2560xf32>
    %cst_75 = arith.constant 0.000000e+00 : f32
    %138 = vector.broadcast %cst_75 : f32 to vector<2x2560xf32>
    %139 = arith.maximumf %137, %138 : vector<2x2560xf32>
    %c0_76 = arith.constant 0 : index
    %c0_77 = arith.constant 0 : index
    %140 = vector.load %arg7[%c0_76, %c0_77] : memref<2560x10xbf16, #tpu.memory_space<vmem>>, vector<2560x10xbf16>
    %141 = arith.extf %140 : vector<2560x10xbf16> to vector<2560x10xf32>
    %cst_78 = arith.constant dense<0.000000e+00> : vector<2x10xf32>
    %142 = tpu.matmul %139, %141, %cst_78 {dimension_numbers = #tpu.dot_dimension_numbers<[1], [0], [0], [1], [0, 0, 1, 1], [], []>} : vector<2x2560xf32>, vector<2560x10xf32>, vector<2x10xf32> -> vector<2x10xf32>
    %c0_79 = arith.constant 0 : index
    %c0_80 = arith.constant 0 : index
    %143 = vector.load %arg8[%c0_79, %c0_80] : memref<1x10xf32, #tpu.memory_space<vmem>>, vector<1x10xf32>
    %144 = vector.broadcast %143 : vector<1x10xf32> to vector<2x10xf32>
    %145 = arith.addf %142, %144 : vector<2x10xf32>
    %c0_81 = arith.constant 0 : index
    %c0_82 = arith.constant 0 : index
    %146 = vector.load %arg9[%c0_81, %c0_82] : memref<2x10xf32, #tpu.memory_space<vmem>>, vector<2x10xf32>
    tpu.vector_store %arg9[%c0_81, %c0_82], %145 {strides = array<i32>} : memref<2x10xf32, #tpu.memory_space<vmem>>, vector<2x10xf32>,
    return
  }
}

</mosaic_0001>

<bundles_post_ra>
// kernel: s2convnet_forward.1
= control target key start
LH: loop header
LB: loop body
LE: loop exit
PB: predicated region body
PF: predicated region fallthrough
CT: control target
= control target key end

     0   :  { %14 = vsyncpa [#allocation3], 0  ;;  %s34409_s0 = inlined_call_operand.vmem [shape: f32[2,144], index: 0, kind: input, shape index: {}]   ;;  %s34410_s1 = inlined_call_operand.vmem [shape: bf16[144,18], index: 1, kind: input, shape index: {}]   ;;  %s34411_s2 = inlined_call_operand.hbm [shape: bf16[18,5120], index: 2, kind: input, shape index: {}]   ;;  %s34412_s3 = inlined_call_operand.hbm [shape: f32[1,5120], index: 3, kind: input, shape index: {}]   ;;  %s34413_s4 = inlined_call_operand.vmem [shape: bf16[256,20], index: 4, kind: input, shape index: {}]   ;;  %s34414_s5 = inlined_call_operand.hbm [shape: bf16[400,2560], index: 5, kind: input, shape index: {}]   ;;  %s34415_s6 = inlined_call_operand.hbm [shape: f32[1,2560], index: 6, kind: input, shape index: {}]   ;;  %s34416_s7 = inlined_call_operand.vmem [shape: bf16[2560,10], index: 7, kind: input, shape index: {}]   ;;  %s34417_s8 = inlined_call_operand.hbm [shape: f32[1,10], index: 8, kind: input, shape index: {}]   ;;  %s34418_s9 = inlined_call_operand.hbm [shape: f32[2,10], index: 9, kind: output, shape index: {}]  }
   0x1   :  { %15 = vsyncpa [#allocation6], 0 }
   0x2   :  { %16 = vsyncpa [#allocation9], 0 }
   0x3   :  { %17 = vsyncpa [#allocation4], 0  ;;  %s30263_s30 = smov [#allocation5]   ;;  %s30264_s11 = smov [#allocation8]  }
   0x4   :  { %s40_s10 = sshll.u32 %s30263_s30, 4  ;;  %s64_s12 = sshll.u32 %s30264_s11, 4  ;;  %s41_s10 = int_to_ptr.vmem [resolvable:$true] %s40_s10  ;;  %s65_s12 = int_to_ptr.vmem [resolvable:$true] %s64_s12 }
   0x5   :  { %s30123_s15 = scalar_lea.hbm %s34412_s3, 640 }
   0x6   :  { %p30124_p0 = scmp.ne.s32.totalorder %s34412_s3, %s30123_s15  ;;  %p30127_p1 = scmp.lt.u32.totalorder %s30123_s15, %s34412_s3 }
   0x8   :  { %p30129_p2 = pnand %p30127_p1, %p30124_p0 }
   0xa   :  { %30132 = shalt.err (!%p30129_p2)
}
   0xb   :  { %s30133_s20 = scalar_lea.vmem %s41_s10, 640  ;;  %p30138_p4 = scmp.lt.s32.totalorder %s41_s10, %s41_s10 }
   0xc   :  { %p30134_p3 = scmp.ne.s32.totalorder %s41_s10, %s30133_s20  ;;  %p30139_p5 = scmp.lt.s32.totalorder %s30133_s20, %s30133_s20 }
   0xe   :  { %p30140_p6 = por %p30139_p5, %p30138_p4 }
  0x10   :  { %p30141_p7 = pnand %p30140_p6, %p30134_p3 }
  0x12   :  { %30144 = shalt.err (!%p30141_p7)
}
  0x13   :  { %43 = dma.hbm_to_vmem [thread:$0]  %s34412_s3, 640, %s41_s10, [#allocation6]  }
  0x14   :  { %s30145_s25 = scalar_lea.hbm %s34415_s6, 320 }
  0x15   :  { %p30146_p8 = scmp.ne.s32.totalorder %s34415_s6, %s30145_s25  ;;  %p30149_p9 = scmp.lt.u32.totalorder %s30145_s25, %s34415_s6 }
  0x17   :  { %p30151_p10 = pnand %p30149_p9, %p30146_p8 }
  0x19   :  { %30154 = shalt.err (!%p30151_p10)
}
  0x1a   :  { %s30155_s30 = scalar_lea.vmem %s65_s12, 320  ;;  %p30160_p12 = scmp.lt.s32.totalorder %s65_s12, %s65_s12 }
  0x1b   :  { %p30156_p11 = scmp.ne.s32.totalorder %s65_s12, %s30155_s30  ;;  %p30161_p13 = scmp.lt.s32.totalorder %s30155_s30, %s30155_s30 }
  0x1d   :  { %p30162_p0 = por %p30161_p13, %p30160_p12 }
  0x1f   :  { %p30163_p1 = pnand %p30162_p0, %p30156_p11 }
  0x21   :  { %30166 = shalt.err (!%p30163_p1)
}
  0x22   :  { %67 = dma.hbm_to_vmem [thread:$0]  %s34415_s6, 320, %s65_s12, [#allocation9]  }
  0x23   :  { %s30265_s11 = smov [#allocation2]   ;;  %s30167_s16 = scalar_lea.hbm %s34411_s2, 7680 }
  0x24   :  { %s27_s13 = sshll.u32 %s30265_s11, 4  ;;  %p30168_p2 = scmp.ne.s32.totalorder %s34411_s2, %s30167_s16  ;;  %s28_s13 = int_to_ptr.vmem [resolvable:$true] %s27_s13 }
  0x25   :  { %p30171_p3 = scmp.lt.u32.totalorder %s30167_s16, %s34411_s2 }
  0x27   :  { %p30173_p4 = pnand %p30171_p3, %p30168_p2 }
  0x29   :  { %30176 = shalt.err (!%p30173_p4)
}
  0x2a   :  { %s30177_s21 = scalar_lea.vmem %s28_s13, 7680  ;;  %p30182_p6 = scmp.lt.s32.totalorder %s28_s13, %s28_s13 }
  0x2b   :  { %p30178_p5 = scmp.ne.s32.totalorder %s28_s13, %s30177_s21  ;;  %p30183_p7 = scmp.lt.s32.totalorder %s30177_s21, %s30177_s21 }
  0x2d   :  { %p30184_p8 = por %p30183_p7, %p30182_p6 }
  0x2f   :  { %p30185_p9 = pnand %p30184_p8, %p30178_p5 }
  0x31   :  { %30188 = shalt.err (!%p30185_p9)
}
  0x32   :  { %s30266_s6 = smov 2560   ;;  %s30267_s12 = smov 160  }
  0x33   :  { %33 = dma.hbm_to_vmem [thread:$0]  %s34411_s2, 7680, %s28_s13, [#allocation3], %s30266_s6, %s30266_s6, %s30267_s12  }
  0x34   :  { %s30268_s24 = smov [#allocation7]   ;;  %s30189_s28 = scalar_lea.hbm %s34414_s5, 64000 }
  0x35   :  { %s51_s25 = sshll.u32 %s30268_s24, 4  ;;  %p30190_p10 = scmp.ne.s32.totalorder %s34414_s5, %s30189_s28  ;;  %s52_s25 = int_to_ptr.vmem [resolvable:$true] %s51_s25 }
  0x36   :  { %p30193_p11 = scmp.lt.u32.totalorder %s30189_s28, %s34414_s5 }
  0x38   :  { %p30195_p12 = pnand %p30193_p11, %p30190_p10 }
  0x3a   :  { %30198 = shalt.err (!%p30195_p12)
}
  0x3b   :  { %s30199_s11 = scalar_lea.vmem %s52_s25, 64000  ;;  %p30204_p0 = scmp.lt.s32.totalorder %s52_s25, %s52_s25 }
  0x3c   :  { %p30200_p13 = scmp.ne.s32.totalorder %s52_s25, %s30199_s11  ;;  %p30205_p1 = scmp.lt.s32.totalorder %s30199_s11, %s30199_s11 }
  0x3e   :  { %p30206_p2 = por %p30205_p1, %p30204_p0 }
  0x40   :  { %p30207_p3 = pnand %p30206_p2, %p30200_p13 }
  0x42   :  { %30210 = shalt.err (!%p30207_p3)
}
  0x43   :  { %s30269_s2 = smov 1280   ;;  %s30270_s13 = smov 80  }
  0x44   :  { %57 = dma.hbm_to_vmem [thread:$0]  %s34414_s5, 64000, %s52_s25, [#allocation6], %s30269_s2, %s30269_s2, %s30270_s13  }
  0x45   :  { %s30271_s16 = smov [#allocation10]   ;;  %s30211_s20 = scalar_lea.hbm %s34417_s8, 16 }
  0x46   :  { %s76_s17 = sshll.u32 %s30271_s16, 4  ;;  %p30212_p4 = scmp.ne.s32.totalorder %s34417_s8, %s30211_s20  ;;  %s77_s17 = int_to_ptr.vmem [resolvable:$true] %s76_s17 }
  0x47   :  { %p30215_p5 = scmp.lt.u32.totalorder %s30211_s20, %s34417_s8 }
  0x49   :  { %p30217_p6 = pnand %p30215_p5, %p30212_p4 }
  0x4b   :  { %30220 = shalt.err (!%p30217_p6)
}
  0x4c   :  { %s30221_s23 = scalar_lea.vmem %s77_s17, 16  ;;  %s30225_s5 = scalar_lea.vmem %s77_s17, 32 }
  0x4d   :  { %p30222_p7 = scmp.ne.s32.totalorder %s77_s17, %s30221_s23  ;;  %p30226_p8 = scmp.lt.s32.totalorder %s77_s17, %s77_s17 }
  0x4e   :  { %p30227_p9 = scmp.lt.s32.totalorder %s30225_s5, %s30221_s23 }
  0x50   :  { %p30228_p10 = por %p30227_p9, %p30226_p8 }
  0x52   :  { %p30229_p11 = pnand %p30228_p10, %p30222_p7 }
  0x54   :  { %30232 = shalt.err (!%p30229_p11)
}
  0x55   :  { %79 = dma.hbm_to_vmem [thread:$0]  %s34417_s8, 16, %s77_s17, [#allocation9]  }
  0x56   :  { %30255 = dma.done.wait [#allocation3], 7680  }
  0x57   :  { %30256 = vsyncadd [#allocation3], 4294959616 }
  0x58   :  { %30257 = dma.done.wait [#allocation6], 64640  }
  0x59   :  { %30258 = vsyncadd [#allocation6], 4294902656 }
  0x5a   :  { %30259 = dma.done.wait [#allocation9], 336  }
  0x5b   :  { %30260 = vsyncadd [#allocation9], 4294966960  ;;  %v30272_v0 = vmov 0.0|0.0   ;;  %v25252_v1 = vld [vmem:[%s34410_s1] sm:$0xff]   ;;  %v25991_v2 = vld [vmem:[%s34410_s1 + $0x8] sm:$0xff]   ;;  %vm142_vm0 = vcmask 130048  }
  0x5c   :  { %27223 = vmatprep.subr.bf16.mxu0 %v30272_v0  ;;  %v24588_v3 = vld.sshfl [vmem:[%s34409_s0] sm:$0x33 pattern:$0x76325410]  ;;  %v25992_v10 = vld [vmem:[%s34410_s1 + $0x10] sm:$0xff]   ;;  %vm609_vm1 = vcmask 1041408  }
  0x5d   :  { %27225 = vmatpush1.bf16.msra.mxu0 %v25252_v1  ;;  %v215_v4 = vld [vmem:[#allocation2] sm:$0xff]  ;;  %v140_v6 = vcombine.high %v24588_v3, %v24588_v3  ;;  %v25993_v12 = vld [vmem:[%s34410_s1 + $0x18] sm:$0xff]   ;;  %v25995_v15 = vld [vmem:[%s34410_s1 + $0x28] sm:$0xff]   ;;  %v34419_v34 = vmov 0.0   ;;  %vm605_vm2 = vcmask 146432   ;;  %vm2634_vm3 = vcmask 1043456  }
  0x5e   :  { %27226 = vmatprep.subr.bf16.mxu0 %v30272_v0  ;;  %v235_v5 = vld [vmem:[#allocation2 + $0xa0] sm:$0xff]  ;;  %v25996_v16 = vld [vmem:[%s34410_s1 + $0x30] sm:$0xff]   ;;  %v25997_v17 = vld [vmem:[%s34410_s1 + $0x38] sm:$0xff]   ;;  %794 = vmatprep.mubr.f32.mxu1 %v34419_v34  ;;  %vm2775_vm4 = vcmask 162816   ;;  %vm24569_vm5 = vcmask 74752  }
  0x5f   :  { %v29470_v7 = vcombine.high %v215_v4, %v235_v5  ;;  %v29471_v8 = vcombine.low %v215_v4, %v235_v5  ;;  %v255_v9 = vld [vmem:[#allocation2 + $0x140] sm:$0x11]  ;;  %24589 = vmatprep.mubr.msk.f32.mxu0 %vm142_vm0, %v140_v6  ;;  %v221_v18 = vld [vmem:[#allocation2 + $0x30] sm:$0xff]  ;;  %v216_v26 = vld [vmem:[#allocation2 + $0x8] sm:$0xff] }
  0x60   :  { %v356_v11 = vunpack.c.h.bf16 %v255_v9  ;;  %v355_v13 = vunpack.c.l.bf16 %v255_v9  ;;  %v25994_v14 = vld [vmem:[%s34410_s1 + $0x20] sm:$0xff]   ;;  %v241_v19 = vld [vmem:[#allocation2 + $0xd0] sm:$0xff]  ;;  %v236_v27 = vld [vmem:[#allocation2 + $0xa8] sm:$0xff] }
  0x61   :  { %27228 = vmatpush1.bf16.msra.mxu0 %v25991_v2  ;;  %27251 = vmatprep.subr.bf16.mxu1 %v29470_v7  ;;  %v25998_v20 = vld [vmem:[%s34410_s1 + $0x40] sm:$0xff]   ;;  %v261_v21 = vld [vmem:[#allocation2 + $0x170] sm:$0x11]  ;;  %v29482_v22 = vcombine.high %v221_v18, %v241_v19  ;;  %v29483_v23 = vcombine.low %v221_v18, %v241_v19  ;;  %v29472_v29 = vcombine.high %v216_v26, %v236_v27  ;;  %v256_v35 = vld [vmem:[#allocation2 + $0x148] sm:$0x11] }
  0x62   :  { %27229 = vmatprep.subr.bf16.mxu0 %v30272_v0  ;;  %27253 = vmatpush1.bf16.msra.mxu1 %v29471_v8  ;;  %v368_v24 = vunpack.c.h.bf16 %v261_v21  ;;  %v367_v25 = vunpack.c.l.bf16 %v261_v21  ;;  %v223_v28 = vld [vmem:[#allocation2 + $0x40] sm:$0xff]  ;;  %v29473_v31 = vcombine.low %v216_v26, %v236_v27  ;;  %v358_v37 = vunpack.c.h.bf16 %v256_v35  ;;  %v217_v40 = vld [vmem:[#allocation2 + $0x10] sm:$0xff]  ;;  %v218_v55 = vld [vmem:[#allocation2 + $0x18] sm:$0xff] }
  0x63   :  { %24590 = vmatprep.subr.msk.mxu1 %vm609_vm1, %v356_v11  ;;  %v243_v30 = vld [vmem:[#allocation2 + $0xe0] sm:$0xff]  ;;  %v237_v41 = vld [vmem:[#allocation2 + $0xb0] sm:$0xff]  ;;  %v357_v45 = vunpack.c.l.bf16 %v256_v35  ;;  %v238_v56 = vld [vmem:[#allocation2 + $0xb8] sm:$0xff] }
  0x64   :  { %v29486_v32 = vcombine.high %v223_v28, %v243_v30  ;;  %v29487_v33 = vcombine.low %v223_v28, %v243_v30  ;;  %v263_v36 = vld [vmem:[#allocation2 + $0x180] sm:$0x11]  ;;  %v225_v43 = vld [vmem:[#allocation2 + $0x50] sm:$0xff]  ;;  %v29474_v47 = vcombine.high %v217_v40, %v237_v41  ;;  %v29475_v51 = vcombine.low %v217_v40, %v237_v41  ;;  %v258_v62 = vld [vmem:[#allocation2 + $0x158] sm:$0x11] }
  0x65   :  { %27231 = vmatpush1.bf16.msra.mxu0 %v25992_v10  ;;  %v372_v38 = vunpack.c.h.bf16 %v263_v36  ;;  %v245_v44 = vld [vmem:[#allocation2 + $0xf0] sm:$0xff]  ;;  %v371_v46 = vunpack.c.l.bf16 %v263_v36  ;;  %v227_v57 = vld [vmem:[#allocation2 + $0x60] sm:$0xff]  ;;  %v29476_v61 = vcombine.high %v218_v55, %v238_v56  ;;  %v29477_v1 = vcombine.low %v218_v55, %v238_v56  ;;  %v220_v19 = vld [vmem:[#allocation2 + $0x28] sm:$0xff] }
  0x66   :  { %27232 = vmatprep.subr.bf16.mxu0 %v30272_v0  ;;  %24591 = vmatpush1.msk.msra.mxu1 %vm609_vm1, %v355_v13  ;;  %v257_v48 = vld [vmem:[#allocation2 + $0x150] sm:$0x11]  ;;  %v29490_v50 = vcombine.high %v225_v43, %v245_v44  ;;  %v29491_v52 = vcombine.low %v225_v43, %v245_v44  ;;  %v247_v58 = vld [vmem:[#allocation2 + $0x100] sm:$0xff]  ;;  %v361_v9 = vunpack.c.l.bf16 %v258_v62  ;;  %v260_v26 = vld [vmem:[#allocation2 + $0x168] sm:$0x11] }
  0x67   :  { %27255 = vmatprep.subr.bf16.mxu1 %v29472_v29  ;;  %v265_v49 = vld [vmem:[#allocation2 + $0x190] sm:$0x11]  ;;  %v360_v53 = vunpack.c.h.bf16 %v257_v48  ;;  %v359_v59 = vunpack.c.l.bf16 %v257_v48  ;;  %v267_v63 = vld [vmem:[#allocation2 + $0x1a0] sm:$0x11]  ;;  %v29495_v2 = vcombine.low %v227_v57, %v247_v58  ;;  %v242_v35 = vld [vmem:[#allocation2 + $0xd8] sm:$0xff] }
  0x68   :  { %v376_v54 = vunpack.c.h.bf16 %v265_v49  ;;  %v375_v60 = vunpack.c.l.bf16 %v265_v49  ;;  %v380_v4 = vunpack.c.h.bf16 %v267_v63  ;;  %v219_v5 = vld [vmem:[#allocation2 + $0x20] sm:$0xff]  ;;  %v229_v7 = vld [vmem:[#allocation2 + $0x70] sm:$0xff]  ;;  %v379_v10 = vunpack.c.l.bf16 %v267_v63  ;;  %v224_v49 = vld [vmem:[#allocation2 + $0x48] sm:$0xff] }
  0x69   :  { %27234 = vmatpush1.bf16.msra.mxu0 %v25993_v12  ;;  %v239_v6 = vld [vmem:[#allocation2 + $0xc0] sm:$0xff]  ;;  %v249_v8 = vld [vmem:[#allocation2 + $0x110] sm:$0xff] }
  0x6a   :  { %27235 = vmatprep.subr.bf16.mxu0 %v30272_v0  ;;  %v29478_v11 = vcombine.high %v219_v5, %v239_v6  ;;  %v259_v12 = vld [vmem:[#allocation2 + $0x160] sm:$0x11]  ;;  %v269_v13 = vld [vmem:[#allocation2 + $0x1b0] sm:$0x11] }
  0x6b   :  { %v384_v18 = vunpack.c.h.bf16 %v269_v13  ;;  %v231_v21 = vld [vmem:[#allocation2 + $0x80] sm:$0xff]  ;;  %v233_v36 = vld [vmem:[#allocation2 + $0x90] sm:$0xff] }
  0x6c   :  { %v271_v27 = vld [vmem:[#allocation2 + $0x1c0] sm:$0x11]  ;;  %v273_v43 = vld [vmem:[#allocation2 + $0x1d0] sm:$0x11] }
  0x6d   :  { %27237 = vmatpush1.bf16.msra.mxu0 %v25994_v14  ;;  %v29498_v14 = vcombine.high %v229_v7, %v249_v8  ;;  %v387_v40 = vunpack.c.l.bf16 %v271_v27  ;;  %v392_v48 = vunpack.c.h.bf16 %v273_v43 }
  0x6e   :  { %27238 = vmatprep.subr.bf16.mxu0 %v30272_v0 }
  0x71   :  { %27240 = vmatpush1.bf16.msra.mxu0 %v25995_v15  ;;  %v29479_v15 = vcombine.low %v219_v5, %v239_v6  ;;  %v30511_v5 = vld [vmem:[%s34413_s4 + $0x8] sm:$0xff]   ;;  %v30518_v6 = vld [vmem:[%s34413_s4 + $0x50] sm:$0xff]  }
  0x72   :  { %27241 = vmatprep.subr.bf16.mxu0 %v30272_v0 }
  0x75   :  { %27243 = vmatpush1.bf16.msra.mxu0 %v25996_v16  ;;  %v29499_v16 = vcombine.low %v229_v7, %v249_v8  ;;  %v268_v8 = vld [vmem:[#allocation2 + $0x1a8] sm:$0x11] }
  0x76   :  { %27244 = vmatprep.subr.bf16.mxu0 %v30272_v0 }
  0x79   :  { %27246 = vmatpush1.bf16.msra.mxu0 %v25997_v17  ;;  %v364_v17 = vunpack.c.h.bf16 %v259_v12 }
  0x7a   :  { %27247 = vmatprep.subr.bf16.mxu0 %v30272_v0  ;;  %v29494_v0 = vcombine.high %v227_v57, %v247_v58  ;;  %v226_v57 = vld [vmem:[#allocation2 + $0x58] sm:$0xff] }
  0x7b   :  { %v246_v58 = vld [vmem:[#allocation2 + $0xf8] sm:$0xff] }
  0x7c   :  { %v29492_v63 = vcombine.high %v226_v57, %v246_v58 }
  0x7d   :  { %27249 = vmatpush1.bf16.msra.mxu0 %v25998_v20  ;;  %v240_v20 = vld [vmem:[#allocation2 + $0xc8] sm:$0xff] }
  0x7e   :  { %27275 = vmatprep.subr.bf16.mxu0 %v29482_v22  ;;  %v251_v22 = vld [vmem:[#allocation2 + $0x120] sm:$0xff]  ;;  %v29481_v29 = vcombine.low %v220_v19, %v240_v20 }
  0x7f   :  { %v29502_v28 = vcombine.high %v231_v21, %v251_v22  ;;  %v29503_v30 = vcombine.low %v231_v21, %v251_v22  ;;  %v232_v21 = vld [vmem:[#allocation2 + $0x88] sm:$0xff] }
  0x80   :  { %210 = vmatmul.mubr.f32.vlgmr.msra.gmra.mrb[0].mxu0 %v24588_v3  ;;  %v362_v3 = vunpack.c.h.bf16 %v258_v62  ;;  %v30495_v62 = vld [vmem:[%s34413_s4] sm:$0xff]   ;;  %v252_v22 = vld [vmem:[#allocation2 + $0x128] sm:$0xff] }
  0x81   :  { %27277 = vmatpush1.bf16.msra.mxu0 %v29483_v23  ;;  %1220 = vmatprep.mubr.f32.mxu0 %v34419_v34  ;;  %v363_v23 = vunpack.c.l.bf16 %v259_v12  ;;  %v230_v12 = vld [vmem:[#allocation2 + $0x78] sm:$0xff] }
  0x82   :  { %24608 = vmatprep.subr.msk.mxu0 %vm609_vm1, %v368_v24  ;;  %v383_v24 = vunpack.c.l.bf16 %v269_v13  ;;  %v250_v13 = vld [vmem:[#allocation2 + $0x118] sm:$0xff] }
  0x85   :  { %24609 = vmatpush1.msk.msra.mxu0 %vm609_vm1, %v367_v25  ;;  %v29480_v25 = vcombine.high %v220_v19, %v240_v20  ;;  %v29501_v19 = vcombine.low %v230_v12, %v250_v13 }
  0x86   :  { %27283 = vmatprep.subr.bf16.mxu0 %v29486_v32  ;;  %v388_v32 = vunpack.c.h.bf16 %v271_v27  ;;  %v29504_v27 = vcombine.high %v232_v21, %v252_v22 }
 0x153   :  { %v30421_v39 = vpop.f32.mrb[0].mxu0 }
 0x154   :  { %v213_v42 = vpop.f32.mrb[1].mxu0  ;;  %24592 = vmatmul.mubr.msk.f32.vlgmr.msra.gmra.mrb[0].mxu1 %vm605_vm2, %v30421_v39  ;;  %24610 = vmatmul.mubr.msk.f32.vlgmr.msra.gmra.mrb[2].mxu0 %vm605_vm2, %v30421_v39 }
 0x155   :  { %27257 = vmatpush1.bf16.msra.mxu1 %v29473_v31  ;;  %27285 = vmatpush1.bf16.msra.mxu0 %v29487_v33  ;;  %v366_v31 = vunpack.c.h.bf16 %v260_v26  ;;  %v222_v33 = vld [vmem:[#allocation2 + $0x38] sm:$0xff] }
 0x156   :  { %24593 = vmatprep.subr.msk.mxu1 %vm609_vm1, %v358_v37  ;;  %24614 = vmatprep.subr.msk.mxu0 %vm609_vm1, %v372_v38  ;;  %v253_v37 = vld [vmem:[#allocation2 + $0x130] sm:$0xff]  ;;  %v365_v38 = vunpack.c.l.bf16 %v260_v26  ;;  %v29484_v41 = vcombine.high %v222_v33, %v242_v35  ;;  %v262_v42 = vld [vmem:[#allocation2 + $0x178] sm:$0x11]  ;;  %v272_v26 = vld [vmem:[#allocation2 + $0x1c8] sm:$0x11] }
 0x157   :  { %865 = vmatprep.mubr.f32.mxu1 %v34419_v34  ;;  %1362 = vmatprep.mubr.f32.mxu0 %v34419_v34  ;;  %v29506_v44 = vcombine.high %v233_v36, %v253_v37 }
 0x159   :  { %24594 = vmatpush1.msk.msra.mxu1 %vm609_vm1, %v357_v45  ;;  %24615 = vmatpush1.msk.msra.mxu0 %vm609_vm1, %v371_v46  ;;  %v29485_v45 = vcombine.low %v222_v33, %v242_v35  ;;  %v29507_v46 = vcombine.low %v233_v36, %v253_v37  ;;  %v26011_v33 = vld [vmem:[%s34413_s4 + $0x68] sm:$0xff]   ;;  %v389_v35 = vunpack.c.l.bf16 %v272_v26  ;;  %v274_v36 = vld [vmem:[#allocation2 + $0x1d8] sm:$0x11] }
 0x15a   :  { %24595 = vmatmul.mubr.msk.f32.vlgmr.msra.gmra.mrb[2].mxu1 %vm605_vm2, %v30421_v39  ;;  %27259 = vmatprep.subr.bf16.mxu1 %v29474_v47  ;;  %v370_v47 = vunpack.c.h.bf16 %v262_v42 }
 0x15b   :  { %24616 = vmatmul.mubr.msk.f32.vlgmr.msra.gmra.mrb[4].mxu0 %vm605_vm2, %v30421_v39  ;;  %27291 = vmatprep.subr.bf16.mxu0 %v29490_v50  ;;  %v244_v50 = vld [vmem:[#allocation2 + $0xe8] sm:$0xff] }
 0x15c   :  { %27261 = vmatpush1.bf16.msra.mxu1 %v29475_v51  ;;  %27293 = vmatpush1.bf16.msra.mxu0 %v29491_v52  ;;  %v369_v51 = vunpack.c.l.bf16 %v262_v42  ;;  %v391_v52 = vunpack.c.l.bf16 %v273_v43  ;;  %v29489_v55 = vcombine.low %v224_v49, %v244_v50  ;;  %v26012_v42 = vld [vmem:[%s34413_s4 + $0x70] sm:$0xff]   ;;  %v393_v43 = vunpack.c.l.bf16 %v274_v36 }
 0x15d   :  { %24596 = vmatprep.subr.msk.mxu1 %vm609_vm1, %v360_v53  ;;  %24620 = vmatprep.subr.msk.mxu0 %vm609_vm1, %v376_v54  ;;  %v264_v53 = vld [vmem:[#allocation2 + $0x188] sm:$0x11]  ;;  %v29488_v54 = vcombine.high %v224_v49, %v244_v50  ;;  %v30601_v50 = vld [vmem:[#allocation5] sm:$0xff] }
 0x15e   :  { %936 = vmatprep.mubr.f32.mxu1 %v34419_v34  ;;  %1504 = vmatprep.mubr.f32.mxu0 %v34419_v34  ;;  %v374_v56 = vunpack.c.h.bf16 %v264_v53 }
 0x160   :  { %24597 = vmatpush1.msk.msra.mxu1 %vm609_vm1, %v359_v59  ;;  %24621 = vmatpush1.msk.msra.mxu0 %vm609_vm1, %v375_v60  ;;  %v30488_v59 = vld [vmem:[%s34413_s4 + $0x40] sm:$0xff]   ;;  %v373_v60 = vunpack.c.l.bf16 %v264_v53 }
 0x161   :  { %24598 = vmatmul.mubr.msk.f32.vlgmr.msra.gmra.mrb[4].mxu1 %vm605_vm2, %v30421_v39  ;;  %27263 = vmatprep.subr.bf16.mxu1 %v29476_v61  ;;  %v266_v61 = vld [vmem:[#allocation2 + $0x198] sm:$0x11] }
 0x162   :  { %24622 = vmatmul.mubr.msk.f32.vlgmr.msra.gmra.mrb[6].mxu0 %vm605_vm2, %v30421_v39  ;;  %27299 = vmatprep.subr.bf16.mxu0 %v29494_v0  ;;  %v30502_v0 = vld [vmem:[%s34413_s4 + $0x48] sm:$0xff]   ;;  %v377_v7 = vunpack.c.l.bf16 %v266_v61 }
 0x163   :  { %27265 = vmatpush1.bf16.msra.mxu1 %v29477_v1  ;;  %27301 = vmatpush1.bf16.msra.mxu0 %v29495_v2  ;;  %v29493_v1 = vcombine.low %v226_v57, %v246_v58  ;;  %v378_v2 = vunpack.c.h.bf16 %v266_v61 }
 0x164   :  { %24599 = vmatprep.subr.msk.mxu1 %vm609_vm1, %v362_v3  ;;  %24626 = vmatprep.subr.msk.mxu0 %vm609_vm1, %v380_v4  ;;  %v228_v3 = vld [vmem:[#allocation2 + $0x68] sm:$0xff] }
 0x165   :  { %1007 = vmatprep.mubr.f32.mxu1 %v34419_v34  ;;  %1646 = vmatprep.mubr.f32.mxu0 %v34419_v34  ;;  %v248_v4 = vld [vmem:[#allocation2 + $0x108] sm:$0xff] }
 0x167   :  { %24600 = vmatpush1.msk.msra.mxu1 %vm609_vm1, %v361_v9  ;;  %24627 = vmatpush1.msk.msra.mxu0 %vm609_vm1, %v379_v10  ;;  %v29496_v9 = vcombine.high %v228_v3, %v248_v4  ;;  %v29497_v10 = vcombine.low %v228_v3, %v248_v4 }
 0x168   :  { %24601 = vmatmul.mubr.msk.f32.vlgmr.msra.gmra.mrb[6].mxu1 %vm605_vm2, %v30421_v39  ;;  %27267 = vmatprep.subr.bf16.mxu1 %v29478_v11  ;;  %v382_v11 = vunpack.c.h.bf16 %v268_v8 }
 0x169   :  { %24628 = vmatmul.mubr.msk.f32.vlgmr.msra.gmra.mrb[8].mxu0 %vm605_vm2, %v30421_v39  ;;  %27307 = vmatprep.subr.bf16.mxu0 %v29498_v14  ;;  %v30528_v14 = vld [vmem:[%s34413_s4 + $0x10] sm:$0xff]  }
 0x16a   :  { %27269 = vmatpush1.bf16.msra.mxu1 %v29479_v15  ;;  %27309 = vmatpush1.bf16.msra.mxu0 %v29499_v16  ;;  %v30535_v15 = vld [vmem:[%s34413_s4 + $0x58] sm:$0xff]   ;;  %v381_v16 = vunpack.c.l.bf16 %v268_v8 }
 0x16b   :  { %24602 = vmatprep.subr.msk.mxu1 %vm609_vm1, %v364_v17  ;;  %24632 = vmatprep.subr.msk.mxu0 %vm609_vm1, %v384_v18  ;;  %v270_v17 = vld [vmem:[#allocation2 + $0x1b8] sm:$0x11]  ;;  %v29500_v18 = vcombine.high %v230_v12, %v250_v13 }
 0x16c   :  { %1078 = vmatprep.mubr.f32.mxu1 %v34419_v34  ;;  %1788 = vmatprep.mubr.f32.mxu0 %v34419_v34  ;;  %v386_v20 = vunpack.c.h.bf16 %v270_v17 }
 0x16e   :  { %24603 = vmatpush1.msk.msra.mxu1 %vm609_vm1, %v363_v23  ;;  %24633 = vmatpush1.msk.msra.mxu0 %vm609_vm1, %v383_v24  ;;  %v26001_v23 = vld [vmem:[%s34413_s4 + $0x18] sm:$0xff]   ;;  %v26010_v24 = vld [vmem:[%s34413_s4 + $0x60] sm:$0xff]  }
 0x16f   :  { %24604 = vmatmul.mubr.msk.f32.vlgmr.msra.gmra.mrb[8].mxu1 %vm605_vm2, %v30421_v39  ;;  %27271 = vmatprep.subr.bf16.mxu1 %v29480_v25  ;;  %v385_v25 = vunpack.c.l.bf16 %v270_v17 }
 0x170   :  { %24634 = vmatmul.mubr.msk.f32.vlgmr.msra.gmra.mrb[10].mxu0 %vm605_vm2, %v30421_v39  ;;  %27315 = vmatprep.subr.bf16.mxu0 %v29502_v28  ;;  %v29505_v28 = vcombine.low %v232_v21, %v252_v22 }
 0x171   :  { %27273 = vmatpush1.bf16.msra.mxu1 %v29481_v29  ;;  %27317 = vmatpush1.bf16.msra.mxu0 %v29503_v30  ;;  %v390_v29 = vunpack.c.h.bf16 %v272_v26  ;;  %v234_v30 = vld [vmem:[#allocation2 + $0x98] sm:$0xff] }
 0x172   :  { %24605 = vmatprep.subr.msk.mxu1 %vm609_vm1, %v366_v31  ;;  %24638 = vmatprep.subr.msk.mxu0 %vm609_vm1, %v388_v32  ;;  %v254_v31 = vld [vmem:[#allocation2 + $0x138] sm:$0xff]  ;;  %v26002_v32 = vld [vmem:[%s34413_s4 + $0x20] sm:$0xff]  }
 0x173   :  { %1149 = vmatprep.mubr.f32.mxu1 %v34419_v34  ;;  %1930 = vmatprep.mubr.f32.mxu0 %v34419_v34  ;;  %v29508_v37 = vcombine.high %v234_v30, %v254_v31 }
 0x175   :  { %24606 = vmatpush1.msk.msra.mxu1 %vm609_vm1, %v365_v38  ;;  %24639 = vmatpush1.msk.msra.mxu0 %vm609_vm1, %v387_v40  ;;  %v29509_v38 = vcombine.low %v234_v30, %v254_v31  ;;  %v394_v40 = vunpack.c.h.bf16 %v274_v36 }
 0x176   :  { %24607 = vmatmul.mubr.msk.f32.vlgmr.msra.gmra.mrb[10].mxu1 %vm605_vm2, %v30421_v39  ;;  %27279 = vmatprep.subr.bf16.mxu1 %v29484_v41  ;;  %v26003_v41 = vld [vmem:[%s34413_s4 + $0x28] sm:$0xff]  }
 0x177   :  { %24640 = vmatmul.mubr.msk.f32.vlgmr.msra.gmra.mrb[12].mxu0 %vm605_vm2, %v30421_v39  ;;  %27323 = vmatprep.subr.bf16.mxu0 %v29506_v44  ;;  %v26004_v44 = vld [vmem:[%s34413_s4 + $0x30] sm:$0xff]  }
 0x178   :  { %27281 = vmatpush1.bf16.msra.mxu1 %v29485_v45  ;;  %27325 = vmatpush1.bf16.msra.mxu0 %v29507_v46  ;;  %v26005_v45 = vld [vmem:[%s34413_s4 + $0x38] sm:$0xff]   ;;  %v405_v46 = vlaneseq }
 0x179   :  { %24611 = vmatprep.subr.msk.mxu1 %vm609_vm1, %v370_v47  ;;  %24644 = vmatprep.subr.msk.mxu0 %vm609_vm1, %v392_v48 }
 0x17a   :  { %1291 = vmatprep.mubr.f32.mxu1 %v34419_v34  ;;  %2072 = vmatprep.mubr.f32.mxu0 %v34419_v34  ;;  %v30593_v47 = vshrl.u32 %v405_v46, 7 }
 0x17c   :  { %24612 = vmatpush1.msk.msra.mxu1 %vm609_vm1, %v369_v51  ;;  %24645 = vmatpush1.msk.msra.mxu0 %vm609_vm1, %v391_v52  ;;  %v30596_v48 = vsub.s32 0, %v30593_v47  ;;  %v30599_v49 = vsub.s32 4, %v30593_v47  ;;  %v30603_v51 = vld [vmem:[#allocation5 + $0x8] sm:$0xff]  ;;  %v30606_v52 = vsub.s32 1, %v30593_v47  ;;  %v30609_v53 = vsub.s32 5, %v30593_v47 }
 0x17d   :  { %24613 = vmatmul.mubr.msk.f32.vlgmr.msra.gmra.mrb[12].mxu1 %vm605_vm2, %v30421_v39  ;;  %27287 = vmatprep.subr.bf16.mxu1 %v29488_v54  ;;  %v30620_v58 = vsub.s32 2, %v30593_v47  ;;  %v30623_v61 = vsub.s32 3, %v30593_v47 }
 0x17e   :  { %24646 = vmatmul.mubr.msk.f32.vlgmr.msra.gmra.mrb[14].mxu0 %vm605_vm2, %v30421_v39  ;;  %27289 = vmatpush1.bf16.msra.mxu1 %v29489_v55  ;;  %34434 = vst [vmem:[#allocation16_spill] sm:$0xff] %v30599_v49  ;;  %34435 = vst [vmem:[#allocation17_spill] sm:$0xff] %v30609_v53  ;;  %v408_v54 = vrot.slane %v30601_v50, %v30596_v48  ;;  %v456_v55 = vrot.slane %v30603_v51, %v30599_v49 }
 0x17f   :  { %24617 = vmatprep.subr.msk.mxu1 %vm609_vm1, %v374_v56  ;;  %1433 = vmatprep.mubr.f32.mxu1 %v34419_v34  ;;  %v412_v56 = vrot.slane %v30601_v50, %v30606_v52  ;;  %v460_v57 = vrot.slane %v30603_v51, %v30609_v53  ;;  %34436 = vst [vmem:[#allocation18_spill] sm:$0xff] %v30620_v58  ;;  %34437 = vst [vmem:[#allocation19_spill] sm:$0xff] %v30623_v61 }
 0x180   :  { %27331 = vmatprep.subr.bf16.mxu0 %v30488_v59  ;;  %v416_v4 = vrot.slane %v30601_v50, %v30620_v58 }
 0x181   :  { %27333 = vmatpush3.bf16.msra.mxu0 %v30495_v62 }
 0x182   :  { %24618 = vmatpush1.msk.msra.mxu1 %vm609_vm1, %v373_v60  ;;  %27335 = vmatprep.subr.bf16.mxu0 %v30502_v0 }
 0x183   :  { %24619 = vmatmul.mubr.msk.f32.vlgmr.msra.gmra.mrb[14].mxu1 %vm605_vm2, %v30421_v39  ;;  %27295 = vmatprep.subr.bf16.mxu1 %v29492_v63 }
 0x184   :  { %27297 = vmatpush1.bf16.msra.mxu1 %v29493_v1  ;;  %1575 = vmatprep.mubr.f32.mxu1 %v34419_v34 }
 0x185   :  { %24623 = vmatprep.subr.msk.mxu1 %vm609_vm1, %v378_v2  ;;  %27337 = vmatpush3.bf16.msra.mxu0 %v30511_v5 }
 0x186   :  { %27339 = vmatprep.subr.bf16.mxu0 %v30518_v6 }
 0x188   :  { %24624 = vmatpush1.msk.msra.mxu1 %vm609_vm1, %v377_v7 }
 0x189   :  { %24625 = vmatmul.mubr.msk.f32.vlgmr.msra.gmra.mrb[16].mxu1 %vm605_vm2, %v30421_v39  ;;  %27303 = vmatprep.subr.bf16.mxu1 %v29496_v9 }
 0x18a   :  { %27305 = vmatpush1.bf16.msra.mxu1 %v29497_v10  ;;  %1717 = vmatprep.mubr.f32.mxu1 %v34419_v34 }
 0x18b   :  { %24629 = vmatprep.subr.msk.mxu1 %vm609_vm1, %v382_v11  ;;  %27341 = vmatpush3.bf16.msra.mxu0 %v30528_v14 }
 0x18c   :  { %27343 = vmatprep.subr.bf16.mxu0 %v30535_v15 }
 0x18e   :  { %24630 = vmatpush1.msk.msra.mxu1 %vm609_vm1, %v381_v16 }
 0x18f   :  { %24631 = vmatmul.mubr.msk.f32.vlgmr.msra.gmra.mrb[18].mxu1 %vm605_vm2, %v30421_v39  ;;  %27311 = vmatprep.subr.bf16.mxu1 %v29500_v18 }
 0x190   :  { %27313 = vmatpush1.bf16.msra.mxu1 %v29501_v19  ;;  %1859 = vmatprep.mubr.f32.mxu1 %v34419_v34 }
 0x191   :  { %24635 = vmatprep.subr.msk.mxu1 %vm609_vm1, %v386_v20  ;;  %27345 = vmatpush3.bf16.msra.mxu0 %v26001_v23 }
 0x192   :  { %27347 = vmatprep.subr.bf16.mxu0 %v26010_v24 }
 0x194   :  { %24636 = vmatpush1.msk.msra.mxu1 %vm609_vm1, %v385_v25 }
 0x195   :  { %24637 = vmatmul.mubr.msk.f32.vlgmr.msra.gmra.mrb[20].mxu1 %vm605_vm2, %v30421_v39  ;;  %27319 = vmatprep.subr.bf16.mxu1 %v29504_v27 }
 0x196   :  { %27321 = vmatpush1.bf16.msra.mxu1 %v29505_v28  ;;  %2001 = vmatprep.mubr.f32.mxu1 %v34419_v34 }
 0x197   :  { %24641 = vmatprep.subr.msk.mxu1 %vm609_vm1, %v390_v29  ;;  %27349 = vmatpush3.bf16.msra.mxu0 %v26002_v32  ;;  %v398_v29 = vld [vmem:[#allocation5 + $0x18] sm:$0xff] }
 0x198   :  { %27351 = vmatprep.subr.bf16.mxu0 %v26011_v33  ;;  %v520_v30 = vrot.slane %v398_v29, %v30599_v49  ;;  %v524_v31 = vrot.slane %v398_v29, %v30609_v53 }
 0x19a   :  { %24642 = vmatpush1.msk.msra.mxu1 %vm609_vm1, %v389_v35 }
 0x19b   :  { %24643 = vmatmul.mubr.msk.f32.vlgmr.msra.gmra.mrb[22].mxu1 %vm605_vm2, %v30421_v39  ;;  %27327 = vmatprep.subr.bf16.mxu1 %v29508_v37 }
 0x19c   :  { %27329 = vmatpush1.bf16.msra.mxu1 %v29509_v38  ;;  %2143 = vmatprep.mubr.f32.mxu1 %v34419_v34 }
 0x19d   :  { %24647 = vmatprep.subr.msk.mxu1 %vm609_vm1, %v394_v40  ;;  %27353 = vmatpush3.bf16.msra.mxu0 %v26003_v41  ;;  %v448_v40 = vrot.slane %v30603_v51, %v30620_v58 }
 0x19e   :  { %27355 = vmatprep.subr.bf16.mxu0 %v26012_v42 }
 0x1a0   :  { %24648 = vmatpush1.msk.msra.mxu1 %vm609_vm1, %v393_v43 }
 0x1a1   :  { %24649 = vmatmul.mubr.msk.f32.vlgmr.msra.gmra.mrb[24].mxu1 %vm605_vm2, %v30421_v39  ;;  %27363 = vmatprep.subr.bf16.mxu1 %v30488_v59  ;;  %v26013_v39 = vld [vmem:[%s34413_s4 + $0x78] sm:$0xff]  }
 0x1a2   :  { %27365 = vmatpush3.bf16.msra.mxu1 %v30495_v62  ;;  %27357 = vmatpush3.bf16.msra.mxu0 %v26004_v44 }
 0x1a3   :  { %27367 = vmatprep.subr.bf16.mxu1 %v30502_v0  ;;  %27359 = vmatprep.subr.bf16.mxu0 %v26013_v39 }
 0x1a6   :  { %27369 = vmatpush3.bf16.msra.mxu1 %v30511_v5  ;;  %27361 = vmatpush3.bf16.msra.mxu0 %v26005_v45 }
 0x1a7   :  { %27371 = vmatprep.subr.bf16.mxu1 %v30518_v6  ;;  %v420_v6 = vrot.slane %v30601_v50, %v30623_v61 }
 0x1aa   :  { %27373 = vmatpush3.bf16.msra.mxu1 %v30528_v14  ;;  %v397_v14 = vld [vmem:[#allocation5 + $0x10] sm:$0xff] }
 0x1ab   :  { %27375 = vmatprep.subr.bf16.mxu1 %v30535_v15  ;;  %v488_v17 = vrot.slane %v397_v14, %v30599_v49  ;;  %v492_v18 = vrot.slane %v397_v14, %v30609_v53 }
 0x1ae   :  { %27377 = vmatpush3.bf16.msra.mxu1 %v26001_v23 }
 0x1af   :  { %27379 = vmatprep.subr.bf16.mxu1 %v26010_v24 }
 0x1b2   :  { %27381 = vmatpush3.bf16.msra.mxu1 %v26002_v32 }
 0x1b3   :  { %27383 = vmatprep.subr.bf16.mxu1 %v26011_v33 }
 0x1b6   :  { %27385 = vmatpush3.bf16.msra.mxu1 %v26003_v41  ;;  %v452_v41 = vrot.slane %v30603_v51, %v30623_v61 }
 0x1b7   :  { %27387 = vmatprep.subr.bf16.mxu1 %v26012_v42 }
 0x1ba   :  { %27389 = vmatpush3.bf16.msra.mxu1 %v26004_v44 }
 0x1bb   :  { %27391 = vmatprep.subr.bf16.mxu1 %v26013_v39 }
 0x1be   :  { %27393 = vmatpush3.bf16.msra.mxu1 %v26005_v45  ;;  %v30676_v45 = vsub.s32 6, %v30593_v47 }
 0x1c0   :  { %34450 = vst [vmem:[#allocation32_spill] sm:$0xff] %v30676_v45 }
 0x227   :  { %v796_v59 = vpop.f32.mrb[0].mxu1  ;;  %v1222_v60 = vpop.f32.mrb[2].mxu0 }
 0x228   :  { %v797_v62 = vadd.f32 %v796_v59, %v408_v54  ;;  %v30625_v63 = vadd.f32 %v1222_v60, %v456_v55  ;;  %v798_v0 = vpop.f32.mrb[1].mxu1  ;;  %v1224_v1 = vpop.f32.mrb[3].mxu0  ;;  %v30683_v55 = vsub.s32 7, %v30593_v47 }
 0x229   :  { %v799_v2 = vadd.f32 %v798_v0, %v412_v56  ;;  %v30627_v3 = vadd.f32 %v1224_v1, %v460_v57  ;;  %v399_v56 = vld [vmem:[#allocation5 + $0x20] sm:$0xff]  ;;  %v464_v57 = vrot.slane %v30603_v51, %v30676_v45 }
 0x22a   :  { %34438 = vst [vmem:[#allocation20_spill] sm:$0xff] %v30625_v63  ;;  %v2150_v7 = vmax.f32 %v797_v62, 0.0  ;;  %34453 = vst [vmem:[#allocation35_spill] sm:$0xff] %v30683_v55  ;;  %v552_v59 = vrot.slane %v399_v56, %v30599_v49  ;;  %v468_v60 = vrot.slane %v30603_v51, %v30683_v55  ;;  %v556_v62 = vrot.slane %v399_v56, %v30609_v53 }
 0x22b   :  { %34439 = vst [vmem:[#allocation21_spill] sm:$0xff] %v30627_v3  ;;  %v2151_v5 = vmax.f32 %v799_v2, 0.0 }
 0x22d   :  { %v867_v8 = vpop.f32.mrb[2].mxu1  ;;  %2318 = vmatprep.mubr.f32.mxu0 %v2151_v5 }
 0x22e   :  { %v868_v9 = vadd.f32 %v867_v8, %v416_v4  ;;  %v30633_v10 = vpop.f32.mrb[4].mxu0  ;;  %v869_v11 = vpop.f32.mrb[3].mxu1  ;;  %2319 = vmatmul.mubr.f32.vlgmr.msra.gmra.mrb[16].mxu0 %v2150_v7  ;;  %v480_v8 = vrot.slane %v397_v14, %v30620_v58 }
 0x22f   :  { %34440 = vst [vmem:[#allocation22_spill] sm:$0xff] %v30633_v10  ;;  %v870_v12 = vadd.f32 %v869_v11, %v420_v6  ;;  %v30635_v13 = vpop.f32.mrb[5].mxu0  ;;  %2883 = vmatprep.mubr.f32.mxu0 %v34419_v34 }
 0x230   :  { %34441 = vst [vmem:[#allocation23_spill] sm:$0xff] %v30635_v13  ;;  %v2152_v16 = vmax.f32 %v868_v9, 0.0  ;;  %v484_v9 = vrot.slane %v397_v14, %v30623_v61 }
 0x231   :  { %v2153_v15 = vmax.f32 %v870_v12, 0.0 }
 0x233   :  { %2478 = vmatprep.mubr.f32.mxu1 %v2153_v15 }
 0x234   :  { %v30640_v19 = vpop.f32.mrb[4].mxu1  ;;  %2479 = vmatmul.mubr.f32.vlgmr.msra.gmra.mrb[26].mxu1 %v2152_v16  ;;  %v496_v16 = vrot.slane %v397_v14, %v30676_v45 }
 0x235   :  { %v1506_v20 = vpop.f32.mrb[6].mxu0  ;;  %v30642_v21 = vpop.f32.mrb[5].mxu1  ;;  %2954 = vmatprep.mubr.f32.mxu1 %v34419_v34 }
 0x236   :  { %v30645_v22 = vadd.f32 %v1506_v20, %v488_v17  ;;  %v1508_v23 = vpop.f32.mrb[7].mxu0  ;;  %v500_v17 = vrot.slane %v397_v14, %v30683_v55  ;;  %v532_v14 = vrot.slane %v398_v29, %v30683_v55 }
 0x237   :  { %v30647_v24 = vadd.f32 %v1508_v23, %v492_v18 }
 0x238   :  { %34442 = vst [vmem:[#allocation24_spill] sm:$0xff] %v30645_v22 }
 0x239   :  { %34443 = vst [vmem:[#allocation25_spill] sm:$0xff] %v30647_v24 }
 0x23b   :  { %v30649_v25 = vpop.f32.mrb[6].mxu1 }
 0x23c   :  { %v30651_v26 = vpop.f32.mrb[8].mxu0  ;;  %v30653_v27 = vpop.f32.mrb[7].mxu1 }
 0x23d   :  { %34444 = vst [vmem:[#allocation26_spill] sm:$0xff] %v30651_v26  ;;  %v30655_v28 = vpop.f32.mrb[9].mxu0  ;;  %v2491_v26 = vld [vmem:[#allocation7 + $0xd8] sm:$0xcc] }
 0x23e   :  { %34445 = vst [vmem:[#allocation27_spill] sm:$0xff] %v30655_v28 }
 0x242   :  { %v30659_v32 = vpop.f32.mrb[8].mxu1 }
 0x243   :  { %v1790_v33 = vpop.f32.mrb[10].mxu0  ;;  %v30661_v35 = vpop.f32.mrb[9].mxu1 }
 0x244   :  { %v30663_v36 = vadd.f32 %v1790_v33, %v520_v30  ;;  %v1792_v37 = vpop.f32.mrb[11].mxu0  ;;  %v516_v33 = vrot.slane %v398_v29, %v30623_v61 }
 0x245   :  { %v30665_v38 = vadd.f32 %v1792_v37, %v524_v31  ;;  %v512_v31 = vrot.slane %v398_v29, %v30620_v58 }
 0x246   :  { %34446 = vst [vmem:[#allocation28_spill] sm:$0xff] %v30663_v36 }
 0x247   :  { %34447 = vst [vmem:[#allocation29_spill] sm:$0xff] %v30665_v38 }
 0x249   :  { %v1151_v42 = vpop.f32.mrb[10].mxu1 }
 0x24a   :  { %v30671_v43 = vadd.f32 %v1151_v42, %v448_v40  ;;  %v30673_v44 = vpop.f32.mrb[12].mxu0  ;;  %v1153_v39 = vpop.f32.mrb[11].mxu1 }
 0x24b   :  { %34449 = vst [vmem:[#allocation31_spill] sm:$0xff] %v30673_v44  ;;  %v30678_v46 = vadd.f32 %v1153_v39, %v452_v41  ;;  %v30680_v54 = vpop.f32.mrb[13].mxu0  ;;  %v528_v39 = vrot.slane %v398_v29, %v30676_v45  ;;  %v564_v29 = vrot.slane %v399_v56, %v30683_v55 }
 0x24c   :  { %34448 = vst [vmem:[#allocation30_spill] sm:$0xff] %v30671_v43  ;;  %34452 = vst [vmem:[#allocation34_spill] sm:$0xff] %v30680_v54 }
 0x24d   :  { %34451 = vst [vmem:[#allocation33_spill] sm:$0xff] %v30678_v46 }
 0x250   :  { %v1293_v0 = vpop.f32.mrb[12].mxu1 }
 0x251   :  { %v30691_v1 = vadd.f32 %v1293_v0, %v464_v57  ;;  %v2074_v2 = vpop.f32.mrb[14].mxu0  ;;  %v1295_v4 = vpop.f32.mrb[13].mxu1  ;;  %v544_v0 = vrot.slane %v399_v56, %v30620_v58 }
 0x252   :  { %v30693_v5 = vadd.f32 %v2074_v2, %v552_v59  ;;  %v30695_v47 = vadd.f32 %v1295_v4, %v468_v60  ;;  %v2076_v6 = vpop.f32.mrb[15].mxu0  ;;  %v548_v2 = vrot.slane %v399_v56, %v30623_v61 }
 0x253   :  { %34454 = vst [vmem:[#allocation36_spill] sm:$0xff] %v30691_v1  ;;  %v30697_v7 = vadd.f32 %v2076_v6, %v556_v62 }
 0x254   :  { %34455 = vst [vmem:[#allocation37_spill] sm:$0xff] %v30693_v5  ;;  %34456 = vst [vmem:[#allocation38_spill] sm:$0xff] %v30695_v47 }
 0x255   :  { %34457 = vst [vmem:[#allocation39_spill] sm:$0xff] %v30697_v7 }
 0x256   :  { %v1435_v11 = vpop.f32.mrb[14].mxu1 }
 0x257   :  { %v30701_v51 = vadd.f32 %v1435_v11, %v480_v8  ;;  %v1437_v12 = vpop.f32.mrb[15].mxu1  ;;  %v560_v11 = vrot.slane %v399_v56, %v30676_v45 }
 0x258   :  { %v30703_v15 = vadd.f32 %v1437_v12, %v484_v9 }
 0x259   :  { %34458 = vst [vmem:[#allocation40_spill] sm:$0xff] %v30701_v51 }
 0x25a   :  { %34459 = vst [vmem:[#allocation41_spill] sm:$0xff] %v30703_v15 }
 0x25c   :  { %v1577_v18 = vpop.f32.mrb[16].mxu1 }
 0x25d   :  { %v30707_v20 = vadd.f32 %v1577_v18, %v496_v16  ;;  %v1579_v23 = vpop.f32.mrb[17].mxu1 }
 0x25e   :  { %v30709_v30 = vadd.f32 %v1579_v23, %v500_v17  ;;  %v2484_v23 = vld [vmem:[#allocation7 + $0xa0] sm:$0xcc] }
 0x25f   :  { %34460 = vst [vmem:[#allocation42_spill] sm:$0xff] %v30707_v20 }
 0x260   :  { %34461 = vst [vmem:[#allocation43_spill] sm:$0xff] %v30709_v30  ;;  %v2501_v30 = vld [vmem:[#allocation7 + $0x128] sm:$0xff] }
 0x261   :  { %v2548_v51 = vunpack.c.l.bf16 %v2501_v30  ;;  %v2549_v15 = vunpack.c.h.bf16 %v2501_v30 }
 0x262   :  { %v1719_v37 = vpop.f32.mrb[18].mxu1 }
 0x263   :  { %v30713_v40 = vadd.f32 %v1719_v37, %v512_v31  ;;  %v1721_v41 = vpop.f32.mrb[19].mxu1  ;;  %v2494_v31 = vld [vmem:[#allocation7 + $0xf0] sm:$0xff]  ;;  %v2514_v37 = vunpack.c.l.bf16 %v2484_v23 }
 0x264   :  { %v30715_v42 = vadd.f32 %v1721_v41, %v516_v33  ;;  %v2504_v33 = vld [vmem:[#allocation7 + $0x140] sm:$0xff]  ;;  %v2515_v41 = vunpack.c.h.bf16 %v2484_v23 }
 0x265   :  { %34462 = vst [vmem:[#allocation44_spill] sm:$0xff] %v30713_v40 }
 0x266   :  { %34463 = vst [vmem:[#allocation45_spill] sm:$0xff] %v30715_v42 }
 0x268   :  { %v1861_v57 = vpop.f32.mrb[20].mxu1 }
 0x269   :  { %v30719_v59 = vadd.f32 %v1861_v57, %v528_v39  ;;  %v1863_v60 = vpop.f32.mrb[21].mxu1  ;;  %v2534_v39 = vunpack.c.l.bf16 %v2494_v31  ;;  %v2485_v57 = vld [vmem:[#allocation7 + $0xa8] sm:$0xcc] }
 0x26a   :  { %v30721_v62 = vadd.f32 %v1863_v60, %v532_v14  ;;  %v2535_v14 = vunpack.c.h.bf16 %v2494_v31  ;;  %v2495_v60 = vld [vmem:[#allocation7 + $0xf8] sm:$0xff]  ;;  %v2516_v56 = vunpack.c.l.bf16 %v2485_v57  ;;  %v2517_v61 = vunpack.c.h.bf16 %v2485_v57 }
 0x26b   :  { %34464 = vst [vmem:[#allocation46_spill] sm:$0xff] %v30719_v59  ;;  %v2536_v58 = vunpack.c.l.bf16 %v2495_v60  ;;  %v2537_v23 = vunpack.c.h.bf16 %v2495_v60  ;;  %v2506_v60 = vld [vmem:[#allocation7 + $0x150] sm:$0xff]  ;;  %v2507_v59 = vld [vmem:[#allocation7 + $0x158] sm:$0xff] }
 0x26c   :  { %34465 = vst [vmem:[#allocation47_spill] sm:$0xff] %v30721_v62  ;;  %v2639_v34 = vrot.slane %v2535_v14, 4  ;;  %v2641_v7 = vrot.slane %v2516_v56, 4  ;;  %v2496_v14 = vld [vmem:[#allocation7 + $0x100] sm:$0xff] }
 0x26e   :  { %v2003_v4 = vpop.f32.mrb[22].mxu1 }
 0x26f   :  { %v30725_v6 = vadd.f32 %v2003_v4, %v544_v0  ;;  %v2005_v8 = vpop.f32.mrb[23].mxu1  ;;  %v2554_v0 = vunpack.c.l.bf16 %v2504_v33  ;;  %v2505_v4 = vld [vmem:[#allocation7 + $0x148] sm:$0xff] }
 0x270   :  { %v30727_v9 = vadd.f32 %v2005_v8, %v548_v2  ;;  %v2555_v2 = vunpack.c.h.bf16 %v2504_v33  ;;  %v2635_v8 = vrot.slane %v2514_v37, 4  ;;  %v2557_v31 = vunpack.c.h.bf16 %v2505_v4 }
 0x271   :  { %34466 = vst [vmem:[#allocation48_spill] sm:$0xff] %v30725_v6  ;;  %v2642_v33 = vrot.slane %v2536_v58, 4  ;;  %v2644_v6 = vrot.slane %v2517_v61, 4  ;;  %v2645_v37 = vrot.slane %v2537_v23, 4  ;;  %v2538_v23 = vunpack.c.l.bf16 %v2496_v14 }
 0x272   :  { %34467 = vst [vmem:[#allocation49_spill] sm:$0xff] %v30727_v9  ;;  %v2486_v9 = vld [vmem:[#allocation7 + $0xb0] sm:$0xcc] }
 0x273   :  { %v2519_v56 = vunpack.c.h.bf16 %v2486_v9 }
 0x274   :  { %v2145_v12 = vpop.f32.mrb[24].mxu1 }
 0x275   :  { %v30731_v16 = vadd.f32 %v2145_v12, %v560_v11  ;;  %v2147_v17 = vpop.f32.mrb[25].mxu1  ;;  %v2636_v11 = vrot.slane %v2534_v39, 4  ;;  %v2638_v12 = vrot.slane %v2515_v41, 4  ;;  %v2701_v41 = vrot.slane %v2557_v31, 4 }
 0x276   :  { %v30733_v18 = vadd.f32 %v2147_v17, %v564_v29  ;;  %v2695_v29 = vrot.slane %v2554_v0, 4  ;;  %v2697_v17 = vrot.slane %v2555_v2, 4  ;;  %v2643_v2 = vsel %vm2634_vm3, %v2641_v7, %v2642_v33 }
 0x277   :  { %34468 = vst [vmem:[#allocation50_spill] sm:$0xff] %v30731_v16  ;;  %v2640_v16 = vsel %vm2634_vm3, %v2638_v12, %v2639_v34  ;;  %v2637_v0 = vsel %vm2634_vm3, %v2635_v8, %v2636_v11  ;;  %v2518_v12 = vunpack.c.l.bf16 %v2486_v9  ;;  %v2702_v58 = vsel %vm2634_vm3, %v2645_v37, %v2701_v41  ;;  %v2497_v8 = vld [vmem:[#allocation7 + $0x108] sm:$0xff] }
 0x278   :  { %34469 = vst [vmem:[#allocation51_spill] sm:$0xff] %v30733_v18  ;;  %v2556_v18 = vunpack.c.l.bf16 %v2505_v4  ;;  %v2698_v5 = vsel %vm2634_vm3, %v2639_v34, %v2697_v17  ;;  %v2696_v57 = vsel %vm2634_vm3, %v2636_v11, %v2695_v29  ;;  %v2646_v34 = vsel %vm2634_vm3, %v2644_v6, %v2645_v37 }
 0x279   :  { %v27394_v44 = vpack.c.bf16 %v2698_v5, %v2640_v16  ;;  %v27396_v61 = vpack.c.bf16 %v2696_v57, %v2637_v0  ;;  %v2487_v16 = vld [vmem:[#allocation7 + $0xb8] sm:$0xcc]  ;;  %v2539_v11 = vunpack.c.h.bf16 %v2496_v14  ;;  %v2558_v31 = vunpack.c.l.bf16 %v2506_v60 }
 0x27a   :  { %v2699_v39 = vrot.slane %v2556_v18, 4  ;;  %v27398_v18 = vpack.c.bf16 %v2702_v58, %v2646_v34  ;;  %v2559_v7 = vunpack.c.h.bf16 %v2506_v60  ;;  %v2647_v54 = vrot.slane %v2518_v12, 4 }
 0x27b   :  { %27395 = vmatprep.subr.bf16.mxu0 %v27394_v44  ;;  %v2648_v44 = vrot.slane %v2538_v23, 4  ;;  %v2650_v6 = vrot.slane %v2519_v56, 4  ;;  %v2520_v37 = vunpack.c.l.bf16 %v2487_v16  ;;  %v2521_v0 = vunpack.c.h.bf16 %v2487_v16 }
 0x27c   :  { %v2700_v5 = vsel %vm2634_vm3, %v2642_v33, %v2699_v39  ;;  %27397 = vmatpush1.bf16.msra.mxu0 %v27396_v61  ;;  %27399 = vmatprep.subr.bf16.mxu1 %v27398_v18  ;;  %v2651_v33 = vrot.slane %v2539_v11, 4  ;;  %v30744_v57 = vrot.slane %v2558_v31, 4  ;;  %v30746_v9 = vrot.slane %v2559_v7, 4  ;;  %v2488_v7 = vld [vmem:[#allocation7 + $0xc0] sm:$0xcc]  ;;  %v2510_v11 = vld [vmem:[#allocation7 + $0x170] sm:$0xff] }
 0x27d   :  { %v27400_v4 = vpack.c.bf16 %v2700_v5, %v2643_v2  ;;  %24650 = vmatprep.subr.msk.mxu0 %vm2634_vm3, %v2697_v17  ;;  %v2540_v2 = vunpack.c.l.bf16 %v2497_v8  ;;  %v2541_v14 = vunpack.c.h.bf16 %v2497_v8  ;;  %v2560_v60 = vunpack.c.l.bf16 %v2507_v59  ;;  %v2500_v31 = vld [vmem:[#allocation7 + $0x120] sm:$0xff] }
 0x27e   :  { %v2561_v12 = vunpack.c.h.bf16 %v2507_v59  ;;  %v2653_v34 = vrot.slane %v2520_v37, 4  ;;  %v2652_v17 = vsel %vm2634_vm3, %v2650_v6, %v2651_v33  ;;  %v2706_v58 = vsel %vm2634_vm3, %v2651_v33, %v30746_v9  ;;  %v2508_v6 = vld [vmem:[#allocation7 + $0x160] sm:$0xff] }
 0x27f   :  { %27401 = vmatpush1.bf16.msra.mxu1 %v27400_v4  ;;  %v2654_v61 = vrot.slane %v2540_v2, 4  ;;  %v2656_v5 = vrot.slane %v2521_v0, 4  ;;  %v27402_v16 = vpack.c.bf16 %v2706_v58, %v2652_v17  ;;  %v2657_v18 = vrot.slane %v2541_v14, 4 }
 0x280   :  { %24653 = vmatprep.subr.msk.mxu1 %vm2634_vm3, %v2701_v41  ;;  %24651 = vmatpush1.msk.msra.mxu0 %vm2634_vm3, %v2695_v29  ;;  %v30753_v4 = vrot.slane %v2560_v60, 4  ;;  %v30755_v56 = vrot.slane %v2561_v12, 4  ;;  %v30759_v59 = vsel %vm2634_vm3, %v2647_v54, %v2648_v44  ;;  %v30763_v29 = vsel %vm2634_vm3, %v2648_v44, %v30744_v57  ;;  %v2498_v44 = vld [vmem:[#allocation7 + $0x110] sm:$0xff]  ;;  %v2489_v60 = vld [vmem:[#allocation7 + $0xc8] sm:$0xcc]  ;;  %v2499_v12 = vld [vmem:[#allocation7 + $0x118] sm:$0xff] }
 0x281   :  { %v30766_v41 = vsel %vm2634_vm3, %v2653_v34, %v2654_v61  ;;  %27403 = vmatprep.subr.bf16.mxu0 %v27402_v16  ;;  %v2658_v23 = vsel %vm2634_vm3, %v2656_v5, %v2657_v18  ;;  %v2523_v37 = vunpack.c.h.bf16 %v2488_v7  ;;  %v2543_v0 = vunpack.c.h.bf16 %v2498_v44 }
 0x282   :  { %v2710_v8 = vsel %vm2634_vm3, %v2657_v18, %v30755_v56  ;;  %v30775_v54 = vsel %vm2634_vm3, %v2654_v61, %v30753_v4  ;;  %v2563_v33 = vunpack.c.h.bf16 %v2508_v6  ;;  %v2522_v2 = vunpack.c.l.bf16 %v2488_v7  ;;  %v2509_v61 = vld [vmem:[#allocation7 + $0x168] sm:$0xff] }
 0x283   :  { %24654 = vmatpush1.msk.msra.mxu1 %vm2634_vm3, %v2699_v39  ;;  %v27406_v39 = vpack.c.bf16 %v2710_v8, %v2658_v23  ;;  %v2542_v14 = vunpack.c.l.bf16 %v2498_v44  ;;  %v2562_v34 = vunpack.c.l.bf16 %v2508_v6  ;;  %v2662_v17 = vrot.slane %v2523_v37, 4 }
 0x284   :  { %v2663_v58 = vrot.slane %v2543_v0, 4  ;;  %v30779_v5 = vrot.slane %v2563_v33, 4  ;;  %v2659_v16 = vrot.slane %v2522_v2, 4  ;;  %v2524_v18 = vunpack.c.l.bf16 %v2489_v60 }
 0x285   :  { %27407 = vmatprep.subr.bf16.mxu1 %v27406_v39  ;;  %v2525_v23 = vunpack.c.h.bf16 %v2489_v60  ;;  %v2544_v8 = vunpack.c.l.bf16 %v2499_v12  ;;  %v2490_v39 = vld [vmem:[#allocation7 + $0xd0] sm:$0xcc]  ;;  %v2660_v62 = vrot.slane %v2542_v14, 4  ;;  %v2545_v36 = vunpack.c.h.bf16 %v2499_v12 }
 0x286   :  { %v2564_v38 = vunpack.c.l.bf16 %v2509_v61  ;;  %v2565_v7 = vunpack.c.h.bf16 %v2509_v61  ;;  %v30782_v6 = vsel %vm2634_vm3, %v2662_v17, %v2663_v58  ;;  %v30784_v37 = vrot.slane %v2562_v34, 4 }
 0x287   :  { %v30788_v33 = vsel %vm2634_vm3, %v2663_v58, %v30779_v5  ;;  %v2527_v2 = vunpack.c.h.bf16 %v2490_v39  ;;  %v2547_v60 = vunpack.c.h.bf16 %v2500_v31  ;;  %v2567_v40 = vunpack.c.h.bf16 %v2510_v11  ;;  %v2511_v58 = vld [vmem:[#allocation7 + $0x178] sm:$0xff] }
 0x288   :  { %v2665_v14 = vrot.slane %v2524_v18, 4  ;;  %v2666_v12 = vrot.slane %v2544_v8, 4  ;;  %v2668_v61 = vrot.slane %v2525_v23, 4  ;;  %v2669_v28 = vrot.slane %v2545_v36, 4 }
 0x289   :  { %v30792_v20 = vrot.slane %v2564_v38, 4  ;;  %v30794_v17 = vrot.slane %v2565_v7, 4  ;;  %v30797_v34 = vsel %vm2634_vm3, %v2659_v16, %v2660_v62  ;;  %v30801_v22 = vsel %vm2634_vm3, %v2660_v62, %v30784_v37 }
 0x28a   :  { %v2566_v18 = vunpack.c.l.bf16 %v2510_v11  ;;  %v2674_v8 = vrot.slane %v2527_v2, 4  ;;  %v2675_v23 = vrot.slane %v2547_v60, 4  ;;  %v30803_v24 = vrot.slane %v2567_v40, 4 }
 0x28b   :  { %v2528_v36 = vunpack.c.l.bf16 %v2491_v26  ;;  %v2529_v7 = vunpack.c.h.bf16 %v2491_v26  ;;  %v2568_v16 = vunpack.c.l.bf16 %v2511_v58  ;;  %v2670_v13 = vsel %vm2634_vm3, %v2668_v61, %v2669_v28 }
 0x28c   :  { %v2667_v1 = vsel %vm2634_vm3, %v2665_v14, %v2666_v12  ;;  %v2716_v62 = vsel %vm2634_vm3, %v2666_v12, %v30792_v20  ;;  %v2718_v40 = vsel %vm2634_vm3, %v2669_v28, %v30794_v17  ;;  %v30814_v26 = vsel %vm2634_vm3, %v2674_v8, %v2675_v23  ;;  %v2492_v8 = vld [vmem:[#allocation7 + $0xe0] sm:$0xcc] }
 0x28d   :  { %v30816_v30 = vrot.slane %v2566_v18, 4  ;;  %v30820_v60 = vsel %vm2634_vm3, %v2675_v23, %v30803_v24  ;;  %v2677_v14 = vrot.slane %v2528_v36, 4  ;;  %v2680_v28 = vrot.slane %v2529_v7, 4  ;;  %v2513_v23 = vld [vmem:[#allocation7 + $0x188] sm:$0xff] }
 0x28e   :  { %v2681_v12 = vrot.slane %v2549_v15, 4  ;;  %v30826_v61 = vrot.slane %v2568_v16, 4  ;;  %v27412_v15 = vpack.c.bf16 %v30801_v22, %v30797_v34  ;;  %v2530_v36 = vunpack.c.l.bf16 %v2492_v8 }
 0x28f   :  { %v2531_v7 = vunpack.c.h.bf16 %v2492_v8 }
 0x290   :  { %v2682_v22 = vsel %vm2634_vm3, %v2680_v28, %v2681_v12 }
 0x301   :  { %v26205_v44 = vpop.f32.mrb[16].mxu0 }
 0x302   :  { %v26206_v0 = vpop.f32.mrb[17].mxu0 }
 0x303   :  { %v30790_v42 = vadd.f32 %v26206_v0, %v26205_v44  ;;  %v2526_v44 = vunpack.c.l.bf16 %v2490_v39  ;;  %v2546_v0 = vunpack.c.l.bf16 %v2500_v31  ;;  %v2569_v31 = vunpack.c.h.bf16 %v2511_v58 }
 0x304   :  { %v34470_v58 = vpack.c.bf16 %v30763_v29, %v30759_v59  ;;  %v27416_v59 = vpack.c.bf16 %v2716_v62, %v2667_v1  ;;  %v2502_v29 = vld [vmem:[#allocation7 + $0x130] sm:$0xff] }
 0x305   :  { %v2671_v39 = vrot.slane %v2526_v44, 4  ;;  %v2672_v2 = vrot.slane %v2546_v0, 4  ;;  %v34471_v44 = vpack.c.bf16 %v30775_v54, %v30766_v41  ;;  %v27410_v0 = vpack.c.bf16 %v30788_v33, %v30782_v6  ;;  %v2512_v41 = vld [vmem:[#allocation7 + $0x180] sm:$0xff] }
 0x306   :  { %v30836_v18 = vrot.slane %v2569_v31, 4  ;;  %v34472_v54 = vmov 0.0   ;;  %v27418_v6 = vpack.c.bf16 %v30820_v60, %v30814_v26  ;;  %v2551_v16 = vunpack.c.h.bf16 %v2502_v29 }
 0x307   :  { %v26240_v38 = vpop.f32.mrb[26].mxu1  ;;  %v2673_v33 = vsel %vm2634_vm3, %v2671_v39, %v2672_v2  ;;  %v2571_v62 = vunpack.c.h.bf16 %v2512_v41  ;;  %v2550_v31 = vunpack.c.l.bf16 %v2502_v29  ;;  %v2572_v60 = vunpack.c.l.bf16 %v2513_v23 }
 0x308   :  { %v26241_v10 = vpop.f32.mrb[27].mxu1 }
 0x309   :  { %v30809_v11 = vadd.f32 %v26241_v10, %v26240_v38  ;;  %v2678_v10 = vrot.slane %v2548_v51, 4  ;;  %v27414_v51 = vpack.c.bf16 %v2718_v40, %v2670_v13  ;;  %v2503_v13 = vld [vmem:[#allocation7 + $0x138] sm:$0xff]  ;;  %v2726_v38 = vsel %vm2634_vm3, %v2681_v12, %v30836_v18 }
 0x30a   :  { %v2553_v39 = vunpack.c.h.bf16 %v2503_v13  ;;  %v2552_v26 = vunpack.c.l.bf16 %v2503_v13  ;;  %v2683_v12 = vrot.slane %v2530_v36, 4  ;;  %v2684_v8 = vrot.slane %v2550_v31, 4 }
 0x30b   :  { %24652 = vmatmul.mubr.msk.f32.vlgmr.msra.gmra.mrb[18].mxu0 %vm2775_vm4, %v30809_v11  ;;  %24655 = vmatmul.mubr.msk.f32.vlgmr.msra.gmra.mrb[28].mxu1 %vm2775_vm4, %v30809_v11  ;;  %v2679_v1 = vsel %vm2634_vm3, %v2677_v14, %v2678_v10  ;;  %v2724_v34 = vsel %vm2634_vm3, %v2678_v10, %v30826_v61  ;;  %v27422_v14 = vpack.c.bf16 %v2726_v38, %v2682_v22  ;;  %v29724_v38 = vld [vmem:[#allocation7] ss:$80 sps:$4 sm:$0xff]  }
 0x30c   :  { %27405 = vmatpush1.bf16.msra.mxu0 %v34470_v58  ;;  %27409 = vmatpush1.bf16.msra.mxu1 %v34471_v44  ;;  %v27424_v28 = vpack.c.bf16 %v2724_v34, %v2679_v1  ;;  %v2686_v58 = vrot.slane %v2531_v7, 4  ;;  %v2687_v44 = vrot.slane %v2551_v16, 4  ;;  %v29727_v7 = vld [vmem:[#allocation7 + $0x8] ss:$80 sps:$4 sm:$0xff]  }
 0x30d   :  { %24656 = vmatprep.subr.msk.mxu0 %vm2634_vm3, %v30746_v9  ;;  %24659 = vmatprep.subr.msk.mxu1 %vm2634_vm3, %v30755_v56  ;;  %v2720_v9 = vsel %vm2634_vm3, %v2672_v2, %v30816_v30  ;;  %v2493_v56 = vld [vmem:[#allocation7 + $0xe8] sm:$0xcc]  ;;  %v2573_v2 = vunpack.c.h.bf16 %v2513_v23 }
 0x30e   :  { %3025 = vmatprep.mubr.f32.mxu0 %v34472_v54  ;;  %3096 = vmatprep.mubr.f32.mxu1 %v34472_v54  ;;  %v2533_v40 = vunpack.c.h.bf16 %v2493_v56  ;;  %v27420_v10 = vpack.c.bf16 %v2720_v9, %v2673_v33  ;;  %v2690_v33 = vrot.slane %v2552_v26, 4  ;;  %v2731_v9 = vrot.slane %v2572_v60, 4  ;;  %v29730_v26 = vld [vmem:[#allocation7 + $0x10] ss:$80 sps:$4 sm:$0xff]  }
 0x310   :  { %24657 = vmatpush1.msk.msra.mxu0 %vm2634_vm3, %v30744_v57  ;;  %24660 = vmatpush1.msk.msra.mxu1 %vm2634_vm3, %v30753_v4  ;;  %v2570_v57 = vunpack.c.l.bf16 %v2512_v41  ;;  %v2532_v4 = vunpack.c.l.bf16 %v2493_v56  ;;  %v2732_v22 = vsel %vm2634_vm3, %v2690_v33, %v2731_v9 }
 0x311   :  { %24658 = vmatmul.mubr.msk.f32.vlgmr.msra.gmra.mrb[20].mxu0 %vm2775_vm4, %v30809_v11  ;;  %24661 = vmatmul.mubr.msk.f32.vlgmr.msra.gmra.mrb[30].mxu1 %vm2775_vm4, %v30809_v11 }
 0x312   :  { %27411 = vmatprep.subr.bf16.mxu0 %v27410_v0  ;;  %27415 = vmatprep.subr.bf16.mxu1 %v27414_v51  ;;  %v2729_v0 = vrot.slane %v2571_v62, 4  ;;  %v2692_v51 = vrot.slane %v2533_v40, 4  ;;  %v2727_v29 = vrot.slane %v2570_v57, 4  ;;  %v2689_v41 = vrot.slane %v2532_v4, 4  ;;  %v29728_v57 = vld [vmem:[#allocation7 + $0x14] ss:$80 sps:$4 sm:$0xff]  }
 0x313   :  { %27413 = vmatpush1.bf16.msra.mxu0 %v27412_v15  ;;  %27417 = vmatpush1.bf16.msra.mxu1 %v27416_v59  ;;  %v2693_v15 = vrot.slane %v2553_v39, 4  ;;  %v2733_v59 = vrot.slane %v2573_v2, 4  ;;  %v2346_v39 = vld [vmem:[#allocation7 + $0xb0] sm:$0x33]  ;;  %v2347_v2 = vld [vmem:[#allocation7 + $0xb8] sm:$0x33] }
 0x314   :  { %24662 = vmatprep.subr.msk.mxu0 %vm2634_vm3, %v30779_v5  ;;  %24665 = vmatprep.subr.msk.mxu1 %vm2634_vm3, %v30794_v17  ;;  %v2688_v5 = vsel %vm2634_vm3, %v2686_v58, %v2687_v44  ;;  %v2730_v17 = vsel %vm2634_vm3, %v2687_v44, %v2729_v0  ;;  %v2691_v23 = vsel %vm2634_vm3, %v2689_v41, %v2690_v33  ;;  %v29731_v4 = vld [vmem:[#allocation7 + $0x1c] ss:$80 sps:$4 sm:$0xff]   ;;  %v2399_v60 = vunpack.c.h.bf16 %v2346_v39  ;;  %v29734_v44 = vld [vmem:[#allocation7 + $0x24] ss:$80 sps:$4 sm:$0xff]  }
 0x315   :  { %3167 = vmatprep.mubr.f32.mxu0 %v34472_v54  ;;  %3238 = vmatprep.mubr.f32.mxu1 %v34472_v54  ;;  %v2694_v56 = vsel %vm2634_vm3, %v2692_v51, %v2693_v15  ;;  %v2734_v13 = vsel %vm2634_vm3, %v2693_v15, %v2733_v59  ;;  %v27432_v36 = vpack.c.bf16 %v2732_v22, %v2691_v23  ;;  %v2349_v58 = vld [vmem:[#allocation7 + $0xc8] sm:$0x33]  ;;  %v2350_v33 = vld [vmem:[#allocation7 + $0xd0] sm:$0x33] }
 0x316   :  { %v27430_v1 = vpack.c.bf16 %v2734_v13, %v2694_v56  ;;  %v29739_v51 = vld [vmem:[#allocation7 + $0x28] ss:$80 sps:$4 sm:$0xff]   ;;  %v2404_v41 = vunpack.c.l.bf16 %v2349_v58  ;;  %v29742_v56 = vld [vmem:[#allocation7 + $0x30] ss:$80 sps:$4 sm:$0xff]   ;;  %v2406_v23 = vunpack.c.l.bf16 %v2350_v33 }
 0x317   :  { %24663 = vmatpush1.msk.msra.mxu0 %vm2634_vm3, %v30784_v37  ;;  %24666 = vmatpush1.msk.msra.mxu1 %vm2634_vm3, %v30792_v20  ;;  %v2685_v37 = vsel %vm2634_vm3, %v2683_v12, %v2684_v8  ;;  %v2728_v20 = vsel %vm2634_vm3, %v2684_v8, %v2727_v29  ;;  %v2348_v12 = vld [vmem:[#allocation7 + $0xc0] sm:$0x33]  ;;  %v29745_v13 = vld [vmem:[#allocation7 + $0x38] ss:$80 sps:$4 sm:$0xff]  }
 0x318   :  { %24664 = vmatmul.mubr.msk.f32.vlgmr.msra.gmra.mrb[22].mxu0 %vm2775_vm4, %v30809_v11  ;;  %24667 = vmatmul.mubr.msk.f32.vlgmr.msra.gmra.mrb[32].mxu1 %vm2775_vm4, %v30809_v11  ;;  %v27428_v34 = vpack.c.bf16 %v2728_v20, %v2685_v37  ;;  %v29736_v8 = vld [vmem:[#allocation7 + $0x20] ss:$80 sps:$4 sm:$0xff]   ;;  %v2403_v15 = vunpack.c.h.bf16 %v2348_v12  ;;  %v2407_v37 = vunpack.c.h.bf16 %v2350_v33  ;;  %v4393_v33 = vld [vmem:[#allocation7 + $0x238] sm:$0x33] }
 0x319   :  { %27419 = vmatprep.subr.bf16.mxu0 %v27418_v6  ;;  %27423 = vmatprep.subr.bf16.mxu1 %v27422_v14  ;;  %v27426_v6 = vpack.c.bf16 %v2730_v17, %v2688_v5  ;;  %v2401_v14 = vunpack.c.h.bf16 %v2347_v2  ;;  %v29740_v5 = vld [vmem:[#allocation7 + $0x34] ss:$80 sps:$4 sm:$0xff]   ;;  %v29743_v17 = vld [vmem:[#allocation7 + $0x3c] ss:$80 sps:$4 sm:$0xff]  }
 0x31a   :  { %27421 = vmatpush1.bf16.msra.mxu0 %v27420_v10  ;;  %27425 = vmatpush1.bf16.msra.mxu1 %v27424_v28  ;;  %v2398_v10 = vunpack.c.l.bf16 %v2346_v39  ;;  %v2400_v28 = vunpack.c.l.bf16 %v2347_v2  ;;  %v30973_v39 = vld [vmem:[%s34413_s4] sm:$0xff]   ;;  %v30986_v2 = vld [vmem:[%s34413_s4 + $0x8] sm:$0xff]  }
 0x31b   :  { %24668 = vmatprep.subr.msk.mxu0 %vm2634_vm3, %v30803_v24  ;;  %24671 = vmatprep.subr.msk.mxu1 %vm2634_vm3, %v30836_v18  ;;  %v2344_v24 = vld [vmem:[#allocation7 + $0xa0] sm:$0x33]  ;;  %v2345_v18 = vld [vmem:[#allocation7 + $0xa8] sm:$0x33] }
 0x31c   :  { %3309 = vmatprep.mubr.f32.mxu0 %v34472_v54  ;;  %3380 = vmatprep.mubr.f32.mxu1 %v34472_v54  ;;  %v2395_v16 = vunpack.c.h.bf16 %v2344_v24  ;;  %v2397_v62 = vunpack.c.h.bf16 %v2345_v18  ;;  %v2394_v31 = vunpack.c.l.bf16 %v2344_v24  ;;  %v2396_v40 = vunpack.c.l.bf16 %v2345_v18  ;;  %v29748_v18 = vld [vmem:[#allocation7 + $0x40] ss:$80 sps:$4 sm:$0xff]  }
 0x31d   :  { %v428_v24 = vrot.slane %v30601_v50, %v30609_v53 }
 0x31e   :  { %24669 = vmatpush1.msk.msra.mxu0 %vm2634_vm3, %v30816_v30  ;;  %24672 = vmatpush1.msk.msra.mxu1 %vm2634_vm3, %v30826_v61  ;;  %v29722_v30 = vld [vmem:[#allocation7 + $0x4] ss:$80 sps:$4 sm:$0xff]   ;;  %v29725_v61 = vld [vmem:[#allocation7 + $0xc] ss:$80 sps:$4 sm:$0xff]  }
 0x31f   :  { %24670 = vmatmul.mubr.msk.f32.vlgmr.msra.gmra.mrb[24].mxu0 %vm2775_vm4, %v30809_v11  ;;  %24673 = vmatmul.mubr.msk.f32.vlgmr.msra.gmra.mrb[34].mxu1 %vm2775_vm4, %v30809_v11 }
 0x320   :  { %27427 = vmatprep.subr.bf16.mxu0 %v27426_v6  ;;  %27431 = vmatprep.subr.bf16.mxu1 %v27430_v1  ;;  %v2352_v6 = vld [vmem:[#allocation7 + $0xe0] sm:$0x33]  ;;  %v2353_v1 = vld [vmem:[#allocation7 + $0xe8] sm:$0x33] }
 0x321   :  { %27429 = vmatpush1.bf16.msra.mxu0 %v27428_v34  ;;  %27433 = vmatpush1.bf16.msra.mxu1 %v27432_v36  ;;  %v29746_v34 = vld [vmem:[#allocation7 + $0x44] ss:$80 sps:$4 sm:$0xff]   ;;  %v29749_v36 = vld [vmem:[#allocation7 + $0x4c] ss:$80 sps:$4 sm:$0xff]   ;;  %v2410_v50 = vunpack.c.l.bf16 %v2352_v6 }
 0x322   :  { %24674 = vmatprep.subr.msk.mxu0 %vm2634_vm3, %v2729_v0  ;;  %24677 = vmatprep.subr.msk.mxu1 %vm2634_vm3, %v2733_v59  ;;  %v29737_v0 = vld [vmem:[#allocation7 + $0x2c] ss:$80 sps:$4 sm:$0xff]   ;;  %v2405_v59 = vunpack.c.h.bf16 %v2349_v58 }
 0x323   :  { %3451 = vmatprep.mubr.f32.mxu0 %v34472_v54  ;;  %3522 = vmatprep.mubr.f32.mxu1 %v34472_v54 }
 0x325   :  { %24675 = vmatpush1.msk.msra.mxu0 %vm2634_vm3, %v2727_v29  ;;  %24678 = vmatpush1.msk.msra.mxu1 %vm2634_vm3, %v2731_v9  ;;  %v2402_v29 = vunpack.c.l.bf16 %v2348_v12  ;;  %v2351_v9 = vld [vmem:[#allocation7 + $0xd8] sm:$0x33] }
 0x326   :  { %24676 = vmatmul.mubr.msk.f32.vlgmr.msra.gmra.mrb[26].mxu0 %vm2775_vm4, %v30809_v11  ;;  %24679 = vmatmul.mubr.msk.f32.vlgmr.msra.gmra.mrb[36].mxu1 %vm2775_vm4, %v30809_v11  ;;  %v29733_v11 = vld [vmem:[#allocation7 + $0x18] ss:$80 sps:$4 sm:$0xff]   ;;  %v2409_v20 = vunpack.c.h.bf16 %v2351_v9  ;;  %v2408_v22 = vunpack.c.l.bf16 %v2351_v9 }
 0x327   :  { %27435 = vmatprep.subr.bf16.mxu0 %v29722_v30  ;;  %27439 = vmatprep.subr.bf16.mxu1 %v29725_v61  ;;  %v29751_v30 = vld [vmem:[#allocation7 + $0x48] ss:$80 sps:$4 sm:$0xff]   ;;  %v2411_v61 = vunpack.c.h.bf16 %v2352_v6 }
 0x328   :  { %27437 = vmatpush1.bf16.msra.mxu0 %v29724_v38  ;;  %27441 = vmatpush1.bf16.msra.mxu1 %v29727_v7  ;;  %v2413_v38 = vunpack.c.h.bf16 %v2353_v1  ;;  %v941_v7 = vadd.f32 %v30642_v21, %v428_v24  ;;  %v30967_v21 = vld [vmem:[%s34413_s4 + $0x40] sm:$0xff]  }
 0x329   :  { %24680 = vmatprep.subr.msk.mxu0 %vm2634_vm3, %v2395_v16  ;;  %24683 = vmatprep.subr.msk.mxu1 %vm2634_vm3, %v2397_v62  ;;  %v2412_v16 = vunpack.c.l.bf16 %v2353_v1  ;;  %v29755_v62 = vld [vmem:[#allocation7 + $0x19c] ss:$80 sps:$4 sm:$0xff]   ;;  %v29760_v1 = vld [vmem:[#allocation7 + $0x1a0] ss:$80 sps:$4 sm:$0xff]  }
 0x32a   :  { %3656 = vmatprep.mubr.f32.mxu0 %v34472_v54  ;;  %3727 = vmatprep.mubr.f32.mxu1 %v34472_v54  ;;  %v31037_v12 = vld [vmem:[#allocation5] sm:$0xff] }
 0x32b   :  { %v424_v58 = vrot.slane %v31037_v12, %v30599_v49  ;;  %v5332_v49 = vld [vmem:[#allocation7 + $0x268] sm:$0xcc] }
 0x32c   :  { %24681 = vmatpush1.msk.msra.mxu0 %vm2634_vm3, %v2394_v31  ;;  %24684 = vmatpush1.msk.msra.mxu1 %vm2634_vm3, %v2396_v40  ;;  %v2155_v31 = vmax.f32 %v941_v7, 0.0  ;;  %v29757_v40 = vld [vmem:[#allocation7 + $0x198] ss:$80 sps:$4 sm:$0xff]  }
 0x32d   :  { %24682 = vmatmul.mubr.msk.f32.vlgmr.msra.gmra.mrb[18].mxu0 %vm2775_vm4, %v30790_v42  ;;  %24685 = vmatmul.mubr.msk.f32.vlgmr.msra.gmra.mrb[28].mxu1 %vm2775_vm4, %v30790_v42  ;;  %v4397_v7 = vld [vmem:[#allocation7 + $0x258] sm:$0x33] }
 0x32e   :  { %27443 = vmatprep.subr.bf16.mxu0 %v29728_v57  ;;  %27447 = vmatprep.subr.bf16.mxu1 %v29731_v4  ;;  %v30992_v57 = vld [vmem:[%s34413_s4 + $0x50] sm:$0xff]  }
 0x32f   :  { %27445 = vmatpush1.bf16.msra.mxu0 %v29730_v26  ;;  %27449 = vmatpush1.bf16.msra.mxu1 %v29733_v11  ;;  %v30998_v4 = vld [vmem:[%s34413_s4 + $0x10] sm:$0xff]   ;;  %v31004_v26 = vld [vmem:[%s34413_s4 + $0x58] sm:$0xff]  }
 0x330   :  { %24686 = vmatprep.subr.msk.mxu0 %vm2634_vm3, %v2399_v60  ;;  %24689 = vmatprep.subr.msk.mxu1 %vm2634_vm3, %v2401_v14  ;;  %v31010_v11 = vld [vmem:[%s34413_s4 + $0x18] sm:$0xff]   ;;  %v31016_v60 = vld [vmem:[%s34413_s4 + $0x60] sm:$0xff]  }
 0x331   :  { %3798 = vmatprep.mubr.f32.mxu0 %v34472_v54  ;;  %3869 = vmatprep.mubr.f32.mxu1 %v34472_v54  ;;  %v31022_v14 = vld [vmem:[%s34413_s4 + $0x20] sm:$0xff]  }
 0x333   :  { %24687 = vmatpush1.msk.msra.mxu0 %vm2634_vm3, %v2398_v10  ;;  %24690 = vmatpush1.msk.msra.mxu1 %vm2634_vm3, %v2400_v28  ;;  %v31028_v10 = vld [vmem:[%s34413_s4 + $0x68] sm:$0xff]  }
 0x334   :  { %24688 = vmatmul.mubr.msk.f32.vlgmr.msra.gmra.mrb[20].mxu0 %vm2775_vm4, %v30790_v42  ;;  %24691 = vmatmul.mubr.msk.f32.vlgmr.msra.gmra.mrb[30].mxu1 %vm2775_vm4, %v30790_v42  ;;  %v31034_v28 = vld [vmem:[%s34413_s4 + $0x28] sm:$0xff]  }
 0x335   :  { %27451 = vmatprep.subr.bf16.mxu0 %v29734_v44  ;;  %27455 = vmatprep.subr.bf16.mxu1 %v29737_v0  ;;  %v31044_v44 = vld [vmem:[%s34413_s4 + $0x70] sm:$0xff]  }
 0x336   :  { %27453 = vmatpush1.bf16.msra.mxu0 %v29736_v8  ;;  %27457 = vmatpush1.bf16.msra.mxu1 %v29739_v51  ;;  %v31050_v0 = vld [vmem:[%s34413_s4 + $0x30] sm:$0xff]   ;;  %v939_v8 = vadd.f32 %v30640_v19, %v424_v58  ;;  %v31057_v51 = vld [vmem:[%s34413_s4 + $0x78] sm:$0xff]   ;;  %v4453_v58 = vunpack.c.h.bf16 %v4397_v7 }
 0x337   :  { %24692 = vmatprep.subr.msk.mxu0 %vm2634_vm3, %v2403_v15  ;;  %24695 = vmatprep.subr.msk.mxu1 %vm2634_vm3, %v2405_v59  ;;  %v29752_v15 = vld [vmem:[#allocation7 + $0x194] ss:$80 sps:$4 sm:$0xff]  }
 0x338   :  { %3940 = vmatprep.mubr.f32.mxu0 %v34472_v54  ;;  %4011 = vmatprep.mubr.f32.mxu1 %v34472_v54  ;;  %v31063_v59 = vld [vmem:[%s34413_s4 + $0x38] sm:$0xff]  }
 0x339   :  { %34473 = vst [vmem:[#allocation52_spill] sm:$0xff] %v31063_v59  ;;  %v4392_v19 = vld [vmem:[#allocation7 + $0x230] sm:$0x33] }
 0x33a   :  { %24693 = vmatpush1.msk.msra.mxu0 %vm2634_vm3, %v2402_v29  ;;  %24696 = vmatpush1.msk.msra.mxu1 %vm2634_vm3, %v2404_v41  ;;  %v29754_v29 = vld [vmem:[#allocation7 + $0x190] ss:$80 sps:$4 sm:$0xff]   ;;  %v2154_v41 = vmax.f32 %v939_v8, 0.0  ;;  %v4443_v9 = vunpack.c.h.bf16 %v4392_v19 }
 0x33b   :  { %24694 = vmatmul.mubr.msk.f32.vlgmr.msra.gmra.mrb[22].mxu0 %vm2775_vm4, %v30790_v42  ;;  %24697 = vmatmul.mubr.msk.f32.vlgmr.msra.gmra.mrb[32].mxu1 %vm2775_vm4, %v30790_v42 }
 0x33c   :  { %27459 = vmatprep.subr.bf16.mxu0 %v29740_v5  ;;  %27463 = vmatprep.subr.bf16.mxu1 %v29743_v17  ;;  %v4445_v5 = vunpack.c.h.bf16 %v4393_v33  ;;  %v4442_v17 = vunpack.c.l.bf16 %v4392_v19  ;;  %v4399_v19 = vld [vmem:[#allocation7 + $0x268] sm:$0x33] }
 0x33d   :  { %27461 = vmatpush1.bf16.msra.mxu0 %v29742_v56  ;;  %27465 = vmatpush1.bf16.msra.mxu1 %v29745_v13  ;;  %v4444_v56 = vunpack.c.l.bf16 %v4393_v33  ;;  %v29758_v13 = vld [vmem:[#allocation7 + $0x1a4] ss:$80 sps:$4 sm:$0xff]   ;;  %v29772_v33 = vld [vmem:[#allocation7 + $0x1c0] ss:$80 sps:$4 sm:$0xff]  }
 0x33e   :  { %24698 = vmatprep.subr.msk.mxu0 %vm2634_vm3, %v2407_v37  ;;  %24701 = vmatprep.subr.msk.mxu1 %vm2634_vm3, %v2409_v20  ;;  %v29761_v37 = vld [vmem:[#allocation7 + $0x1ac] ss:$80 sps:$4 sm:$0xff]   ;;  %v4394_v20 = vld [vmem:[#allocation7 + $0x240] sm:$0x33] }
 0x33f   :  { %4082 = vmatprep.mubr.f32.mxu0 %v34472_v54  ;;  %4153 = vmatprep.mubr.f32.mxu1 %v34472_v54  ;;  %v4447_v24 = vunpack.c.h.bf16 %v4394_v20 }
 0x341   :  { %24699 = vmatpush1.msk.msra.mxu0 %vm2634_vm3, %v2406_v23  ;;  %24702 = vmatpush1.msk.msra.mxu1 %vm2634_vm3, %v2408_v22  ;;  %v4395_v23 = vld [vmem:[#allocation7 + $0x248] sm:$0x33] }
 0x342   :  { %24700 = vmatmul.mubr.msk.f32.vlgmr.msra.gmra.mrb[24].mxu0 %vm2775_vm4, %v30790_v42  ;;  %24703 = vmatmul.mubr.msk.f32.vlgmr.msra.gmra.mrb[34].mxu1 %vm2775_vm4, %v30790_v42 }
 0x343   :  { %27467 = vmatprep.subr.bf16.mxu0 %v29746_v34  ;;  %27471 = vmatprep.subr.bf16.mxu1 %v29749_v36  ;;  %v29763_v34 = vld [vmem:[#allocation7 + $0x1a8] ss:$80 sps:$4 sm:$0xff]  }
 0x344   :  { %27469 = vmatpush1.bf16.msra.mxu0 %v29748_v18  ;;  %27473 = vmatpush1.bf16.msra.mxu1 %v29751_v30  ;;  %v4449_v18 = vunpack.c.h.bf16 %v4395_v23  ;;  %v4446_v30 = vunpack.c.l.bf16 %v4394_v20  ;;  %v4457_v20 = vunpack.c.h.bf16 %v4399_v19 }
 0x345   :  { %24704 = vmatprep.subr.msk.mxu0 %vm2634_vm3, %v2411_v61  ;;  %24707 = vmatprep.subr.msk.mxu1 %vm2634_vm3, %v2413_v38  ;;  %v4448_v61 = vunpack.c.l.bf16 %v4395_v23  ;;  %v4396_v38 = vld [vmem:[#allocation7 + $0x250] sm:$0x33] }
 0x346   :  { %4224 = vmatprep.mubr.f32.mxu0 %v34472_v54  ;;  %4295 = vmatprep.mubr.f32.mxu1 %v34472_v54  ;;  %v4450_v8 = vunpack.c.l.bf16 %v4396_v38 }
 0x348   :  { %24705 = vmatpush1.msk.msra.mxu0 %vm2634_vm3, %v2410_v50  ;;  %24708 = vmatpush1.msk.msra.mxu1 %vm2634_vm3, %v2412_v16  ;;  %v29764_v50 = vld [vmem:[#allocation7 + $0x1b4] ss:$80 sps:$4 sm:$0xff]   ;;  %v29767_v16 = vld [vmem:[#allocation7 + $0x1bc] ss:$80 sps:$4 sm:$0xff]  }
 0x349   :  { %24706 = vmatmul.mubr.msk.f32.vlgmr.msra.gmra.mrb[26].mxu0 %vm2775_vm4, %v30790_v42  ;;  %24709 = vmatmul.mubr.msk.f32.vlgmr.msra.gmra.mrb[36].mxu1 %vm2775_vm4, %v30790_v42  ;;  %v30979_v42 = vld [vmem:[%s34413_s4 + $0x48] sm:$0xff]  }
 0x34a   :  { %27475 = vmatprep.subr.bf16.mxu0 %v30967_v21  ;;  %4366 = vmatprep.mubr.f32.mxu0 %v2155_v31  ;;  %v29769_v31 = vld [vmem:[#allocation7 + $0x1b8] ss:$80 sps:$4 sm:$0xff]  }
 0x34b   :  { %27477 = vmatpush3.bf16.msra.mxu0 %v30973_v39  ;;  %27511 = vmatprep.subr.bf16.mxu1 %v29755_v62  ;;  %v29766_v62 = vld [vmem:[#allocation7 + $0x1b0] ss:$80 sps:$4 sm:$0xff]  }
 0x34c   :  { %27479 = vmatprep.subr.bf16.mxu0 %v30979_v42  ;;  %27513 = vmatpush1.bf16.msra.mxu1 %v29757_v40  ;;  %v4451_v40 = vunpack.c.h.bf16 %v4396_v38  ;;  %v4401_v38 = vld [vmem:[#allocation7 + $0x278] sm:$0x33] }
 0x34d   :  { %4660 = vmatprep.mubr.f32.mxu1 %v34472_v54  ;;  %24713 = vmatprep.subr.msk.mxu1 %vm2634_vm3, %v4445_v5  ;;  %v29775_v5 = vld [vmem:[#allocation7 + $0x1c8] ss:$80 sps:$4 sm:$0xff]  }
 0x34f   :  { %27481 = vmatpush3.bf16.msra.mxu0 %v30986_v2 }
 0x350   :  { %27483 = vmatprep.subr.bf16.mxu0 %v30992_v57  ;;  %24714 = vmatpush1.msk.msra.mxu1 %vm2634_vm3, %v4444_v56  ;;  %v5335_v56 = vld [vmem:[#allocation7 + $0x280] sm:$0xff] }
 0x351   :  { %27519 = vmatprep.subr.bf16.mxu1 %v29761_v37 }
 0x353   :  { %27485 = vmatpush3.bf16.msra.mxu0 %v30998_v4 }
 0x354   :  { %27487 = vmatprep.subr.bf16.mxu0 %v31004_v26 }
 0x357   :  { %27489 = vmatpush3.bf16.msra.mxu0 %v31010_v11 }
 0x358   :  { %27491 = vmatprep.subr.bf16.mxu0 %v31016_v60 }
 0x35b   :  { %27493 = vmatpush3.bf16.msra.mxu0 %v31022_v14 }
 0x35c   :  { %27495 = vmatprep.subr.bf16.mxu0 %v31028_v10 }
 0x35f   :  { %27497 = vmatpush3.bf16.msra.mxu0 %v31034_v28 }
 0x360   :  { %27499 = vmatprep.subr.bf16.mxu0 %v31044_v44 }
 0x363   :  { %27501 = vmatpush3.bf16.msra.mxu0 %v31050_v0 }
 0x364   :  { %27503 = vmatprep.subr.bf16.mxu0 %v31057_v51 }
 0x367   :  { %27505 = vmatpush3.bf16.msra.mxu0 %v31063_v59 }
 0x368   :  { %27507 = vmatprep.subr.bf16.mxu0 %v29752_v15  ;;  %v4452_v15 = vunpack.c.l.bf16 %v4397_v7  ;;  %v436_v7 = vrot.slane %v31037_v12, %v30683_v55  ;;  %v5352_v55 = vld [vmem:[#allocation7 + $0x308] sm:$0xff] }
 0x36a   :  { %4367 = vmatmul.mubr.f32.vlgmr.msra.gmra.mrb[28].mxu0 %v2154_v41  ;;  %v4398_v41 = vld [vmem:[#allocation7 + $0x260] sm:$0x33] }
 0x36b   :  { %27509 = vmatpush1.bf16.msra.mxu0 %v29754_v29  ;;  %4589 = vmatprep.mubr.f32.mxu0 %v34472_v54  ;;  %v29770_v29 = vld [vmem:[#allocation7 + $0x1c4] ss:$80 sps:$4 sm:$0xff]   ;;  %v4455_v37 = vunpack.c.h.bf16 %v4398_v41  ;;  %v4454_v23 = vunpack.c.l.bf16 %v4398_v41 }
 0x36c   :  { %24710 = vmatprep.subr.msk.mxu0 %vm2634_vm3, %v4443_v9  ;;  %v29773_v9 = vld [vmem:[#allocation7 + $0x1cc] ss:$80 sps:$4 sm:$0xff]  }
 0x36f   :  { %24711 = vmatpush1.msk.msra.mxu0 %vm2634_vm3, %v4442_v17  ;;  %v5325_v17 = vld [vmem:[#allocation7 + $0x230] sm:$0xcc] }
 0x370   :  { %27515 = vmatprep.subr.bf16.mxu0 %v29758_v13  ;;  %v5345_v13 = vld [vmem:[#allocation7 + $0x2d0] sm:$0xff] }
 0x43d   :  { %v26275_v22 = vpop.f32.mrb[28].mxu0 }
 0x43e   :  { %v26276_v6 = vpop.f32.mrb[29].mxu0 }
 0x43f   :  { %v31071_v36 = vadd.f32 %v26276_v6, %v26275_v22  ;;  %v5356_v22 = vunpack.c.h.bf16 %v5325_v17  ;;  %v5376_v6 = vunpack.c.h.bf16 %v5335_v56 }
 0x441   :  { %24712 = vmatmul.mubr.msk.f32.vlgmr.msra.gmra.mrb[18].mxu0 %vm2775_vm4, %v31071_v36  ;;  %24715 = vmatmul.mubr.msk.f32.vlgmr.msra.gmra.mrb[28].mxu1 %vm2775_vm4, %v31071_v36 }
 0x442   :  { %27517 = vmatpush1.bf16.msra.mxu0 %v29760_v1  ;;  %27521 = vmatpush1.bf16.msra.mxu1 %v29763_v34  ;;  %v5396_v1 = vunpack.c.h.bf16 %v5345_v13  ;;  %v4456_v34 = vunpack.c.l.bf16 %v4399_v19 }
 0x443   :  { %24716 = vmatprep.subr.msk.mxu0 %vm2634_vm3, %v4447_v24  ;;  %24719 = vmatprep.subr.msk.mxu1 %vm2634_vm3, %v4449_v18  ;;  %v4400_v24 = vld [vmem:[#allocation7 + $0x270] sm:$0x33]  ;;  %v5355_v18 = vunpack.c.l.bf16 %v5325_v17  ;;  %v4460_v17 = vunpack.c.l.bf16 %v4401_v38 }
 0x444   :  { %4731 = vmatprep.mubr.f32.mxu0 %v34472_v54  ;;  %4802 = vmatprep.mubr.f32.mxu1 %v34472_v54 }
 0x445   :  { %v5475_v41 = vrot.slane %v5355_v18, 4 }
 0x446   :  { %24717 = vmatpush1.msk.msra.mxu0 %vm2634_vm3, %v4446_v30  ;;  %24720 = vmatpush1.msk.msra.mxu1 %vm2634_vm3, %v4448_v61  ;;  %v5375_v30 = vunpack.c.l.bf16 %v5335_v56  ;;  %v5395_v61 = vunpack.c.l.bf16 %v5345_v13 }
 0x447   :  { %24718 = vmatmul.mubr.msk.f32.vlgmr.msra.gmra.mrb[20].mxu0 %vm2775_vm4, %v31071_v36  ;;  %24721 = vmatmul.mubr.msk.f32.vlgmr.msra.gmra.mrb[30].mxu1 %vm2775_vm4, %v31071_v36 }
 0x448   :  { %27523 = vmatprep.subr.bf16.mxu0 %v29764_v50  ;;  %27527 = vmatprep.subr.bf16.mxu1 %v29767_v16  ;;  %v29776_v50 = vld [vmem:[#allocation7 + $0x1d4] ss:$80 sps:$4 sm:$0xff]   ;;  %v29778_v16 = vld [vmem:[#allocation7 + $0x1d0] ss:$80 sps:$4 sm:$0xff]   ;;  %v5476_v19 = vrot.slane %v5375_v30, 4 }
 0x449   :  { %27525 = vmatpush1.bf16.msra.mxu0 %v29766_v62  ;;  %27529 = vmatpush1.bf16.msra.mxu1 %v29769_v31  ;;  %v29779_v62 = vld [vmem:[#allocation7 + $0x1dc] ss:$80 sps:$4 sm:$0xff]   ;;  %v29781_v31 = vld [vmem:[#allocation7 + $0x1d8] ss:$80 sps:$4 sm:$0xff]  }
 0x44a   :  { %24722 = vmatprep.subr.msk.mxu0 %vm2634_vm3, %v4451_v40  ;;  %24725 = vmatprep.subr.msk.mxu1 %vm2634_vm3, %v4453_v58  ;;  %v4459_v40 = vunpack.c.h.bf16 %v4400_v24  ;;  %v5478_v58 = vrot.slane %v5356_v22, 4 }
 0x44b   :  { %4873 = vmatprep.mubr.f32.mxu0 %v34472_v54  ;;  %4944 = vmatprep.mubr.f32.mxu1 %v34472_v54 }
 0x44d   :  { %24723 = vmatpush1.msk.msra.mxu0 %vm2634_vm3, %v4450_v8  ;;  %24726 = vmatpush1.msk.msra.mxu1 %vm2634_vm3, %v4452_v15  ;;  %v5479_v8 = vrot.slane %v5376_v6, 4  ;;  %v5537_v15 = vrot.slane %v5396_v1, 4  ;;  %v5336_v6 = vld [vmem:[#allocation7 + $0x288] sm:$0xff]  ;;  %v5346_v1 = vld [vmem:[#allocation7 + $0x2d8] sm:$0xff] }
 0x44e   :  { %24724 = vmatmul.mubr.msk.f32.vlgmr.msra.gmra.mrb[22].mxu0 %vm2775_vm4, %v31071_v36  ;;  %24727 = vmatmul.mubr.msk.f32.vlgmr.msra.gmra.mrb[32].mxu1 %vm2775_vm4, %v31071_v36  ;;  %v5398_v18 = vunpack.c.h.bf16 %v5346_v1 }
 0x44f   :  { %27531 = vmatprep.subr.bf16.mxu0 %v29770_v29  ;;  %27535 = vmatprep.subr.bf16.mxu1 %v29773_v9  ;;  %v4461_v29 = vunpack.c.h.bf16 %v4401_v38  ;;  %v1012_v9 = vadd.f32 %v30653_v27, %v436_v7  ;;  %v5480_v56 = vsel %vm2634_vm3, %v5478_v58, %v5479_v8  ;;  %v5538_v13 = vsel %vm2634_vm3, %v5479_v8, %v5537_v15 }
 0x450   :  { %27533 = vmatpush1.bf16.msra.mxu0 %v29772_v33  ;;  %27537 = vmatpush1.bf16.msra.mxu1 %v29775_v5  ;;  %v5535_v33 = vrot.slane %v5395_v61, 4  ;;  %v4458_v5 = vunpack.c.l.bf16 %v4400_v24  ;;  %v27578_v27 = vpack.c.bf16 %v5538_v13, %v5480_v56  ;;  %v5378_v24 = vunpack.c.h.bf16 %v5336_v6 }
 0x451   :  { %24728 = vmatprep.subr.msk.mxu0 %vm2634_vm3, %v4455_v37  ;;  %24731 = vmatprep.subr.msk.mxu1 %vm2634_vm3, %v4457_v20  ;;  %v5477_v37 = vsel %vm2634_vm3, %v5475_v41, %v5476_v19  ;;  %v5377_v61 = vunpack.c.l.bf16 %v5336_v6  ;;  %v5397_v38 = vunpack.c.l.bf16 %v5346_v1  ;;  %v5348_v6 = vld [vmem:[#allocation7 + $0x2e8] sm:$0xff] }
 0x452   :  { %5015 = vmatprep.mubr.f32.mxu0 %v34472_v54  ;;  %5086 = vmatprep.mubr.f32.mxu1 %v34472_v54  ;;  %v5536_v20 = vsel %vm2634_vm3, %v5476_v19, %v5535_v33 }
 0x453   :  { %v27580_v22 = vpack.c.bf16 %v5536_v20, %v5477_v37  ;;  %v5539_v58 = vrot.slane %v5397_v38, 4  ;;  %v5328_v20 = vld [vmem:[#allocation7 + $0x248] sm:$0xcc] }
 0x454   :  { %24729 = vmatpush1.msk.msra.mxu0 %vm2634_vm3, %v4454_v23  ;;  %24732 = vmatpush1.msk.msra.mxu1 %vm2634_vm3, %v4456_v34  ;;  %v2157_v23 = vmax.f32 %v1012_v9, 0.0  ;;  %v5361_v1 = vunpack.c.l.bf16 %v5328_v20 }
 0x455   :  { %24730 = vmatmul.mubr.msk.f32.vlgmr.msra.gmra.mrb[24].mxu0 %vm2775_vm4, %v31071_v36  ;;  %24733 = vmatmul.mubr.msk.f32.vlgmr.msra.gmra.mrb[34].mxu1 %vm2775_vm4, %v31071_v36 }
 0x456   :  { %27539 = vmatprep.subr.bf16.mxu0 %v29776_v50  ;;  %27543 = vmatprep.subr.bf16.mxu1 %v29779_v62  ;;  %v5485_v50 = vrot.slane %v5378_v24, 4  ;;  %v432_v62 = vrot.slane %v31037_v12, %v30676_v45 }
 0x457   :  { %27541 = vmatpush1.bf16.msra.mxu0 %v29778_v16  ;;  %27545 = vmatpush1.bf16.msra.mxu1 %v29781_v31  ;;  %v5541_v16 = vrot.slane %v5398_v18, 4 }
 0x458   :  { %24734 = vmatprep.subr.msk.mxu0 %vm2634_vm3, %v4459_v40  ;;  %24737 = vmatprep.subr.msk.mxu1 %vm2634_vm3, %v4461_v29  ;;  %v5482_v40 = vrot.slane %v5377_v61, 4  ;;  %v1010_v29 = vadd.f32 %v30649_v25, %v432_v62  ;;  %v5327_v25 = vld [vmem:[#allocation7 + $0x240] sm:$0xcc] }
 0x459   :  { %5157 = vmatprep.mubr.f32.mxu0 %v34472_v54  ;;  %5228 = vmatprep.mubr.f32.mxu1 %v34472_v54  ;;  %v5360_v56 = vunpack.c.h.bf16 %v5327_v25 }
 0x45a   :  { %v5540_v12 = vsel %vm2634_vm3, %v5482_v40, %v5539_v58  ;;  %v2156_v9 = vmax.f32 %v1010_v29, 0.0 }
 0x45b   :  { %24735 = vmatpush1.msk.msra.mxu0 %vm2634_vm3, %v4458_v5  ;;  %24738 = vmatpush1.msk.msra.mxu1 %vm2634_vm3, %v4460_v17  ;;  %v5337_v5 = vld [vmem:[#allocation7 + $0x290] sm:$0xff]  ;;  %v5347_v17 = vld [vmem:[#allocation7 + $0x2e0] sm:$0xff] }
 0x45c   :  { %24736 = vmatmul.mubr.msk.f32.vlgmr.msra.gmra.mrb[26].mxu0 %vm2775_vm4, %v31071_v36  ;;  %24739 = vmatmul.mubr.msk.f32.vlgmr.msra.gmra.mrb[36].mxu1 %vm2775_vm4, %v31071_v36  ;;  %v5326_v36 = vld [vmem:[#allocation7 + $0x238] sm:$0xcc]  ;;  %v5380_v13 = vunpack.c.h.bf16 %v5337_v5  ;;  %v5400_v37 = vunpack.c.h.bf16 %v5347_v17 }
 0x45d   :  { %27547 = vmatprep.subr.bf16.mxu1 %v30967_v21  ;;  %5319 = vmatprep.mubr.f32.mxu1 %v2157_v23  ;;  %v5358_v34 = vunpack.c.h.bf16 %v5326_v36  ;;  %v5357_v30 = vunpack.c.l.bf16 %v5326_v36  ;;  %v5359_v23 = vunpack.c.l.bf16 %v5327_v25  ;;  %v5399_v36 = vunpack.c.l.bf16 %v5347_v17 }
 0x45e   :  { %27549 = vmatpush3.bf16.msra.mxu1 %v30973_v39  ;;  %27579 = vmatprep.subr.bf16.mxu0 %v27578_v27  ;;  %v5338_v27 = vld [vmem:[#allocation7 + $0x298] sm:$0xff]  ;;  %v5491_v24 = vrot.slane %v5380_v13, 4  ;;  %v31153_v18 = vrot.slane %v5400_v37, 4 }
 0x45f   :  { %27551 = vmatprep.subr.bf16.mxu1 %v30979_v42  ;;  %27581 = vmatpush1.bf16.msra.mxu0 %v27580_v22  ;;  %v5484_v7 = vrot.slane %v5358_v34, 4  ;;  %v5481_v31 = vrot.slane %v5357_v30, 4  ;;  %v5379_v22 = vunpack.c.l.bf16 %v5337_v5  ;;  %v5490_v34 = vrot.slane %v5360_v56, 4 }
 0x460   :  { %24740 = vmatprep.subr.msk.mxu0 %vm2634_vm3, %v5537_v15  ;;  %5722 = vmatprep.mubr.f32.mxu0 %v34472_v54  ;;  %v5542_v15 = vsel %vm2634_vm3, %v5485_v50, %v5541_v16  ;;  %v5362_v30 = vunpack.c.h.bf16 %v5328_v20  ;;  %v5487_v61 = vrot.slane %v5359_v23, 4  ;;  %v5546_v62 = vsel %vm2634_vm3, %v5491_v24, %v31153_v18  ;;  %v5329_v23 = vld [vmem:[#allocation7 + $0x250] sm:$0xcc] }
 0x461   :  { %v5486_v8 = vsel %vm2634_vm3, %v5484_v7, %v5485_v50  ;;  %v5483_v19 = vsel %vm2634_vm3, %v5481_v31, %v5482_v40  ;;  %v5488_v38 = vrot.slane %v5379_v22, 4  ;;  %v31155_v7 = vrot.slane %v5399_v36, 4  ;;  %v5339_v22 = vld [vmem:[#allocation7 + $0x2a0] sm:$0xff]  ;;  %v5349_v36 = vld [vmem:[#allocation7 + $0x2f0] sm:$0xff] }
 0x462   :  { %27553 = vmatpush3.bf16.msra.mxu1 %v30986_v2  ;;  %v27582_v41 = vpack.c.bf16 %v5542_v15, %v5486_v8  ;;  %v5381_v50 = vunpack.c.l.bf16 %v5338_v27  ;;  %v5382_v31 = vunpack.c.h.bf16 %v5338_v27  ;;  %v5401_v40 = vunpack.c.l.bf16 %v5348_v6 }
 0x463   :  { %27555 = vmatprep.subr.bf16.mxu1 %v30992_v57  ;;  %24741 = vmatpush1.msk.msra.mxu0 %vm2634_vm3, %v5535_v33  ;;  %v27584_v33 = vpack.c.bf16 %v5540_v12, %v5483_v19  ;;  %v5402_v8 = vunpack.c.h.bf16 %v5348_v6  ;;  %v5493_v15 = vrot.slane %v5361_v1, 4  ;;  %v31169_v25 = vsel %vm2634_vm3, %v5488_v38, %v31155_v7 }
 0x464   :  { %v5494_v29 = vrot.slane %v5381_v50, 4  ;;  %v5497_v19 = vrot.slane %v5382_v31, 4  ;;  %v31160_v12 = vrot.slane %v5401_v40, 4  ;;  %v5363_v6 = vunpack.c.l.bf16 %v5329_v23 }
 0x465   :  { %v5364_v1 = vunpack.c.h.bf16 %v5329_v23  ;;  %v5403_v50 = vunpack.c.l.bf16 %v5349_v36 }
 0x466   :  { %27557 = vmatpush3.bf16.msra.mxu1 %v30998_v4  ;;  %v31172_v5 = vsel %vm2634_vm3, %v5493_v15, %v5494_v29  ;;  %v31179_v13 = vsel %vm2634_vm3, %v5494_v29, %v31160_v12 }
 0x467   :  { %27559 = vmatprep.subr.bf16.mxu1 %v31004_v26  ;;  %v5502_v31 = vrot.slane %v5364_v1, 4 }
 0x46a   :  { %27561 = vmatpush3.bf16.msra.mxu1 %v31010_v11 }
 0x46b   :  { %27563 = vmatprep.subr.bf16.mxu1 %v31016_v60 }
 0x46e   :  { %27565 = vmatpush3.bf16.msra.mxu1 %v31022_v14 }
 0x46f   :  { %27567 = vmatprep.subr.bf16.mxu1 %v31028_v10 }
 0x472   :  { %27569 = vmatpush3.bf16.msra.mxu1 %v31034_v28 }
 0x473   :  { %27571 = vmatprep.subr.bf16.mxu1 %v31044_v44 }
 0x476   :  { %27573 = vmatpush3.bf16.msra.mxu1 %v31050_v0 }
 0x477   :  { %27575 = vmatprep.subr.bf16.mxu1 %v31057_v51 }
 0x47a   :  { %27577 = vmatpush3.bf16.msra.mxu1 %v31063_v59 }
 0x47b   :  { %27583 = vmatprep.subr.bf16.mxu1 %v27582_v41  ;;  %v5496_v41 = vrot.slane %v5362_v30, 4  ;;  %v5383_v30 = vunpack.c.l.bf16 %v5339_v22 }
 0x47d   :  { %5320 = vmatmul.mubr.f32.vlgmr.msra.gmra.mrb[38].mxu1 %v2156_v9  ;;  %v31165_v9 = vrot.slane %v5402_v8, 4  ;;  %v5498_v17 = vsel %vm2634_vm3, %v5496_v41, %v5497_v19  ;;  %v5331_v41 = vld [vmem:[#allocation7 + $0x260] sm:$0xcc] }
 0x47e   :  { %27585 = vmatpush1.bf16.msra.mxu1 %v27584_v33  ;;  %5793 = vmatprep.mubr.f32.mxu1 %v34472_v54  ;;  %v31163_v33 = vsel %vm2634_vm3, %v5487_v61, %v5488_v38  ;;  %v5330_v61 = vld [vmem:[#allocation7 + $0x258] sm:$0xcc]  ;;  %v5340_v38 = vld [vmem:[#allocation7 + $0x2a8] sm:$0xff] }
 0x47f   :  { %24743 = vmatprep.subr.msk.mxu1 %vm2634_vm3, %v5541_v16  ;;  %v5492_v16 = vsel %vm2634_vm3, %v5490_v34, %v5491_v24  ;;  %v5550_v37 = vsel %vm2634_vm3, %v5497_v19, %v31165_v9  ;;  %v5384_v34 = vunpack.c.h.bf16 %v5339_v22  ;;  %v5404_v24 = vunpack.c.h.bf16 %v5349_v36  ;;  %v5341_v19 = vld [vmem:[#allocation7 + $0x2b0] sm:$0xff] }
 0x480   :  { %v27590_v27 = vpack.c.bf16 %v5550_v37, %v5498_v17  ;;  %v5365_v8 = vunpack.c.l.bf16 %v5330_v61  ;;  %v5366_v15 = vunpack.c.h.bf16 %v5330_v61  ;;  %v5385_v29 = vunpack.c.l.bf16 %v5340_v38  ;;  %v5351_v17 = vld [vmem:[#allocation7 + $0x300] sm:$0xff] }
 0x481   :  { %v5503_v40 = vrot.slane %v5384_v34, 4  ;;  %v5500_v37 = vrot.slane %v5383_v30, 4  ;;  %v31187_v22 = vrot.slane %v5403_v50, 4  ;;  %v5388_v1 = vunpack.c.h.bf16 %v5341_v19 }
 0x482   :  { %24744 = vmatpush1.msk.msra.mxu1 %vm2634_vm3, %v5539_v58  ;;  %v27586_v58 = vpack.c.bf16 %v5546_v62, %v5492_v16  ;;  %v5350_v16 = vld [vmem:[#allocation7 + $0x2f8] sm:$0xff]  ;;  %v5499_v62 = vrot.slane %v5363_v6, 4  ;;  %v5368_v6 = vunpack.c.h.bf16 %v5331_v41  ;;  %v5408_v34 = vunpack.c.h.bf16 %v5351_v17 }
 0x483   :  { %27591 = vmatprep.subr.bf16.mxu1 %v27590_v27  ;;  %v5386_v27 = vunpack.c.h.bf16 %v5340_v38  ;;  %v5405_v23 = vunpack.c.l.bf16 %v5350_v16  ;;  %v5406_v20 = vunpack.c.h.bf16 %v5350_v16  ;;  %v31190_v36 = vsel %vm2634_vm3, %v5502_v31, %v5503_v40  ;;  %v5342_v31 = vld [vmem:[#allocation7 + $0x2b8] sm:$0xff] }
 0x484   :  { %27587 = vmatprep.subr.bf16.mxu0 %v27586_v58  ;;  %v31185_v58 = vrot.slane %v5404_v24, 4  ;;  %v5505_v61 = vrot.slane %v5365_v8, 4  ;;  %v5506_v56 = vrot.slane %v5385_v29, 4  ;;  %v5508_v45 = vrot.slane %v5366_v15, 4 }
 0x485   :  { %v5509_v30 = vrot.slane %v5386_v27, 4  ;;  %v31196_v38 = vrot.slane %v5405_v23, 4  ;;  %v31198_v16 = vrot.slane %v5406_v20, 4  ;;  %v31201_v50 = vsel %vm2634_vm3, %v5499_v62, %v5500_v37 }
 0x486   :  { %v31194_v24 = vsel %vm2634_vm3, %v5503_v40, %v31185_v58  ;;  %v31205_v53 = vsel %vm2634_vm3, %v5500_v37, %v31187_v22  ;;  %v5367_v40 = vunpack.c.l.bf16 %v5331_v41  ;;  %v5387_v47 = vunpack.c.l.bf16 %v5341_v19 }
 0x487   :  { %v5407_v8 = vunpack.c.l.bf16 %v5351_v17  ;;  %v5514_v29 = vrot.slane %v5368_v6, 4  ;;  %v5515_v15 = vrot.slane %v5388_v1, 4  ;;  %v31207_v63 = vrot.slane %v5408_v34, 4 }
 0x488   :  { %v5369_v27 = vunpack.c.l.bf16 %v5332_v49  ;;  %v5370_v20 = vunpack.c.h.bf16 %v5332_v49  ;;  %v5389_v3 = vunpack.c.l.bf16 %v5342_v31  ;;  %v5390_v43 = vunpack.c.h.bf16 %v5342_v31 }
 0x489   :  { %v5410_v62 = vunpack.c.h.bf16 %v5352_v55  ;;  %v5510_v59 = vsel %vm2634_vm3, %v5508_v45, %v5509_v30  ;;  %v5558_v37 = vsel %vm2634_vm3, %v5509_v30, %v31198_v16  ;;  %v5507_v41 = vsel %vm2634_vm3, %v5505_v61, %v5506_v56 }
 0x48a   :  { %v5409_v19 = vunpack.c.l.bf16 %v5352_v55  ;;  %v5556_v6 = vsel %vm2634_vm3, %v5506_v56, %v31196_v38  ;;  %v5511_v1 = vrot.slane %v5367_v40, 4  ;;  %v5512_v34 = vrot.slane %v5387_v47, 4 }
 0x48b   :  { %v31218_v49 = vsel %vm2634_vm3, %v5514_v29, %v5515_v15  ;;  %v31220_v31 = vrot.slane %v5407_v8, 4  ;;  %v31224_v45 = vsel %vm2634_vm3, %v5515_v15, %v31207_v63  ;;  %v5517_v30 = vrot.slane %v5369_v27, 4  ;;  %v5333_v15 = vld [vmem:[#allocation7 + $0x270] sm:$0xcc] }
 0x48c   :  { %v5520_v55 = vrot.slane %v5370_v20, 4  ;;  %v5521_v56 = vrot.slane %v5390_v43, 4  ;;  %v31230_v47 = vrot.slane %v5410_v62, 4  ;;  %v34474_v61 = vpack.c.bf16 %v31169_v25, %v31163_v33  ;;  %v5343_v25 = vld [vmem:[#allocation7 + $0x2c0] sm:$0xff] }
 0x48d   :  { %v34475_v40 = vpack.c.bf16 %v31179_v13, %v31172_v5  ;;  %v27594_v8 = vpack.c.bf16 %v31194_v24, %v31190_v36  ;;  %v31240_v29 = vrot.slane %v5409_v19, 4  ;;  %v27596_v43 = vpack.c.bf16 %v31205_v53, %v31201_v50  ;;  %v5353_v5 = vld [vmem:[#allocation7 + $0x310] sm:$0xff]  ;;  %v5354_v24 = vld [vmem:[#allocation7 + $0x318] sm:$0xff] }
 0x48e   :  { %v27600_v33 = vpack.c.bf16 %v5556_v6, %v5507_v41  ;;  %v27602_v13 = vpack.c.bf16 %v31224_v45, %v31218_v49  ;;  %v5513_v36 = vsel %vm2634_vm3, %v5511_v1, %v5512_v34  ;;  %v5522_v53 = vsel %vm2634_vm3, %v5520_v55, %v5521_v56 }
 0x48f   :  { %v5566_v50 = vsel %vm2634_vm3, %v5521_v56, %v31230_v47  ;;  %v5372_v62 = vunpack.c.h.bf16 %v5333_v15  ;;  %v5412_v41 = vunpack.c.h.bf16 %v5353_v5  ;;  %v5391_v19 = vunpack.c.l.bf16 %v5343_v25 }
 0x490   :  { %v5413_v45 = vunpack.c.l.bf16 %v5354_v24 }
 0x550   :  { %v26310_v23 = vpop.f32.mrb[38].mxu1 }
 0x551   :  { %v26311_v46 = vpop.f32.mrb[39].mxu1 }
 0x552   :  { %v31213_v17 = vadd.f32 %v26311_v46, %v26310_v23  ;;  %v5518_v46 = vrot.slane %v5389_v3, 4  ;;  %v27598_v3 = vpack.c.bf16 %v5558_v37, %v5510_v59  ;;  %v5344_v59 = vld [vmem:[#allocation7 + $0x2c8] sm:$0xff]  ;;  %v5371_v23 = vunpack.c.l.bf16 %v5333_v15 }
 0x553   :  { %v5392_v37 = vunpack.c.h.bf16 %v5343_v25  ;;  %v5394_v1 = vunpack.c.h.bf16 %v5344_v59  ;;  %v5393_v49 = vunpack.c.l.bf16 %v5344_v59  ;;  %v5524_v15 = vrot.slane %v5391_v19, 4 }
 0x554   :  { %24742 = vmatmul.mubr.msk.f32.vlgmr.msra.gmra.mrb[18].mxu0 %vm2775_vm4, %v31213_v17  ;;  %24745 = vmatmul.mubr.msk.f32.vlgmr.msra.gmra.mrb[28].mxu1 %vm2775_vm4, %v31213_v17  ;;  %v5519_v27 = vsel %vm2634_vm3, %v5517_v30, %v5518_v46  ;;  %v5564_v20 = vsel %vm2634_vm3, %v5518_v46, %v31240_v29  ;;  %v27606_v30 = vpack.c.bf16 %v5566_v50, %v5522_v53  ;;  %v5523_v56 = vrot.slane %v5371_v23, 4 }
 0x555   :  { %27589 = vmatpush1.bf16.msra.mxu0 %v34474_v61  ;;  %27593 = vmatpush1.bf16.msra.mxu1 %v34475_v40  ;;  %v27608_v55 = vpack.c.bf16 %v5564_v20, %v5519_v27  ;;  %v5526_v61 = vrot.slane %v5372_v62, 4  ;;  %v5527_v40 = vrot.slane %v5392_v37, 4  ;;  %v30039_v27 = vld [vmem:[#allocation5 + $0x8] sm:$0xff] }
 0x556   :  { %24746 = vmatprep.subr.msk.mxu0 %vm2634_vm3, %v31153_v18  ;;  %24749 = vmatprep.subr.msk.mxu1 %vm2634_vm3, %v31165_v9  ;;  %v5560_v18 = vsel %vm2634_vm3, %v5512_v34, %v31220_v31  ;;  %v5334_v9 = vld [vmem:[#allocation7 + $0x278] sm:$0xcc]  ;;  %v5414_v34 = vunpack.c.h.bf16 %v5354_v24  ;;  %v444_v23 = vrot.slane %v30039_v27, %v30606_v52  ;;  %v29790_v37 = vld [vmem:[#allocation7 + $0x330] ss:$80 sps:$4 sm:$0xff]  }
 0x557   :  { %5864 = vmatprep.mubr.f32.mxu0 %v34472_v54  ;;  %5935 = vmatprep.mubr.f32.mxu1 %v34472_v54  ;;  %v5374_v6 = vunpack.c.h.bf16 %v5334_v9  ;;  %v27604_v46 = vpack.c.bf16 %v5560_v18, %v5513_v36  ;;  %v5530_v36 = vrot.slane %v5393_v49, 4  ;;  %v5571_v18 = vrot.slane %v5413_v45, 4  ;;  %v6483_v49 = vld [vmem:[#allocation7 + $0x3e8] sm:$0x33]  ;;  %v29794_v45 = vld [vmem:[#allocation7 + $0x344] ss:$80 sps:$4 sm:$0xff]  }
 0x559   :  { %24747 = vmatpush1.msk.msra.mxu0 %vm2634_vm3, %v31155_v7  ;;  %24750 = vmatpush1.msk.msra.mxu1 %vm2634_vm3, %v31160_v12  ;;  %v5411_v7 = vunpack.c.l.bf16 %v5353_v5  ;;  %v5373_v12 = vunpack.c.l.bf16 %v5334_v9  ;;  %v5572_v53 = vsel %vm2634_vm3, %v5530_v36, %v5571_v18 }
 0x55a   :  { %24748 = vmatmul.mubr.msk.f32.vlgmr.msra.gmra.mrb[20].mxu0 %vm2775_vm4, %v31213_v17  ;;  %24751 = vmatmul.mubr.msk.f32.vlgmr.msra.gmra.mrb[30].mxu1 %vm2775_vm4, %v31213_v17 }
 0x55b   :  { %27595 = vmatprep.subr.bf16.mxu0 %v27594_v8  ;;  %27599 = vmatprep.subr.bf16.mxu1 %v27598_v3  ;;  %v5569_v8 = vrot.slane %v5412_v41, 4  ;;  %v5532_v3 = vrot.slane %v5374_v6, 4  ;;  %v5567_v25 = vrot.slane %v5411_v7, 4  ;;  %v5529_v5 = vrot.slane %v5373_v12, 4  ;;  %v29793_v41 = vld [vmem:[#allocation7 + $0x338] ss:$80 sps:$4 sm:$0xff]  }
 0x55c   :  { %27597 = vmatpush1.bf16.msra.mxu0 %v27596_v43  ;;  %27601 = vmatpush1.bf16.msra.mxu1 %v27600_v33  ;;  %v5533_v43 = vrot.slane %v5394_v1, 4  ;;  %v5573_v33 = vrot.slane %v5414_v34, 4  ;;  %v6482_v12 = vld [vmem:[#allocation7 + $0x3e0] sm:$0x33] }
 0x55d   :  { %24752 = vmatprep.subr.msk.mxu0 %vm2634_vm3, %v31185_v58  ;;  %24755 = vmatprep.subr.msk.mxu1 %vm2634_vm3, %v31198_v16  ;;  %v5528_v58 = vsel %vm2634_vm3, %v5526_v61, %v5527_v40  ;;  %v5570_v16 = vsel %vm2634_vm3, %v5527_v40, %v5569_v8  ;;  %v5531_v24 = vsel %vm2634_vm3, %v5529_v5, %v5530_v36  ;;  %v6539_v61 = vunpack.c.h.bf16 %v6483_v49  ;;  %v29805_v5 = vld [vmem:[#allocation7 + $0x358] ss:$80 sps:$4 sm:$0xff]   ;;  %v7411_v36 = vld [vmem:[#allocation7 + $0x3c0] sm:$0xcc] }
 0x55e   :  { %6006 = vmatprep.mubr.f32.mxu0 %v34472_v54  ;;  %6077 = vmatprep.mubr.f32.mxu1 %v34472_v54  ;;  %v5534_v9 = vsel %vm2634_vm3, %v5532_v3, %v5533_v43  ;;  %v5574_v59 = vsel %vm2634_vm3, %v5533_v43, %v5573_v33  ;;  %v27616_v62 = vpack.c.bf16 %v5572_v53, %v5531_v24  ;;  %v6536_v40 = vunpack.c.l.bf16 %v6482_v12  ;;  %v6484_v3 = vld [vmem:[#allocation7 + $0x3f0] sm:$0x33]  ;;  %v6485_v43 = vld [vmem:[#allocation7 + $0x3f8] sm:$0x33] }
 0x55f   :  { %v27614_v50 = vpack.c.bf16 %v5574_v59, %v5534_v9  ;;  %v6543_v9 = vunpack.c.h.bf16 %v6485_v43  ;;  %v6540_v59 = vunpack.c.l.bf16 %v6484_v3  ;;  %v6542_v53 = vunpack.c.l.bf16 %v6485_v43 }
 0x560   :  { %24753 = vmatpush1.msk.msra.mxu0 %vm2634_vm3, %v31187_v22  ;;  %24756 = vmatpush1.msk.msra.mxu1 %vm2634_vm3, %v31196_v38  ;;  %v5525_v22 = vsel %vm2634_vm3, %v5523_v56, %v5524_v15  ;;  %v5568_v38 = vsel %vm2634_vm3, %v5524_v15, %v5567_v25  ;;  %v6537_v56 = vunpack.c.h.bf16 %v6482_v12  ;;  %v29800_v15 = vld [vmem:[#allocation7 + $0x354] ss:$80 sps:$4 sm:$0xff]   ;;  %v7422_v12 = vld [vmem:[#allocation7 + $0x418] sm:$0xff] }
 0x561   :  { %24754 = vmatmul.mubr.msk.f32.vlgmr.msra.gmra.mrb[22].mxu0 %vm2775_vm4, %v31213_v17  ;;  %24757 = vmatmul.mubr.msk.f32.vlgmr.msra.gmra.mrb[32].mxu1 %vm2775_vm4, %v31213_v17  ;;  %v27612_v20 = vpack.c.bf16 %v5568_v38, %v5525_v22  ;;  %v7442_v22 = vunpack.c.h.bf16 %v7411_v36 }
 0x562   :  { %27603 = vmatprep.subr.bf16.mxu0 %v27602_v13  ;;  %27607 = vmatprep.subr.bf16.mxu1 %v27606_v30  ;;  %v27610_v13 = vpack.c.bf16 %v5570_v16, %v5528_v58  ;;  %v29797_v30 = vld [vmem:[#allocation7 + $0x34c] ss:$80 sps:$4 sm:$0xff]   ;;  %v7431_v58 = vld [vmem:[#allocation7 + $0x460] sm:$0xff]  ;;  %v6541_v16 = vunpack.c.h.bf16 %v6484_v3 }
 0x563   :  { %27605 = vmatpush1.bf16.msra.mxu0 %v27604_v46  ;;  %27609 = vmatpush1.bf16.msra.mxu1 %v27608_v55  ;;  %v29796_v46 = vld [vmem:[#allocation7 + $0x340] ss:$80 sps:$4 sm:$0xff]   ;;  %v29799_v55 = vld [vmem:[#allocation7 + $0x348] ss:$80 sps:$4 sm:$0xff]   ;;  %v7482_v24 = vunpack.c.h.bf16 %v7431_v58 }
 0x564   :  { %24758 = vmatprep.subr.msk.mxu0 %vm2634_vm3, %v31207_v63  ;;  %24761 = vmatprep.subr.msk.mxu1 %vm2634_vm3, %v31230_v47  ;;  %v1083_v63 = vadd.f32 %v30661_v35, %v444_v23  ;;  %v440_v35 = vrot.slane %v30039_v27, %v30596_v48  ;;  %v7481_v23 = vunpack.c.l.bf16 %v7431_v58 }
 0x565   :  { %6148 = vmatprep.mubr.f32.mxu0 %v34472_v54  ;;  %6219 = vmatprep.mubr.f32.mxu1 %v34472_v54 }
 0x566   :  { %v2159_v47 = vmax.f32 %v1083_v63, 0.0  ;;  %v29808_v63 = vld [vmem:[#allocation7 + $0x360] ss:$80 sps:$4 sm:$0xff]  }
 0x567   :  { %24759 = vmatpush1.msk.msra.mxu0 %vm2634_vm3, %v31220_v31  ;;  %24762 = vmatpush1.msk.msra.mxu1 %vm2634_vm3, %v31240_v29  ;;  %v29785_v31 = vld [vmem:[#allocation7 + $0x32c] ss:$80 sps:$4 sm:$0xff]   ;;  %v29787_v29 = vld [vmem:[#allocation7 + $0x328] ss:$80 sps:$4 sm:$0xff]  }
 0x568   :  { %24760 = vmatmul.mubr.msk.f32.vlgmr.msra.gmra.mrb[24].mxu0 %vm2775_vm4, %v31213_v17  ;;  %24763 = vmatmul.mubr.msk.f32.vlgmr.msra.gmra.mrb[34].mxu1 %vm2775_vm4, %v31213_v17 }
 0x569   :  { %27611 = vmatprep.subr.bf16.mxu0 %v27610_v13  ;;  %27615 = vmatprep.subr.bf16.mxu1 %v27614_v50  ;;  %v6486_v13 = vld [vmem:[#allocation7 + $0x400] sm:$0x33]  ;;  %v7441_v50 = vunpack.c.l.bf16 %v7411_v36  ;;  %v31470_v36 = vld [vmem:[%s34413_s4 + $0x70] sm:$0xff]  }
 0x56a   :  { %27613 = vmatpush1.bf16.msra.mxu0 %v27612_v20  ;;  %27617 = vmatpush1.bf16.msra.mxu1 %v27616_v62  ;;  %v6487_v20 = vld [vmem:[#allocation7 + $0x408] sm:$0x33]  ;;  %v29806_v62 = vld [vmem:[#allocation7 + $0x364] ss:$80 sps:$4 sm:$0xff]  }
 0x56b   :  { %24764 = vmatprep.subr.msk.mxu0 %vm2634_vm3, %v5569_v8  ;;  %24767 = vmatprep.subr.msk.mxu1 %vm2634_vm3, %v5573_v33  ;;  %v6538_v8 = vunpack.c.l.bf16 %v6483_v49  ;;  %v29802_v33 = vld [vmem:[#allocation7 + $0x350] ss:$80 sps:$4 sm:$0xff]   ;;  %v7432_v49 = vld [vmem:[#allocation7 + $0x468] sm:$0xff] }
 0x56c   :  { %6290 = vmatprep.mubr.f32.mxu0 %v34472_v54  ;;  %6361 = vmatprep.mubr.f32.mxu1 %v34472_v54  ;;  %v7483_v3 = vunpack.c.l.bf16 %v7432_v49 }
 0x56e   :  { %24765 = vmatpush1.msk.msra.mxu0 %vm2634_vm3, %v5567_v25  ;;  %24768 = vmatpush1.msk.msra.mxu1 %vm2634_vm3, %v5571_v18  ;;  %v29803_v25 = vld [vmem:[#allocation7 + $0x35c] ss:$80 sps:$4 sm:$0xff]   ;;  %v7421_v18 = vld [vmem:[#allocation7 + $0x410] sm:$0xff] }
 0x56f   :  { %24766 = vmatmul.mubr.msk.f32.vlgmr.msra.gmra.mrb[26].mxu0 %vm2775_vm4, %v31213_v17  ;;  %24769 = vmatmul.mubr.msk.f32.vlgmr.msra.gmra.mrb[36].mxu1 %vm2775_vm4, %v31213_v17  ;;  %v7462_v38 = vunpack.c.h.bf16 %v7421_v18  ;;  %v7461_v27 = vunpack.c.l.bf16 %v7421_v18 }
 0x570   :  { %27619 = vmatprep.subr.bf16.mxu0 %v30967_v21  ;;  %6452 = vmatprep.mubr.f32.mxu0 %v2159_v47  ;;  %v1081_v21 = vadd.f32 %v30659_v32, %v440_v35  ;;  %v29788_v32 = vld [vmem:[#allocation7 + $0x334] ss:$80 sps:$4 sm:$0xff]   ;;  %v29811_v47 = vld [vmem:[#allocation7 + $0x368] ss:$80 sps:$4 sm:$0xff]   ;;  %v7564_v35 = vrot.slane %v7442_v22, 4 }
 0x571   :  { %27621 = vmatpush3.bf16.msra.mxu0 %v30973_v39  ;;  %27655 = vmatprep.subr.bf16.mxu1 %v29785_v31  ;;  %v29782_v39 = vld [vmem:[#allocation7 + $0x324] ss:$80 sps:$4 sm:$0xff]   ;;  %v29809_v31 = vld [vmem:[#allocation7 + $0x36c] ss:$80 sps:$4 sm:$0xff]  }
 0x572   :  { %27623 = vmatprep.subr.bf16.mxu0 %v30979_v42  ;;  %27657 = vmatpush1.bf16.msra.mxu1 %v29787_v29  ;;  %v34476_v42 = vld [vmem:[#allocation52_spill] sm:$0xff]  ;;  %v6545_v29 = vunpack.c.h.bf16 %v6486_v13  ;;  %v31478_v22 = vld [vmem:[%s34413_s4 + $0x30] sm:$0xff]  }
 0x573   :  { %6746 = vmatprep.mubr.f32.mxu1 %v34472_v54 }
 0x575   :  { %27625 = vmatpush3.bf16.msra.mxu0 %v30986_v2  ;;  %v29784_v2 = vld [vmem:[#allocation7 + $0x320] ss:$80 sps:$4 sm:$0xff]  }
 0x576   :  { %27627 = vmatprep.subr.bf16.mxu0 %v30992_v57  ;;  %v2158_v57 = vmax.f32 %v1081_v21, 0.0  ;;  %v7565_v21 = vrot.slane %v7462_v38, 4  ;;  %v31484_v38 = vld [vmem:[%s34413_s4 + $0x78] sm:$0xff]  }
 0x579   :  { %27629 = vmatpush3.bf16.msra.mxu0 %v30998_v4  ;;  %v6478_v4 = vld [vmem:[#allocation7 + $0x3c0] sm:$0x33] }
 0x57a   :  { %27631 = vmatprep.subr.bf16.mxu0 %v31004_v26  ;;  %v6479_v26 = vld [vmem:[#allocation7 + $0x3c8] sm:$0x33] }
 0x57d   :  { %27633 = vmatpush3.bf16.msra.mxu0 %v31010_v11  ;;  %v6529_v11 = vunpack.c.h.bf16 %v6478_v4 }
 0x57e   :  { %27635 = vmatprep.subr.bf16.mxu0 %v31016_v60  ;;  %v6531_v60 = vunpack.c.h.bf16 %v6479_v26 }
 0x580   :  { %24773 = vmatprep.subr.msk.mxu1 %vm2634_vm3, %v6531_v60  ;;  %v7566_v60 = vsel %vm2634_vm3, %v7564_v35, %v7565_v21 }
 0x581   :  { %27637 = vmatpush3.bf16.msra.mxu0 %v31022_v14  ;;  %v6528_v14 = vunpack.c.l.bf16 %v6478_v4  ;;  %v7621_v4 = vrot.slane %v7481_v23, 4  ;;  %v34478_v23 = vld [vmem:[#allocation30_spill] sm:$0xff] }
 0x582   :  { %27639 = vmatprep.subr.bf16.mxu0 %v31028_v10  ;;  %v6530_v10 = vunpack.c.l.bf16 %v6479_v26  ;;  %v6544_v26 = vunpack.c.l.bf16 %v6486_v13 }
 0x584   :  { %24774 = vmatpush1.msk.msra.mxu1 %vm2634_vm3, %v6530_v10 }
 0x585   :  { %27641 = vmatpush3.bf16.msra.mxu0 %v31034_v28  ;;  %v29791_v28 = vld [vmem:[#allocation7 + $0x33c] ss:$80 sps:$4 sm:$0xff]  }
 0x586   :  { %27643 = vmatprep.subr.bf16.mxu0 %v31044_v44  ;;  %27663 = vmatprep.subr.bf16.mxu1 %v29791_v28  ;;  %v6480_v44 = vld [vmem:[#allocation7 + $0x3d0] sm:$0x33] }
 0x587   :  { %v6533_v6 = vunpack.c.h.bf16 %v6480_v44  ;;  %v6532_v34 = vunpack.c.l.bf16 %v6480_v44  ;;  %v34477_v44 = vld [vmem:[#allocation33_spill] sm:$0xff] }
 0x589   :  { %27645 = vmatpush3.bf16.msra.mxu0 %v31050_v0  ;;  %v6481_v0 = vld [vmem:[#allocation7 + $0x3d8] sm:$0x33] }
 0x58a   :  { %27647 = vmatprep.subr.bf16.mxu0 %v31057_v51  ;;  %v6535_v1 = vunpack.c.h.bf16 %v6481_v0  ;;  %v6534_v7 = vunpack.c.l.bf16 %v6481_v0  ;;  %v2161_v0 = vmax.f32 %v34477_v44, 0.0 }
 0x58d   :  { %27649 = vmatpush3.bf16.msra.mxu0 %v34476_v42  ;;  %v6547_v42 = vunpack.c.h.bf16 %v6487_v20 }
 0x58e   :  { %27651 = vmatprep.subr.bf16.mxu0 %v29782_v39  ;;  %v7623_v39 = vrot.slane %v7482_v24, 4 }
 0x590   :  { %6453 = vmatmul.mubr.f32.vlgmr.msra.gmra.mrb[30].mxu0 %v2158_v57  ;;  %v7562_v57 = vrot.slane %v7461_v27, 4 }
 0x591   :  { %27653 = vmatpush1.bf16.msra.mxu0 %v29784_v2  ;;  %6675 = vmatprep.mubr.f32.mxu0 %v34472_v54  ;;  %v7561_v2 = vrot.slane %v7441_v50, 4  ;;  %v31492_v50 = vld [vmem:[%s34413_s4 + $0x38] sm:$0xff]  }
 0x592   :  { %24770 = vmatprep.subr.msk.mxu0 %vm2634_vm3, %v6529_v11  ;;  %v6546_v11 = vunpack.c.l.bf16 %v6487_v20  ;;  %v2160_v20 = vmax.f32 %v34478_v23, 0.0  ;;  %v7425_v23 = vld [vmem:[#allocation7 + $0x430] sm:$0xff] }
 0x593   :  { %v7563_v10 = vsel %vm2634_vm3, %v7561_v2, %v7562_v57 }
 0x595   :  { %24771 = vmatpush1.msk.msra.mxu0 %vm2634_vm3, %v6528_v14  ;;  %v7624_v14 = vsel %vm2634_vm3, %v7565_v21, %v7623_v39  ;;  %v7414_v21 = vld [vmem:[#allocation7 + $0x3d8] sm:$0xcc] }
 0x596   :  { %27659 = vmatprep.subr.bf16.mxu0 %v29788_v32  ;;  %v7622_v32 = vsel %vm2634_vm3, %v7562_v57, %v7621_v4  ;;  %v27722_v28 = vpack.c.bf16 %v7624_v14, %v7566_v60 }
 0x663   :  { %v26345_v51 = vpop.f32.mrb[30].mxu0 }
 0x664   :  { %v26346_v17 = vpop.f32.mrb[31].mxu0 }
 0x665   :  { %v31341_v19 = vadd.f32 %v26346_v17, %v26345_v51  ;;  %v27724_v51 = vpack.c.bf16 %v7622_v32, %v7563_v10  ;;  %v31395_v17 = vld [vmem:[%s34413_s4 + $0x40] sm:$0xff]   ;;  %v7448_v10 = vunpack.c.h.bf16 %v7414_v21 }
 0x667   :  { %24772 = vmatmul.mubr.msk.f32.vlgmr.msra.gmra.mrb[18].mxu0 %vm2775_vm4, %v31341_v19  ;;  %24775 = vmatmul.mubr.msk.f32.vlgmr.msra.gmra.mrb[28].mxu1 %vm2775_vm4, %v31341_v19 }
 0x668   :  { %27661 = vmatpush1.bf16.msra.mxu0 %v29790_v37  ;;  %27665 = vmatpush1.bf16.msra.mxu1 %v29793_v41  ;;  %v31401_v37 = vld [vmem:[%s34413_s4] sm:$0xff]   ;;  %v31407_v41 = vld [vmem:[%s34413_s4 + $0x48] sm:$0xff]  }
 0x669   :  { %24776 = vmatprep.subr.msk.mxu0 %vm2634_vm3, %v6533_v6  ;;  %24779 = vmatprep.subr.msk.mxu1 %vm2634_vm3, %v6535_v1  ;;  %v31421_v6 = vld [vmem:[%s34413_s4 + $0x50] sm:$0xff]  }
 0x66a   :  { %6817 = vmatprep.mubr.f32.mxu0 %v34472_v54  ;;  %6888 = vmatprep.mubr.f32.mxu1 %v34472_v54  ;;  %v31428_v1 = vld [vmem:[%s34413_s4 + $0x10] sm:$0xff]  }
 0x66c   :  { %24777 = vmatpush1.msk.msra.mxu0 %vm2634_vm3, %v6532_v34  ;;  %24780 = vmatpush1.msk.msra.mxu1 %vm2634_vm3, %v6534_v7  ;;  %v31434_v34 = vld [vmem:[%s34413_s4 + $0x58] sm:$0xff]   ;;  %v7412_v7 = vld [vmem:[#allocation7 + $0x3c8] sm:$0xcc] }
 0x66d   :  { %24778 = vmatmul.mubr.msk.f32.vlgmr.msra.gmra.mrb[20].mxu0 %vm2775_vm4, %v31341_v19  ;;  %24781 = vmatmul.mubr.msk.f32.vlgmr.msra.gmra.mrb[30].mxu1 %vm2775_vm4, %v31341_v19 }
 0x66e   :  { %27667 = vmatprep.subr.bf16.mxu0 %v29794_v45  ;;  %27671 = vmatprep.subr.bf16.mxu1 %v29797_v30  ;;  %v31440_v45 = vld [vmem:[%s34413_s4 + $0x18] sm:$0xff]   ;;  %v31446_v30 = vld [vmem:[%s34413_s4 + $0x60] sm:$0xff]  }
 0x66f   :  { %27669 = vmatpush1.bf16.msra.mxu0 %v29796_v46  ;;  %27673 = vmatpush1.bf16.msra.mxu1 %v29799_v55  ;;  %v7444_v46 = vunpack.c.h.bf16 %v7412_v7  ;;  %v7464_v55 = vunpack.c.h.bf16 %v7422_v12 }
 0x670   :  { %24782 = vmatprep.subr.msk.mxu0 %vm2634_vm3, %v6537_v56  ;;  %24785 = vmatprep.subr.msk.mxu1 %vm2634_vm3, %v6539_v61  ;;  %v7484_v56 = vunpack.c.h.bf16 %v7432_v49  ;;  %v31452_v61 = vld [vmem:[%s34413_s4 + $0x20] sm:$0xff]  }
 0x671   :  { %6959 = vmatprep.mubr.f32.mxu0 %v34472_v54  ;;  %7030 = vmatprep.mubr.f32.mxu1 %v34472_v54  ;;  %v7570_v43 = vrot.slane %v7444_v46, 4 }
 0x673   :  { %24783 = vmatpush1.msk.msra.mxu0 %vm2634_vm3, %v6536_v40  ;;  %24786 = vmatpush1.msk.msra.mxu1 %vm2634_vm3, %v6538_v8  ;;  %v31458_v40 = vld [vmem:[%s34413_s4 + $0x68] sm:$0xff]   ;;  %v7443_v8 = vunpack.c.l.bf16 %v7412_v7 }
 0x674   :  { %24784 = vmatmul.mubr.msk.f32.vlgmr.msra.gmra.mrb[22].mxu0 %vm2775_vm4, %v31341_v19  ;;  %24787 = vmatmul.mubr.msk.f32.vlgmr.msra.gmra.mrb[32].mxu1 %vm2775_vm4, %v31341_v19 }
 0x675   :  { %27675 = vmatprep.subr.bf16.mxu0 %v29800_v15  ;;  %27679 = vmatprep.subr.bf16.mxu1 %v29803_v25  ;;  %v7463_v15 = vunpack.c.l.bf16 %v7422_v12  ;;  %v7627_v25 = vrot.slane %v7484_v56, 4  ;;  %v7567_v18 = vrot.slane %v7443_v8, 4 }
 0x676   :  { %27677 = vmatpush1.bf16.msra.mxu0 %v29802_v33  ;;  %27681 = vmatpush1.bf16.msra.mxu1 %v29805_v5  ;;  %v7571_v33 = vrot.slane %v7464_v55, 4  ;;  %v31464_v5 = vld [vmem:[%s34413_s4 + $0x28] sm:$0xff]  }
 0x677   :  { %24788 = vmatprep.subr.msk.mxu0 %vm2634_vm3, %v6541_v16  ;;  %24791 = vmatprep.subr.msk.mxu1 %vm2634_vm3, %v6543_v9  ;;  %v7568_v58 = vrot.slane %v7463_v15, 4  ;;  %v7625_v16 = vrot.slane %v7483_v3, 4  ;;  %v7582_v15 = vrot.slane %v7448_v10, 4 }
 0x678   :  { %7101 = vmatprep.mubr.f32.mxu0 %v34472_v54  ;;  %7172 = vmatprep.mubr.f32.mxu1 %v34472_v54  ;;  %v7572_v9 = vsel %vm2634_vm3, %v7570_v43, %v7571_v33 }
 0x679   :  { %v7626_v13 = vsel %vm2634_vm3, %v7568_v58, %v7625_v16 }
 0x67a   :  { %24789 = vmatpush1.msk.msra.mxu0 %vm2634_vm3, %v6540_v59  ;;  %24792 = vmatpush1.msk.msra.mxu1 %vm2634_vm3, %v6542_v53  ;;  %v7628_v59 = vsel %vm2634_vm3, %v7571_v33, %v7627_v25  ;;  %v7569_v53 = vsel %vm2634_vm3, %v7567_v18, %v7568_v58 }
 0x67b   :  { %24790 = vmatmul.mubr.msk.f32.vlgmr.msra.gmra.mrb[24].mxu0 %vm2775_vm4, %v31341_v19  ;;  %24793 = vmatmul.mubr.msk.f32.vlgmr.msra.gmra.mrb[34].mxu1 %vm2775_vm4, %v31341_v19  ;;  %v27726_v24 = vpack.c.bf16 %v7628_v59, %v7572_v9  ;;  %v27728_v27 = vpack.c.bf16 %v7626_v13, %v7569_v53 }
 0x67c   :  { %27683 = vmatprep.subr.bf16.mxu0 %v29806_v62  ;;  %27687 = vmatprep.subr.bf16.mxu1 %v29809_v31  ;;  %v7413_v62 = vld [vmem:[#allocation7 + $0x3d0] sm:$0xcc] }
 0x67d   :  { %27685 = vmatpush1.bf16.msra.mxu0 %v29808_v63  ;;  %27689 = vmatpush1.bf16.msra.mxu1 %v29811_v47  ;;  %v7423_v63 = vld [vmem:[#allocation7 + $0x420] sm:$0xff]  ;;  %v7433_v31 = vld [vmem:[#allocation7 + $0x470] sm:$0xff]  ;;  %v7446_v47 = vunpack.c.h.bf16 %v7413_v62 }
 0x67e   :  { %24794 = vmatprep.subr.msk.mxu0 %vm2634_vm3, %v6545_v29  ;;  %24797 = vmatprep.subr.msk.mxu1 %vm2634_vm3, %v6547_v42  ;;  %v7466_v29 = vunpack.c.h.bf16 %v7423_v63  ;;  %v7486_v35 = vunpack.c.h.bf16 %v7433_v31  ;;  %v7445_v42 = vunpack.c.l.bf16 %v7413_v62  ;;  %v7465_v2 = vunpack.c.l.bf16 %v7423_v63 }
 0x67f   :  { %7243 = vmatprep.mubr.f32.mxu0 %v34472_v54  ;;  %7314 = vmatprep.mubr.f32.mxu1 %v34472_v54  ;;  %v7485_v57 = vunpack.c.l.bf16 %v7433_v31  ;;  %v7470_v31 = vunpack.c.h.bf16 %v7425_v23 }
 0x680   :  { %v7577_v60 = vrot.slane %v7466_v29, 4  ;;  %v31499_v14 = vrot.slane %v7486_v35, 4  ;;  %v7573_v32 = vrot.slane %v7445_v42, 4  ;;  %v7469_v29 = vunpack.c.l.bf16 %v7425_v23  ;;  %v7416_v35 = vld [vmem:[#allocation7 + $0x3e8] sm:$0xcc] }
 0x681   :  { %24795 = vmatpush1.msk.msra.mxu0 %vm2634_vm3, %v6544_v26  ;;  %24798 = vmatpush1.msk.msra.mxu1 %vm2634_vm3, %v6546_v11  ;;  %v7447_v26 = vunpack.c.l.bf16 %v7414_v21  ;;  %v7576_v11 = vrot.slane %v7446_v47, 4  ;;  %v31501_v44 = vrot.slane %v7485_v57, 4  ;;  %v7426_v21 = vld [vmem:[#allocation7 + $0x438] sm:$0xff]  ;;  %v7436_v42 = vld [vmem:[#allocation7 + $0x488] sm:$0xff] }
 0x682   :  { %24796 = vmatmul.mubr.msk.f32.vlgmr.msra.gmra.mrb[26].mxu0 %vm2775_vm4, %v31341_v19  ;;  %24799 = vmatmul.mubr.msk.f32.vlgmr.msra.gmra.mrb[36].mxu1 %vm2775_vm4, %v31341_v19  ;;  %v31415_v19 = vld [vmem:[%s34413_s4 + $0x8] sm:$0xff]   ;;  %v7632_v7 = vsel %vm2634_vm3, %v7577_v60, %v31499_v14  ;;  %v7471_v10 = vunpack.c.l.bf16 %v7426_v21 }
 0x683   :  { %27691 = vmatprep.subr.bf16.mxu1 %v31395_v17  ;;  %7405 = vmatprep.mubr.f32.mxu1 %v2161_v0  ;;  %v7579_v56 = vrot.slane %v7447_v26, 4 }
 0x684   :  { %27693 = vmatpush3.bf16.msra.mxu1 %v31401_v37  ;;  %27723 = vmatprep.subr.bf16.mxu0 %v27722_v28  ;;  %v7574_v28 = vrot.slane %v7465_v2, 4 }
 0x685   :  { %27695 = vmatprep.subr.bf16.mxu1 %v31407_v41  ;;  %27725 = vmatpush1.bf16.msra.mxu0 %v27724_v51  ;;  %v7578_v51 = vsel %vm2634_vm3, %v7576_v11, %v7577_v60  ;;  %v7451_v11 = vunpack.c.l.bf16 %v7416_v35  ;;  %v7452_v60 = vunpack.c.h.bf16 %v7416_v35 }
 0x686   :  { %24800 = vmatprep.subr.msk.mxu0 %vm2634_vm3, %v7623_v39  ;;  %7808 = vmatprep.mubr.f32.mxu0 %v34472_v54  ;;  %v7424_v39 = vld [vmem:[#allocation7 + $0x428] sm:$0xff]  ;;  %v27730_v46 = vpack.c.bf16 %v7632_v7, %v7578_v51  ;;  %v31509_v33 = vsel %vm2634_vm3, %v7573_v32, %v7574_v28  ;;  %v31515_v18 = vsel %vm2634_vm3, %v7574_v28, %v31501_v44  ;;  %v7417_v32 = vld [vmem:[#allocation7 + $0x3f0] sm:$0xcc]  ;;  %v7427_v28 = vld [vmem:[#allocation7 + $0x440] sm:$0xff]  ;;  %v7586_v51 = vrot.slane %v7469_v29, 4 }
 0x687   :  { %v7467_v0 = vunpack.c.l.bf16 %v7424_v39  ;;  %v7468_v12 = vunpack.c.h.bf16 %v7424_v39  ;;  %v27732_v9 = vpack.c.bf16 %v31515_v18, %v31509_v33  ;;  %v7472_v7 = vunpack.c.h.bf16 %v7426_v21 }
 0x688   :  { %27697 = vmatpush3.bf16.msra.mxu1 %v31415_v19  ;;  %v7453_v35 = vunpack.c.l.bf16 %v7417_v32  ;;  %v7473_v21 = vunpack.c.l.bf16 %v7427_v28 }
 0x689   :  { %27699 = vmatprep.subr.bf16.mxu1 %v31421_v6  ;;  %24801 = vmatpush1.msk.msra.mxu0 %vm2634_vm3, %v7621_v4  ;;  %v7434_v4 = vld [vmem:[#allocation7 + $0x478] sm:$0xff]  ;;  %v7580_v8 = vrot.slane %v7467_v0, 4  ;;  %v7583_v3 = vrot.slane %v7468_v12, 4  ;;  %v7437_v0 = vld [vmem:[#allocation7 + $0x490] sm:$0xff]  ;;  %v7491_v12 = vunpack.c.l.bf16 %v7436_v42  ;;  %v7595_v23 = vrot.slane %v7472_v7, 4 }
 0x68a   :  { %v7487_v49 = vunpack.c.l.bf16 %v7434_v4  ;;  %v7488_v55 = vunpack.c.h.bf16 %v7434_v4  ;;  %27731 = vmatprep.subr.bf16.mxu0 %v27730_v46  ;;  %v7589_v4 = vrot.slane %v7470_v31, 4  ;;  %v7428_v31 = vld [vmem:[#allocation7 + $0x448] sm:$0xff] }
 0x68b   :  { %v31518_v58 = vsel %vm2634_vm3, %v7579_v56, %v7580_v8  ;;  %v7454_v56 = vunpack.c.h.bf16 %v7417_v32  ;;  %v7475_v7 = vunpack.c.l.bf16 %v7428_v31 }
 0x68c   :  { %27701 = vmatpush3.bf16.msra.mxu1 %v31428_v1  ;;  %v31506_v43 = vrot.slane %v7487_v49, 4  ;;  %v7492_v49 = vunpack.c.h.bf16 %v7436_v42 }
 0x68d   :  { %27703 = vmatprep.subr.bf16.mxu1 %v31434_v34  ;;  %v7600_v42 = vrot.slane %v7454_v56, 4 }
 0x68e   :  { %v31525_v59 = vsel %vm2634_vm3, %v7580_v8, %v31506_v43  ;;  %v7474_v8 = vunpack.c.h.bf16 %v7427_v28 }
 0x690   :  { %27705 = vmatpush3.bf16.msra.mxu1 %v31440_v45 }
 0x691   :  { %27707 = vmatprep.subr.bf16.mxu1 %v31446_v30 }
 0x694   :  { %27709 = vmatpush3.bf16.msra.mxu1 %v31452_v61 }
 0x695   :  { %27711 = vmatprep.subr.bf16.mxu1 %v31458_v40 }
 0x698   :  { %27713 = vmatpush3.bf16.msra.mxu1 %v31464_v5 }
 0x699   :  { %27715 = vmatprep.subr.bf16.mxu1 %v31470_v36 }
 0x69c   :  { %27717 = vmatpush3.bf16.msra.mxu1 %v31478_v22 }
 0x69d   :  { %27719 = vmatprep.subr.bf16.mxu1 %v31484_v38 }
 0x6a0   :  { %27721 = vmatpush3.bf16.msra.mxu1 %v31492_v50 }
 0x6a1   :  { %27727 = vmatprep.subr.bf16.mxu1 %v27726_v24 }
 0x6a3   :  { %7406 = vmatmul.mubr.f32.vlgmr.msra.gmra.mrb[40].mxu1 %v2160_v20  ;;  %v7435_v20 = vld [vmem:[#allocation7 + $0x480] sm:$0xff] }
 0x6a4   :  { %27729 = vmatpush1.bf16.msra.mxu1 %v27728_v27  ;;  %7879 = vmatprep.mubr.f32.mxu1 %v34472_v54  ;;  %v7415_v27 = vld [vmem:[#allocation7 + $0x3e0] sm:$0xcc]  ;;  %v7490_v47 = vunpack.c.h.bf16 %v7435_v20  ;;  %v7489_v39 = vunpack.c.l.bf16 %v7435_v20  ;;  %v31542_v20 = vrot.slane %v7491_v12, 4  ;;  %v7476_v12 = vunpack.c.h.bf16 %v7428_v31 }
 0x6a5   :  { %24803 = vmatprep.subr.msk.mxu1 %vm2634_vm3, %v7627_v25  ;;  %v31511_v25 = vrot.slane %v7488_v55, 4  ;;  %v7449_v62 = vunpack.c.l.bf16 %v7415_v27  ;;  %v7450_v63 = vunpack.c.h.bf16 %v7415_v27  ;;  %v7418_v27 = vld [vmem:[#allocation7 + $0x3f8] sm:$0xcc] }
 0x6a6   :  { %v31531_v26 = vrot.slane %v7490_v47, 4  ;;  %v31533_v46 = vrot.slane %v7489_v39, 4  ;;  %v7438_v47 = vld [vmem:[#allocation7 + $0x498] sm:$0xff]  ;;  %v7493_v39 = vunpack.c.l.bf16 %v7437_v0 }
 0x6a7   :  { %v7636_v24 = vsel %vm2634_vm3, %v7583_v3, %v31511_v25  ;;  %v7585_v2 = vrot.slane %v7449_v62, 4  ;;  %v7588_v57 = vrot.slane %v7450_v63, 4  ;;  %v31544_v62 = vrot.slane %v7492_v49, 4 }
 0x6a8   :  { %24804 = vmatpush1.msk.msra.mxu1 %vm2634_vm3, %v7625_v16  ;;  %v7584_v16 = vsel %vm2634_vm3, %v7582_v15, %v7583_v3  ;;  %v7494_v15 = vunpack.c.h.bf16 %v7437_v0  ;;  %v31540_v3 = vsel %vm2634_vm3, %v7589_v4, %v31531_v26  ;;  %v31551_v29 = vsel %vm2634_vm3, %v7586_v51, %v31533_v46 }
 0x6a9   :  { %v27734_v13 = vpack.c.bf16 %v7636_v24, %v7584_v16  ;;  %v31536_v55 = vsel %vm2634_vm3, %v7588_v57, %v7589_v4  ;;  %v7591_v16 = vrot.slane %v7451_v11, 4  ;;  %v7592_v24 = vrot.slane %v7471_v10, 4 }
 0x6aa   :  { %v31547_v63 = vsel %vm2634_vm3, %v7585_v2, %v7586_v51  ;;  %v7601_v57 = vrot.slane %v7474_v8, 4  ;;  %v31553_v4 = vrot.slane %v7494_v15, 4  ;;  %v7455_v11 = vunpack.c.l.bf16 %v7418_v27 }
 0x6ab   :  { %27735 = vmatprep.subr.bf16.mxu1 %v27734_v13  ;;  %v7594_v13 = vrot.slane %v7452_v60, 4  ;;  %v7456_v10 = vunpack.c.h.bf16 %v7418_v27  ;;  %v7496_v2 = vunpack.c.h.bf16 %v7438_v47  ;;  %v7644_v51 = vsel %vm2634_vm3, %v7595_v23, %v31544_v62 }
 0x6ac   :  { %v7593_v32 = vsel %vm2634_vm3, %v7591_v16, %v7592_v24  ;;  %v7495_v28 = vunpack.c.l.bf16 %v7438_v47  ;;  %v7642_v56 = vsel %vm2634_vm3, %v7592_v24, %v31542_v20  ;;  %v7597_v8 = vrot.slane %v7453_v35, 4 }
 0x6ad   :  { %v7596_v53 = vsel %vm2634_vm3, %v7594_v13, %v7595_v23  ;;  %v7598_v15 = vrot.slane %v7473_v21, 4  ;;  %v31564_v27 = vsel %vm2634_vm3, %v7600_v42, %v7601_v57  ;;  %v31566_v31 = vrot.slane %v7493_v39, 4 }
 0x6ae   :  { %v31570_v13 = vsel %vm2634_vm3, %v7601_v57, %v31553_v4  ;;  %v7603_v23 = vrot.slane %v7455_v11, 4  ;;  %v7604_v16 = vrot.slane %v7475_v7, 4  ;;  %v7606_v24 = vrot.slane %v7456_v10, 4  ;;  %v7419_v57 = vld [vmem:[#allocation7 + $0x400] sm:$0xcc] }
 0x6af   :  { %v7607_v47 = vrot.slane %v7476_v12, 4  ;;  %v31576_v35 = vrot.slane %v7496_v2, 4  ;;  %v34479_v21 = vpack.c.bf16 %v31525_v59, %v31518_v58  ;;  %v27738_v39 = vpack.c.bf16 %v31540_v3, %v31536_v55  ;;  %v7439_v58 = vld [vmem:[#allocation7 + $0x4a0] sm:$0xff]  ;;  %v7440_v3 = vld [vmem:[#allocation7 + $0x4a8] sm:$0xff] }
 0x6b0   :  { %v31586_v42 = vrot.slane %v7495_v28, 4  ;;  %v27742_v11 = vpack.c.bf16 %v7644_v51, %v7596_v53  ;;  %v27740_v33 = vpack.c.bf16 %v31551_v29, %v31547_v63  ;;  %v27744_v18 = vpack.c.bf16 %v7642_v56, %v7593_v32  ;;  %v7430_v53 = vld [vmem:[#allocation7 + $0x458] sm:$0xff] }
 0x6b1   :  { %v27746_v59 = vpack.c.bf16 %v31570_v13, %v31564_v27  ;;  %v7599_v55 = vsel %vm2634_vm3, %v7597_v8, %v7598_v15  ;;  %v7608_v63 = vsel %vm2634_vm3, %v7606_v24, %v7607_v47  ;;  %v7652_v29 = vsel %vm2634_vm3, %v7607_v47, %v31576_v35 }
 0x6b2   :  { %v7457_v10 = vunpack.c.l.bf16 %v7419_v57  ;;  %v7650_v7 = vsel %vm2634_vm3, %v7604_v16, %v31586_v42  ;;  %v7458_v12 = vunpack.c.h.bf16 %v7419_v57  ;;  %v7480_v28 = vunpack.c.h.bf16 %v7430_v53 }
 0x6b3   :  { %v7500_v56 = vunpack.c.h.bf16 %v7440_v3  ;;  %v7479_v8 = vunpack.c.l.bf16 %v7430_v53  ;;  %v27750_v27 = vpack.c.bf16 %v7652_v29, %v7608_v63 }
 0x6b4   :  { %v7612_v24 = vrot.slane %v7458_v12, 4 }
 0x776   :  { %v26380_v60 = vpop.f32.mrb[40].mxu1 }
 0x777   :  { %v26381_v49 = vpop.f32.mrb[41].mxu1 }
 0x778   :  { %v31559_v0 = vadd.f32 %v26381_v49, %v26380_v60  ;;  %v7605_v60 = vsel %vm2634_vm3, %v7603_v23, %v7604_v16  ;;  %v7498_v49 = vunpack.c.h.bf16 %v7439_v58  ;;  %v7609_v16 = vrot.slane %v7457_v10, 4  ;;  %v29814_v10 = vld [vmem:[#allocation7 + $0x4b0] ss:$80 sps:$4 sm:$0xff]  }
 0x779   :  { %v27752_v23 = vpack.c.bf16 %v7650_v7, %v7605_v60  ;;  %v34481_v7 = vld [vmem:[#allocation20_spill] sm:$0xff] }
 0x77a   :  { %24802 = vmatmul.mubr.msk.f32.vlgmr.msra.gmra.mrb[18].mxu0 %vm2775_vm4, %v31559_v0  ;;  %24805 = vmatmul.mubr.msk.f32.vlgmr.msra.gmra.mrb[28].mxu1 %vm2775_vm4, %v31559_v0  ;;  %v2162_v12 = vmax.f32 %v34481_v7, 0.0 }
 0x77b   :  { %27733 = vmatpush1.bf16.msra.mxu0 %v27732_v9  ;;  %27737 = vmatpush1.bf16.msra.mxu1 %v34479_v21  ;;  %v7429_v9 = vld [vmem:[#allocation7 + $0x450] sm:$0xff]  ;;  %v7655_v21 = vrot.slane %v7498_v49, 4  ;;  %v8565_v49 = vld [vmem:[#allocation7 + $0x558] sm:$0x33] }
 0x77c   :  { %24806 = vmatprep.subr.msk.mxu0 %vm2634_vm3, %v31499_v14  ;;  %24809 = vmatprep.subr.msk.mxu1 %vm2634_vm3, %v31511_v25  ;;  %v7646_v14 = vsel %vm2634_vm3, %v7598_v15, %v31566_v31  ;;  %v7420_v25 = vld [vmem:[#allocation7 + $0x408] sm:$0xcc]  ;;  %v7478_v2 = vunpack.c.h.bf16 %v7429_v9  ;;  %v7477_v51 = vunpack.c.l.bf16 %v7429_v9  ;;  %v7499_v15 = vunpack.c.l.bf16 %v7440_v3 }
 0x77d   :  { %7950 = vmatprep.mubr.f32.mxu0 %v34472_v54  ;;  %8021 = vmatprep.mubr.f32.mxu1 %v34472_v54  ;;  %v7460_v32 = vunpack.c.h.bf16 %v7420_v25  ;;  %v27748_v13 = vpack.c.bf16 %v7646_v14, %v7599_v55 }
 0x77e   :  { %v7613_v47 = vrot.slane %v7478_v2, 4  ;;  %v7657_v55 = vrot.slane %v7499_v15, 4  ;;  %v8564_v2 = vld [vmem:[#allocation7 + $0x550] sm:$0x33]  ;;  %v8567_v15 = vld [vmem:[#allocation7 + $0x568] sm:$0x33] }
 0x77f   :  { %24807 = vmatpush1.msk.msra.mxu0 %vm2634_vm3, %v31501_v44  ;;  %24810 = vmatpush1.msk.msra.mxu1 %vm2634_vm3, %v31506_v43  ;;  %v7497_v44 = vunpack.c.l.bf16 %v7439_v58  ;;  %v7459_v43 = vunpack.c.l.bf16 %v7420_v25  ;;  %v7618_v57 = vrot.slane %v7460_v32, 4  ;;  %v7616_v58 = vrot.slane %v7479_v8, 4  ;;  %v8566_v8 = vld [vmem:[#allocation7 + $0x560] sm:$0x33] }
 0x780   :  { %24808 = vmatmul.mubr.msk.f32.vlgmr.msra.gmra.mrb[20].mxu0 %vm2775_vm4, %v31559_v0  ;;  %24811 = vmatmul.mubr.msk.f32.vlgmr.msra.gmra.mrb[30].mxu1 %vm2775_vm4, %v31559_v0  ;;  %v8617_v32 = vunpack.c.h.bf16 %v8565_v49 }
 0x781   :  { %27739 = vmatprep.subr.bf16.mxu0 %v27738_v39  ;;  %27743 = vmatprep.subr.bf16.mxu1 %v27742_v11  ;;  %v7610_v39 = vrot.slane %v7477_v51, 4  ;;  %v7619_v11 = vrot.slane %v7480_v28, 4  ;;  %v7615_v9 = vrot.slane %v7459_v43, 4  ;;  %v7658_v3 = vsel %vm2634_vm3, %v7616_v58, %v7657_v55  ;;  %v29821_v43 = vld [vmem:[#allocation7 + $0x4cc] ss:$80 sps:$4 sm:$0xff]  }
 0x782   :  { %27741 = vmatpush1.bf16.msra.mxu0 %v27740_v33  ;;  %27745 = vmatpush1.bf16.msra.mxu1 %v27744_v18  ;;  %v7659_v33 = vrot.slane %v7500_v56, 4  ;;  %v7653_v18 = vrot.slane %v7497_v44, 4  ;;  %v8615_v51 = vunpack.c.h.bf16 %v8564_v2  ;;  %v8614_v28 = vunpack.c.l.bf16 %v8564_v2  ;;  %v29818_v44 = vld [vmem:[#allocation7 + $0x4c4] ss:$80 sps:$4 sm:$0xff]  }
 0x783   :  { %24812 = vmatprep.subr.msk.mxu0 %vm2634_vm3, %v31531_v26  ;;  %24815 = vmatprep.subr.msk.mxu1 %vm2634_vm3, %v31544_v62  ;;  %v7614_v26 = vsel %vm2634_vm3, %v7612_v24, %v7613_v47  ;;  %v7656_v62 = vsel %vm2634_vm3, %v7613_v47, %v7655_v21  ;;  %v7620_v14 = vsel %vm2634_vm3, %v7618_v57, %v7619_v11  ;;  %v8616_v56 = vunpack.c.l.bf16 %v8565_v49  ;;  %v8572_v2 = vld [vmem:[#allocation7 + $0x590] sm:$0x33] }
 0x784   :  { %8092 = vmatprep.mubr.f32.mxu0 %v34472_v54  ;;  %8163 = vmatprep.mubr.f32.mxu1 %v34472_v54  ;;  %v7660_v25 = vsel %vm2634_vm3, %v7619_v11, %v7659_v33  ;;  %v7617_v53 = vsel %vm2634_vm3, %v7615_v9, %v7616_v58  ;;  %v8619_v47 = vunpack.c.h.bf16 %v8566_v8  ;;  %v8620_v57 = vunpack.c.l.bf16 %v8567_v15  ;;  %v8568_v11 = vld [vmem:[#allocation7 + $0x570] sm:$0x33]  ;;  %v29827_v9 = vld [vmem:[#allocation7 + $0x4dc] ss:$80 sps:$4 sm:$0xff]  }
 0x785   :  { %v27758_v63 = vpack.c.bf16 %v7660_v25, %v7620_v14  ;;  %v27760_v60 = vpack.c.bf16 %v7658_v3, %v7617_v53  ;;  %v29826_v58 = vld [vmem:[#allocation7 + $0x4d0] ss:$80 sps:$4 sm:$0xff]   ;;  %v8622_v14 = vunpack.c.l.bf16 %v8568_v11  ;;  %v8571_v53 = vld [vmem:[#allocation7 + $0x588] sm:$0x33] }
 0x786   :  { %24813 = vmatpush1.msk.msra.mxu0 %vm2634_vm3, %v31533_v46  ;;  %24816 = vmatpush1.msk.msra.mxu1 %vm2634_vm3, %v31542_v20  ;;  %v7611_v46 = vsel %vm2634_vm3, %v7609_v16, %v7610_v39  ;;  %v7654_v20 = vsel %vm2634_vm3, %v7610_v39, %v7653_v18  ;;  %v29823_v16 = vld [vmem:[#allocation7 + $0x4c8] ss:$80 sps:$4 sm:$0xff]   ;;  %v8618_v39 = vunpack.c.l.bf16 %v8566_v8  ;;  %v29832_v3 = vld [vmem:[#allocation7 + $0x4e0] ss:$80 sps:$4 sm:$0xff]  }
 0x787   :  { %24814 = vmatmul.mubr.msk.f32.vlgmr.msra.gmra.mrb[22].mxu0 %vm2775_vm4, %v31559_v0  ;;  %24817 = vmatmul.mubr.msk.f32.vlgmr.msra.gmra.mrb[32].mxu1 %vm2775_vm4, %v31559_v0  ;;  %v27756_v29 = vpack.c.bf16 %v7654_v20, %v7611_v46  ;;  %v29830_v46 = vld [vmem:[#allocation7 + $0x4e4] ss:$80 sps:$4 sm:$0xff]   ;;  %v29841_v8 = vld [vmem:[#allocation7 + $0x4f8] ss:$80 sps:$4 sm:$0xff]  }
 0x788   :  { %27747 = vmatprep.subr.bf16.mxu0 %v27746_v59  ;;  %27751 = vmatprep.subr.bf16.mxu1 %v27750_v27  ;;  %v27754_v59 = vpack.c.bf16 %v7656_v62, %v7614_v26  ;;  %v8623_v26 = vunpack.c.h.bf16 %v8568_v11  ;;  %v8570_v20 = vld [vmem:[#allocation7 + $0x580] sm:$0x33] }
 0x789   :  { %27749 = vmatpush1.bf16.msra.mxu0 %v27748_v13  ;;  %27753 = vmatpush1.bf16.msra.mxu1 %v27752_v23  ;;  %v29820_v23 = vld [vmem:[#allocation7 + $0x4c0] ss:$80 sps:$4 sm:$0xff]  }
 0x78a   :  { %24818 = vmatprep.subr.msk.mxu0 %vm2634_vm3, %v31553_v4  ;;  %24821 = vmatprep.subr.msk.mxu1 %vm2634_vm3, %v31576_v35  ;;  %v29815_v4 = vld [vmem:[#allocation7 + $0x4bc] ss:$80 sps:$4 sm:$0xff]  }
 0x78b   :  { %8234 = vmatprep.mubr.f32.mxu0 %v34472_v54  ;;  %8305 = vmatprep.mubr.f32.mxu1 %v34472_v54 }
 0x78d   :  { %24819 = vmatpush1.msk.msra.mxu0 %vm2634_vm3, %v31566_v31  ;;  %24822 = vmatpush1.msk.msra.mxu1 %vm2634_vm3, %v31586_v42  ;;  %v34480_v31 = vld [vmem:[#allocation21_spill] sm:$0xff]  ;;  %v29817_v42 = vld [vmem:[#allocation7 + $0x4b8] ss:$80 sps:$4 sm:$0xff]  }
 0x78e   :  { %24820 = vmatmul.mubr.msk.f32.vlgmr.msra.gmra.mrb[24].mxu0 %vm2775_vm4, %v31559_v0  ;;  %24823 = vmatmul.mubr.msk.f32.vlgmr.msra.gmra.mrb[34].mxu1 %vm2775_vm4, %v31559_v0  ;;  %v2163_v35 = vmax.f32 %v34480_v31, 0.0  ;;  %v8627_v31 = vunpack.c.h.bf16 %v8570_v20 }
 0x78f   :  { %27755 = vmatprep.subr.bf16.mxu0 %v27754_v59  ;;  %27759 = vmatprep.subr.bf16.mxu1 %v27758_v63  ;;  %v29833_v59 = vld [vmem:[#allocation7 + $0x4ec] ss:$80 sps:$4 sm:$0xff]   ;;  %v29835_v63 = vld [vmem:[#allocation7 + $0x4e8] ss:$80 sps:$4 sm:$0xff]  }
 0x790   :  { %27757 = vmatpush1.bf16.msra.mxu0 %v27756_v29  ;;  %27761 = vmatpush1.bf16.msra.mxu1 %v27760_v60  ;;  %v9497_v29 = vld [vmem:[#allocation7 + $0x550] sm:$0xcc]  ;;  %v9507_v60 = vld [vmem:[#allocation7 + $0x5a0] sm:$0xff] }
 0x791   :  { %24824 = vmatprep.subr.msk.mxu0 %vm2634_vm3, %v7655_v21  ;;  %24827 = vmatprep.subr.msk.mxu1 %vm2634_vm3, %v7659_v33  ;;  %v8621_v21 = vunpack.c.h.bf16 %v8567_v15  ;;  %v8569_v33 = vld [vmem:[#allocation7 + $0x578] sm:$0x33]  ;;  %v9527_v49 = vunpack.c.l.bf16 %v9497_v29  ;;  %v8631_v15 = vunpack.c.h.bf16 %v8572_v2 }
 0x792   :  { %8376 = vmatprep.mubr.f32.mxu0 %v34472_v54  ;;  %8447 = vmatprep.mubr.f32.mxu1 %v34472_v54  ;;  %v8625_v62 = vunpack.c.h.bf16 %v8569_v33  ;;  %v8624_v25 = vunpack.c.l.bf16 %v8569_v33 }
 0x794   :  { %24825 = vmatpush1.msk.msra.mxu0 %vm2634_vm3, %v7653_v18  ;;  %24828 = vmatpush1.msk.msra.mxu1 %vm2634_vm3, %v7657_v55  ;;  %v29824_v18 = vld [vmem:[#allocation7 + $0x4d4] ss:$80 sps:$4 sm:$0xff]   ;;  %v29829_v55 = vld [vmem:[#allocation7 + $0x4d8] ss:$80 sps:$4 sm:$0xff]  }
 0x795   :  { %24826 = vmatmul.mubr.msk.f32.vlgmr.msra.gmra.mrb[26].mxu0 %vm2775_vm4, %v31559_v0  ;;  %24829 = vmatmul.mubr.msk.f32.vlgmr.msra.gmra.mrb[36].mxu1 %vm2775_vm4, %v31559_v0  ;;  %v29812_v0 = vld [vmem:[#allocation7 + $0x4b4] ss:$80 sps:$4 sm:$0xff]  }
 0x796   :  { %27763 = vmatprep.subr.bf16.mxu0 %v31395_v17  ;;  %8538 = vmatprep.mubr.f32.mxu0 %v2163_v35  ;;  %v8629_v35 = vunpack.c.h.bf16 %v8571_v53 }
 0x797   :  { %27765 = vmatpush3.bf16.msra.mxu0 %v31401_v37  ;;  %27799 = vmatprep.subr.bf16.mxu1 %v29815_v4  ;;  %v9517_v4 = vld [vmem:[#allocation7 + $0x5f0] sm:$0xff] }
 0x798   :  { %27767 = vmatprep.subr.bf16.mxu0 %v31407_v41  ;;  %27801 = vmatpush1.bf16.msra.mxu1 %v29817_v42  ;;  %v8626_v42 = vunpack.c.l.bf16 %v8570_v20  ;;  %v9568_v7 = vunpack.c.h.bf16 %v9517_v4 }
 0x799   :  { %8832 = vmatprep.mubr.f32.mxu1 %v34472_v54  ;;  %24833 = vmatprep.subr.msk.mxu1 %vm2634_vm3, %v8617_v32  ;;  %v9567_v32 = vunpack.c.l.bf16 %v9517_v4  ;;  %v9519_v4 = vld [vmem:[#allocation7 + $0x600] sm:$0xff] }
 0x79b   :  { %27769 = vmatpush3.bf16.msra.mxu0 %v31415_v19 }
 0x79c   :  { %27771 = vmatprep.subr.bf16.mxu0 %v31421_v6  ;;  %24834 = vmatpush1.msk.msra.mxu1 %vm2634_vm3, %v8616_v56  ;;  %v29836_v56 = vld [vmem:[#allocation7 + $0x4f4] ss:$80 sps:$4 sm:$0xff]  }
 0x79d   :  { %27807 = vmatprep.subr.bf16.mxu1 %v29821_v43  ;;  %v29839_v43 = vld [vmem:[#allocation7 + $0x4fc] ss:$80 sps:$4 sm:$0xff]  }
 0x79f   :  { %27773 = vmatpush3.bf16.msra.mxu0 %v31428_v1 }
 0x7a0   :  { %27775 = vmatprep.subr.bf16.mxu0 %v31434_v34 }
 0x7a3   :  { %27777 = vmatpush3.bf16.msra.mxu0 %v31440_v45 }
 0x7a4   :  { %27779 = vmatprep.subr.bf16.mxu0 %v31446_v30 }
 0x7a7   :  { %27781 = vmatpush3.bf16.msra.mxu0 %v31452_v61 }
 0x7a8   :  { %27783 = vmatprep.subr.bf16.mxu0 %v31458_v40 }
 0x7ab   :  { %27785 = vmatpush3.bf16.msra.mxu0 %v31464_v5 }
 0x7ac   :  { %27787 = vmatprep.subr.bf16.mxu0 %v31470_v36 }
 0x7af   :  { %27789 = vmatpush3.bf16.msra.mxu0 %v31478_v22 }
 0x7b0   :  { %27791 = vmatprep.subr.bf16.mxu0 %v31484_v38 }
 0x7b3   :  { %27793 = vmatpush3.bf16.msra.mxu0 %v31492_v50 }
 0x7b4   :  { %27795 = vmatprep.subr.bf16.mxu0 %v29812_v0  ;;  %v9528_v0 = vunpack.c.h.bf16 %v9497_v29 }
 0x7b6   :  { %8539 = vmatmul.mubr.f32.vlgmr.msra.gmra.mrb[32].mxu0 %v2162_v12  ;;  %v8628_v12 = vunpack.c.l.bf16 %v8571_v53 }
 0x7b7   :  { %27797 = vmatpush1.bf16.msra.mxu0 %v29814_v10  ;;  %8761 = vmatprep.mubr.f32.mxu0 %v34472_v54  ;;  %v9548_v10 = vunpack.c.h.bf16 %v9507_v60 }
 0x7b8   :  { %24830 = vmatprep.subr.msk.mxu0 %vm2634_vm3, %v8615_v51  ;;  %v9547_v51 = vunpack.c.l.bf16 %v9507_v60 }
 0x7bb   :  { %24831 = vmatpush1.msk.msra.mxu0 %vm2634_vm3, %v8614_v28  ;;  %v8573_v28 = vld [vmem:[#allocation7 + $0x598] sm:$0x33] }
 0x7bc   :  { %27803 = vmatprep.subr.bf16.mxu0 %v29818_v44  ;;  %v29838_v44 = vld [vmem:[#allocation7 + $0x4f0] ss:$80 sps:$4 sm:$0xff]   ;;  %v8632_v11 = vunpack.c.l.bf16 %v8573_v28 }
 0x889   :  { %v26415_v27 = vpop.f32.mrb[32].mxu0 }
 0x88a   :  { %v26416_v13 = vpop.f32.mrb[33].mxu0 }
 0x88b   :  { %v31685_v24 = vadd.f32 %v26416_v13, %v26415_v27  ;;  %v9650_v27 = vrot.slane %v9528_v0, 4  ;;  %v9651_v13 = vrot.slane %v9548_v10, 4  ;;  %v9500_v0 = vld [vmem:[#allocation7 + $0x568] sm:$0xcc] }
 0x88d   :  { %24832 = vmatmul.mubr.msk.f32.vlgmr.msra.gmra.mrb[18].mxu0 %vm2775_vm4, %v31685_v24  ;;  %24835 = vmatmul.mubr.msk.f32.vlgmr.msra.gmra.mrb[28].mxu1 %vm2775_vm4, %v31685_v24  ;;  %v9652_v33 = vsel %vm2634_vm3, %v9650_v27, %v9651_v13 }
 0x88e   :  { %27805 = vmatpush1.bf16.msra.mxu0 %v29820_v23  ;;  %27809 = vmatpush1.bf16.msra.mxu1 %v29823_v16  ;;  %v9709_v23 = vrot.slane %v9568_v7, 4  ;;  %v8633_v16 = vunpack.c.h.bf16 %v8573_v28 }
 0x88f   :  { %24836 = vmatprep.subr.msk.mxu0 %vm2634_vm3, %v8619_v47  ;;  %24839 = vmatprep.subr.msk.mxu1 %vm2634_vm3, %v8621_v21  ;;  %v9647_v47 = vrot.slane %v9527_v49, 4  ;;  %v9648_v21 = vrot.slane %v9547_v51, 4  ;;  %v9533_v49 = vunpack.c.l.bf16 %v9500_v0 }
 0x890   :  { %8903 = vmatprep.mubr.f32.mxu0 %v34472_v54  ;;  %8974 = vmatprep.mubr.f32.mxu1 %v34472_v54 }
 0x892   :  { %24837 = vmatpush1.msk.msra.mxu0 %vm2634_vm3, %v8618_v39  ;;  %24840 = vmatpush1.msk.msra.mxu1 %vm2634_vm3, %v8620_v57  ;;  %v9707_v39 = vrot.slane %v9567_v32, 4  ;;  %v8630_v57 = vunpack.c.l.bf16 %v8572_v2  ;;  %v9520_v2 = vld [vmem:[#allocation7 + $0x608] sm:$0xff] }
 0x893   :  { %24838 = vmatmul.mubr.msk.f32.vlgmr.msra.gmra.mrb[20].mxu0 %vm2775_vm4, %v31685_v24  ;;  %24841 = vmatmul.mubr.msk.f32.vlgmr.msra.gmra.mrb[30].mxu1 %vm2775_vm4, %v31685_v24 }
 0x894   :  { %27811 = vmatprep.subr.bf16.mxu0 %v29824_v18  ;;  %27815 = vmatprep.subr.bf16.mxu1 %v29827_v9  ;;  %v9710_v18 = vsel %vm2634_vm3, %v9651_v13, %v9709_v23  ;;  %v9649_v9 = vsel %vm2634_vm3, %v9647_v47, %v9648_v21 }
 0x895   :  { %27813 = vmatpush1.bf16.msra.mxu0 %v29826_v58  ;;  %27817 = vmatpush1.bf16.msra.mxu1 %v29829_v55  ;;  %v9708_v58 = vsel %vm2634_vm3, %v9648_v21, %v9707_v39  ;;  %v27866_v55 = vpack.c.bf16 %v9710_v18, %v9652_v33  ;;  %v9574_v21 = vunpack.c.h.bf16 %v9520_v2 }
 0x896   :  { %24842 = vmatprep.subr.msk.mxu0 %vm2634_vm3, %v8623_v26  ;;  %24845 = vmatprep.subr.msk.mxu1 %vm2634_vm3, %v8625_v62  ;;  %v34482_v26 = vld [vmem:[#allocation38_spill] sm:$0xff] }
 0x897   :  { %9045 = vmatprep.mubr.f32.mxu0 %v34472_v54  ;;  %9116 = vmatprep.mubr.f32.mxu1 %v34472_v54  ;;  %v2165_v62 = vmax.f32 %v34482_v26, 0.0 }
 0x899   :  { %24843 = vmatpush1.msk.msra.mxu0 %vm2634_vm3, %v8622_v14  ;;  %24846 = vmatpush1.msk.msra.mxu1 %vm2634_vm3, %v8624_v25  ;;  %v27868_v14 = vpack.c.bf16 %v9708_v58, %v9649_v9  ;;  %v31775_v58 = vrot.slane %v9574_v21, 4 }
 0x89a   :  { %24844 = vmatmul.mubr.msk.f32.vlgmr.msra.gmra.mrb[22].mxu0 %vm2775_vm4, %v31685_v24  ;;  %24847 = vmatmul.mubr.msk.f32.vlgmr.msra.gmra.mrb[32].mxu1 %vm2775_vm4, %v31685_v24 }
 0x89b   :  { %27819 = vmatprep.subr.bf16.mxu0 %v29830_v46  ;;  %27823 = vmatprep.subr.bf16.mxu1 %v29833_v59 }
 0x89c   :  { %27821 = vmatpush1.bf16.msra.mxu0 %v29832_v3  ;;  %27825 = vmatpush1.bf16.msra.mxu1 %v29835_v63 }
 0x89d   :  { %24848 = vmatprep.subr.msk.mxu0 %vm2634_vm3, %v8627_v31  ;;  %24851 = vmatprep.subr.msk.mxu1 %vm2634_vm3, %v8629_v35 }
 0x89e   :  { %9187 = vmatprep.mubr.f32.mxu0 %v34472_v54  ;;  %9258 = vmatprep.mubr.f32.mxu1 %v34472_v54 }
 0x8a0   :  { %24849 = vmatpush1.msk.msra.mxu0 %vm2634_vm3, %v8626_v42  ;;  %24852 = vmatpush1.msk.msra.mxu1 %vm2634_vm3, %v8628_v12  ;;  %v9572_v42 = vunpack.c.h.bf16 %v9519_v4  ;;  %v9571_v12 = vunpack.c.l.bf16 %v9519_v4  ;;  %v9523_v4 = vld [vmem:[#allocation7 + $0x620] sm:$0xff] }
 0x8a1   :  { %24850 = vmatmul.mubr.msk.f32.vlgmr.msra.gmra.mrb[24].mxu0 %vm2775_vm4, %v31685_v24  ;;  %24853 = vmatmul.mubr.msk.f32.vlgmr.msra.gmra.mrb[34].mxu1 %vm2775_vm4, %v31685_v24 }
 0x8a2   :  { %27827 = vmatprep.subr.bf16.mxu0 %v29836_v56  ;;  %27831 = vmatprep.subr.bf16.mxu1 %v29839_v43  ;;  %v31763_v28 = vrot.slane %v9572_v42, 4  ;;  %v9534_v56 = vunpack.c.h.bf16 %v9500_v0 }
 0x8a3   :  { %27829 = vmatpush1.bf16.msra.mxu0 %v29838_v44  ;;  %27833 = vmatpush1.bf16.msra.mxu1 %v29841_v8  ;;  %v31765_v8 = vrot.slane %v9571_v12, 4 }
 0x8a4   :  { %24854 = vmatprep.subr.msk.mxu0 %vm2634_vm3, %v8631_v15  ;;  %24857 = vmatprep.subr.msk.mxu1 %vm2634_vm3, %v8633_v16  ;;  %v9573_v16 = vunpack.c.l.bf16 %v9520_v2  ;;  %v9580_v2 = vunpack.c.h.bf16 %v9523_v4 }
 0x8a5   :  { %9329 = vmatprep.mubr.f32.mxu0 %v34472_v54  ;;  %9400 = vmatprep.mubr.f32.mxu1 %v34472_v54 }
 0x8a6   :  { %v31770_v18 = vrot.slane %v9573_v16, 4  ;;  %v9524_v16 = vld [vmem:[#allocation7 + $0x628] sm:$0xff] }
 0x8a7   :  { %24855 = vmatpush1.msk.msra.mxu0 %vm2634_vm3, %v8630_v57  ;;  %24858 = vmatpush1.msk.msra.mxu1 %vm2634_vm3, %v8632_v11  ;;  %v9668_v11 = vrot.slane %v9534_v56, 4 }
 0x8a8   :  { %24856 = vmatmul.mubr.msk.f32.vlgmr.msra.gmra.mrb[26].mxu0 %vm2775_vm4, %v31685_v24  ;;  %24859 = vmatmul.mubr.msk.f32.vlgmr.msra.gmra.mrb[36].mxu1 %vm2775_vm4, %v31685_v24  ;;  %v9518_v24 = vld [vmem:[#allocation7 + $0x5f8] sm:$0xff] }
 0x8a9   :  { %27835 = vmatprep.subr.bf16.mxu1 %v31395_v17  ;;  %9491 = vmatprep.mubr.f32.mxu1 %v2165_v62  ;;  %v9498_v17 = vld [vmem:[#allocation7 + $0x558] sm:$0xcc]  ;;  %v9570_v46 = vunpack.c.h.bf16 %v9518_v24  ;;  %v9569_v20 = vunpack.c.l.bf16 %v9518_v24 }
 0x8aa   :  { %27837 = vmatpush3.bf16.msra.mxu1 %v31401_v37  ;;  %27867 = vmatprep.subr.bf16.mxu0 %v27866_v55  ;;  %v9508_v37 = vld [vmem:[#allocation7 + $0x5a8] sm:$0xff] }
 0x8ab   :  { %27839 = vmatprep.subr.bf16.mxu1 %v31407_v41  ;;  %27869 = vmatpush1.bf16.msra.mxu0 %v27868_v14  ;;  %v9530_v41 = vunpack.c.h.bf16 %v9498_v17  ;;  %v9550_v25 = vunpack.c.h.bf16 %v9508_v37 }
 0x8ac   :  { %24860 = vmatprep.subr.msk.mxu0 %vm2634_vm3, %v9709_v23  ;;  %9894 = vmatprep.mubr.f32.mxu0 %v34472_v54 }
 0x8ad   :  { %v9657_v53 = vrot.slane %v9550_v25, 4  ;;  %v9501_v25 = vld [vmem:[#allocation7 + $0x570] sm:$0xcc] }
 0x8ae   :  { %27841 = vmatpush3.bf16.msra.mxu1 %v31415_v19  ;;  %v9529_v19 = vunpack.c.l.bf16 %v9498_v17 }
 0x8af   :  { %27843 = vmatprep.subr.bf16.mxu1 %v31421_v6  ;;  %24861 = vmatpush1.msk.msra.mxu0 %vm2634_vm3, %v9707_v39  ;;  %v9549_v6 = vunpack.c.l.bf16 %v9508_v37  ;;  %v9665_v39 = vrot.slane %v9533_v49, 4 }
 0x8b1   :  { %v9654_v3 = vrot.slane %v9549_v6, 4  ;;  %v9535_v6 = vunpack.c.l.bf16 %v9501_v25 }
 0x8b2   :  { %27845 = vmatpush3.bf16.msra.mxu1 %v31428_v1  ;;  %v9656_v1 = vrot.slane %v9530_v41, 4 }
 0x8b3   :  { %27847 = vmatprep.subr.bf16.mxu1 %v31434_v34  ;;  %v9713_v34 = vrot.slane %v9570_v46, 4  ;;  %v9511_v46 = vld [vmem:[#allocation7 + $0x5c0] sm:$0xff] }
 0x8b4   :  { %v9658_v59 = vsel %vm2634_vm3, %v9656_v1, %v9657_v53  ;;  %v9556_v1 = vunpack.c.h.bf16 %v9511_v46 }
 0x8b5   :  { %v9714_v63 = vsel %vm2634_vm3, %v9657_v53, %v9713_v34 }
 0x8b6   :  { %27849 = vmatpush3.bf16.msra.mxu1 %v31440_v45  ;;  %v9653_v45 = vrot.slane %v9529_v19, 4  ;;  %v9521_v19 = vld [vmem:[#allocation7 + $0x610] sm:$0xff] }
 0x8b7   :  { %27851 = vmatprep.subr.bf16.mxu1 %v31446_v30  ;;  %v9711_v30 = vrot.slane %v9569_v20, 4  ;;  %v9536_v20 = vunpack.c.h.bf16 %v9501_v25  ;;  %v9576_v53 = vunpack.c.h.bf16 %v9521_v19 }
 0x8b9   :  { %v9712_v29 = vsel %vm2634_vm3, %v9654_v3, %v9711_v30 }
 0x8ba   :  { %27853 = vmatpush3.bf16.msra.mxu1 %v31452_v61  ;;  %v27870_v61 = vpack.c.bf16 %v9714_v63, %v9658_v59  ;;  %v9522_v59 = vld [vmem:[#allocation7 + $0x618] sm:$0xff]  ;;  %v9671_v63 = vrot.slane %v9535_v6, 4  ;;  %v9582_v6 = vunpack.c.h.bf16 %v9524_v16 }
 0x8bb   :  { %27855 = vmatprep.subr.bf16.mxu1 %v31458_v40  ;;  %v9655_v40 = vsel %vm2634_vm3, %v9653_v45, %v9654_v3  ;;  %v9502_v45 = vld [vmem:[#allocation7 + $0x578] sm:$0xcc]  ;;  %v9512_v3 = vld [vmem:[#allocation7 + $0x5c8] sm:$0xff]  ;;  %v9577_v42 = vunpack.c.l.bf16 %v9522_v59  ;;  %v9578_v0 = vunpack.c.h.bf16 %v9522_v59 }
 0x8be   :  { %27857 = vmatpush3.bf16.msra.mxu1 %v31464_v5  ;;  %v27872_v5 = vpack.c.bf16 %v9712_v29, %v9655_v40  ;;  %v9675_v40 = vrot.slane %v9556_v1, 4  ;;  %v31795_v29 = vrot.slane %v9576_v53, 4 }
 0x8bf   :  { %27859 = vmatprep.subr.bf16.mxu1 %v31470_v36  ;;  %v34483_v36 = vld [vmem:[#allocation36_spill] sm:$0xff] }
 0x8c0   :  { %v2164_v60 = vmax.f32 %v34483_v36, 0.0  ;;  %v9538_v36 = vunpack.c.h.bf16 %v9502_v45  ;;  %v31804_v49 = vsel %vm2634_vm3, %v9675_v40, %v31795_v29 }
 0x8c2   :  { %27861 = vmatpush3.bf16.msra.mxu1 %v31478_v22  ;;  %v9499_v22 = vld [vmem:[#allocation7 + $0x560] sm:$0xcc]  ;;  %v9680_v56 = vrot.slane %v9538_v36, 4 }
 0x8c3   :  { %27863 = vmatprep.subr.bf16.mxu1 %v31484_v38  ;;  %v9509_v38 = vld [vmem:[#allocation7 + $0x5b0] sm:$0xff]  ;;  %v9532_v31 = vunpack.c.h.bf16 %v9499_v22  ;;  %v9531_v10 = vunpack.c.l.bf16 %v9499_v22  ;;  %v9503_v22 = vld [vmem:[#allocation7 + $0x580] sm:$0xcc] }
 0x8c4   :  { %v9552_v35 = vunpack.c.h.bf16 %v9509_v38  ;;  %v9551_v7 = vunpack.c.l.bf16 %v9509_v38  ;;  %v9513_v38 = vld [vmem:[#allocation7 + $0x5d0] sm:$0xff]  ;;  %v9539_v21 = vunpack.c.l.bf16 %v9503_v22 }
 0x8c5   :  { %v9662_v51 = vrot.slane %v9532_v31, 4  ;;  %v9659_v44 = vrot.slane %v9531_v10, 4  ;;  %v9560_v12 = vunpack.c.h.bf16 %v9513_v38 }
 0x8c6   :  { %27865 = vmatpush3.bf16.msra.mxu1 %v31492_v50  ;;  %v9510_v50 = vld [vmem:[#allocation7 + $0x5b8] sm:$0xff]  ;;  %v9663_v32 = vrot.slane %v9552_v35, 4  ;;  %v9660_v43 = vrot.slane %v9551_v7, 4  ;;  %v9558_v35 = vunpack.c.h.bf16 %v9512_v3  ;;  %v9540_v7 = vunpack.c.h.bf16 %v9503_v22 }
 0x8c7   :  { %27871 = vmatprep.subr.bf16.mxu1 %v27870_v61  ;;  %v9553_v15 = vunpack.c.l.bf16 %v9510_v50  ;;  %v9554_v23 = vunpack.c.h.bf16 %v9510_v50  ;;  %v9674_v61 = vrot.slane %v9536_v20, 4  ;;  %v9683_v59 = vrot.slane %v9539_v21, 4 }
 0x8c8   :  { %v9664_v27 = vsel %vm2634_vm3, %v9662_v51, %v9663_v32  ;;  %v9718_v13 = vsel %vm2634_vm3, %v9663_v32, %v31763_v28  ;;  %v31773_v9 = vsel %vm2634_vm3, %v9659_v44, %v9660_v43  ;;  %v31779_v55 = vsel %vm2634_vm3, %v9660_v43, %v31765_v8  ;;  %v9504_v44 = vld [vmem:[#allocation7 + $0x588] sm:$0xcc] }
 0x8c9   :  { %9492 = vmatmul.mubr.f32.vlgmr.msra.gmra.mrb[42].mxu1 %v2164_v60  ;;  %v27874_v47 = vpack.c.bf16 %v9718_v13, %v9664_v27  ;;  %v9666_v57 = vrot.slane %v9553_v15, 4  ;;  %v9669_v33 = vrot.slane %v9554_v23, 4  ;;  %v27876_v14 = vpack.c.bf16 %v31779_v55, %v31773_v9  ;;  %v9514_v23 = vld [vmem:[#allocation7 + $0x5d8] sm:$0xff] }
 0x8ca   :  { %27873 = vmatpush1.bf16.msra.mxu1 %v27872_v5  ;;  %9965 = vmatprep.mubr.f32.mxu1 %v34472_v54  ;;  %v9537_v5 = vunpack.c.l.bf16 %v9502_v45  ;;  %v9557_v60 = vunpack.c.l.bf16 %v9512_v3  ;;  %v31800_v10 = vsel %vm2634_vm3, %v9674_v61, %v9675_v40  ;;  %v9681_v43 = vrot.slane %v9558_v35, 4 }
 0x8cb   :  { %24863 = vmatprep.subr.msk.mxu1 %vm2634_vm3, %v9713_v34  ;;  %27875 = vmatprep.subr.bf16.mxu0 %v27874_v47  ;;  %v31782_v26 = vsel %vm2634_vm3, %v9665_v39, %v9666_v57  ;;  %v9670_v62 = vsel %vm2634_vm3, %v9668_v11, %v9669_v33  ;;  %v31789_v17 = vsel %vm2634_vm3, %v9666_v57, %v31770_v18  ;;  %v9555_v34 = vunpack.c.l.bf16 %v9511_v46 }
 0x8cc   :  { %v9722_v37 = vsel %vm2634_vm3, %v9669_v33, %v31775_v58  ;;  %v27880_v24 = vpack.c.bf16 %v31789_v17, %v31782_v26  ;;  %v9677_v51 = vrot.slane %v9537_v5, 4  ;;  %v9678_v32 = vrot.slane %v9557_v60, 4  ;;  %v9525_v26 = vld [vmem:[#allocation7 + $0x630] sm:$0xff] }
 0x8cd   :  { %v27878_v41 = vpack.c.bf16 %v9722_v37, %v9670_v62  ;;  %v9672_v31 = vrot.slane %v9555_v34, 4  ;;  %v31806_v15 = vrot.slane %v9577_v42, 4  ;;  %v31808_v27 = vrot.slane %v9578_v0, 4  ;;  %v9505_v42 = vld [vmem:[#allocation7 + $0x590] sm:$0xcc] }
 0x8ce   :  { %24864 = vmatpush1.msk.msra.mxu1 %vm2634_vm3, %v9711_v30  ;;  %v9575_v30 = vunpack.c.l.bf16 %v9521_v19  ;;  %v9559_v39 = vunpack.c.l.bf16 %v9513_v38  ;;  %v9579_v57 = vunpack.c.l.bf16 %v9523_v4  ;;  %v9686_v11 = vrot.slane %v9540_v7, 4  ;;  %v9526_v7 = vld [vmem:[#allocation7 + $0x638] sm:$0xff] }
 0x8cf   :  { %27879 = vmatprep.subr.bf16.mxu1 %v27878_v41  ;;  %v31811_v13 = vsel %vm2634_vm3, %v9671_v63, %v9672_v31  ;;  %v9687_v33 = vrot.slane %v9560_v12, 4  ;;  %v31817_v62 = vrot.slane %v9580_v2, 4  ;;  %v9541_v37 = vunpack.c.l.bf16 %v9504_v44 }
 0x8d0   :  { %v31797_v50 = vrot.slane %v9575_v30, 4  ;;  %v9542_v25 = vunpack.c.h.bf16 %v9504_v44  ;;  %v9561_v46 = vunpack.c.l.bf16 %v9514_v23  ;;  %v9562_v19 = vunpack.c.h.bf16 %v9514_v23 }
 0x8d1   :  { %v9682_v1 = vsel %vm2634_vm3, %v9680_v56, %v9681_v43  ;;  %v9730_v53 = vsel %vm2634_vm3, %v9681_v43, %v31808_v27  ;;  %v9679_v34 = vsel %vm2634_vm3, %v9677_v51, %v9678_v32  ;;  %v9581_v45 = vunpack.c.l.bf16 %v9524_v16 }
 0x8d2   :  { %v31815_v47 = vsel %vm2634_vm3, %v9672_v31, %v31797_v50  ;;  %v9728_v30 = vsel %vm2634_vm3, %v9678_v32, %v31806_v15  ;;  %v9684_v63 = vrot.slane %v9559_v39, 4  ;;  %v31828_v61 = vsel %vm2634_vm3, %v9686_v11, %v9687_v33 }
 0x8d3   :  { %v31830_v40 = vrot.slane %v9579_v57, 4  ;;  %v31834_v5 = vsel %vm2634_vm3, %v9687_v33, %v31817_v62  ;;  %v9689_v36 = vrot.slane %v9541_v37, 4  ;;  %v9690_v60 = vrot.slane %v9561_v46, 4 }
 0x8d4   :  { %v9692_v22 = vrot.slane %v9542_v25, 4  ;;  %v9693_v38 = vrot.slane %v9562_v19, 4  ;;  %v31840_v4 = vrot.slane %v9582_v6, 4  ;;  %v27882_v31 = vpack.c.bf16 %v31804_v49, %v31800_v10  ;;  %v9516_v10 = vld [vmem:[#allocation7 + $0x5e8] sm:$0xff] }
 0x8d5   :  { %v31850_v35 = vrot.slane %v9581_v45, 4  ;;  %v27886_v0 = vpack.c.bf16 %v9730_v53, %v9682_v1  ;;  %v27884_v9 = vpack.c.bf16 %v31815_v47, %v31811_v13  ;;  %v27888_v55 = vpack.c.bf16 %v9728_v30, %v9679_v34 }
 0x8d6   :  { %v27890_v17 = vpack.c.bf16 %v31834_v5, %v31828_v61  ;;  %v9694_v12 = vsel %vm2634_vm3, %v9692_v22, %v9693_v38  ;;  %v9738_v2 = vsel %vm2634_vm3, %v9693_v38, %v31840_v4  ;;  %v9691_v49 = vsel %vm2634_vm3, %v9689_v36, %v9690_v60  ;;  %v30056_v22 = vld [vmem:[#allocation5 + $0x10] sm:$0xff] }
 0x8d7   :  { %v9543_v51 = vunpack.c.l.bf16 %v9505_v42  ;;  %v9736_v32 = vsel %vm2634_vm3, %v9690_v60, %v31850_v35  ;;  %v9544_v56 = vunpack.c.h.bf16 %v9505_v42  ;;  %v9584_v43 = vunpack.c.h.bf16 %v9525_v26 }
 0x8d8   :  { %v9566_v16 = vunpack.c.h.bf16 %v9516_v10  ;;  %v9586_v47 = vunpack.c.h.bf16 %v9526_v7  ;;  %v9565_v21 = vunpack.c.l.bf16 %v9516_v10  ;;  %v9585_v39 = vunpack.c.l.bf16 %v9526_v7  ;;  %v31985_v10 = vld [vmem:[%s34413_s4 + $0x20] sm:$0xff]   ;;  %v31991_v7 = vld [vmem:[%s34413_s4 + $0x68] sm:$0xff]  }
 0x8d9   :  { %v27894_v57 = vpack.c.bf16 %v9738_v2, %v9694_v12  ;;  %v27896_v33 = vpack.c.bf16 %v9736_v32, %v9691_v49  ;;  %v9695_v37 = vrot.slane %v9543_v51, 4  ;;  %v9741_v46 = vrot.slane %v9584_v43, 4  ;;  %v31997_v12 = vld [vmem:[%s34413_s4 + $0x28] sm:$0xff]   ;;  %v32004_v49 = vld [vmem:[%s34413_s4 + $0x70] sm:$0xff]  }
 0x8da   :  { %v9745_v1 = vrot.slane %v9586_v47, 4  ;;  %v9702_v45 = vrot.slane %v9565_v21, 4  ;;  %v9743_v30 = vrot.slane %v9585_v39, 4  ;;  %v476_v38 = vrot.slane %v30056_v22, %v30606_v52  ;;  %v32010_v51 = vld [vmem:[%s34413_s4 + $0x30] sm:$0xff]   ;;  %v29842_v43 = vld [vmem:[#allocation7 + $0x644] ss:$80 sps:$4 sm:$0xff]  }
 0x8db   :  { %v472_v2 = vrot.slane %v30056_v22, %v30596_v48  ;;  %v34485_v32 = vld [vmem:[#allocation22_spill] sm:$0xff]  ;;  %v10650_v47 = vld [vmem:[#allocation7 + $0x6e0] sm:$0x33]  ;;  %v10656_v22 = vld [vmem:[#allocation7 + $0x710] sm:$0x33] }
 0x8dc   :  { %v9744_v5 = vsel %vm2634_vm3, %v9702_v45, %v9743_v30  ;;  %v10700_v39 = vunpack.c.l.bf16 %v10650_v47 }
 0x99c   :  { %v26450_v41 = vpop.f32.mrb[42].mxu1 }
 0x99d   :  { %v26451_v20 = vpop.f32.mrb[43].mxu1 }
 0x99e   :  { %v31823_v3 = vadd.f32 %v26451_v20, %v26450_v41  ;;  %v9698_v41 = vrot.slane %v9544_v56, 4  ;;  %v9705_v20 = vrot.slane %v9566_v16, 4  ;;  %v1365_v56 = vadd.f32 %v34485_v32, %v472_v2 }
 0x99f   :  { %v10712_v32 = vunpack.c.l.bf16 %v10656_v22 }
 0x9a0   :  { %24862 = vmatmul.mubr.msk.f32.vlgmr.msra.gmra.mrb[18].mxu0 %vm2775_vm4, %v31823_v3  ;;  %24865 = vmatmul.mubr.msk.f32.vlgmr.msra.gmra.mrb[28].mxu1 %vm2775_vm4, %v31823_v3  ;;  %v2166_v16 = vmax.f32 %v1365_v56, 0.0 }
 0x9a1   :  { %27877 = vmatpush1.bf16.msra.mxu0 %v27876_v14  ;;  %27881 = vmatpush1.bf16.msra.mxu1 %v27880_v24  ;;  %v9515_v14 = vld [vmem:[#allocation7 + $0x5e0] sm:$0xff]  ;;  %v9685_v24 = vsel %vm2634_vm3, %v9683_v59, %v9684_v63 }
 0x9a2   :  { %24866 = vmatprep.subr.msk.mxu0 %vm2634_vm3, %v31763_v28  ;;  %24869 = vmatprep.subr.msk.mxu1 %vm2634_vm3, %v31775_v58  ;;  %v9732_v28 = vsel %vm2634_vm3, %v9684_v63, %v31830_v40  ;;  %v9506_v58 = vld [vmem:[#allocation7 + $0x598] sm:$0xcc]  ;;  %v9564_v44 = vunpack.c.h.bf16 %v9515_v14  ;;  %v9563_v13 = vunpack.c.l.bf16 %v9515_v14  ;;  %v9746_v63 = vsel %vm2634_vm3, %v9705_v20, %v9745_v1  ;;  %v31949_v14 = vld [vmem:[%s34413_s4 + $0x8] sm:$0xff]  }
 0x9a3   :  { %10036 = vmatprep.mubr.f32.mxu0 %v34472_v54  ;;  %10107 = vmatprep.mubr.f32.mxu1 %v34472_v54  ;;  %v9546_v23 = vunpack.c.h.bf16 %v9506_v58  ;;  %v27892_v11 = vpack.c.bf16 %v9732_v28, %v9685_v24  ;;  %v31967_v24 = vld [vmem:[%s34413_s4 + $0x58] sm:$0xff]  }
 0x9a4   :  { %v9699_v25 = vrot.slane %v9564_v44, 4  ;;  %v9696_v19 = vrot.slane %v9563_v13, 4  ;;  %v31973_v28 = vld [vmem:[%s34413_s4 + $0x18] sm:$0xff]  }
 0x9a5   :  { %24867 = vmatpush1.msk.msra.mxu0 %vm2634_vm3, %v31765_v8  ;;  %24870 = vmatpush1.msk.msra.mxu1 %vm2634_vm3, %v31770_v18  ;;  %v9583_v8 = vunpack.c.l.bf16 %v9525_v26  ;;  %v9545_v18 = vunpack.c.l.bf16 %v9506_v58  ;;  %v9704_v6 = vrot.slane %v9546_v23, 4  ;;  %v31955_v26 = vld [vmem:[%s34413_s4 + $0x50] sm:$0xff]   ;;  %v31979_v58 = vld [vmem:[%s34413_s4 + $0x60] sm:$0xff]   ;;  %v32017_v44 = vld [vmem:[%s34413_s4 + $0x78] sm:$0xff]  }
 0x9a6   :  { %24868 = vmatmul.mubr.msk.f32.vlgmr.msra.gmra.mrb[20].mxu0 %vm2775_vm4, %v31823_v3  ;;  %24871 = vmatmul.mubr.msk.f32.vlgmr.msra.gmra.mrb[30].mxu1 %vm2775_vm4, %v31823_v3  ;;  %v32023_v13 = vld [vmem:[%s34413_s4 + $0x38] sm:$0xff]  }
 0x9a7   :  { %27883 = vmatprep.subr.bf16.mxu0 %v27882_v31  ;;  %27887 = vmatprep.subr.bf16.mxu1 %v27886_v0  ;;  %v9739_v53 = vrot.slane %v9583_v8, 4  ;;  %v9701_v34 = vrot.slane %v9545_v18, 4  ;;  %v9706_v59 = vsel %vm2634_vm3, %v9704_v6, %v9705_v20  ;;  %v29847_v0 = vld [vmem:[#allocation7 + $0x648] ss:$80 sps:$4 sm:$0xff]   ;;  %v29844_v23 = vld [vmem:[#allocation7 + $0x640] ss:$80 sps:$4 sm:$0xff]   ;;  %v10701_v18 = vunpack.c.h.bf16 %v10650_v47 }
 0x9a8   :  { %27885 = vmatpush1.bf16.msra.mxu0 %v27884_v9  ;;  %27889 = vmatpush1.bf16.msra.mxu1 %v27888_v55  ;;  %v27902_v60 = vpack.c.bf16 %v9746_v63, %v9706_v59  ;;  %v31930_v9 = vld [vmem:[%s34413_s4 + $0x40] sm:$0xff]   ;;  %v10651_v8 = vld [vmem:[#allocation7 + $0x6e8] sm:$0x33]  ;;  %v29856_v63 = vld [vmem:[#allocation7 + $0x660] ss:$80 sps:$4 sm:$0xff]  }
 0x9a9   :  { %24872 = vmatprep.subr.msk.mxu0 %vm2634_vm3, %v31795_v29  ;;  %24875 = vmatprep.subr.msk.mxu1 %vm2634_vm3, %v31808_v27  ;;  %v9700_v29 = vsel %vm2634_vm3, %v9698_v41, %v9699_v25  ;;  %v9742_v27 = vsel %vm2634_vm3, %v9699_v25, %v9741_v46  ;;  %v9703_v61 = vsel %vm2634_vm3, %v9701_v34, %v9702_v45  ;;  %v31936_v55 = vld [vmem:[%s34413_s4] sm:$0xff]   ;;  %v10703_v21 = vunpack.c.h.bf16 %v10651_v8  ;;  %v10658_v47 = vld [vmem:[#allocation7 + $0x720] sm:$0x33] }
 0x9aa   :  { %10178 = vmatprep.mubr.f32.mxu0 %v34472_v54  ;;  %10249 = vmatprep.mubr.f32.mxu1 %v34472_v54  ;;  %v27898_v36 = vpack.c.bf16 %v9742_v27, %v9700_v29  ;;  %v27904_v42 = vpack.c.bf16 %v9744_v5, %v9703_v61  ;;  %v10653_v41 = vld [vmem:[#allocation7 + $0x6f8] sm:$0x33]  ;;  %v10655_v29 = vld [vmem:[#allocation7 + $0x708] sm:$0x33]  ;;  %v29854_v27 = vld [vmem:[#allocation7 + $0x664] ss:$80 sps:$4 sm:$0xff]  }
 0x9ab   :  { %v29853_v6 = vld [vmem:[#allocation7 + $0x658] ss:$80 sps:$4 sm:$0xff]   ;;  %v10706_v45 = vunpack.c.l.bf16 %v10653_v41  ;;  %v29857_v59 = vld [vmem:[#allocation7 + $0x66c] ss:$80 sps:$4 sm:$0xff]   ;;  %v10711_v61 = vunpack.c.h.bf16 %v10655_v29 }
 0x9ac   :  { %24873 = vmatpush1.msk.msra.mxu0 %vm2634_vm3, %v31797_v50  ;;  %24876 = vmatpush1.msk.msra.mxu1 %vm2634_vm3, %v31806_v15  ;;  %v9697_v50 = vsel %vm2634_vm3, %v9695_v37, %v9696_v19  ;;  %v9740_v15 = vsel %vm2634_vm3, %v9696_v19, %v9739_v53  ;;  %v10652_v37 = vld [vmem:[#allocation7 + $0x6f0] sm:$0x33] }
 0x9ad   :  { %24874 = vmatmul.mubr.msk.f32.vlgmr.msra.gmra.mrb[22].mxu0 %vm2775_vm4, %v31823_v3  ;;  %24877 = vmatmul.mubr.msk.f32.vlgmr.msra.gmra.mrb[32].mxu1 %vm2775_vm4, %v31823_v3  ;;  %v27900_v31 = vpack.c.bf16 %v9740_v15, %v9697_v50  ;;  %v29850_v19 = vld [vmem:[#allocation7 + $0x650] ss:$80 sps:$4 sm:$0xff]   ;;  %v10704_v34 = vunpack.c.l.bf16 %v10652_v37  ;;  %v29859_v50 = vld [vmem:[#allocation7 + $0x668] ss:$80 sps:$4 sm:$0xff]  }
 0x9ae   :  { %27891 = vmatprep.subr.bf16.mxu0 %v27890_v17  ;;  %27895 = vmatprep.subr.bf16.mxu1 %v27894_v57  ;;  %v31961_v17 = vld [vmem:[%s34413_s4 + $0x10] sm:$0xff]   ;;  %v10702_v57 = vunpack.c.l.bf16 %v10651_v8 }
 0x9af   :  { %27893 = vmatpush1.bf16.msra.mxu0 %v27892_v11  ;;  %27897 = vmatpush1.bf16.msra.mxu1 %v27896_v33  ;;  %v29848_v11 = vld [vmem:[#allocation7 + $0x654] ss:$80 sps:$4 sm:$0xff]   ;;  %v29851_v33 = vld [vmem:[#allocation7 + $0x65c] ss:$80 sps:$4 sm:$0xff]  }
 0x9b0   :  { %24878 = vmatprep.subr.msk.mxu0 %vm2634_vm3, %v31817_v62  ;;  %24881 = vmatprep.subr.msk.mxu1 %vm2634_vm3, %v31840_v4  ;;  %v34484_v62 = vld [vmem:[#allocation23_spill] sm:$0xff] }
 0x9b1   :  { %10320 = vmatprep.mubr.f32.mxu0 %v34472_v54  ;;  %10391 = vmatprep.mubr.f32.mxu1 %v34472_v54  ;;  %v1367_v4 = vadd.f32 %v34484_v62, %v476_v38  ;;  %v10657_v38 = vld [vmem:[#allocation7 + $0x718] sm:$0x33] }
 0x9b2   :  { %v29865_v62 = vld [vmem:[#allocation7 + $0x678] ss:$80 sps:$4 sm:$0xff]   ;;  %v10715_v2 = vunpack.c.h.bf16 %v10657_v38 }
 0x9b3   :  { %24879 = vmatpush1.msk.msra.mxu0 %vm2634_vm3, %v31830_v40  ;;  %24882 = vmatpush1.msk.msra.mxu1 %vm2634_vm3, %v31850_v35  ;;  %v29845_v40 = vld [vmem:[#allocation7 + $0x64c] ss:$80 sps:$4 sm:$0xff]   ;;  %v2167_v35 = vmax.f32 %v1367_v4, 0.0  ;;  %v11583_v4 = vld [vmem:[#allocation7 + $0x6e0] sm:$0xcc] }
 0x9b4   :  { %24880 = vmatmul.mubr.msk.f32.vlgmr.msra.gmra.mrb[24].mxu0 %vm2775_vm4, %v31823_v3  ;;  %24883 = vmatmul.mubr.msk.f32.vlgmr.msra.gmra.mrb[34].mxu1 %vm2775_vm4, %v31823_v3  ;;  %v11614_v56 = vunpack.c.h.bf16 %v11583_v4  ;;  %v11613_v8 = vunpack.c.l.bf16 %v11583_v4 }
 0x9b5   :  { %27899 = vmatprep.subr.bf16.mxu0 %v27898_v36  ;;  %27903 = vmatprep.subr.bf16.mxu1 %v27902_v60  ;;  %v10710_v36 = vunpack.c.l.bf16 %v10655_v29  ;;  %v29860_v60 = vld [vmem:[#allocation7 + $0x674] ss:$80 sps:$4 sm:$0xff]  }
 0x9b6   :  { %27901 = vmatpush1.bf16.msra.mxu0 %v27900_v31  ;;  %27905 = vmatpush1.bf16.msra.mxu1 %v27904_v42  ;;  %v29862_v31 = vld [vmem:[#allocation7 + $0x670] ss:$80 sps:$4 sm:$0xff]   ;;  %v29863_v42 = vld [vmem:[#allocation7 + $0x67c] ss:$80 sps:$4 sm:$0xff]  }
 0x9b7   :  { %24884 = vmatprep.subr.msk.mxu0 %vm2634_vm3, %v9741_v46  ;;  %24887 = vmatprep.subr.msk.mxu1 %vm2634_vm3, %v9745_v1  ;;  %v10705_v1 = vunpack.c.h.bf16 %v10652_v37  ;;  %v29871_v37 = vld [vmem:[#allocation7 + $0x688] ss:$80 sps:$4 sm:$0xff]  }
 0x9b8   :  { %10462 = vmatprep.mubr.f32.mxu0 %v34472_v54  ;;  %10533 = vmatprep.mubr.f32.mxu1 %v34472_v54 }
 0x9ba   :  { %24885 = vmatpush1.msk.msra.mxu0 %vm2634_vm3, %v9739_v53  ;;  %24888 = vmatpush1.msk.msra.mxu1 %vm2634_vm3, %v9743_v30  ;;  %v10707_v53 = vunpack.c.h.bf16 %v10653_v41  ;;  %v10654_v30 = vld [vmem:[#allocation7 + $0x700] sm:$0x33]  ;;  %v10717_v41 = vunpack.c.h.bf16 %v10658_v47 }
 0x9bb   :  { %24886 = vmatmul.mubr.msk.f32.vlgmr.msra.gmra.mrb[26].mxu0 %vm2775_vm4, %v31823_v3  ;;  %24889 = vmatmul.mubr.msk.f32.vlgmr.msra.gmra.mrb[36].mxu1 %vm2775_vm4, %v31823_v3  ;;  %v31942_v3 = vld [vmem:[%s34413_s4 + $0x48] sm:$0xff]   ;;  %v10709_v15 = vunpack.c.h.bf16 %v10654_v30  ;;  %v10708_v5 = vunpack.c.l.bf16 %v10654_v30 }
 0x9bc   :  { %27907 = vmatprep.subr.bf16.mxu0 %v31930_v9  ;;  %10624 = vmatprep.mubr.f32.mxu0 %v2167_v35  ;;  %v11603_v35 = vld [vmem:[#allocation7 + $0x780] sm:$0xff] }
 0x9bd   :  { %27909 = vmatpush3.bf16.msra.mxu0 %v31936_v55  ;;  %27943 = vmatprep.subr.bf16.mxu1 %v29845_v40  ;;  %v11593_v40 = vld [vmem:[#allocation7 + $0x730] sm:$0xff] }
 0x9be   :  { %27911 = vmatprep.subr.bf16.mxu0 %v31942_v3  ;;  %27945 = vmatpush1.bf16.msra.mxu1 %v29847_v0  ;;  %v10713_v0 = vunpack.c.h.bf16 %v10656_v22 }
 0x9bf   :  { %10918 = vmatprep.mubr.f32.mxu1 %v34472_v54  ;;  %24893 = vmatprep.subr.msk.mxu1 %vm2634_vm3, %v10703_v21  ;;  %v11653_v21 = vunpack.c.l.bf16 %v11603_v35 }
 0x9c1   :  { %27913 = vmatpush3.bf16.msra.mxu0 %v31949_v14 }
 0x9c2   :  { %27915 = vmatprep.subr.bf16.mxu0 %v31955_v26  ;;  %24894 = vmatpush1.msk.msra.mxu1 %vm2634_vm3, %v10702_v57  ;;  %v29866_v57 = vld [vmem:[#allocation7 + $0x684] ss:$80 sps:$4 sm:$0xff]  }
 0x9c3   :  { %27951 = vmatprep.subr.bf16.mxu1 %v29851_v33  ;;  %v29869_v33 = vld [vmem:[#allocation7 + $0x68c] ss:$80 sps:$4 sm:$0xff]  }
 0x9c5   :  { %27917 = vmatpush3.bf16.msra.mxu0 %v31961_v17 }
 0x9c6   :  { %27919 = vmatprep.subr.bf16.mxu0 %v31967_v24 }
 0x9c9   :  { %27921 = vmatpush3.bf16.msra.mxu0 %v31973_v28 }
 0x9ca   :  { %27923 = vmatprep.subr.bf16.mxu0 %v31979_v58 }
 0x9cd   :  { %27925 = vmatpush3.bf16.msra.mxu0 %v31985_v10 }
 0x9ce   :  { %27927 = vmatprep.subr.bf16.mxu0 %v31991_v7 }
 0x9d1   :  { %27929 = vmatpush3.bf16.msra.mxu0 %v31997_v12 }
 0x9d2   :  { %27931 = vmatprep.subr.bf16.mxu0 %v32004_v49 }
 0x9d5   :  { %27933 = vmatpush3.bf16.msra.mxu0 %v32010_v51 }
 0x9d6   :  { %27935 = vmatprep.subr.bf16.mxu0 %v32017_v44 }
 0x9d9   :  { %27937 = vmatpush3.bf16.msra.mxu0 %v32023_v13 }
 0x9da   :  { %27939 = vmatprep.subr.bf16.mxu0 %v29842_v43  ;;  %v11634_v43 = vunpack.c.h.bf16 %v11593_v40 }
 0x9dc   :  { %10625 = vmatmul.mubr.f32.vlgmr.msra.gmra.mrb[34].mxu0 %v2166_v16  ;;  %v10714_v16 = vunpack.c.l.bf16 %v10657_v38 }
 0x9dd   :  { %27941 = vmatpush1.bf16.msra.mxu0 %v29844_v23  ;;  %10847 = vmatprep.mubr.f32.mxu0 %v34472_v54  ;;  %v11654_v23 = vunpack.c.h.bf16 %v11603_v35 }
 0x9de   :  { %24890 = vmatprep.subr.msk.mxu0 %vm2634_vm3, %v10701_v18  ;;  %v11633_v18 = vunpack.c.l.bf16 %v11593_v40 }
 0x9e1   :  { %24891 = vmatpush1.msk.msra.mxu0 %vm2634_vm3, %v10700_v39  ;;  %v10659_v39 = vld [vmem:[#allocation7 + $0x728] sm:$0x33] }
 0x9e2   :  { %27947 = vmatprep.subr.bf16.mxu0 %v29848_v11  ;;  %v29868_v11 = vld [vmem:[#allocation7 + $0x680] ss:$80 sps:$4 sm:$0xff]   ;;  %v10718_v30 = vunpack.c.l.bf16 %v10659_v39 }
 0xaaf   :  { %v26485_v25 = vpop.f32.mrb[34].mxu0 }
 0xab0   :  { %v26486_v46 = vpop.f32.mrb[35].mxu0 }
 0xab1   :  { %v32031_v20 = vadd.f32 %v26486_v46, %v26485_v25  ;;  %v11736_v25 = vrot.slane %v11614_v56, 4  ;;  %v11737_v46 = vrot.slane %v11634_v43, 4 }
 0xab3   :  { %24892 = vmatmul.mubr.msk.f32.vlgmr.msra.gmra.mrb[18].mxu0 %vm2775_vm4, %v32031_v20  ;;  %24895 = vmatmul.mubr.msk.f32.vlgmr.msra.gmra.mrb[28].mxu1 %vm2775_vm4, %v32031_v20  ;;  %v11738_v29 = vsel %vm2634_vm3, %v11736_v25, %v11737_v46 }
 0xab4   :  { %27949 = vmatpush1.bf16.msra.mxu0 %v29850_v19  ;;  %27953 = vmatpush1.bf16.msra.mxu1 %v29853_v6  ;;  %v11795_v19 = vrot.slane %v11654_v23, 4  ;;  %v10719_v6 = vunpack.c.h.bf16 %v10659_v39 }
 0xab5   :  { %24896 = vmatprep.subr.msk.mxu0 %vm2634_vm3, %v10705_v1  ;;  %24899 = vmatprep.subr.msk.mxu1 %vm2634_vm3, %v10707_v53  ;;  %v11733_v1 = vrot.slane %v11613_v8, 4  ;;  %v11734_v53 = vrot.slane %v11633_v18, 4 }
 0xab6   :  { %10989 = vmatprep.mubr.f32.mxu0 %v34472_v54  ;;  %11060 = vmatprep.mubr.f32.mxu1 %v34472_v54 }
 0xab8   :  { %24897 = vmatpush1.msk.msra.mxu0 %vm2634_vm3, %v10704_v34  ;;  %24900 = vmatpush1.msk.msra.mxu1 %vm2634_vm3, %v10706_v45  ;;  %v11793_v34 = vrot.slane %v11653_v21, 4  ;;  %v10716_v45 = vunpack.c.l.bf16 %v10658_v47  ;;  %v34487_v21 = vld [vmem:[#allocation40_spill] sm:$0xff] }
 0xab9   :  { %24898 = vmatmul.mubr.msk.f32.vlgmr.msra.gmra.mrb[20].mxu0 %vm2775_vm4, %v32031_v20  ;;  %24901 = vmatmul.mubr.msk.f32.vlgmr.msra.gmra.mrb[30].mxu1 %vm2775_vm4, %v32031_v20  ;;  %v2168_v39 = vmax.f32 %v34487_v21, 0.0  ;;  %v11597_v21 = vld [vmem:[#allocation7 + $0x750] sm:$0xff] }
 0xaba   :  { %27955 = vmatprep.subr.bf16.mxu0 %v29854_v27  ;;  %27959 = vmatprep.subr.bf16.mxu1 %v29857_v59  ;;  %v11796_v27 = vsel %vm2634_vm3, %v11737_v46, %v11795_v19  ;;  %v11735_v59 = vsel %vm2634_vm3, %v11733_v1, %v11734_v53  ;;  %v11586_v46 = vld [vmem:[#allocation7 + $0x6f8] sm:$0xcc] }
 0xabb   :  { %27957 = vmatpush1.bf16.msra.mxu0 %v29856_v63  ;;  %27961 = vmatpush1.bf16.msra.mxu1 %v29859_v50  ;;  %v11794_v63 = vsel %vm2634_vm3, %v11734_v53, %v11793_v34  ;;  %v28010_v50 = vpack.c.bf16 %v11796_v27, %v11738_v29 }
 0xabc   :  { %24902 = vmatprep.subr.msk.mxu0 %vm2634_vm3, %v10709_v15  ;;  %24905 = vmatprep.subr.msk.mxu1 %vm2634_vm3, %v10711_v61  ;;  %v34486_v15 = vld [vmem:[#allocation41_spill] sm:$0xff] }
 0xabd   :  { %11131 = vmatprep.mubr.f32.mxu0 %v34472_v54  ;;  %11202 = vmatprep.mubr.f32.mxu1 %v34472_v54  ;;  %v2169_v61 = vmax.f32 %v34486_v15, 0.0 }
 0xabf   :  { %24903 = vmatpush1.msk.msra.mxu0 %vm2634_vm3, %v10708_v5  ;;  %24906 = vmatpush1.msk.msra.mxu1 %vm2634_vm3, %v10710_v36  ;;  %v28012_v5 = vpack.c.bf16 %v11794_v63, %v11735_v59  ;;  %v11594_v36 = vld [vmem:[#allocation7 + $0x738] sm:$0xff]  ;;  %v11620_v59 = vunpack.c.h.bf16 %v11586_v46 }
 0xac0   :  { %24904 = vmatmul.mubr.msk.f32.vlgmr.msra.gmra.mrb[22].mxu0 %vm2775_vm4, %v32031_v20  ;;  %24907 = vmatmul.mubr.msk.f32.vlgmr.msra.gmra.mrb[32].mxu1 %vm2775_vm4, %v32031_v20  ;;  %v11636_v38 = vunpack.c.h.bf16 %v11594_v36 }
 0xac1   :  { %27963 = vmatprep.subr.bf16.mxu0 %v29860_v60  ;;  %27967 = vmatprep.subr.bf16.mxu1 %v29863_v42  ;;  %v11604_v60 = vld [vmem:[#allocation7 + $0x788] sm:$0xff] }
 0xac2   :  { %27965 = vmatpush1.bf16.msra.mxu0 %v29862_v31  ;;  %27969 = vmatpush1.bf16.msra.mxu1 %v29865_v62  ;;  %v11656_v31 = vunpack.c.h.bf16 %v11604_v60  ;;  %v11635_v62 = vunpack.c.l.bf16 %v11594_v36  ;;  %v11655_v4 = vunpack.c.l.bf16 %v11604_v60  ;;  %v11743_v35 = vrot.slane %v11636_v38, 4 }
 0xac3   :  { %24908 = vmatprep.subr.msk.mxu0 %vm2634_vm3, %v10713_v0  ;;  %24911 = vmatprep.subr.msk.mxu1 %vm2634_vm3, %v10715_v2 }
 0xac4   :  { %11273 = vmatprep.mubr.f32.mxu0 %v34472_v54  ;;  %11344 = vmatprep.mubr.f32.mxu1 %v34472_v54  ;;  %v11799_v0 = vrot.slane %v11656_v31, 4  ;;  %v11797_v56 = vrot.slane %v11655_v4, 4 }
 0xac6   :  { %24909 = vmatpush1.msk.msra.mxu0 %vm2634_vm3, %v10712_v32  ;;  %24912 = vmatpush1.msk.msra.mxu1 %vm2634_vm3, %v10714_v16  ;;  %v11740_v32 = vrot.slane %v11635_v62, 4  ;;  %v11800_v23 = vsel %vm2634_vm3, %v11743_v35, %v11799_v0  ;;  %v11754_v62 = vrot.slane %v11620_v59, 4 }
 0xac7   :  { %24910 = vmatmul.mubr.msk.f32.vlgmr.msra.gmra.mrb[24].mxu0 %vm2775_vm4, %v32031_v20  ;;  %24913 = vmatmul.mubr.msk.f32.vlgmr.msra.gmra.mrb[34].mxu1 %vm2775_vm4, %v32031_v20 }
 0xac8   :  { %27971 = vmatprep.subr.bf16.mxu0 %v29866_v57  ;;  %27975 = vmatprep.subr.bf16.mxu1 %v29869_v33  ;;  %v11798_v8 = vsel %vm2634_vm3, %v11740_v32, %v11797_v56  ;;  %v11585_v57 = vld [vmem:[#allocation7 + $0x6f0] sm:$0xcc] }
 0xac9   :  { %27973 = vmatpush1.bf16.msra.mxu0 %v29868_v11  ;;  %27977 = vmatpush1.bf16.msra.mxu1 %v29871_v37  ;;  %v11595_v11 = vld [vmem:[#allocation7 + $0x740] sm:$0xff]  ;;  %v11605_v33 = vld [vmem:[#allocation7 + $0x790] sm:$0xff]  ;;  %v11618_v37 = vunpack.c.h.bf16 %v11585_v57 }
 0xaca   :  { %24914 = vmatprep.subr.msk.mxu0 %vm2634_vm3, %v10717_v41  ;;  %24917 = vmatprep.subr.msk.mxu1 %vm2634_vm3, %v10719_v6  ;;  %v11638_v41 = vunpack.c.h.bf16 %v11595_v11  ;;  %v11658_v25 = vunpack.c.h.bf16 %v11605_v33  ;;  %v11617_v6 = vunpack.c.l.bf16 %v11585_v57  ;;  %v11637_v1 = vunpack.c.l.bf16 %v11595_v11 }
 0xacb   :  { %11415 = vmatprep.mubr.f32.mxu0 %v34472_v54  ;;  %11486 = vmatprep.mubr.f32.mxu1 %v34472_v54  ;;  %v11657_v53 = vunpack.c.l.bf16 %v11605_v33  ;;  %v11642_v33 = vunpack.c.h.bf16 %v11597_v21 }
 0xacc   :  { %v11749_v29 = vrot.slane %v11638_v41, 4  ;;  %v32109_v27 = vrot.slane %v11658_v25, 4  ;;  %v11745_v63 = vrot.slane %v11617_v6, 4  ;;  %v11641_v41 = vunpack.c.l.bf16 %v11597_v21  ;;  %v11588_v25 = vld [vmem:[#allocation7 + $0x708] sm:$0xcc] }
 0xacd   :  { %24915 = vmatpush1.msk.msra.mxu0 %vm2634_vm3, %v10716_v45  ;;  %24918 = vmatpush1.msk.msra.mxu1 %vm2634_vm3, %v10718_v30  ;;  %v11619_v45 = vunpack.c.l.bf16 %v11586_v46  ;;  %v11748_v30 = vrot.slane %v11618_v37, 4  ;;  %v32111_v15 = vrot.slane %v11657_v53, 4  ;;  %v11598_v46 = vld [vmem:[#allocation7 + $0x758] sm:$0xff]  ;;  %v11608_v6 = vld [vmem:[#allocation7 + $0x7a8] sm:$0xff] }
 0xace   :  { %24916 = vmatmul.mubr.msk.f32.vlgmr.msra.gmra.mrb[26].mxu0 %vm2775_vm4, %v32031_v20  ;;  %24919 = vmatmul.mubr.msk.f32.vlgmr.msra.gmra.mrb[36].mxu1 %vm2775_vm4, %v32031_v20  ;;  %v11584_v20 = vld [vmem:[#allocation7 + $0x6e8] sm:$0xcc]  ;;  %v11643_v59 = vunpack.c.l.bf16 %v11598_v46 }
 0xacf   :  { %27979 = vmatprep.subr.bf16.mxu1 %v31930_v9  ;;  %11577 = vmatprep.mubr.f32.mxu1 %v2169_v61  ;;  %v11616_v22 = vunpack.c.h.bf16 %v11584_v20  ;;  %v11615_v42 = vunpack.c.l.bf16 %v11584_v20  ;;  %v11804_v20 = vsel %vm2634_vm3, %v11749_v29, %v32109_v27  ;;  %v11751_v31 = vrot.slane %v11619_v45, 4 }
 0xad0   :  { %27981 = vmatpush3.bf16.msra.mxu1 %v31936_v55  ;;  %28011 = vmatprep.subr.bf16.mxu0 %v28010_v50  ;;  %v11746_v50 = vrot.slane %v11637_v1, 4 }
 0xad1   :  { %27983 = vmatprep.subr.bf16.mxu1 %v31942_v3  ;;  %28013 = vmatpush1.bf16.msra.mxu0 %v28012_v5  ;;  %v11742_v40 = vrot.slane %v11616_v22, 4  ;;  %v11739_v2 = vrot.slane %v11615_v42, 4  ;;  %v11750_v5 = vsel %vm2634_vm3, %v11748_v30, %v11749_v29  ;;  %v11623_v30 = vunpack.c.l.bf16 %v11588_v25 }
 0xad2   :  { %24920 = vmatprep.subr.msk.mxu0 %vm2634_vm3, %v11795_v19  ;;  %11980 = vmatprep.mubr.f32.mxu0 %v34472_v54  ;;  %v11596_v19 = vld [vmem:[#allocation7 + $0x748] sm:$0xff]  ;;  %v28018_v22 = vpack.c.bf16 %v11804_v20, %v11750_v5  ;;  %v11624_v29 = vunpack.c.h.bf16 %v11588_v25  ;;  %v11758_v5 = vrot.slane %v11641_v41, 4  ;;  %v11644_v20 = vunpack.c.h.bf16 %v11598_v46 }
 0xad3   :  { %v11744_v43 = vsel %vm2634_vm3, %v11742_v40, %v11743_v35  ;;  %v11741_v47 = vsel %vm2634_vm3, %v11739_v2, %v11740_v32  ;;  %v11639_v61 = vunpack.c.l.bf16 %v11596_v19  ;;  %v11640_v36 = vunpack.c.h.bf16 %v11596_v19 }
 0xad4   :  { %27985 = vmatpush3.bf16.msra.mxu1 %v31949_v14  ;;  %v28014_v16 = vpack.c.bf16 %v11800_v23, %v11744_v43  ;;  %v28016_v18 = vpack.c.bf16 %v11798_v8, %v11741_v47  ;;  %v32119_v35 = vsel %vm2634_vm3, %v11745_v63, %v11746_v50  ;;  %v32125_v2 = vsel %vm2634_vm3, %v11746_v50, %v32111_v15  ;;  %v11589_v63 = vld [vmem:[#allocation7 + $0x710] sm:$0xcc]  ;;  %v11599_v50 = vld [vmem:[#allocation7 + $0x760] sm:$0xff] }
 0xad5   :  { %27987 = vmatprep.subr.bf16.mxu1 %v31955_v26  ;;  %24921 = vmatpush1.msk.msra.mxu0 %vm2634_vm3, %v11793_v34  ;;  %v11606_v34 = vld [vmem:[#allocation7 + $0x798] sm:$0xff]  ;;  %v11752_v42 = vrot.slane %v11639_v61, 4  ;;  %v11755_v4 = vrot.slane %v11640_v36, 4  ;;  %v28020_v43 = vpack.c.bf16 %v32125_v2, %v32119_v35  ;;  %v11609_v61 = vld [vmem:[#allocation7 + $0x7b0] sm:$0xff]  ;;  %v11663_v36 = vunpack.c.l.bf16 %v11608_v6 }
 0xad6   :  { %v11659_v60 = vunpack.c.l.bf16 %v11606_v34  ;;  %v11660_v38 = vunpack.c.h.bf16 %v11606_v34  ;;  %28019 = vmatprep.subr.bf16.mxu0 %v28018_v22  ;;  %v11761_v34 = vrot.slane %v11642_v33, 4  ;;  %v11767_v21 = vrot.slane %v11644_v20, 4  ;;  %v11600_v33 = vld [vmem:[#allocation7 + $0x768] sm:$0xff] }
 0xad7   :  { %v32128_v32 = vsel %vm2634_vm3, %v11751_v31, %v11752_v42  ;;  %v11626_v31 = vunpack.c.h.bf16 %v11589_v63  ;;  %v11625_v25 = vunpack.c.l.bf16 %v11589_v63  ;;  %v11645_v46 = vunpack.c.l.bf16 %v11599_v50 }
 0xad8   :  { %27989 = vmatpush3.bf16.msra.mxu1 %v31961_v17  ;;  %v32116_v40 = vrot.slane %v11659_v60, 4  ;;  %v11664_v60 = vunpack.c.h.bf16 %v11608_v6  ;;  %v11647_v20 = vunpack.c.l.bf16 %v11600_v33 }
 0xad9   :  { %27991 = vmatprep.subr.bf16.mxu1 %v31967_v24  ;;  %v11772_v6 = vrot.slane %v11626_v31, 4 }
 0xada   :  { %v32135_v23 = vsel %vm2634_vm3, %v11752_v42, %v32116_v40  ;;  %v11646_v42 = vunpack.c.h.bf16 %v11599_v50 }
 0xadc   :  { %27993 = vmatpush3.bf16.msra.mxu1 %v31973_v28 }
 0xadd   :  { %27995 = vmatprep.subr.bf16.mxu1 %v31979_v58 }
 0xae0   :  { %27997 = vmatpush3.bf16.msra.mxu1 %v31985_v10 }
 0xae1   :  { %27999 = vmatprep.subr.bf16.mxu1 %v31991_v7 }
 0xae4   :  { %28001 = vmatpush3.bf16.msra.mxu1 %v31997_v12 }
 0xae5   :  { %28003 = vmatprep.subr.bf16.mxu1 %v32004_v49 }
 0xae8   :  { %28005 = vmatpush3.bf16.msra.mxu1 %v32010_v51 }
 0xae9   :  { %28007 = vmatprep.subr.bf16.mxu1 %v32017_v44 }
 0xaec   :  { %28009 = vmatpush3.bf16.msra.mxu1 %v32023_v13 }
 0xaed   :  { %28015 = vmatprep.subr.bf16.mxu1 %v28014_v16 }
 0xaef   :  { %11578 = vmatmul.mubr.f32.vlgmr.msra.gmra.mrb[44].mxu1 %v2168_v39  ;;  %v11607_v39 = vld [vmem:[#allocation7 + $0x7a0] sm:$0xff] }
 0xaf0   :  { %28017 = vmatpush1.bf16.msra.mxu1 %v28016_v18  ;;  %12051 = vmatprep.mubr.f32.mxu1 %v34472_v54  ;;  %v11587_v18 = vld [vmem:[#allocation7 + $0x700] sm:$0xcc]  ;;  %v11662_v37 = vunpack.c.h.bf16 %v11607_v39  ;;  %v11661_v19 = vunpack.c.l.bf16 %v11607_v39  ;;  %v32152_v39 = vrot.slane %v11663_v36, 4  ;;  %v11648_v36 = vunpack.c.h.bf16 %v11600_v33 }
 0xaf1   :  { %24923 = vmatprep.subr.msk.mxu1 %vm2634_vm3, %v11799_v0  ;;  %v32121_v0 = vrot.slane %v11660_v38, 4  ;;  %v11621_v57 = vunpack.c.l.bf16 %v11587_v18  ;;  %v11622_v11 = vunpack.c.h.bf16 %v11587_v18  ;;  %v11590_v18 = vld [vmem:[#allocation7 + $0x718] sm:$0xcc] }
 0xaf2   :  { %v32141_v45 = vrot.slane %v11662_v37, 4  ;;  %v32143_v22 = vrot.slane %v11661_v19, 4  ;;  %v11610_v37 = vld [vmem:[#allocation7 + $0x7b8] sm:$0xff]  ;;  %v11665_v19 = vunpack.c.l.bf16 %v11609_v61 }
 0xaf3   :  { %v11808_v16 = vsel %vm2634_vm3, %v11755_v4, %v32121_v0  ;;  %v11757_v1 = vrot.slane %v11621_v57, 4  ;;  %v11760_v53 = vrot.slane %v11622_v11, 4  ;;  %v32154_v57 = vrot.slane %v11664_v60, 4 }
 0xaf4   :  { %24924 = vmatpush1.msk.msra.mxu1 %vm2634_vm3, %v11797_v56  ;;  %v11756_v56 = vsel %vm2634_vm3, %v11754_v62, %v11755_v4  ;;  %v11666_v62 = vunpack.c.h.bf16 %v11609_v61  ;;  %v32150_v4 = vsel %vm2634_vm3, %v11761_v34, %v32141_v45  ;;  %v32161_v41 = vsel %vm2634_vm3, %v11758_v5, %v32143_v22 }
 0xaf5   :  { %v28022_v8 = vpack.c.bf16 %v11808_v16, %v11756_v56  ;;  %v32146_v38 = vsel %vm2634_vm3, %v11760_v53, %v11761_v34  ;;  %v11763_v56 = vrot.slane %v11623_v30, 4  ;;  %v11764_v16 = vrot.slane %v11643_v59, 4 }
 0xaf6   :  { %v32157_v11 = vsel %vm2634_vm3, %v11757_v1, %v11758_v5  ;;  %v11773_v53 = vrot.slane %v11646_v42, 4  ;;  %v32163_v34 = vrot.slane %v11666_v62, 4  ;;  %v11627_v30 = vunpack.c.l.bf16 %v11590_v18 }
 0xaf7   :  { %28023 = vmatprep.subr.bf16.mxu1 %v28022_v8  ;;  %v11766_v8 = vrot.slane %v11624_v29, 4  ;;  %v11628_v59 = vunpack.c.h.bf16 %v11590_v18  ;;  %v11668_v1 = vunpack.c.h.bf16 %v11610_v37  ;;  %v11816_v5 = vsel %vm2634_vm3, %v11767_v21, %v32154_v57 }
 0xaf8   :  { %v11765_v63 = vsel %vm2634_vm3, %v11763_v56, %v11764_v16  ;;  %v11667_v50 = vunpack.c.l.bf16 %v11610_v37  ;;  %v11814_v31 = vsel %vm2634_vm3, %v11764_v16, %v32152_v39  ;;  %v11769_v42 = vrot.slane %v11625_v25, 4 }
 0xaf9   :  { %v11768_v47 = vsel %vm2634_vm3, %v11766_v8, %v11767_v21  ;;  %v11770_v62 = vrot.slane %v11645_v46, 4  ;;  %v32174_v18 = vsel %vm2634_vm3, %v11772_v6, %v11773_v53  ;;  %v32176_v33 = vrot.slane %v11665_v19, 4 }
 0xafa   :  { %v32180_v8 = vsel %vm2634_vm3, %v11773_v53, %v32163_v34  ;;  %v11775_v21 = vrot.slane %v11627_v30, 4  ;;  %v11776_v56 = vrot.slane %v11647_v20, 4  ;;  %v11778_v16 = vrot.slane %v11628_v59, 4  ;;  %v11591_v53 = vld [vmem:[#allocation7 + $0x720] sm:$0xcc] }
 0xafb   :  { %v11779_v37 = vrot.slane %v11648_v36, 4  ;;  %v32186_v25 = vrot.slane %v11668_v1, 4  ;;  %v34488_v46 = vpack.c.bf16 %v32135_v23, %v32128_v32  ;;  %v28026_v19 = vpack.c.bf16 %v32150_v4, %v32146_v38  ;;  %v11611_v32 = vld [vmem:[#allocation7 + $0x7c0] sm:$0xff]  ;;  %v11612_v4 = vld [vmem:[#allocation7 + $0x7c8] sm:$0xff] }
 0xafc   :  { %v32196_v6 = vrot.slane %v11667_v50, 4  ;;  %v28030_v30 = vpack.c.bf16 %v11816_v5, %v11768_v47  ;;  %v28028_v35 = vpack.c.bf16 %v32161_v41, %v32157_v11  ;;  %v28032_v2 = vpack.c.bf16 %v11814_v31, %v11765_v63  ;;  %v11602_v47 = vld [vmem:[#allocation7 + $0x778] sm:$0xff] }
 0xafd   :  { %v28034_v23 = vpack.c.bf16 %v32180_v8, %v32174_v18  ;;  %v11771_v38 = vsel %vm2634_vm3, %v11769_v42, %v11770_v62  ;;  %v11780_v11 = vsel %vm2634_vm3, %v11778_v16, %v11779_v37  ;;  %v11824_v41 = vsel %vm2634_vm3, %v11779_v37, %v32186_v25 }
 0xafe   :  { %v11629_v59 = vunpack.c.l.bf16 %v11591_v53  ;;  %v11822_v20 = vsel %vm2634_vm3, %v11776_v56, %v32196_v6  ;;  %v11630_v36 = vunpack.c.h.bf16 %v11591_v53  ;;  %v11652_v50 = vunpack.c.h.bf16 %v11602_v47 }
 0xaff   :  { %v11672_v31 = vunpack.c.h.bf16 %v11612_v4  ;;  %v11651_v42 = vunpack.c.l.bf16 %v11602_v47  ;;  %v28038_v18 = vpack.c.bf16 %v11824_v41, %v11780_v11 }
 0xb00   :  { %v11784_v16 = vrot.slane %v11630_v36, 4 }
 0xbc2   :  { %v26520_v29 = vpop.f32.mrb[44].mxu1 }
 0xbc3   :  { %v26521_v60 = vpop.f32.mrb[45].mxu1 }
 0xbc4   :  { %v32169_v61 = vadd.f32 %v26521_v60, %v26520_v29  ;;  %v11777_v29 = vsel %vm2634_vm3, %v11775_v21, %v11776_v56  ;;  %v11670_v60 = vunpack.c.h.bf16 %v11611_v32  ;;  %v11781_v56 = vrot.slane %v11629_v59, 4  ;;  %v29883_v59 = vld [vmem:[#allocation7 + $0x7e8] ss:$80 sps:$4 sm:$0xff]  }
 0xbc5   :  { %v28040_v21 = vpack.c.bf16 %v11822_v20, %v11777_v29 }
 0xbc6   :  { %24922 = vmatmul.mubr.msk.f32.vlgmr.msra.gmra.mrb[18].mxu0 %vm2775_vm4, %v32169_v61  ;;  %24925 = vmatmul.mubr.msk.f32.vlgmr.msra.gmra.mrb[28].mxu1 %vm2775_vm4, %v32169_v61 }
 0xbc7   :  { %28021 = vmatpush1.bf16.msra.mxu0 %v28020_v43  ;;  %28025 = vmatpush1.bf16.msra.mxu1 %v34488_v46  ;;  %v11601_v43 = vld [vmem:[#allocation7 + $0x770] sm:$0xff]  ;;  %v11827_v46 = vrot.slane %v11670_v60, 4 }
 0xbc8   :  { %24926 = vmatprep.subr.msk.mxu0 %vm2634_vm3, %v32109_v27  ;;  %24929 = vmatprep.subr.msk.mxu1 %vm2634_vm3, %v32121_v0  ;;  %v11818_v27 = vsel %vm2634_vm3, %v11770_v62, %v32176_v33  ;;  %v11592_v0 = vld [vmem:[#allocation7 + $0x728] sm:$0xcc]  ;;  %v11650_v1 = vunpack.c.h.bf16 %v11601_v43  ;;  %v11649_v5 = vunpack.c.l.bf16 %v11601_v43  ;;  %v11671_v62 = vunpack.c.l.bf16 %v11612_v4 }
 0xbc9   :  { %12122 = vmatprep.mubr.f32.mxu0 %v34472_v54  ;;  %12193 = vmatprep.mubr.f32.mxu1 %v34472_v54  ;;  %v11632_v63 = vunpack.c.h.bf16 %v11592_v0  ;;  %v28036_v8 = vpack.c.bf16 %v11818_v27, %v11771_v38 }
 0xbca   :  { %v11785_v37 = vrot.slane %v11650_v1, 4  ;;  %v11829_v38 = vrot.slane %v11671_v62, 4 }
 0xbcb   :  { %24927 = vmatpush1.msk.msra.mxu0 %vm2634_vm3, %v32111_v15  ;;  %24930 = vmatpush1.msk.msra.mxu1 %vm2634_vm3, %v32116_v40  ;;  %v11669_v15 = vunpack.c.l.bf16 %v11611_v32  ;;  %v11631_v40 = vunpack.c.l.bf16 %v11592_v0  ;;  %v11790_v53 = vrot.slane %v11632_v63, 4  ;;  %v11788_v32 = vrot.slane %v11651_v42, 4  ;;  %v12740_v63 = vld [vmem:[#allocation7 + $0x890] sm:$0x33]  ;;  %v29889_v42 = vld [vmem:[#allocation7 + $0x7f8] ss:$80 sps:$4 sm:$0xff]  }
 0xbcc   :  { %24928 = vmatmul.mubr.msk.f32.vlgmr.msra.gmra.mrb[20].mxu0 %vm2775_vm4, %v32169_v61  ;;  %24931 = vmatmul.mubr.msk.f32.vlgmr.msra.gmra.mrb[30].mxu1 %vm2775_vm4, %v32169_v61  ;;  %v12795_v62 = vunpack.c.h.bf16 %v12740_v63 }
 0xbcd   :  { %28027 = vmatprep.subr.bf16.mxu0 %v28026_v19  ;;  %28031 = vmatprep.subr.bf16.mxu1 %v28030_v30  ;;  %v11782_v19 = vrot.slane %v11649_v5, 4  ;;  %v11791_v30 = vrot.slane %v11652_v50, 4  ;;  %v11787_v43 = vrot.slane %v11631_v40, 4  ;;  %v11830_v4 = vsel %vm2634_vm3, %v11788_v32, %v11829_v38  ;;  %v12741_v50 = vld [vmem:[#allocation7 + $0x898] sm:$0x33] }
 0xbce   :  { %28029 = vmatpush1.bf16.msra.mxu0 %v28028_v35  ;;  %28033 = vmatpush1.bf16.msra.mxu1 %v28032_v2  ;;  %v11831_v35 = vrot.slane %v11672_v31, 4  ;;  %v11825_v2 = vrot.slane %v11669_v15, 4  ;;  %v29884_v31 = vld [vmem:[#allocation7 + $0x7f4] ss:$80 sps:$4 sm:$0xff]   ;;  %v29887_v15 = vld [vmem:[#allocation7 + $0x7fc] ss:$80 sps:$4 sm:$0xff]  }
 0xbcf   :  { %24932 = vmatprep.subr.msk.mxu0 %vm2634_vm3, %v32141_v45  ;;  %24935 = vmatprep.subr.msk.mxu1 %vm2634_vm3, %v32154_v57  ;;  %v11786_v45 = vsel %vm2634_vm3, %v11784_v16, %v11785_v37  ;;  %v11828_v57 = vsel %vm2634_vm3, %v11785_v37, %v11827_v46  ;;  %v11792_v27 = vsel %vm2634_vm3, %v11790_v53, %v11791_v30  ;;  %v29886_v40 = vld [vmem:[#allocation7 + $0x7f0] ss:$80 sps:$4 sm:$0xff]   ;;  %v12743_v37 = vld [vmem:[#allocation7 + $0x8a8] sm:$0x33] }
 0xbd0   :  { %12264 = vmatprep.mubr.f32.mxu0 %v34472_v54  ;;  %12335 = vmatprep.mubr.f32.mxu1 %v34472_v54  ;;  %v11832_v0 = vsel %vm2634_vm3, %v11791_v30, %v11831_v35  ;;  %v11789_v47 = vsel %vm2634_vm3, %v11787_v43, %v11788_v32  ;;  %v12742_v16 = vld [vmem:[#allocation7 + $0x8a0] sm:$0x33]  ;;  %v29895_v53 = vld [vmem:[#allocation7 + $0x808] ss:$80 sps:$4 sm:$0xff]   ;;  %v13669_v30 = vld [vmem:[#allocation7 + $0x870] sm:$0xcc]  ;;  %v12801_v32 = vunpack.c.h.bf16 %v12743_v37 }
 0xbd1   :  { %v28046_v11 = vpack.c.bf16 %v11832_v0, %v11792_v27  ;;  %v28048_v29 = vpack.c.bf16 %v11830_v4, %v11789_v47  ;;  %v12799_v43 = vunpack.c.h.bf16 %v12742_v16  ;;  %v12800_v0 = vunpack.c.l.bf16 %v12743_v37 }
 0xbd2   :  { %24933 = vmatpush1.msk.msra.mxu0 %vm2634_vm3, %v32143_v22  ;;  %24936 = vmatpush1.msk.msra.mxu1 %vm2634_vm3, %v32152_v39  ;;  %v11783_v22 = vsel %vm2634_vm3, %v11781_v56, %v11782_v19  ;;  %v11826_v39 = vsel %vm2634_vm3, %v11782_v19, %v11825_v2  ;;  %v29890_v56 = vld [vmem:[#allocation7 + $0x804] ss:$80 sps:$4 sm:$0xff]   ;;  %v29893_v19 = vld [vmem:[#allocation7 + $0x80c] ss:$80 sps:$4 sm:$0xff]  }
 0xbd3   :  { %24934 = vmatmul.mubr.msk.f32.vlgmr.msra.gmra.mrb[22].mxu0 %vm2775_vm4, %v32169_v61  ;;  %24937 = vmatmul.mubr.msk.f32.vlgmr.msra.gmra.mrb[32].mxu1 %vm2775_vm4, %v32169_v61  ;;  %v28044_v41 = vpack.c.bf16 %v11826_v39, %v11783_v22  ;;  %v12744_v22 = vld [vmem:[#allocation7 + $0x8b0] sm:$0x33]  ;;  %v13699_v39 = vunpack.c.l.bf16 %v13669_v30 }
 0xbd4   :  { %28035 = vmatprep.subr.bf16.mxu0 %v28034_v23  ;;  %28039 = vmatprep.subr.bf16.mxu1 %v28038_v18  ;;  %v28042_v23 = vpack.c.bf16 %v11828_v57, %v11786_v45  ;;  %v12797_v18 = vunpack.c.h.bf16 %v12741_v50  ;;  %v13700_v45 = vunpack.c.h.bf16 %v13669_v30  ;;  %v32424_v30 = vld [vmem:[%s34413_s4 + $0x70] sm:$0xff]  }
 0xbd5   :  { %28037 = vmatpush1.bf16.msra.mxu0 %v28036_v8  ;;  %28041 = vmatpush1.bf16.msra.mxu1 %v28040_v21  ;;  %v12794_v8 = vunpack.c.l.bf16 %v12740_v63  ;;  %v12796_v21 = vunpack.c.l.bf16 %v12741_v50  ;;  %v13680_v63 = vld [vmem:[#allocation7 + $0x8c8] sm:$0xff]  ;;  %v13690_v50 = vld [vmem:[#allocation7 + $0x918] sm:$0xff] }
 0xbd6   :  { %24938 = vmatprep.subr.msk.mxu0 %vm2634_vm3, %v32163_v34  ;;  %24941 = vmatprep.subr.msk.mxu1 %vm2634_vm3, %v32186_v25  ;;  %v29875_v34 = vld [vmem:[#allocation7 + $0x7dc] ss:$80 sps:$4 sm:$0xff]  }
 0xbd7   :  { %12406 = vmatprep.mubr.f32.mxu0 %v34472_v54  ;;  %12477 = vmatprep.mubr.f32.mxu1 %v34472_v54 }
 0xbd9   :  { %24939 = vmatpush1.msk.msra.mxu0 %vm2634_vm3, %v32176_v33  ;;  %24942 = vmatpush1.msk.msra.mxu1 %vm2634_vm3, %v32196_v6  ;;  %v34489_v33 = vld [vmem:[#allocation25_spill] sm:$0xff]  ;;  %v29877_v6 = vld [vmem:[#allocation7 + $0x7d8] ss:$80 sps:$4 sm:$0xff]  }
 0xbda   :  { %24940 = vmatmul.mubr.msk.f32.vlgmr.msra.gmra.mrb[24].mxu0 %vm2775_vm4, %v32169_v61  ;;  %24943 = vmatmul.mubr.msk.f32.vlgmr.msra.gmra.mrb[34].mxu1 %vm2775_vm4, %v32169_v61  ;;  %v2171_v25 = vmax.f32 %v34489_v33, 0.0  ;;  %v12803_v33 = vunpack.c.h.bf16 %v12744_v22 }
 0xbdb   :  { %28043 = vmatprep.subr.bf16.mxu0 %v28042_v23  ;;  %28047 = vmatprep.subr.bf16.mxu1 %v28046_v11  ;;  %v12745_v23 = vld [vmem:[#allocation7 + $0x8b8] sm:$0x33]  ;;  %v29896_v11 = vld [vmem:[#allocation7 + $0x814] ss:$80 sps:$4 sm:$0xff]  }
 0xbdc   :  { %28045 = vmatpush1.bf16.msra.mxu0 %v28044_v41  ;;  %28049 = vmatpush1.bf16.msra.mxu1 %v28048_v29  ;;  %v29898_v41 = vld [vmem:[#allocation7 + $0x810] ss:$80 sps:$4 sm:$0xff]   ;;  %v29899_v29 = vld [vmem:[#allocation7 + $0x81c] ss:$80 sps:$4 sm:$0xff]  }
 0xbdd   :  { %24944 = vmatprep.subr.msk.mxu0 %vm2634_vm3, %v11827_v46  ;;  %24947 = vmatprep.subr.msk.mxu1 %vm2634_vm3, %v11831_v35  ;;  %v29892_v46 = vld [vmem:[#allocation7 + $0x800] ss:$80 sps:$4 sm:$0xff]  }
 0xbde   :  { %12548 = vmatprep.mubr.f32.mxu0 %v34472_v54  ;;  %12619 = vmatprep.mubr.f32.mxu1 %v34472_v54  ;;  %v13679_v35 = vld [vmem:[#allocation7 + $0x8c0] sm:$0xff] }
 0xbdf   :  { %v13720_v57 = vunpack.c.h.bf16 %v13679_v35  ;;  %v13719_v47 = vunpack.c.l.bf16 %v13679_v35 }
 0xbe0   :  { %24945 = vmatpush1.msk.msra.mxu0 %vm2634_vm3, %v11825_v2  ;;  %24948 = vmatpush1.msk.msra.mxu1 %vm2634_vm3, %v11829_v38  ;;  %v13689_v2 = vld [vmem:[#allocation7 + $0x910] sm:$0xff]  ;;  %v12798_v38 = vunpack.c.l.bf16 %v12742_v16  ;;  %v13741_v16 = vunpack.c.l.bf16 %v13690_v50 }
 0xbe1   :  { %24946 = vmatmul.mubr.msk.f32.vlgmr.msra.gmra.mrb[26].mxu0 %vm2775_vm4, %v32169_v61  ;;  %24949 = vmatmul.mubr.msk.f32.vlgmr.msra.gmra.mrb[36].mxu1 %vm2775_vm4, %v32169_v61  ;;  %v29880_v61 = vld [vmem:[#allocation7 + $0x7e0] ss:$80 sps:$4 sm:$0xff]   ;;  %v13740_v27 = vunpack.c.h.bf16 %v13689_v2  ;;  %v13739_v4 = vunpack.c.l.bf16 %v13689_v2 }
 0xbe2   :  { %28051 = vmatprep.subr.bf16.mxu0 %v31930_v9  ;;  %12710 = vmatprep.mubr.f32.mxu0 %v2171_v25  ;;  %v29872_v9 = vld [vmem:[#allocation7 + $0x7d4] ss:$80 sps:$4 sm:$0xff]   ;;  %v13822_v25 = vrot.slane %v13700_v45, 4  ;;  %v32432_v45 = vld [vmem:[%s34413_s4 + $0x30] sm:$0xff]  }
 0xbe3   :  { %28053 = vmatpush3.bf16.msra.mxu0 %v31936_v55  ;;  %28087 = vmatprep.subr.bf16.mxu1 %v29875_v34  ;;  %v29874_v55 = vld [vmem:[#allocation7 + $0x7d0] ss:$80 sps:$4 sm:$0xff]   ;;  %v29901_v34 = vld [vmem:[#allocation7 + $0x818] ss:$80 sps:$4 sm:$0xff]  }
 0xbe4   :  { %28055 = vmatprep.subr.bf16.mxu0 %v31942_v3  ;;  %28089 = vmatpush1.bf16.msra.mxu1 %v29877_v6  ;;  %v34490_v3 = vld [vmem:[#allocation24_spill] sm:$0xff]  ;;  %v13823_v6 = vrot.slane %v13720_v57, 4  ;;  %v32438_v57 = vld [vmem:[%s34413_s4 + $0x78] sm:$0xff]  }
 0xbe5   :  { %13004 = vmatprep.mubr.f32.mxu1 %v34472_v54 }
 0xbe7   :  { %28057 = vmatpush3.bf16.msra.mxu0 %v31949_v14  ;;  %v2170_v14 = vmax.f32 %v34490_v3, 0.0  ;;  %v13819_v3 = vrot.slane %v13699_v39, 4  ;;  %v32446_v39 = vld [vmem:[%s34413_s4 + $0x38] sm:$0xff]  }
 0xbe8   :  { %28059 = vmatprep.subr.bf16.mxu0 %v31955_v26  ;;  %v12736_v26 = vld [vmem:[#allocation7 + $0x870] sm:$0x33] }
 0xbeb   :  { %28061 = vmatpush3.bf16.msra.mxu0 %v31961_v17  ;;  %v12737_v17 = vld [vmem:[#allocation7 + $0x878] sm:$0x33] }
 0xbec   :  { %28063 = vmatprep.subr.bf16.mxu0 %v31967_v24  ;;  %v12787_v24 = vunpack.c.h.bf16 %v12736_v26 }
 0xbef   :  { %28065 = vmatpush3.bf16.msra.mxu0 %v31973_v28  ;;  %v12789_v28 = vunpack.c.h.bf16 %v12737_v17 }
 0xbf0   :  { %28067 = vmatprep.subr.bf16.mxu0 %v31979_v58  ;;  %v12786_v58 = vunpack.c.l.bf16 %v12736_v26  ;;  %v13879_v26 = vrot.slane %v13739_v4, 4  ;;  %v34492_v4 = vld [vmem:[#allocation42_spill] sm:$0xff] }
 0xbf1   :  { %24953 = vmatprep.subr.msk.mxu1 %vm2634_vm3, %v12789_v28  ;;  %v13824_v28 = vsel %vm2634_vm3, %v13822_v25, %v13823_v6 }
 0xbf3   :  { %28069 = vmatpush3.bf16.msra.mxu0 %v31985_v10  ;;  %v12788_v10 = vunpack.c.l.bf16 %v12737_v17  ;;  %v12802_v17 = vunpack.c.l.bf16 %v12744_v22 }
 0xbf4   :  { %28071 = vmatprep.subr.bf16.mxu0 %v31991_v7  ;;  %v29878_v7 = vld [vmem:[#allocation7 + $0x7e4] ss:$80 sps:$4 sm:$0xff]  }
 0xbf5   :  { %24954 = vmatpush1.msk.msra.mxu1 %vm2634_vm3, %v12788_v10 }
 0xbf7   :  { %28073 = vmatpush3.bf16.msra.mxu0 %v31997_v12  ;;  %v29881_v12 = vld [vmem:[#allocation7 + $0x7ec] ss:$80 sps:$4 sm:$0xff]  }
 0xbf8   :  { %28075 = vmatprep.subr.bf16.mxu0 %v32004_v49  ;;  %28095 = vmatprep.subr.bf16.mxu1 %v29881_v12  ;;  %v12738_v49 = vld [vmem:[#allocation7 + $0x880] sm:$0x33] }
 0xbf9   :  { %v12791_v36 = vunpack.c.h.bf16 %v12738_v49  ;;  %v12790_v60 = vunpack.c.l.bf16 %v12738_v49  ;;  %v34491_v49 = vld [vmem:[#allocation43_spill] sm:$0xff] }
 0xbfb   :  { %28077 = vmatpush3.bf16.msra.mxu0 %v32010_v51  ;;  %v12739_v51 = vld [vmem:[#allocation7 + $0x888] sm:$0x33] }
 0xbfc   :  { %28079 = vmatprep.subr.bf16.mxu0 %v32017_v44  ;;  %v12793_v1 = vunpack.c.h.bf16 %v12739_v51  ;;  %v12792_v5 = vunpack.c.l.bf16 %v12739_v51  ;;  %v2173_v51 = vmax.f32 %v34491_v49, 0.0 }
 0xbff   :  { %28081 = vmatpush3.bf16.msra.mxu0 %v32023_v13 }
 0xc00   :  { %28083 = vmatprep.subr.bf16.mxu0 %v29872_v9  ;;  %v13881_v9 = vrot.slane %v13740_v27, 4 }
 0xc02   :  { %12711 = vmatmul.mubr.f32.vlgmr.msra.gmra.mrb[36].mxu0 %v2170_v14  ;;  %v13820_v14 = vrot.slane %v13719_v47, 4 }
 0xc03   :  { %28085 = vmatpush1.bf16.msra.mxu0 %v29874_v55  ;;  %12933 = vmatprep.mubr.f32.mxu0 %v34472_v54  ;;  %v12805_v55 = vunpack.c.h.bf16 %v12745_v23 }
 0xc04   :  { %24950 = vmatprep.subr.msk.mxu0 %vm2634_vm3, %v12787_v24  ;;  %v12804_v24 = vunpack.c.l.bf16 %v12745_v23  ;;  %v13821_v10 = vsel %vm2634_vm3, %v13819_v3, %v13820_v14  ;;  %v2172_v23 = vmax.f32 %v34492_v4, 0.0  ;;  %v13683_v4 = vld [vmem:[#allocation7 + $0x8e0] sm:$0xff] }
 0xc07   :  { %24951 = vmatpush1.msk.msra.mxu0 %vm2634_vm3, %v12786_v58  ;;  %v13882_v58 = vsel %vm2634_vm3, %v13823_v6, %v13881_v9  ;;  %v13672_v6 = vld [vmem:[#allocation7 + $0x888] sm:$0xcc] }
 0xc08   :  { %28091 = vmatprep.subr.bf16.mxu0 %v29878_v7  ;;  %v13880_v7 = vsel %vm2634_vm3, %v13820_v14, %v13879_v26  ;;  %v28154_v12 = vpack.c.bf16 %v13882_v58, %v13824_v28 }
 0xcd5   :  { %v26555_v44 = vpop.f32.mrb[36].mxu0 }
 0xcd6   :  { %v26556_v13 = vpop.f32.mrb[37].mxu0 }
 0xcd7   :  { %v32295_v20 = vadd.f32 %v26556_v13, %v26555_v44  ;;  %v28156_v44 = vpack.c.bf16 %v13880_v7, %v13821_v10  ;;  %v32349_v13 = vld [vmem:[%s34413_s4 + $0x40] sm:$0xff]   ;;  %v13706_v10 = vunpack.c.h.bf16 %v13672_v6 }
 0xcd9   :  { %24952 = vmatmul.mubr.msk.f32.vlgmr.msra.gmra.mrb[18].mxu0 %vm2775_vm4, %v32295_v20  ;;  %24955 = vmatmul.mubr.msk.f32.vlgmr.msra.gmra.mrb[28].mxu1 %vm2775_vm4, %v32295_v20 }
 0xcda   :  { %28093 = vmatpush1.bf16.msra.mxu0 %v29880_v61  ;;  %28097 = vmatpush1.bf16.msra.mxu1 %v29883_v59  ;;  %v32355_v61 = vld [vmem:[%s34413_s4] sm:$0xff]   ;;  %v32361_v59 = vld [vmem:[%s34413_s4 + $0x48] sm:$0xff]  }
 0xcdb   :  { %24956 = vmatprep.subr.msk.mxu0 %vm2634_vm3, %v12791_v36  ;;  %24959 = vmatprep.subr.msk.mxu1 %vm2634_vm3, %v12793_v1  ;;  %v32375_v36 = vld [vmem:[%s34413_s4 + $0x50] sm:$0xff]  }
 0xcdc   :  { %13075 = vmatprep.mubr.f32.mxu0 %v34472_v54  ;;  %13146 = vmatprep.mubr.f32.mxu1 %v34472_v54  ;;  %v32382_v1 = vld [vmem:[%s34413_s4 + $0x10] sm:$0xff]  }
 0xcde   :  { %24957 = vmatpush1.msk.msra.mxu0 %vm2634_vm3, %v12790_v60  ;;  %24960 = vmatpush1.msk.msra.mxu1 %vm2634_vm3, %v12792_v5  ;;  %v32388_v60 = vld [vmem:[%s34413_s4 + $0x58] sm:$0xff]   ;;  %v13670_v5 = vld [vmem:[#allocation7 + $0x878] sm:$0xcc] }
 0xcdf   :  { %24958 = vmatmul.mubr.msk.f32.vlgmr.msra.gmra.mrb[20].mxu0 %vm2775_vm4, %v32295_v20  ;;  %24961 = vmatmul.mubr.msk.f32.vlgmr.msra.gmra.mrb[30].mxu1 %vm2775_vm4, %v32295_v20 }
 0xce0   :  { %28099 = vmatprep.subr.bf16.mxu0 %v29884_v31  ;;  %28103 = vmatprep.subr.bf16.mxu1 %v29887_v15  ;;  %v32394_v31 = vld [vmem:[%s34413_s4 + $0x18] sm:$0xff]   ;;  %v32400_v15 = vld [vmem:[%s34413_s4 + $0x60] sm:$0xff]  }
 0xce1   :  { %28101 = vmatpush1.bf16.msra.mxu0 %v29886_v40  ;;  %28105 = vmatpush1.bf16.msra.mxu1 %v29889_v42  ;;  %v13702_v40 = vunpack.c.h.bf16 %v13670_v5  ;;  %v13722_v42 = vunpack.c.h.bf16 %v13680_v63 }
 0xce2   :  { %24962 = vmatprep.subr.msk.mxu0 %vm2634_vm3, %v12795_v62  ;;  %24965 = vmatprep.subr.msk.mxu1 %vm2634_vm3, %v12797_v18  ;;  %v13742_v62 = vunpack.c.h.bf16 %v13690_v50  ;;  %v32406_v18 = vld [vmem:[%s34413_s4 + $0x20] sm:$0xff]  }
 0xce3   :  { %13217 = vmatprep.mubr.f32.mxu0 %v34472_v54  ;;  %13288 = vmatprep.mubr.f32.mxu1 %v34472_v54  ;;  %v13828_v37 = vrot.slane %v13702_v40, 4 }
 0xce5   :  { %24963 = vmatpush1.msk.msra.mxu0 %vm2634_vm3, %v12794_v8  ;;  %24966 = vmatpush1.msk.msra.mxu1 %vm2634_vm3, %v12796_v21  ;;  %v32412_v8 = vld [vmem:[%s34413_s4 + $0x68] sm:$0xff]   ;;  %v13701_v21 = vunpack.c.l.bf16 %v13670_v5 }
 0xce6   :  { %24964 = vmatmul.mubr.msk.f32.vlgmr.msra.gmra.mrb[22].mxu0 %vm2775_vm4, %v32295_v20  ;;  %24967 = vmatmul.mubr.msk.f32.vlgmr.msra.gmra.mrb[32].mxu1 %vm2775_vm4, %v32295_v20 }
 0xce7   :  { %28107 = vmatprep.subr.bf16.mxu0 %v29890_v56  ;;  %28111 = vmatprep.subr.bf16.mxu1 %v29893_v19  ;;  %v13721_v56 = vunpack.c.l.bf16 %v13680_v63  ;;  %v13885_v19 = vrot.slane %v13742_v62, 4  ;;  %v13825_v35 = vrot.slane %v13701_v21, 4 }
 0xce8   :  { %28109 = vmatpush1.bf16.msra.mxu0 %v29892_v46  ;;  %28113 = vmatpush1.bf16.msra.mxu1 %v29895_v53  ;;  %v13829_v46 = vrot.slane %v13722_v42, 4  ;;  %v32418_v53 = vld [vmem:[%s34413_s4 + $0x28] sm:$0xff]  }
 0xce9   :  { %24968 = vmatprep.subr.msk.mxu0 %vm2634_vm3, %v12799_v43  ;;  %24971 = vmatprep.subr.msk.mxu1 %vm2634_vm3, %v12801_v32  ;;  %v13826_v2 = vrot.slane %v13721_v56, 4  ;;  %v13883_v43 = vrot.slane %v13741_v16, 4  ;;  %v13840_v56 = vrot.slane %v13706_v10, 4 }
 0xcea   :  { %13359 = vmatprep.mubr.f32.mxu0 %v34472_v54  ;;  %13430 = vmatprep.mubr.f32.mxu1 %v34472_v54  ;;  %v13830_v32 = vsel %vm2634_vm3, %v13828_v37, %v13829_v46 }
 0xceb   :  { %v13884_v22 = vsel %vm2634_vm3, %v13826_v2, %v13883_v43 }
 0xcec   :  { %24969 = vmatpush1.msk.msra.mxu0 %vm2634_vm3, %v12798_v38  ;;  %24972 = vmatpush1.msk.msra.mxu1 %vm2634_vm3, %v12800_v0  ;;  %v13886_v38 = vsel %vm2634_vm3, %v13829_v46, %v13885_v19  ;;  %v13827_v0 = vsel %vm2634_vm3, %v13825_v35, %v13826_v2 }
 0xced   :  { %24970 = vmatmul.mubr.msk.f32.vlgmr.msra.gmra.mrb[24].mxu0 %vm2775_vm4, %v32295_v20  ;;  %24973 = vmatmul.mubr.msk.f32.vlgmr.msra.gmra.mrb[34].mxu1 %vm2775_vm4, %v32295_v20  ;;  %v28158_v27 = vpack.c.bf16 %v13886_v38, %v13830_v32  ;;  %v28160_v47 = vpack.c.bf16 %v13884_v22, %v13827_v0 }
 0xcee   :  { %28115 = vmatprep.subr.bf16.mxu0 %v29896_v11  ;;  %28119 = vmatprep.subr.bf16.mxu1 %v29899_v29  ;;  %v13671_v11 = vld [vmem:[#allocation7 + $0x880] sm:$0xcc] }
 0xcef   :  { %28117 = vmatpush1.bf16.msra.mxu0 %v29898_v41  ;;  %28121 = vmatpush1.bf16.msra.mxu1 %v29901_v34  ;;  %v13681_v41 = vld [vmem:[#allocation7 + $0x8d0] sm:$0xff]  ;;  %v13691_v29 = vld [vmem:[#allocation7 + $0x920] sm:$0xff]  ;;  %v13704_v34 = vunpack.c.h.bf16 %v13671_v11 }
 0xcf0   :  { %24974 = vmatprep.subr.msk.mxu0 %vm2634_vm3, %v12803_v33  ;;  %24977 = vmatprep.subr.msk.mxu1 %vm2634_vm3, %v12805_v55  ;;  %v13724_v33 = vunpack.c.h.bf16 %v13681_v41  ;;  %v13744_v25 = vunpack.c.h.bf16 %v13691_v29  ;;  %v13703_v55 = vunpack.c.l.bf16 %v13671_v11  ;;  %v13723_v3 = vunpack.c.l.bf16 %v13681_v41 }
 0xcf1   :  { %13501 = vmatprep.mubr.f32.mxu0 %v34472_v54  ;;  %13572 = vmatprep.mubr.f32.mxu1 %v34472_v54  ;;  %v13743_v14 = vunpack.c.l.bf16 %v13691_v29  ;;  %v13728_v29 = vunpack.c.h.bf16 %v13683_v4 }
 0xcf2   :  { %v13835_v28 = vrot.slane %v13724_v33, 4  ;;  %v32453_v58 = vrot.slane %v13744_v25, 4  ;;  %v13831_v7 = vrot.slane %v13703_v55, 4  ;;  %v13727_v33 = vunpack.c.l.bf16 %v13683_v4  ;;  %v13674_v25 = vld [vmem:[#allocation7 + $0x898] sm:$0xcc] }
 0xcf3   :  { %24975 = vmatpush1.msk.msra.mxu0 %vm2634_vm3, %v12802_v17  ;;  %24978 = vmatpush1.msk.msra.mxu1 %vm2634_vm3, %v12804_v24  ;;  %v13705_v17 = vunpack.c.l.bf16 %v13672_v6  ;;  %v13834_v24 = vrot.slane %v13704_v34, 4  ;;  %v32455_v49 = vrot.slane %v13743_v14, 4  ;;  %v13684_v6 = vld [vmem:[#allocation7 + $0x8e8] sm:$0xff]  ;;  %v13694_v55 = vld [vmem:[#allocation7 + $0x938] sm:$0xff] }
 0xcf4   :  { %24976 = vmatmul.mubr.msk.f32.vlgmr.msra.gmra.mrb[26].mxu0 %vm2775_vm4, %v32295_v20  ;;  %24979 = vmatmul.mubr.msk.f32.vlgmr.msra.gmra.mrb[36].mxu1 %vm2775_vm4, %v32295_v20  ;;  %v32369_v20 = vld [vmem:[%s34413_s4 + $0x8] sm:$0xff]   ;;  %v13890_v5 = vsel %vm2634_vm3, %v13835_v28, %v32453_v58  ;;  %v13729_v10 = vunpack.c.l.bf16 %v13684_v6 }
 0xcf5   :  { %28123 = vmatprep.subr.bf16.mxu1 %v32349_v13  ;;  %13663 = vmatprep.mubr.f32.mxu1 %v2173_v51  ;;  %v13837_v62 = vrot.slane %v13705_v17, 4 }
 0xcf6   :  { %28125 = vmatpush3.bf16.msra.mxu1 %v32355_v61  ;;  %28155 = vmatprep.subr.bf16.mxu0 %v28154_v12  ;;  %v13832_v12 = vrot.slane %v13723_v3, 4 }
 0xcf7   :  { %28127 = vmatprep.subr.bf16.mxu1 %v32361_v59  ;;  %28157 = vmatpush1.bf16.msra.mxu0 %v28156_v44  ;;  %v13836_v44 = vsel %vm2634_vm3, %v13834_v24, %v13835_v28  ;;  %v13709_v24 = vunpack.c.l.bf16 %v13674_v25  ;;  %v13710_v28 = vunpack.c.h.bf16 %v13674_v25 }
 0xcf8   :  { %24980 = vmatprep.subr.msk.mxu0 %vm2634_vm3, %v13881_v9  ;;  %14066 = vmatprep.mubr.f32.mxu0 %v34472_v54  ;;  %v13682_v9 = vld [vmem:[#allocation7 + $0x8d8] sm:$0xff]  ;;  %v28162_v40 = vpack.c.bf16 %v13890_v5, %v13836_v44  ;;  %v32463_v46 = vsel %vm2634_vm3, %v13831_v7, %v13832_v12  ;;  %v32469_v35 = vsel %vm2634_vm3, %v13832_v12, %v32455_v49  ;;  %v13675_v7 = vld [vmem:[#allocation7 + $0x8a0] sm:$0xcc]  ;;  %v13685_v12 = vld [vmem:[#allocation7 + $0x8f0] sm:$0xff]  ;;  %v13844_v44 = vrot.slane %v13727_v33, 4 }
 0xcf9   :  { %v13725_v51 = vunpack.c.l.bf16 %v13682_v9  ;;  %v13726_v63 = vunpack.c.h.bf16 %v13682_v9  ;;  %v28164_v32 = vpack.c.bf16 %v32469_v35, %v32463_v46  ;;  %v13730_v5 = vunpack.c.h.bf16 %v13684_v6 }
 0xcfa   :  { %28129 = vmatpush3.bf16.msra.mxu1 %v32369_v20  ;;  %v13711_v25 = vunpack.c.l.bf16 %v13675_v7  ;;  %v13731_v6 = vunpack.c.l.bf16 %v13685_v12 }
 0xcfb   :  { %28131 = vmatprep.subr.bf16.mxu1 %v32375_v36  ;;  %24981 = vmatpush1.msk.msra.mxu0 %vm2634_vm3, %v13879_v26  ;;  %v13692_v26 = vld [vmem:[#allocation7 + $0x928] sm:$0xff]  ;;  %v13838_v21 = vrot.slane %v13725_v51, 4  ;;  %v13841_v16 = vrot.slane %v13726_v63, 4  ;;  %v13695_v51 = vld [vmem:[#allocation7 + $0x940] sm:$0xff]  ;;  %v13749_v63 = vunpack.c.l.bf16 %v13694_v55  ;;  %v13853_v4 = vrot.slane %v13730_v5, 4 }
 0xcfc   :  { %v13745_v50 = vunpack.c.l.bf16 %v13692_v26  ;;  %v13746_v42 = vunpack.c.h.bf16 %v13692_v26  ;;  %28163 = vmatprep.subr.bf16.mxu0 %v28162_v40  ;;  %v13847_v26 = vrot.slane %v13728_v29, 4  ;;  %v13686_v29 = vld [vmem:[#allocation7 + $0x8f8] sm:$0xff] }
 0xcfd   :  { %v32472_v2 = vsel %vm2634_vm3, %v13837_v62, %v13838_v21  ;;  %v13712_v62 = vunpack.c.h.bf16 %v13675_v7  ;;  %v13733_v5 = vunpack.c.l.bf16 %v13686_v29 }
 0xcfe   :  { %28133 = vmatpush3.bf16.msra.mxu1 %v32382_v1  ;;  %v32460_v37 = vrot.slane %v13745_v50, 4  ;;  %v13750_v50 = vunpack.c.h.bf16 %v13694_v55 }
 0xcff   :  { %28135 = vmatprep.subr.bf16.mxu1 %v32388_v60  ;;  %v13858_v55 = vrot.slane %v13712_v62, 4 }
 0xd00   :  { %v32479_v38 = vsel %vm2634_vm3, %v13838_v21, %v32460_v37  ;;  %v13732_v21 = vunpack.c.h.bf16 %v13685_v12 }
 0xd02   :  { %28137 = vmatpush3.bf16.msra.mxu1 %v32394_v31 }
 0xd03   :  { %28139 = vmatprep.subr.bf16.mxu1 %v32400_v15 }
 0xd06   :  { %28141 = vmatpush3.bf16.msra.mxu1 %v32406_v18 }
 0xd07   :  { %28143 = vmatprep.subr.bf16.mxu1 %v32412_v8 }
 0xd0a   :  { %28145 = vmatpush3.bf16.msra.mxu1 %v32418_v53 }
 0xd0b   :  { %28147 = vmatprep.subr.bf16.mxu1 %v32424_v30 }
 0xd0e   :  { %28149 = vmatpush3.bf16.msra.mxu1 %v32432_v45 }
 0xd0f   :  { %28151 = vmatprep.subr.bf16.mxu1 %v32438_v57 }
 0xd12   :  { %28153 = vmatpush3.bf16.msra.mxu1 %v32446_v39 }
 0xd13   :  { %28159 = vmatprep.subr.bf16.mxu1 %v28158_v27 }
 0xd15   :  { %13664 = vmatmul.mubr.f32.vlgmr.msra.gmra.mrb[46].mxu1 %v2172_v23  ;;  %v13693_v23 = vld [vmem:[#allocation7 + $0x930] sm:$0xff] }
 0xd16   :  { %28161 = vmatpush1.bf16.msra.mxu1 %v28160_v47  ;;  %14137 = vmatprep.mubr.f32.mxu1 %v34472_v54  ;;  %v13673_v47 = vld [vmem:[#allocation7 + $0x890] sm:$0xcc]  ;;  %v13748_v34 = vunpack.c.h.bf16 %v13693_v23  ;;  %v13747_v9 = vunpack.c.l.bf16 %v13693_v23  ;;  %v32496_v23 = vrot.slane %v13749_v63, 4  ;;  %v13734_v63 = vunpack.c.h.bf16 %v13686_v29 }
 0xd17   :  { %24983 = vmatprep.subr.msk.mxu1 %vm2634_vm3, %v13885_v19  ;;  %v32465_v19 = vrot.slane %v13746_v42, 4  ;;  %v13707_v11 = vunpack.c.l.bf16 %v13673_v47  ;;  %v13708_v41 = vunpack.c.h.bf16 %v13673_v47  ;;  %v13676_v47 = vld [vmem:[#allocation7 + $0x8a8] sm:$0xcc] }
 0xd18   :  { %v32485_v17 = vrot.slane %v13748_v34, 4  ;;  %v32487_v40 = vrot.slane %v13747_v9, 4  ;;  %v13696_v34 = vld [vmem:[#allocation7 + $0x948] sm:$0xff]  ;;  %v13751_v9 = vunpack.c.l.bf16 %v13695_v51 }
 0xd19   :  { %v13894_v27 = vsel %vm2634_vm3, %v13841_v16, %v32465_v19  ;;  %v13843_v3 = vrot.slane %v13707_v11, 4  ;;  %v13846_v14 = vrot.slane %v13708_v41, 4  ;;  %v32498_v11 = vrot.slane %v13750_v50, 4 }
 0xd1a   :  { %24984 = vmatpush1.msk.msra.mxu1 %vm2634_vm3, %v13883_v43  ;;  %v13842_v43 = vsel %vm2634_vm3, %v13840_v56, %v13841_v16  ;;  %v13752_v56 = vunpack.c.h.bf16 %v13695_v51  ;;  %v32494_v16 = vsel %vm2634_vm3, %v13847_v26, %v32485_v17  ;;  %v32505_v33 = vsel %vm2634_vm3, %v13844_v44, %v32487_v40 }
 0xd1b   :  { %v28166_v22 = vpack.c.bf16 %v13894_v27, %v13842_v43  ;;  %v32490_v42 = vsel %vm2634_vm3, %v13846_v14, %v13847_v26  ;;  %v13849_v43 = vrot.slane %v13709_v24, 4  ;;  %v13850_v27 = vrot.slane %v13729_v10, 4 }
 0xd1c   :  { %v32501_v41 = vsel %vm2634_vm3, %v13843_v3, %v13844_v44  ;;  %v13859_v14 = vrot.slane %v13732_v21, 4  ;;  %v32507_v26 = vrot.slane %v13752_v56, 4  ;;  %v13713_v24 = vunpack.c.l.bf16 %v13676_v47 }
 0xd1d   :  { %28167 = vmatprep.subr.bf16.mxu1 %v28166_v22  ;;  %v13852_v22 = vrot.slane %v13710_v28, 4  ;;  %v13714_v10 = vunpack.c.h.bf16 %v13676_v47  ;;  %v13754_v3 = vunpack.c.h.bf16 %v13696_v34  ;;  %v13902_v44 = vsel %vm2634_vm3, %v13853_v4, %v32498_v11 }
 0xd1e   :  { %v13851_v7 = vsel %vm2634_vm3, %v13849_v43, %v13850_v27  ;;  %v13753_v12 = vunpack.c.l.bf16 %v13696_v34  ;;  %v13900_v62 = vsel %vm2634_vm3, %v13850_v27, %v32496_v23  ;;  %v13855_v21 = vrot.slane %v13711_v25, 4 }
 0xd1f   :  { %v13854_v0 = vsel %vm2634_vm3, %v13852_v22, %v13853_v4  ;;  %v13856_v56 = vrot.slane %v13731_v6, 4  ;;  %v32518_v47 = vsel %vm2634_vm3, %v13858_v55, %v13859_v14  ;;  %v32520_v29 = vrot.slane %v13751_v9, 4 }
 0xd20   :  { %v32524_v22 = vsel %vm2634_vm3, %v13859_v14, %v32507_v26  ;;  %v13861_v4 = vrot.slane %v13713_v24, 4  ;;  %v13862_v43 = vrot.slane %v13733_v5, 4  ;;  %v13864_v27 = vrot.slane %v13714_v10, 4  ;;  %v13677_v14 = vld [vmem:[#allocation7 + $0x8b0] sm:$0xcc] }
 0xd21   :  { %v13865_v34 = vrot.slane %v13734_v63, 4  ;;  %v32530_v25 = vrot.slane %v13754_v3, 4  ;;  %v34493_v6 = vpack.c.bf16 %v32479_v38, %v32472_v2  ;;  %v28170_v9 = vpack.c.bf16 %v32494_v16, %v32490_v42  ;;  %v13697_v2 = vld [vmem:[#allocation7 + $0x950] sm:$0xff]  ;;  %v13698_v16 = vld [vmem:[#allocation7 + $0x958] sm:$0xff] }
 0xd22   :  { %v32540_v55 = vrot.slane %v13753_v12, 4  ;;  %v28174_v24 = vpack.c.bf16 %v13902_v44, %v13854_v0  ;;  %v28172_v46 = vpack.c.bf16 %v32505_v33, %v32501_v41  ;;  %v28176_v35 = vpack.c.bf16 %v13900_v62, %v13851_v7  ;;  %v13688_v0 = vld [vmem:[#allocation7 + $0x908] sm:$0xff] }
 0xd23   :  { %v28178_v38 = vpack.c.bf16 %v32524_v22, %v32518_v47  ;;  %v13857_v42 = vsel %vm2634_vm3, %v13855_v21, %v13856_v56  ;;  %v13866_v41 = vsel %vm2634_vm3, %v13864_v27, %v13865_v34  ;;  %v13910_v33 = vsel %vm2634_vm3, %v13865_v34, %v32530_v25 }
 0xd24   :  { %v13715_v10 = vunpack.c.l.bf16 %v13677_v14  ;;  %v13908_v5 = vsel %vm2634_vm3, %v13862_v43, %v32540_v55  ;;  %v13716_v63 = vunpack.c.h.bf16 %v13677_v14  ;;  %v13738_v12 = vunpack.c.h.bf16 %v13688_v0 }
 0xd25   :  { %v13758_v62 = vunpack.c.h.bf16 %v13698_v16  ;;  %v13737_v21 = vunpack.c.l.bf16 %v13688_v0  ;;  %v28182_v47 = vpack.c.bf16 %v13910_v33, %v13866_v41  ;;  %v30089_v33 = vld [vmem:[#allocation5 + $0x18] sm:$0xff] }
 0xd26   :  { %v13870_v27 = vrot.slane %v13716_v63, 4  ;;  %v29907_v63 = vld [vmem:[#allocation7 + $0x968] ss:$80 sps:$4 sm:$0xff]  }
 0xde8   :  { %v26590_v28 = vpop.f32.mrb[46].mxu1 }
 0xde9   :  { %v26591_v50 = vpop.f32.mrb[47].mxu1 }
 0xdea   :  { %v32513_v51 = vadd.f32 %v26591_v50, %v26590_v28  ;;  %v13863_v28 = vsel %vm2634_vm3, %v13861_v4, %v13862_v43  ;;  %v13756_v50 = vunpack.c.h.bf16 %v13697_v2  ;;  %v13867_v43 = vrot.slane %v13715_v10, 4 }
 0xdeb   :  { %v28184_v4 = vpack.c.bf16 %v13908_v5, %v13863_v28  ;;  %v508_v28 = vrot.slane %v30089_v33, %v30606_v52 }
 0xdec   :  { %24982 = vmatmul.mubr.msk.f32.vlgmr.msra.gmra.mrb[18].mxu0 %vm2775_vm4, %v32513_v51  ;;  %24985 = vmatmul.mubr.msk.f32.vlgmr.msra.gmra.mrb[28].mxu1 %vm2775_vm4, %v32513_v51 }
 0xded   :  { %28165 = vmatpush1.bf16.msra.mxu0 %v28164_v32  ;;  %28169 = vmatpush1.bf16.msra.mxu1 %v34493_v6  ;;  %v13687_v32 = vld [vmem:[#allocation7 + $0x900] sm:$0xff]  ;;  %v13913_v6 = vrot.slane %v13756_v50, 4 }
 0xdee   :  { %24986 = vmatprep.subr.msk.mxu0 %vm2634_vm3, %v32453_v58  ;;  %24989 = vmatprep.subr.msk.mxu1 %vm2634_vm3, %v32465_v19  ;;  %v13904_v58 = vsel %vm2634_vm3, %v13856_v56, %v32520_v29  ;;  %v13678_v19 = vld [vmem:[#allocation7 + $0x8b8] sm:$0xcc]  ;;  %v13736_v3 = vunpack.c.h.bf16 %v13687_v32  ;;  %v13735_v44 = vunpack.c.l.bf16 %v13687_v32  ;;  %v13757_v56 = vunpack.c.l.bf16 %v13698_v16 }
 0xdef   :  { %14208 = vmatprep.mubr.f32.mxu0 %v34472_v54  ;;  %14279 = vmatprep.mubr.f32.mxu1 %v34472_v54  ;;  %v13718_v7 = vunpack.c.h.bf16 %v13678_v19  ;;  %v28180_v22 = vpack.c.bf16 %v13904_v58, %v13857_v42 }
 0xdf0   :  { %v13871_v34 = vrot.slane %v13736_v3, 4  ;;  %v13915_v42 = vrot.slane %v13757_v56, 4  ;;  %v34495_v3 = vld [vmem:[#allocation26_spill] sm:$0xff] }
 0xdf1   :  { %24987 = vmatpush1.msk.msra.mxu0 %vm2634_vm3, %v32455_v49  ;;  %24990 = vmatpush1.msk.msra.mxu1 %vm2634_vm3, %v32460_v37  ;;  %v13755_v49 = vunpack.c.l.bf16 %v13697_v2  ;;  %v13717_v37 = vunpack.c.l.bf16 %v13678_v19  ;;  %v13876_v14 = vrot.slane %v13718_v7, 4  ;;  %v13874_v2 = vrot.slane %v13737_v21, 4  ;;  %v29904_v7 = vld [vmem:[#allocation7 + $0x960] ss:$80 sps:$4 sm:$0xff]  }
 0xdf2   :  { %24988 = vmatmul.mubr.msk.f32.vlgmr.msra.gmra.mrb[20].mxu0 %vm2775_vm4, %v32513_v51  ;;  %24991 = vmatmul.mubr.msk.f32.vlgmr.msra.gmra.mrb[30].mxu1 %vm2775_vm4, %v32513_v51 }
 0xdf3   :  { %28171 = vmatprep.subr.bf16.mxu0 %v28170_v9  ;;  %28175 = vmatprep.subr.bf16.mxu1 %v28174_v24  ;;  %v13868_v9 = vrot.slane %v13735_v44, 4  ;;  %v13877_v24 = vrot.slane %v13738_v12, 4  ;;  %v13873_v32 = vrot.slane %v13717_v37, 4  ;;  %v13916_v16 = vsel %vm2634_vm3, %v13874_v2, %v13915_v42  ;;  %v29902_v44 = vld [vmem:[#allocation7 + $0x964] ss:$80 sps:$4 sm:$0xff]  }
 0xdf4   :  { %28173 = vmatpush1.bf16.msra.mxu0 %v28172_v46  ;;  %28177 = vmatpush1.bf16.msra.mxu1 %v28176_v35  ;;  %v13917_v46 = vrot.slane %v13758_v62, 4  ;;  %v13911_v35 = vrot.slane %v13755_v49, 4  ;;  %v14822_v62 = vld [vmem:[#allocation7 + $0xa00] sm:$0x33]  ;;  %v14823_v49 = vld [vmem:[#allocation7 + $0xa08] sm:$0x33] }
 0xdf5   :  { %24992 = vmatprep.subr.msk.mxu0 %vm2634_vm3, %v32485_v17  ;;  %24995 = vmatprep.subr.msk.mxu1 %vm2634_vm3, %v32498_v11  ;;  %v13872_v17 = vsel %vm2634_vm3, %v13870_v27, %v13871_v34  ;;  %v13914_v11 = vsel %vm2634_vm3, %v13871_v34, %v13913_v6  ;;  %v13878_v58 = vsel %vm2634_vm3, %v13876_v14, %v13877_v24  ;;  %v14873_v37 = vunpack.c.h.bf16 %v14822_v62  ;;  %v14825_v27 = vld [vmem:[#allocation7 + $0xa18] sm:$0x33] }
 0xdf6   :  { %14350 = vmatprep.mubr.f32.mxu0 %v34472_v54  ;;  %14421 = vmatprep.mubr.f32.mxu1 %v34472_v54  ;;  %v13918_v19 = vsel %vm2634_vm3, %v13877_v24, %v13917_v46  ;;  %v13875_v0 = vsel %vm2634_vm3, %v13873_v32, %v13874_v2  ;;  %v14875_v21 = vunpack.c.h.bf16 %v14823_v49  ;;  %v14872_v56 = vunpack.c.l.bf16 %v14822_v62  ;;  %v29913_v14 = vld [vmem:[#allocation7 + $0x978] ss:$80 sps:$4 sm:$0xff]   ;;  %v14830_v62 = vld [vmem:[#allocation7 + $0xa40] sm:$0x33] }
 0xdf7   :  { %v28190_v41 = vpack.c.bf16 %v13918_v19, %v13878_v58  ;;  %v28192_v5 = vpack.c.bf16 %v13916_v16, %v13875_v0  ;;  %v14878_v2 = vunpack.c.l.bf16 %v14825_v27  ;;  %v29917_v58 = vld [vmem:[#allocation7 + $0x98c] ss:$80 sps:$4 sm:$0xff]   ;;  %v29916_v19 = vld [vmem:[#allocation7 + $0x980] ss:$80 sps:$4 sm:$0xff]  }
 0xdf8   :  { %24993 = vmatpush1.msk.msra.mxu0 %vm2634_vm3, %v32487_v40  ;;  %24996 = vmatpush1.msk.msra.mxu1 %vm2634_vm3, %v32496_v23  ;;  %v13869_v40 = vsel %vm2634_vm3, %v13867_v43, %v13868_v9  ;;  %v13912_v23 = vsel %vm2634_vm3, %v13868_v9, %v13911_v35  ;;  %v14824_v43 = vld [vmem:[#allocation7 + $0xa10] sm:$0x33] }
 0xdf9   :  { %24994 = vmatmul.mubr.msk.f32.vlgmr.msra.gmra.mrb[22].mxu0 %vm2775_vm4, %v32513_v51  ;;  %24997 = vmatmul.mubr.msk.f32.vlgmr.msra.gmra.mrb[32].mxu1 %vm2775_vm4, %v32513_v51  ;;  %v28188_v10 = vpack.c.bf16 %v13912_v23, %v13869_v40  ;;  %v29910_v9 = vld [vmem:[#allocation7 + $0x970] ss:$80 sps:$4 sm:$0xff]   ;;  %v14876_v32 = vunpack.c.l.bf16 %v14824_v43  ;;  %v29919_v40 = vld [vmem:[#allocation7 + $0x988] ss:$80 sps:$4 sm:$0xff]  }
 0xdfa   :  { %28179 = vmatprep.subr.bf16.mxu0 %v28178_v38  ;;  %28183 = vmatprep.subr.bf16.mxu1 %v28182_v47  ;;  %v28186_v38 = vpack.c.bf16 %v13914_v11, %v13872_v17  ;;  %v14874_v47 = vunpack.c.l.bf16 %v14823_v49  ;;  %v14827_v17 = vld [vmem:[#allocation7 + $0xa28] sm:$0x33]  ;;  %v29914_v11 = vld [vmem:[#allocation7 + $0x984] ss:$80 sps:$4 sm:$0xff]  }
 0xdfb   :  { %28181 = vmatpush1.bf16.msra.mxu0 %v28180_v22  ;;  %28185 = vmatpush1.bf16.msra.mxu1 %v28184_v4  ;;  %v29908_v22 = vld [vmem:[#allocation7 + $0x974] ss:$80 sps:$4 sm:$0xff]   ;;  %v29911_v4 = vld [vmem:[#allocation7 + $0x97c] ss:$80 sps:$4 sm:$0xff]   ;;  %v14883_v0 = vunpack.c.h.bf16 %v14827_v17 }
 0xdfc   :  { %24998 = vmatprep.subr.msk.mxu0 %vm2634_vm3, %v32507_v26  ;;  %25001 = vmatprep.subr.msk.mxu1 %vm2634_vm3, %v32530_v25  ;;  %v34494_v26 = vld [vmem:[#allocation27_spill] sm:$0xff] }
 0xdfd   :  { %14492 = vmatprep.mubr.f32.mxu0 %v34472_v54  ;;  %14563 = vmatprep.mubr.f32.mxu1 %v34472_v54  ;;  %v1651_v25 = vadd.f32 %v34494_v26, %v508_v28  ;;  %v14829_v28 = vld [vmem:[#allocation7 + $0xa38] sm:$0x33] }
 0xdfe   :  { %v29925_v26 = vld [vmem:[#allocation7 + $0x998] ss:$80 sps:$4 sm:$0xff]  }
 0xdff   :  { %24999 = vmatpush1.msk.msra.mxu0 %vm2634_vm3, %v32520_v29  ;;  %25002 = vmatpush1.msk.msra.mxu1 %vm2634_vm3, %v32540_v55  ;;  %v29905_v29 = vld [vmem:[#allocation7 + $0x96c] ss:$80 sps:$4 sm:$0xff]   ;;  %v2175_v55 = vmax.f32 %v1651_v25, 0.0  ;;  %v15755_v25 = vld [vmem:[#allocation7 + $0xa00] sm:$0xcc] }
 0xe00   :  { %25000 = vmatmul.mubr.msk.f32.vlgmr.msra.gmra.mrb[24].mxu0 %vm2775_vm4, %v32513_v51  ;;  %25003 = vmatmul.mubr.msk.f32.vlgmr.msra.gmra.mrb[34].mxu1 %vm2775_vm4, %v32513_v51  ;;  %v15785_v49 = vunpack.c.l.bf16 %v15755_v25 }
 0xe01   :  { %28187 = vmatprep.subr.bf16.mxu0 %v28186_v38  ;;  %28191 = vmatprep.subr.bf16.mxu1 %v28190_v41  ;;  %v14882_v38 = vunpack.c.l.bf16 %v14827_v17  ;;  %v29920_v41 = vld [vmem:[#allocation7 + $0x994] ss:$80 sps:$4 sm:$0xff]  }
 0xe02   :  { %28189 = vmatpush1.bf16.msra.mxu0 %v28188_v10  ;;  %28193 = vmatpush1.bf16.msra.mxu1 %v28192_v5  ;;  %v29922_v10 = vld [vmem:[#allocation7 + $0x990] ss:$80 sps:$4 sm:$0xff]   ;;  %v29923_v5 = vld [vmem:[#allocation7 + $0x99c] ss:$80 sps:$4 sm:$0xff]  }
 0xe03   :  { %25004 = vmatprep.subr.msk.mxu0 %vm2634_vm3, %v13913_v6  ;;  %25007 = vmatprep.subr.msk.mxu1 %vm2634_vm3, %v13917_v46  ;;  %v14877_v46 = vunpack.c.h.bf16 %v14824_v43  ;;  %v29931_v43 = vld [vmem:[#allocation7 + $0x9a8] ss:$80 sps:$4 sm:$0xff]  }
 0xe04   :  { %14634 = vmatprep.mubr.f32.mxu0 %v34472_v54  ;;  %14705 = vmatprep.mubr.f32.mxu1 %v34472_v54 }
 0xe06   :  { %25005 = vmatpush1.msk.msra.mxu0 %vm2634_vm3, %v13911_v35  ;;  %25008 = vmatpush1.msk.msra.mxu1 %vm2634_vm3, %v13915_v42  ;;  %v14879_v35 = vunpack.c.h.bf16 %v14825_v27  ;;  %v14826_v42 = vld [vmem:[#allocation7 + $0xa20] sm:$0x33]  ;;  %v14889_v27 = vunpack.c.h.bf16 %v14830_v62 }
 0xe07   :  { %25006 = vmatmul.mubr.msk.f32.vlgmr.msra.gmra.mrb[26].mxu0 %vm2775_vm4, %v32513_v51  ;;  %25009 = vmatmul.mubr.msk.f32.vlgmr.msra.gmra.mrb[36].mxu1 %vm2775_vm4, %v32513_v51  ;;  %v504_v51 = vrot.slane %v30089_v33, %v30596_v48  ;;  %v14881_v23 = vunpack.c.h.bf16 %v14826_v42  ;;  %v14880_v16 = vunpack.c.l.bf16 %v14826_v42  ;;  %v14828_v33 = vld [vmem:[#allocation7 + $0xa30] sm:$0x33] }
 0xe08   :  { %28195 = vmatprep.subr.bf16.mxu0 %v32349_v13  ;;  %14796 = vmatprep.mubr.f32.mxu0 %v2175_v55  ;;  %v15775_v55 = vld [vmem:[#allocation7 + $0xaa0] sm:$0xff] }
 0xe09   :  { %28197 = vmatpush3.bf16.msra.mxu0 %v32355_v61  ;;  %28231 = vmatprep.subr.bf16.mxu1 %v29905_v29  ;;  %v1649_v50 = vadd.f32 %v34495_v3, %v504_v51  ;;  %v15765_v29 = vld [vmem:[#allocation7 + $0xa50] sm:$0xff]  ;;  %v14887_v51 = vunpack.c.h.bf16 %v14829_v28  ;;  %v14884_v3 = vunpack.c.l.bf16 %v14828_v33 }
 0xe0a   :  { %28199 = vmatprep.subr.bf16.mxu0 %v32361_v59  ;;  %28233 = vmatpush1.bf16.msra.mxu1 %v29907_v63  ;;  %v14885_v63 = vunpack.c.h.bf16 %v14828_v33 }
 0xe0b   :  { %15090 = vmatprep.mubr.f32.mxu1 %v34472_v54  ;;  %v2174_v12 = vmax.f32 %v1649_v50, 0.0  ;;  %25013 = vmatprep.subr.msk.mxu1 %vm2634_vm3, %v14875_v21  ;;  %v15786_v50 = vunpack.c.h.bf16 %v15755_v25  ;;  %v15825_v21 = vunpack.c.l.bf16 %v15775_v55 }
 0xe0d   :  { %28201 = vmatpush3.bf16.msra.mxu0 %v32369_v20 }
 0xe0e   :  { %28203 = vmatprep.subr.bf16.mxu0 %v32375_v36  ;;  %25014 = vmatpush1.msk.msra.mxu1 %vm2634_vm3, %v14874_v47  ;;  %v29926_v47 = vld [vmem:[#allocation7 + $0x9a4] ss:$80 sps:$4 sm:$0xff]  }
 0xe0f   :  { %28239 = vmatprep.subr.bf16.mxu1 %v29911_v4  ;;  %v29929_v4 = vld [vmem:[#allocation7 + $0x9ac] ss:$80 sps:$4 sm:$0xff]  }
 0xe11   :  { %28205 = vmatpush3.bf16.msra.mxu0 %v32382_v1 }
 0xe12   :  { %28207 = vmatprep.subr.bf16.mxu0 %v32388_v60 }
 0xe15   :  { %28209 = vmatpush3.bf16.msra.mxu0 %v32394_v31 }
 0xe16   :  { %28211 = vmatprep.subr.bf16.mxu0 %v32400_v15 }
 0xe19   :  { %28213 = vmatpush3.bf16.msra.mxu0 %v32406_v18 }
 0xe1a   :  { %28215 = vmatprep.subr.bf16.mxu0 %v32412_v8 }
 0xe1d   :  { %28217 = vmatpush3.bf16.msra.mxu0 %v32418_v53 }
 0xe1e   :  { %28219 = vmatprep.subr.bf16.mxu0 %v32424_v30 }
 0xe21   :  { %28221 = vmatpush3.bf16.msra.mxu0 %v32432_v45 }
 0xe22   :  { %28223 = vmatprep.subr.bf16.mxu0 %v32438_v57 }
 0xe25   :  { %28225 = vmatpush3.bf16.msra.mxu0 %v32446_v39 }
 0xe26   :  { %28227 = vmatprep.subr.bf16.mxu0 %v29902_v44  ;;  %v15806_v44 = vunpack.c.h.bf16 %v15765_v29 }
 0xe28   :  { %14797 = vmatmul.mubr.f32.vlgmr.msra.gmra.mrb[38].mxu0 %v2174_v12  ;;  %v14886_v12 = vunpack.c.l.bf16 %v14829_v28 }
 0xe29   :  { %28229 = vmatpush1.bf16.msra.mxu0 %v29904_v7  ;;  %15019 = vmatprep.mubr.f32.mxu0 %v34472_v54  ;;  %v15826_v7 = vunpack.c.h.bf16 %v15775_v55  ;;  %v15777_v55 = vld [vmem:[#allocation7 + $0xab0] sm:$0xff] }
 0xe2a   :  { %25010 = vmatprep.subr.msk.mxu0 %vm2634_vm3, %v14873_v37  ;;  %v15805_v37 = vunpack.c.l.bf16 %v15765_v29 }
 0xe2d   :  { %25011 = vmatpush1.msk.msra.mxu0 %vm2634_vm3, %v14872_v56  ;;  %v14831_v56 = vld [vmem:[#allocation7 + $0xa48] sm:$0x33] }
 0xe2e   :  { %28235 = vmatprep.subr.bf16.mxu0 %v29908_v22  ;;  %v29928_v22 = vld [vmem:[#allocation7 + $0x9a0] ss:$80 sps:$4 sm:$0xff]   ;;  %v14890_v42 = vunpack.c.l.bf16 %v14831_v56 }
 0xefb   :  { %v26625_v34 = vpop.f32.mrb[38].mxu0 }
 0xefc   :  { %v26626_v6 = vpop.f32.mrb[39].mxu0 }
 0xefd   :  { %v32641_v24 = vadd.f32 %v26626_v6, %v26625_v34  ;;  %v15908_v34 = vrot.slane %v15786_v50, 4  ;;  %v15909_v6 = vrot.slane %v15806_v44, 4  ;;  %v15758_v50 = vld [vmem:[#allocation7 + $0xa18] sm:$0xcc] }
 0xeff   :  { %25012 = vmatmul.mubr.msk.f32.vlgmr.msra.gmra.mrb[18].mxu0 %vm2775_vm4, %v32641_v24  ;;  %25015 = vmatmul.mubr.msk.f32.vlgmr.msra.gmra.mrb[28].mxu1 %vm2775_vm4, %v32641_v24  ;;  %v15910_v17 = vsel %vm2634_vm3, %v15908_v34, %v15909_v6 }
 0xf00   :  { %28237 = vmatpush1.bf16.msra.mxu0 %v29910_v9  ;;  %28241 = vmatpush1.bf16.msra.mxu1 %v29913_v14  ;;  %v15967_v9 = vrot.slane %v15826_v7, 4  ;;  %v14891_v14 = vunpack.c.h.bf16 %v14831_v56 }
 0xf01   :  { %25016 = vmatprep.subr.msk.mxu0 %vm2634_vm3, %v14877_v46  ;;  %25019 = vmatprep.subr.msk.mxu1 %vm2634_vm3, %v14879_v35  ;;  %v15905_v46 = vrot.slane %v15785_v49, 4  ;;  %v15906_v35 = vrot.slane %v15805_v37, 4  ;;  %v15791_v49 = vunpack.c.l.bf16 %v15758_v50 }
 0xf02   :  { %15161 = vmatprep.mubr.f32.mxu0 %v34472_v54  ;;  %15232 = vmatprep.mubr.f32.mxu1 %v34472_v54 }
 0xf04   :  { %25017 = vmatpush1.msk.msra.mxu0 %vm2634_vm3, %v14876_v32  ;;  %25020 = vmatpush1.msk.msra.mxu1 %vm2634_vm3, %v14878_v2  ;;  %v15965_v32 = vrot.slane %v15825_v21, 4  ;;  %v14888_v2 = vunpack.c.l.bf16 %v14830_v62  ;;  %v15778_v62 = vld [vmem:[#allocation7 + $0xab8] sm:$0xff] }
 0xf05   :  { %25018 = vmatmul.mubr.msk.f32.vlgmr.msra.gmra.mrb[20].mxu0 %vm2775_vm4, %v32641_v24  ;;  %25021 = vmatmul.mubr.msk.f32.vlgmr.msra.gmra.mrb[30].mxu1 %vm2775_vm4, %v32641_v24 }
 0xf06   :  { %28243 = vmatprep.subr.bf16.mxu0 %v29914_v11  ;;  %28247 = vmatprep.subr.bf16.mxu1 %v29917_v58  ;;  %v15968_v11 = vsel %vm2634_vm3, %v15909_v6, %v15967_v9  ;;  %v15907_v58 = vsel %vm2634_vm3, %v15905_v46, %v15906_v35 }
 0xf07   :  { %28245 = vmatpush1.bf16.msra.mxu0 %v29916_v19  ;;  %28249 = vmatpush1.bf16.msra.mxu1 %v29919_v40  ;;  %v15966_v19 = vsel %vm2634_vm3, %v15906_v35, %v15965_v32  ;;  %v28298_v40 = vpack.c.bf16 %v15968_v11, %v15910_v17  ;;  %v15832_v35 = vunpack.c.h.bf16 %v15778_v62 }
 0xf08   :  { %25022 = vmatprep.subr.msk.mxu0 %vm2634_vm3, %v14881_v23  ;;  %25025 = vmatprep.subr.msk.mxu1 %vm2634_vm3, %v14883_v0  ;;  %v34496_v23 = vld [vmem:[#allocation45_spill] sm:$0xff] }
 0xf09   :  { %15303 = vmatprep.mubr.f32.mxu0 %v34472_v54  ;;  %15374 = vmatprep.mubr.f32.mxu1 %v34472_v54  ;;  %v2177_v0 = vmax.f32 %v34496_v23, 0.0 }
 0xf0b   :  { %25023 = vmatpush1.msk.msra.mxu0 %vm2634_vm3, %v14880_v16  ;;  %25026 = vmatpush1.msk.msra.mxu1 %vm2634_vm3, %v14882_v38  ;;  %v28300_v16 = vpack.c.bf16 %v15966_v19, %v15907_v58  ;;  %v32731_v19 = vrot.slane %v15832_v35, 4 }
 0xf0c   :  { %25024 = vmatmul.mubr.msk.f32.vlgmr.msra.gmra.mrb[22].mxu0 %vm2775_vm4, %v32641_v24  ;;  %25027 = vmatmul.mubr.msk.f32.vlgmr.msra.gmra.mrb[32].mxu1 %vm2775_vm4, %v32641_v24 }
 0xf0d   :  { %28251 = vmatprep.subr.bf16.mxu0 %v29920_v41  ;;  %28255 = vmatprep.subr.bf16.mxu1 %v29923_v5 }
 0xf0e   :  { %28253 = vmatpush1.bf16.msra.mxu0 %v29922_v10  ;;  %28257 = vmatpush1.bf16.msra.mxu1 %v29925_v26 }
 0xf0f   :  { %25028 = vmatprep.subr.msk.mxu0 %vm2634_vm3, %v14885_v63  ;;  %25031 = vmatprep.subr.msk.mxu1 %vm2634_vm3, %v14887_v51 }
 0xf10   :  { %15445 = vmatprep.mubr.f32.mxu0 %v34472_v54  ;;  %15516 = vmatprep.mubr.f32.mxu1 %v34472_v54 }
 0xf12   :  { %25029 = vmatpush1.msk.msra.mxu0 %vm2634_vm3, %v14884_v3  ;;  %25032 = vmatpush1.msk.msra.mxu1 %vm2634_vm3, %v14886_v12  ;;  %v15830_v3 = vunpack.c.h.bf16 %v15777_v55  ;;  %v15829_v12 = vunpack.c.l.bf16 %v15777_v55  ;;  %v15781_v55 = vld [vmem:[#allocation7 + $0xad0] sm:$0xff] }
 0xf13   :  { %25030 = vmatmul.mubr.msk.f32.vlgmr.msra.gmra.mrb[24].mxu0 %vm2775_vm4, %v32641_v24  ;;  %25033 = vmatmul.mubr.msk.f32.vlgmr.msra.gmra.mrb[34].mxu1 %vm2775_vm4, %v32641_v24 }
 0xf14   :  { %28259 = vmatprep.subr.bf16.mxu0 %v29926_v47  ;;  %28263 = vmatprep.subr.bf16.mxu1 %v29929_v4  ;;  %v32719_v56 = vrot.slane %v15830_v3, 4  ;;  %v15792_v47 = vunpack.c.h.bf16 %v15758_v50 }
 0xf15   :  { %28261 = vmatpush1.bf16.msra.mxu0 %v29928_v22  ;;  %28265 = vmatpush1.bf16.msra.mxu1 %v29931_v43  ;;  %v32721_v43 = vrot.slane %v15829_v12, 4 }
 0xf16   :  { %25034 = vmatprep.subr.msk.mxu0 %vm2634_vm3, %v14889_v27  ;;  %25037 = vmatprep.subr.msk.mxu1 %vm2634_vm3, %v14891_v14  ;;  %v15831_v14 = vunpack.c.l.bf16 %v15778_v62  ;;  %v15838_v62 = vunpack.c.h.bf16 %v15781_v55 }
 0xf17   :  { %15587 = vmatprep.mubr.f32.mxu0 %v34472_v54  ;;  %15658 = vmatprep.mubr.f32.mxu1 %v34472_v54 }
 0xf18   :  { %v32726_v11 = vrot.slane %v15831_v14, 4  ;;  %v15782_v14 = vld [vmem:[#allocation7 + $0xad8] sm:$0xff] }
 0xf19   :  { %25035 = vmatpush1.msk.msra.mxu0 %vm2634_vm3, %v14888_v2  ;;  %25038 = vmatpush1.msk.msra.mxu1 %vm2634_vm3, %v14890_v42  ;;  %v15926_v42 = vrot.slane %v15792_v47, 4 }
 0xf1a   :  { %25036 = vmatmul.mubr.msk.f32.vlgmr.msra.gmra.mrb[26].mxu0 %vm2775_vm4, %v32641_v24  ;;  %25039 = vmatmul.mubr.msk.f32.vlgmr.msra.gmra.mrb[36].mxu1 %vm2775_vm4, %v32641_v24  ;;  %v15776_v24 = vld [vmem:[#allocation7 + $0xaa8] sm:$0xff] }
 0xf1b   :  { %28267 = vmatprep.subr.bf16.mxu1 %v32349_v13  ;;  %15749 = vmatprep.mubr.f32.mxu1 %v2177_v0  ;;  %v15756_v13 = vld [vmem:[#allocation7 + $0xa08] sm:$0xcc]  ;;  %v15828_v41 = vunpack.c.h.bf16 %v15776_v24  ;;  %v15827_v33 = vunpack.c.l.bf16 %v15776_v24 }
 0xf1c   :  { %28269 = vmatpush3.bf16.msra.mxu1 %v32355_v61  ;;  %28299 = vmatprep.subr.bf16.mxu0 %v28298_v40  ;;  %v15766_v61 = vld [vmem:[#allocation7 + $0xa58] sm:$0xff] }
 0xf1d   :  { %28271 = vmatprep.subr.bf16.mxu1 %v32361_v59  ;;  %28301 = vmatpush1.bf16.msra.mxu0 %v28300_v16  ;;  %v15788_v59 = vunpack.c.h.bf16 %v15756_v13  ;;  %v15808_v38 = vunpack.c.h.bf16 %v15766_v61 }
 0xf1e   :  { %25040 = vmatprep.subr.msk.mxu0 %vm2634_vm3, %v15967_v9  ;;  %16152 = vmatprep.mubr.f32.mxu0 %v34472_v54 }
 0xf1f   :  { %v15915_v28 = vrot.slane %v15808_v38, 4  ;;  %v15759_v38 = vld [vmem:[#allocation7 + $0xa20] sm:$0xcc] }
 0xf20   :  { %28273 = vmatpush3.bf16.msra.mxu1 %v32369_v20  ;;  %v15787_v20 = vunpack.c.l.bf16 %v15756_v13 }
 0xf21   :  { %28275 = vmatprep.subr.bf16.mxu1 %v32375_v36  ;;  %25041 = vmatpush1.msk.msra.mxu0 %vm2634_vm3, %v15965_v32  ;;  %v15807_v36 = vunpack.c.l.bf16 %v15766_v61  ;;  %v15923_v32 = vrot.slane %v15791_v49, 4 }
 0xf23   :  { %v15912_v10 = vrot.slane %v15807_v36, 4  ;;  %v15793_v36 = vunpack.c.l.bf16 %v15759_v38 }
 0xf24   :  { %28277 = vmatpush3.bf16.msra.mxu1 %v32382_v1  ;;  %v15914_v1 = vrot.slane %v15788_v59, 4 }
 0xf25   :  { %28279 = vmatprep.subr.bf16.mxu1 %v32388_v60  ;;  %v15971_v60 = vrot.slane %v15828_v41, 4  ;;  %v15769_v41 = vld [vmem:[#allocation7 + $0xa70] sm:$0xff] }
 0xf26   :  { %v15916_v5 = vsel %vm2634_vm3, %v15914_v1, %v15915_v28  ;;  %v15814_v1 = vunpack.c.h.bf16 %v15769_v41 }
 0xf27   :  { %v15972_v26 = vsel %vm2634_vm3, %v15915_v28, %v15971_v60 }
 0xf28   :  { %28281 = vmatpush3.bf16.msra.mxu1 %v32394_v31  ;;  %v15911_v31 = vrot.slane %v15787_v20, 4  ;;  %v15779_v20 = vld [vmem:[#allocation7 + $0xac0] sm:$0xff] }
 0xf29   :  { %28283 = vmatprep.subr.bf16.mxu1 %v32400_v15  ;;  %v15969_v15 = vrot.slane %v15827_v33, 4  ;;  %v15794_v33 = vunpack.c.h.bf16 %v15759_v38  ;;  %v15834_v28 = vunpack.c.h.bf16 %v15779_v20 }
 0xf2b   :  { %v15970_v25 = vsel %vm2634_vm3, %v15912_v10, %v15969_v15 }
 0xf2c   :  { %28285 = vmatpush3.bf16.msra.mxu1 %v32406_v18  ;;  %v28302_v18 = vpack.c.bf16 %v15972_v26, %v15916_v5  ;;  %v15780_v5 = vld [vmem:[#allocation7 + $0xac8] sm:$0xff]  ;;  %v15929_v26 = vrot.slane %v15793_v36, 4  ;;  %v15840_v36 = vunpack.c.h.bf16 %v15782_v14 }
 0xf2d   :  { %28287 = vmatprep.subr.bf16.mxu1 %v32412_v8  ;;  %v15913_v8 = vsel %vm2634_vm3, %v15911_v31, %v15912_v10  ;;  %v15760_v31 = vld [vmem:[#allocation7 + $0xa28] sm:$0xcc]  ;;  %v15770_v10 = vld [vmem:[#allocation7 + $0xa78] sm:$0xff]  ;;  %v15835_v3 = vunpack.c.l.bf16 %v15780_v5  ;;  %v15836_v50 = vunpack.c.h.bf16 %v15780_v5 }
 0xf30   :  { %28289 = vmatpush3.bf16.msra.mxu1 %v32418_v53  ;;  %v28304_v53 = vpack.c.bf16 %v15970_v25, %v15913_v8  ;;  %v15933_v8 = vrot.slane %v15814_v1, 4  ;;  %v32751_v25 = vrot.slane %v15834_v28, 4 }
 0xf31   :  { %28291 = vmatprep.subr.bf16.mxu1 %v32424_v30  ;;  %v34497_v30 = vld [vmem:[#allocation44_spill] sm:$0xff] }
 0xf32   :  { %v2176_v29 = vmax.f32 %v34497_v30, 0.0  ;;  %v15796_v30 = vunpack.c.h.bf16 %v15760_v31  ;;  %v32760_v49 = vsel %vm2634_vm3, %v15933_v8, %v32751_v25 }
 0xf34   :  { %28293 = vmatpush3.bf16.msra.mxu1 %v32432_v45  ;;  %v15757_v45 = vld [vmem:[#allocation7 + $0xa10] sm:$0xcc]  ;;  %v15938_v47 = vrot.slane %v15796_v30, 4 }
 0xf35   :  { %28295 = vmatprep.subr.bf16.mxu1 %v32438_v57  ;;  %v15767_v57 = vld [vmem:[#allocation7 + $0xa60] sm:$0xff]  ;;  %v15790_v63 = vunpack.c.h.bf16 %v15757_v45  ;;  %v15789_v44 = vunpack.c.l.bf16 %v15757_v45  ;;  %v15761_v45 = vld [vmem:[#allocation7 + $0xa30] sm:$0xcc] }
 0xf36   :  { %v15810_v51 = vunpack.c.h.bf16 %v15767_v57  ;;  %v15809_v7 = vunpack.c.l.bf16 %v15767_v57  ;;  %v15771_v57 = vld [vmem:[#allocation7 + $0xa80] sm:$0xff]  ;;  %v15797_v35 = vunpack.c.l.bf16 %v15761_v45 }
 0xf37   :  { %v15920_v37 = vrot.slane %v15790_v63, 4  ;;  %v15917_v22 = vrot.slane %v15789_v44, 4  ;;  %v15818_v12 = vunpack.c.h.bf16 %v15771_v57 }
 0xf38   :  { %28297 = vmatpush3.bf16.msra.mxu1 %v32446_v39  ;;  %v15768_v39 = vld [vmem:[#allocation7 + $0xa68] sm:$0xff]  ;;  %v15921_v21 = vrot.slane %v15810_v51, 4  ;;  %v15918_v4 = vrot.slane %v15809_v7, 4  ;;  %v15816_v51 = vunpack.c.h.bf16 %v15770_v10  ;;  %v15798_v7 = vunpack.c.h.bf16 %v15761_v45 }
 0xf39   :  { %28303 = vmatprep.subr.bf16.mxu1 %v28302_v18  ;;  %v15811_v27 = vunpack.c.l.bf16 %v15768_v39  ;;  %v15812_v9 = vunpack.c.h.bf16 %v15768_v39  ;;  %v15932_v18 = vrot.slane %v15794_v33, 4  ;;  %v15941_v5 = vrot.slane %v15797_v35, 4 }
 0xf3a   :  { %v15922_v34 = vsel %vm2634_vm3, %v15920_v37, %v15921_v21  ;;  %v15976_v6 = vsel %vm2634_vm3, %v15921_v21, %v32719_v56  ;;  %v32729_v58 = vsel %vm2634_vm3, %v15917_v22, %v15918_v4  ;;  %v32735_v40 = vsel %vm2634_vm3, %v15918_v4, %v32721_v43  ;;  %v15762_v22 = vld [vmem:[#allocation7 + $0xa38] sm:$0xcc] }
 0xf3b   :  { %15750 = vmatmul.mubr.f32.vlgmr.msra.gmra.mrb[48].mxu1 %v2176_v29  ;;  %v28306_v46 = vpack.c.bf16 %v15976_v6, %v15922_v34  ;;  %v15924_v2 = vrot.slane %v15811_v27, 4  ;;  %v15927_v17 = vrot.slane %v15812_v9, 4  ;;  %v28308_v16 = vpack.c.bf16 %v32735_v40, %v32729_v58  ;;  %v15772_v9 = vld [vmem:[#allocation7 + $0xa88] sm:$0xff] }
 0xf3c   :  { %28305 = vmatpush1.bf16.msra.mxu1 %v28304_v53  ;;  %16223 = vmatprep.mubr.f32.mxu1 %v34472_v54  ;;  %v15795_v53 = vunpack.c.l.bf16 %v15760_v31  ;;  %v15815_v29 = vunpack.c.l.bf16 %v15770_v10  ;;  %v32756_v44 = vsel %vm2634_vm3, %v15932_v18, %v15933_v8  ;;  %v15939_v4 = vrot.slane %v15816_v51, 4 }
 0xf3d   :  { %25043 = vmatprep.subr.msk.mxu1 %vm2634_vm3, %v15971_v60  ;;  %28307 = vmatprep.subr.bf16.mxu0 %v28306_v46  ;;  %v32738_v23 = vsel %vm2634_vm3, %v15923_v32, %v15924_v2  ;;  %v15928_v0 = vsel %vm2634_vm3, %v15926_v42, %v15927_v17  ;;  %v32745_v13 = vsel %vm2634_vm3, %v15924_v2, %v32726_v11  ;;  %v15813_v60 = vunpack.c.l.bf16 %v15769_v41 }
 0xf3e   :  { %v15980_v61 = vsel %vm2634_vm3, %v15927_v17, %v32731_v19  ;;  %v28312_v24 = vpack.c.bf16 %v32745_v13, %v32738_v23  ;;  %v15935_v37 = vrot.slane %v15795_v53, 4  ;;  %v15936_v21 = vrot.slane %v15815_v29, 4  ;;  %v15783_v23 = vld [vmem:[#allocation7 + $0xae0] sm:$0xff] }
 0xf3f   :  { %v28310_v59 = vpack.c.bf16 %v15980_v61, %v15928_v0  ;;  %v15930_v63 = vrot.slane %v15813_v60, 4  ;;  %v32762_v27 = vrot.slane %v15835_v3, 4  ;;  %v32764_v34 = vrot.slane %v15836_v50, 4  ;;  %v15763_v3 = vld [vmem:[#allocation7 + $0xa40] sm:$0xcc] }
 0xf40   :  { %25044 = vmatpush1.msk.msra.mxu1 %vm2634_vm3, %v15969_v15  ;;  %v15833_v15 = vunpack.c.l.bf16 %v15779_v20  ;;  %v15817_v32 = vunpack.c.l.bf16 %v15771_v57  ;;  %v15837_v2 = vunpack.c.l.bf16 %v15781_v55  ;;  %v15944_v42 = vrot.slane %v15798_v7, 4  ;;  %v15784_v7 = vld [vmem:[#allocation7 + $0xae8] sm:$0xff] }
 0xf41   :  { %28311 = vmatprep.subr.bf16.mxu1 %v28310_v59  ;;  %v32767_v6 = vsel %vm2634_vm3, %v15929_v26, %v15930_v63  ;;  %v15945_v17 = vrot.slane %v15818_v12, 4  ;;  %v32773_v0 = vrot.slane %v15838_v62, 4  ;;  %v15799_v61 = vunpack.c.l.bf16 %v15762_v22 }
 0xf42   :  { %v32753_v39 = vrot.slane %v15833_v15, 4  ;;  %v15800_v38 = vunpack.c.h.bf16 %v15762_v22  ;;  %v15819_v41 = vunpack.c.l.bf16 %v15772_v9  ;;  %v15820_v20 = vunpack.c.h.bf16 %v15772_v9 }
 0xf43   :  { %v15940_v1 = vsel %vm2634_vm3, %v15938_v47, %v15939_v4  ;;  %v15988_v28 = vsel %vm2634_vm3, %v15939_v4, %v32764_v34  ;;  %v15937_v60 = vsel %vm2634_vm3, %v15935_v37, %v15936_v21  ;;  %v15839_v31 = vunpack.c.l.bf16 %v15782_v14 }
 0xf44   :  { %v32771_v46 = vsel %vm2634_vm3, %v15930_v63, %v32753_v39  ;;  %v15986_v15 = vsel %vm2634_vm3, %v15936_v21, %v32762_v27  ;;  %v15942_v26 = vrot.slane %v15817_v32, 4  ;;  %v32784_v18 = vsel %vm2634_vm3, %v15944_v42, %v15945_v17 }
 0xf45   :  { %v32786_v8 = vrot.slane %v15837_v2, 4  ;;  %v32790_v53 = vsel %vm2634_vm3, %v15945_v17, %v32773_v0  ;;  %v15947_v30 = vrot.slane %v15799_v61, 4  ;;  %v15948_v29 = vrot.slane %v15819_v41, 4 }
 0xf46   :  { %v15950_v45 = vrot.slane %v15800_v38, 4  ;;  %v15951_v57 = vrot.slane %v15820_v20, 4  ;;  %v32796_v55 = vrot.slane %v15840_v36, 4  ;;  %v28314_v63 = vpack.c.bf16 %v32760_v49, %v32756_v44  ;;  %v15774_v44 = vld [vmem:[#allocation7 + $0xa98] sm:$0xff] }
 0xf47   :  { %v32806_v51 = vrot.slane %v15839_v31, 4  ;;  %v28318_v50 = vpack.c.bf16 %v15988_v28, %v15940_v1  ;;  %v28316_v58 = vpack.c.bf16 %v32771_v46, %v32767_v6  ;;  %v28320_v40 = vpack.c.bf16 %v15986_v15, %v15937_v60 }
 0xf48   :  { %v28322_v13 = vpack.c.bf16 %v32790_v53, %v32784_v18  ;;  %v15952_v12 = vsel %vm2634_vm3, %v15950_v45, %v15951_v57  ;;  %v15996_v62 = vsel %vm2634_vm3, %v15951_v57, %v32796_v55  ;;  %v15949_v49 = vsel %vm2634_vm3, %v15947_v30, %v15948_v29 }
 0xf49   :  { %v15801_v37 = vunpack.c.l.bf16 %v15763_v3  ;;  %v15994_v21 = vsel %vm2634_vm3, %v15948_v29, %v32806_v51  ;;  %v15802_v47 = vunpack.c.h.bf16 %v15763_v3  ;;  %v15842_v4 = vunpack.c.h.bf16 %v15783_v23  ;;  %v32891_v3 = vld [vmem:[%s34413_s4] sm:$0xff]  }
 0xf4a   :  { %v15824_v14 = vunpack.c.h.bf16 %v15774_v44  ;;  %v15844_v46 = vunpack.c.h.bf16 %v15784_v7  ;;  %v15823_v35 = vunpack.c.l.bf16 %v15774_v44  ;;  %v15843_v32 = vunpack.c.l.bf16 %v15784_v7  ;;  %v32958_v44 = vld [vmem:[%s34413_s4 + $0x70] sm:$0xff]  }
 0xf4b   :  { %v28326_v2 = vpack.c.bf16 %v15996_v62, %v15952_v12  ;;  %v28328_v17 = vpack.c.bf16 %v15994_v21, %v15949_v49  ;;  %v15953_v61 = vrot.slane %v15801_v37, 4  ;;  %v15999_v41 = vrot.slane %v15842_v4, 4  ;;  %v32964_v7 = vld [vmem:[%s34413_s4 + $0x30] sm:$0xff]   ;;  %v32970_v12 = vld [vmem:[%s34413_s4 + $0x78] sm:$0xff]   ;;  %v34499_v21 = vld [vmem:[#allocation28_spill] sm:$0xff] }
 0xf4c   :  { %v16003_v1 = vrot.slane %v15844_v46, 4  ;;  %v15960_v31 = vrot.slane %v15823_v35, 4  ;;  %v16001_v15 = vrot.slane %v15843_v32, 4  ;;  %v29932_v62 = vld [vmem:[#allocation7 + $0xaf4] ss:$80 sps:$4 sm:$0xff]  }
 0xf4d   :  { %v32976_v49 = vld [vmem:[%s34413_s4 + $0x38] sm:$0xff]   ;;  %v16909_v4 = vld [vmem:[#allocation7 + $0xb98] sm:$0x33]  ;;  %v16910_v35 = vld [vmem:[#allocation7 + $0xba0] sm:$0x33] }
 0xf4e   :  { %v16002_v53 = vsel %vm2634_vm3, %v15960_v31, %v16001_v15  ;;  %v29934_v37 = vld [vmem:[#allocation7 + $0xaf0] ss:$80 sps:$4 sm:$0xff]   ;;  %v16960_v46 = vunpack.c.l.bf16 %v16909_v4  ;;  %v16911_v32 = vld [vmem:[#allocation7 + $0xba8] sm:$0x33] }
0x100e   :  { %v26660_v59 = vpop.f32.mrb[48].mxu1 }
0x100f   :  { %v26661_v33 = vpop.f32.mrb[49].mxu1 }
0x1010   :  { %v32779_v10 = vadd.f32 %v26661_v33, %v26660_v59  ;;  %v15956_v59 = vrot.slane %v15802_v47, 4  ;;  %v15963_v33 = vrot.slane %v15824_v14, 4  ;;  %v2178_v47 = vmax.f32 %v34499_v21, 0.0 }
0x1012   :  { %25042 = vmatmul.mubr.msk.f32.vlgmr.msra.gmra.mrb[18].mxu0 %vm2775_vm4, %v32779_v10  ;;  %25045 = vmatmul.mubr.msk.f32.vlgmr.msra.gmra.mrb[28].mxu1 %vm2775_vm4, %v32779_v10 }
0x1013   :  { %28309 = vmatpush1.bf16.msra.mxu0 %v28308_v16  ;;  %28313 = vmatpush1.bf16.msra.mxu1 %v28312_v24  ;;  %v15773_v16 = vld [vmem:[#allocation7 + $0xa90] sm:$0xff]  ;;  %v15943_v24 = vsel %vm2634_vm3, %v15941_v5, %v15942_v26 }
0x1014   :  { %25046 = vmatprep.subr.msk.mxu0 %vm2634_vm3, %v32719_v56  ;;  %25049 = vmatprep.subr.msk.mxu1 %vm2634_vm3, %v32731_v19  ;;  %v15990_v56 = vsel %vm2634_vm3, %v15942_v26, %v32786_v8  ;;  %v15764_v19 = vld [vmem:[#allocation7 + $0xa48] sm:$0xcc]  ;;  %v15822_v22 = vunpack.c.h.bf16 %v15773_v16  ;;  %v15821_v6 = vunpack.c.l.bf16 %v15773_v16  ;;  %v16004_v26 = vsel %vm2634_vm3, %v15963_v33, %v16003_v1  ;;  %v32922_v16 = vld [vmem:[%s34413_s4 + $0x58] sm:$0xff]  }
0x1015   :  { %16294 = vmatprep.mubr.f32.mxu0 %v34472_v54  ;;  %16365 = vmatprep.mubr.f32.mxu1 %v34472_v54  ;;  %v15804_v9 = vunpack.c.h.bf16 %v15764_v19  ;;  %v28324_v42 = vpack.c.bf16 %v15990_v56, %v15943_v24  ;;  %v32940_v24 = vld [vmem:[%s34413_s4 + $0x20] sm:$0xff]   ;;  %v32946_v56 = vld [vmem:[%s34413_s4 + $0x68] sm:$0xff]  }
0x1016   :  { %v15957_v38 = vrot.slane %v15822_v22, 4  ;;  %v15954_v20 = vrot.slane %v15821_v6, 4  ;;  %v16908_v22 = vld [vmem:[#allocation7 + $0xb90] sm:$0x33] }
0x1017   :  { %25047 = vmatpush1.msk.msra.mxu0 %vm2634_vm3, %v32721_v43  ;;  %25050 = vmatpush1.msk.msra.mxu1 %vm2634_vm3, %v32726_v11  ;;  %v15841_v43 = vunpack.c.l.bf16 %v15783_v23  ;;  %v15803_v11 = vunpack.c.l.bf16 %v15764_v19  ;;  %v15962_v36 = vrot.slane %v15804_v9, 4  ;;  %v32928_v23 = vld [vmem:[%s34413_s4 + $0x18] sm:$0xff]   ;;  %v32952_v19 = vld [vmem:[%s34413_s4 + $0x28] sm:$0xff]   ;;  %v16959_v6 = vunpack.c.h.bf16 %v16908_v22 }
0x1018   :  { %25048 = vmatmul.mubr.msk.f32.vlgmr.msra.gmra.mrb[20].mxu0 %vm2775_vm4, %v32779_v10  ;;  %25051 = vmatmul.mubr.msk.f32.vlgmr.msra.gmra.mrb[30].mxu1 %vm2775_vm4, %v32779_v10  ;;  %v16961_v9 = vunpack.c.h.bf16 %v16909_v4  ;;  %v16958_v14 = vunpack.c.l.bf16 %v16908_v22  ;;  %v16916_v22 = vld [vmem:[#allocation7 + $0xbd0] sm:$0x33] }
0x1019   :  { %28315 = vmatprep.subr.bf16.mxu0 %v28314_v63  ;;  %28319 = vmatprep.subr.bf16.mxu1 %v28318_v50  ;;  %v15997_v28 = vrot.slane %v15841_v43, 4  ;;  %v15959_v60 = vrot.slane %v15803_v11, 4  ;;  %v15964_v5 = vsel %vm2634_vm3, %v15962_v36, %v15963_v33  ;;  %v29937_v63 = vld [vmem:[#allocation7 + $0xaf8] ss:$80 sps:$4 sm:$0xff]   ;;  %v32904_v50 = vld [vmem:[%s34413_s4 + $0x8] sm:$0xff]   ;;  %v16964_v36 = vunpack.c.l.bf16 %v16911_v32 }
0x101a   :  { %28317 = vmatpush1.bf16.msra.mxu0 %v28316_v58  ;;  %28321 = vmatpush1.bf16.msra.mxu1 %v28320_v40  ;;  %v28334_v29 = vpack.c.bf16 %v16004_v26, %v15964_v5  ;;  %v32910_v58 = vld [vmem:[%s34413_s4 + $0x50] sm:$0xff]   ;;  %v29938_v43 = vld [vmem:[#allocation7 + $0xb04] ss:$80 sps:$4 sm:$0xff]  }
0x101b   :  { %25052 = vmatprep.subr.msk.mxu0 %vm2634_vm3, %v32751_v25  ;;  %25055 = vmatprep.subr.msk.mxu1 %vm2634_vm3, %v32764_v34  ;;  %v15958_v25 = vsel %vm2634_vm3, %v15956_v59, %v15957_v38  ;;  %v16000_v34 = vsel %vm2634_vm3, %v15957_v38, %v15999_v41  ;;  %v15961_v18 = vsel %vm2634_vm3, %v15959_v60, %v15960_v31  ;;  %v32916_v40 = vld [vmem:[%s34413_s4 + $0x10] sm:$0xff]   ;;  %v16963_v38 = vunpack.c.h.bf16 %v16910_v35  ;;  %v16912_v33 = vld [vmem:[#allocation7 + $0xbb0] sm:$0x33] }
0x101c   :  { %16436 = vmatprep.mubr.f32.mxu0 %v34472_v54  ;;  %16507 = vmatprep.mubr.f32.mxu1 %v34472_v54  ;;  %v28330_v30 = vpack.c.bf16 %v16000_v34, %v15958_v25  ;;  %v28336_v57 = vpack.c.bf16 %v16002_v53, %v15961_v18  ;;  %v29941_v11 = vld [vmem:[#allocation7 + $0xb0c] ss:$80 sps:$4 sm:$0xff]   ;;  %v29946_v31 = vld [vmem:[#allocation7 + $0xb10] ss:$80 sps:$4 sm:$0xff]   ;;  %v16967_v25 = vunpack.c.h.bf16 %v16912_v33  ;;  %v16966_v5 = vunpack.c.l.bf16 %v16912_v33 }
0x101d   :  { %v29947_v60 = vld [vmem:[#allocation7 + $0xb1c] ss:$80 sps:$4 sm:$0xff]   ;;  %v29952_v53 = vld [vmem:[#allocation7 + $0xb20] ss:$80 sps:$4 sm:$0xff]  }
0x101e   :  { %25053 = vmatpush1.msk.msra.mxu0 %vm2634_vm3, %v32753_v39  ;;  %25056 = vmatpush1.msk.msra.mxu1 %vm2634_vm3, %v32762_v27  ;;  %v15955_v39 = vsel %vm2634_vm3, %v15953_v61, %v15954_v20  ;;  %v15998_v27 = vsel %vm2634_vm3, %v15954_v20, %v15997_v28  ;;  %v29943_v61 = vld [vmem:[#allocation7 + $0xb08] ss:$80 sps:$4 sm:$0xff]   ;;  %v16962_v20 = vunpack.c.l.bf16 %v16910_v35 }
0x101f   :  { %25054 = vmatmul.mubr.msk.f32.vlgmr.msra.gmra.mrb[22].mxu0 %vm2775_vm4, %v32779_v10  ;;  %25057 = vmatmul.mubr.msk.f32.vlgmr.msra.gmra.mrb[32].mxu1 %vm2775_vm4, %v32779_v10  ;;  %v28332_v45 = vpack.c.bf16 %v15998_v27, %v15955_v39  ;;  %v29950_v39 = vld [vmem:[#allocation7 + $0xb24] ss:$80 sps:$4 sm:$0xff]   ;;  %v16915_v18 = vld [vmem:[#allocation7 + $0xbc8] sm:$0x33] }
0x1020   :  { %28323 = vmatprep.subr.bf16.mxu0 %v28322_v13  ;;  %28327 = vmatprep.subr.bf16.mxu1 %v28326_v2  ;;  %v32934_v13 = vld [vmem:[%s34413_s4 + $0x60] sm:$0xff]   ;;  %v16914_v27 = vld [vmem:[#allocation7 + $0xbc0] sm:$0x33] }
0x1021   :  { %28325 = vmatpush1.bf16.msra.mxu0 %v28324_v42  ;;  %28329 = vmatpush1.bf16.msra.mxu1 %v28328_v17  ;;  %v29940_v17 = vld [vmem:[#allocation7 + $0xb00] ss:$80 sps:$4 sm:$0xff]   ;;  %v29961_v35 = vld [vmem:[#allocation7 + $0xb38] ss:$80 sps:$4 sm:$0xff]  }
0x1022   :  { %25058 = vmatprep.subr.msk.mxu0 %vm2634_vm3, %v32773_v0  ;;  %25061 = vmatprep.subr.msk.mxu1 %vm2634_vm3, %v32796_v55  ;;  %v29935_v0 = vld [vmem:[#allocation7 + $0xafc] ss:$80 sps:$4 sm:$0xff]  }
0x1023   :  { %16578 = vmatprep.mubr.f32.mxu0 %v34472_v54  ;;  %16649 = vmatprep.mubr.f32.mxu1 %v34472_v54 }
0x1025   :  { %25059 = vmatpush1.msk.msra.mxu0 %vm2634_vm3, %v32786_v8  ;;  %25062 = vmatpush1.msk.msra.mxu1 %vm2634_vm3, %v32806_v51  ;;  %v34498_v8 = vld [vmem:[#allocation29_spill] sm:$0xff]  ;;  %v32885_v51 = vld [vmem:[%s34413_s4 + $0x40] sm:$0xff]  }
0x1026   :  { %25060 = vmatmul.mubr.msk.f32.vlgmr.msra.gmra.mrb[24].mxu0 %vm2775_vm4, %v32779_v10  ;;  %25063 = vmatmul.mubr.msk.f32.vlgmr.msra.gmra.mrb[34].mxu1 %vm2775_vm4, %v32779_v10  ;;  %v2179_v55 = vmax.f32 %v34498_v8, 0.0  ;;  %v16971_v8 = vunpack.c.h.bf16 %v16914_v27 }
0x1027   :  { %28331 = vmatprep.subr.bf16.mxu0 %v28330_v30  ;;  %28335 = vmatprep.subr.bf16.mxu1 %v28334_v29  ;;  %v29953_v30 = vld [vmem:[#allocation7 + $0xb2c] ss:$80 sps:$4 sm:$0xff]   ;;  %v29955_v29 = vld [vmem:[#allocation7 + $0xb28] ss:$80 sps:$4 sm:$0xff]  }
0x1028   :  { %28333 = vmatpush1.bf16.msra.mxu0 %v28332_v45  ;;  %28337 = vmatpush1.bf16.msra.mxu1 %v28336_v57  ;;  %v17841_v45 = vld [vmem:[#allocation7 + $0xb90] sm:$0xcc]  ;;  %v17851_v57 = vld [vmem:[#allocation7 + $0xbe0] sm:$0xff] }
0x1029   :  { %25064 = vmatprep.subr.msk.mxu0 %vm2634_vm3, %v15999_v41  ;;  %25067 = vmatprep.subr.msk.mxu1 %vm2634_vm3, %v16003_v1  ;;  %v16965_v41 = vunpack.c.h.bf16 %v16911_v32  ;;  %v16913_v1 = vld [vmem:[#allocation7 + $0xbb8] sm:$0x33]  ;;  %v17871_v4 = vunpack.c.l.bf16 %v17841_v45  ;;  %v16975_v32 = vunpack.c.h.bf16 %v16916_v22 }
0x102a   :  { %16720 = vmatprep.mubr.f32.mxu0 %v34472_v54  ;;  %16791 = vmatprep.mubr.f32.mxu1 %v34472_v54  ;;  %v16969_v34 = vunpack.c.h.bf16 %v16913_v1  ;;  %v16968_v26 = vunpack.c.l.bf16 %v16913_v1 }
0x102c   :  { %25065 = vmatpush1.msk.msra.mxu0 %vm2634_vm3, %v15997_v28  ;;  %25068 = vmatpush1.msk.msra.mxu1 %vm2634_vm3, %v16001_v15  ;;  %v29944_v28 = vld [vmem:[#allocation7 + $0xb14] ss:$80 sps:$4 sm:$0xff]   ;;  %v29949_v15 = vld [vmem:[#allocation7 + $0xb18] ss:$80 sps:$4 sm:$0xff]  }
0x102d   :  { %25066 = vmatmul.mubr.msk.f32.vlgmr.msra.gmra.mrb[26].mxu0 %vm2775_vm4, %v32779_v10  ;;  %25069 = vmatmul.mubr.msk.f32.vlgmr.msra.gmra.mrb[36].mxu1 %vm2775_vm4, %v32779_v10  ;;  %v32897_v10 = vld [vmem:[%s34413_s4 + $0x48] sm:$0xff]  }
0x102e   :  { %28339 = vmatprep.subr.bf16.mxu0 %v32885_v51  ;;  %16882 = vmatprep.mubr.f32.mxu0 %v2179_v55  ;;  %v16973_v55 = vunpack.c.h.bf16 %v16915_v18 }
0x102f   :  { %28341 = vmatpush3.bf16.msra.mxu0 %v32891_v3  ;;  %28375 = vmatprep.subr.bf16.mxu1 %v29935_v0  ;;  %v17861_v0 = vld [vmem:[#allocation7 + $0xc30] sm:$0xff] }
0x1030   :  { %28343 = vmatprep.subr.bf16.mxu0 %v32897_v10  ;;  %28377 = vmatpush1.bf16.msra.mxu1 %v29937_v63  ;;  %v16970_v63 = vunpack.c.l.bf16 %v16914_v27  ;;  %v17912_v21 = vunpack.c.h.bf16 %v17861_v0 }
0x1031   :  { %17176 = vmatprep.mubr.f32.mxu1 %v34472_v54  ;;  %25073 = vmatprep.subr.msk.mxu1 %vm2634_vm3, %v16961_v9  ;;  %v17911_v9 = vunpack.c.l.bf16 %v17861_v0 }
0x1033   :  { %28345 = vmatpush3.bf16.msra.mxu0 %v32904_v50 }
0x1034   :  { %28347 = vmatprep.subr.bf16.mxu0 %v32910_v58  ;;  %25074 = vmatpush1.msk.msra.mxu1 %vm2634_vm3, %v16960_v46  ;;  %v29956_v46 = vld [vmem:[#allocation7 + $0xb34] ss:$80 sps:$4 sm:$0xff]  }
0x1035   :  { %28383 = vmatprep.subr.bf16.mxu1 %v29941_v11  ;;  %v29959_v11 = vld [vmem:[#allocation7 + $0xb3c] ss:$80 sps:$4 sm:$0xff]  }
0x1037   :  { %28349 = vmatpush3.bf16.msra.mxu0 %v32916_v40 }
0x1038   :  { %28351 = vmatprep.subr.bf16.mxu0 %v32922_v16 }
0x103b   :  { %28353 = vmatpush3.bf16.msra.mxu0 %v32928_v23 }
0x103c   :  { %28355 = vmatprep.subr.bf16.mxu0 %v32934_v13 }
0x103f   :  { %28357 = vmatpush3.bf16.msra.mxu0 %v32940_v24 }
0x1040   :  { %28359 = vmatprep.subr.bf16.mxu0 %v32946_v56 }
0x1043   :  { %28361 = vmatpush3.bf16.msra.mxu0 %v32952_v19 }
0x1044   :  { %28363 = vmatprep.subr.bf16.mxu0 %v32958_v44 }
0x1047   :  { %28365 = vmatpush3.bf16.msra.mxu0 %v32964_v7 }
0x1048   :  { %28367 = vmatprep.subr.bf16.mxu0 %v32970_v12 }
0x104b   :  { %28369 = vmatpush3.bf16.msra.mxu0 %v32976_v49 }
0x104c   :  { %28371 = vmatprep.subr.bf16.mxu0 %v29932_v62  ;;  %v17872_v62 = vunpack.c.h.bf16 %v17841_v45 }
0x104e   :  { %16883 = vmatmul.mubr.f32.vlgmr.msra.gmra.mrb[40].mxu0 %v2178_v47  ;;  %v16972_v47 = vunpack.c.l.bf16 %v16915_v18 }
0x104f   :  { %28373 = vmatpush1.bf16.msra.mxu0 %v29934_v37  ;;  %17105 = vmatprep.mubr.f32.mxu0 %v34472_v54  ;;  %v17892_v37 = vunpack.c.h.bf16 %v17851_v57 }
0x1050   :  { %25070 = vmatprep.subr.msk.mxu0 %vm2634_vm3, %v16959_v6  ;;  %v17891_v6 = vunpack.c.l.bf16 %v17851_v57 }
0x1053   :  { %25071 = vmatpush1.msk.msra.mxu0 %vm2634_vm3, %v16958_v14  ;;  %v16917_v14 = vld [vmem:[#allocation7 + $0xbd8] sm:$0x33] }
0x1054   :  { %28379 = vmatprep.subr.bf16.mxu0 %v29938_v43  ;;  %v29958_v43 = vld [vmem:[#allocation7 + $0xb30] ss:$80 sps:$4 sm:$0xff]   ;;  %v16976_v33 = vunpack.c.l.bf16 %v16917_v14 }
0x1121   :  { %v26695_v2 = vpop.f32.mrb[40].mxu0 }
0x1122   :  { %v26696_v42 = vpop.f32.mrb[41].mxu0 }
0x1123   :  { %v32985_v59 = vadd.f32 %v26696_v42, %v26695_v2  ;;  %v17994_v2 = vrot.slane %v17872_v62, 4  ;;  %v17995_v42 = vrot.slane %v17892_v37, 4 }
0x1125   :  { %25072 = vmatmul.mubr.msk.f32.vlgmr.msra.gmra.mrb[18].mxu0 %vm2775_vm4, %v32985_v59  ;;  %25075 = vmatmul.mubr.msk.f32.vlgmr.msra.gmra.mrb[28].mxu1 %vm2775_vm4, %v32985_v59  ;;  %v17996_v1 = vsel %vm2634_vm3, %v17994_v2, %v17995_v42 }
0x1126   :  { %28381 = vmatpush1.bf16.msra.mxu0 %v29940_v17  ;;  %28385 = vmatpush1.bf16.msra.mxu1 %v29943_v61  ;;  %v18053_v17 = vrot.slane %v17912_v21, 4  ;;  %v16977_v61 = vunpack.c.h.bf16 %v16917_v14 }
0x1127   :  { %25076 = vmatprep.subr.msk.mxu0 %vm2634_vm3, %v16963_v38  ;;  %25079 = vmatprep.subr.msk.mxu1 %vm2634_vm3, %v16965_v41  ;;  %v17991_v38 = vrot.slane %v17871_v4, 4  ;;  %v17992_v41 = vrot.slane %v17891_v6, 4 }
0x1128   :  { %17247 = vmatprep.mubr.f32.mxu0 %v34472_v54  ;;  %17318 = vmatprep.mubr.f32.mxu1 %v34472_v54 }
0x112a   :  { %25077 = vmatpush1.msk.msra.mxu0 %vm2634_vm3, %v16962_v20  ;;  %25080 = vmatpush1.msk.msra.mxu1 %vm2634_vm3, %v16964_v36  ;;  %v18051_v20 = vrot.slane %v17911_v9, 4  ;;  %v16974_v36 = vunpack.c.l.bf16 %v16916_v22  ;;  %v34501_v9 = vld [vmem:[#allocation46_spill] sm:$0xff] }
0x112b   :  { %25078 = vmatmul.mubr.msk.f32.vlgmr.msra.gmra.mrb[20].mxu0 %vm2775_vm4, %v32985_v59  ;;  %25081 = vmatmul.mubr.msk.f32.vlgmr.msra.gmra.mrb[30].mxu1 %vm2775_vm4, %v32985_v59  ;;  %v2180_v14 = vmax.f32 %v34501_v9, 0.0  ;;  %v17855_v9 = vld [vmem:[#allocation7 + $0xc00] sm:$0xff] }
0x112c   :  { %28387 = vmatprep.subr.bf16.mxu0 %v29944_v28  ;;  %28391 = vmatprep.subr.bf16.mxu1 %v29947_v60  ;;  %v18054_v28 = vsel %vm2634_vm3, %v17995_v42, %v18053_v17  ;;  %v17993_v60 = vsel %vm2634_vm3, %v17991_v38, %v17992_v41  ;;  %v17844_v42 = vld [vmem:[#allocation7 + $0xba8] sm:$0xcc] }
0x112d   :  { %28389 = vmatpush1.bf16.msra.mxu0 %v29946_v31  ;;  %28393 = vmatpush1.bf16.msra.mxu1 %v29949_v15  ;;  %v18052_v31 = vsel %vm2634_vm3, %v17992_v41, %v18051_v20  ;;  %v28442_v15 = vpack.c.bf16 %v18054_v28, %v17996_v1 }
0x112e   :  { %25082 = vmatprep.subr.msk.mxu0 %vm2634_vm3, %v16967_v25  ;;  %25085 = vmatprep.subr.msk.mxu1 %vm2634_vm3, %v16969_v34  ;;  %v34500_v25 = vld [vmem:[#allocation47_spill] sm:$0xff] }
0x112f   :  { %17389 = vmatprep.mubr.f32.mxu0 %v34472_v54  ;;  %17460 = vmatprep.mubr.f32.mxu1 %v34472_v54  ;;  %v2181_v34 = vmax.f32 %v34500_v25, 0.0 }
0x1131   :  { %25083 = vmatpush1.msk.msra.mxu0 %vm2634_vm3, %v16966_v5  ;;  %25086 = vmatpush1.msk.msra.mxu1 %vm2634_vm3, %v16968_v26  ;;  %v28444_v5 = vpack.c.bf16 %v18052_v31, %v17993_v60  ;;  %v17852_v26 = vld [vmem:[#allocation7 + $0xbe8] sm:$0xff]  ;;  %v17878_v60 = vunpack.c.h.bf16 %v17844_v42 }
0x1132   :  { %25084 = vmatmul.mubr.msk.f32.vlgmr.msra.gmra.mrb[22].mxu0 %vm2775_vm4, %v32985_v59  ;;  %25087 = vmatmul.mubr.msk.f32.vlgmr.msra.gmra.mrb[32].mxu1 %vm2775_vm4, %v32985_v59  ;;  %v17894_v18 = vunpack.c.h.bf16 %v17852_v26 }
0x1133   :  { %28395 = vmatprep.subr.bf16.mxu0 %v29950_v39  ;;  %28399 = vmatprep.subr.bf16.mxu1 %v29953_v30  ;;  %v17862_v39 = vld [vmem:[#allocation7 + $0xc38] sm:$0xff] }
0x1134   :  { %28397 = vmatpush1.bf16.msra.mxu0 %v29952_v53  ;;  %28401 = vmatpush1.bf16.msra.mxu1 %v29955_v29  ;;  %v17914_v53 = vunpack.c.h.bf16 %v17862_v39  ;;  %v17893_v29 = vunpack.c.l.bf16 %v17852_v26  ;;  %v17913_v45 = vunpack.c.l.bf16 %v17862_v39  ;;  %v18001_v0 = vrot.slane %v17894_v18, 4 }
0x1135   :  { %25088 = vmatprep.subr.msk.mxu0 %vm2634_vm3, %v16971_v8  ;;  %25091 = vmatprep.subr.msk.mxu1 %vm2634_vm3, %v16973_v55 }
0x1136   :  { %17531 = vmatprep.mubr.f32.mxu0 %v34472_v54  ;;  %17602 = vmatprep.mubr.f32.mxu1 %v34472_v54  ;;  %v18057_v8 = vrot.slane %v17914_v53, 4  ;;  %v18055_v62 = vrot.slane %v17913_v45, 4 }
0x1138   :  { %25089 = vmatpush1.msk.msra.mxu0 %vm2634_vm3, %v16970_v63  ;;  %25092 = vmatpush1.msk.msra.mxu1 %vm2634_vm3, %v16972_v47  ;;  %v17998_v63 = vrot.slane %v17893_v29, 4  ;;  %v18058_v21 = vsel %vm2634_vm3, %v18001_v0, %v18057_v8  ;;  %v18012_v29 = vrot.slane %v17878_v60, 4 }
0x1139   :  { %25090 = vmatmul.mubr.msk.f32.vlgmr.msra.gmra.mrb[24].mxu0 %vm2775_vm4, %v32985_v59  ;;  %25093 = vmatmul.mubr.msk.f32.vlgmr.msra.gmra.mrb[34].mxu1 %vm2775_vm4, %v32985_v59 }
0x113a   :  { %28403 = vmatprep.subr.bf16.mxu0 %v29956_v46  ;;  %28407 = vmatprep.subr.bf16.mxu1 %v29959_v11  ;;  %v18056_v4 = vsel %vm2634_vm3, %v17998_v63, %v18055_v62  ;;  %v17843_v46 = vld [vmem:[#allocation7 + $0xba0] sm:$0xcc] }
0x113b   :  { %28405 = vmatpush1.bf16.msra.mxu0 %v29958_v43  ;;  %28409 = vmatpush1.bf16.msra.mxu1 %v29961_v35  ;;  %v17853_v43 = vld [vmem:[#allocation7 + $0xbf0] sm:$0xff]  ;;  %v17863_v11 = vld [vmem:[#allocation7 + $0xc40] sm:$0xff]  ;;  %v17876_v35 = vunpack.c.h.bf16 %v17843_v46 }
0x113c   :  { %25094 = vmatprep.subr.msk.mxu0 %vm2634_vm3, %v16975_v32  ;;  %25097 = vmatprep.subr.msk.mxu1 %vm2634_vm3, %v16977_v61  ;;  %v17896_v32 = vunpack.c.h.bf16 %v17853_v43  ;;  %v17916_v2 = vunpack.c.h.bf16 %v17863_v11  ;;  %v17875_v61 = vunpack.c.l.bf16 %v17843_v46  ;;  %v17895_v38 = vunpack.c.l.bf16 %v17853_v43 }
0x113d   :  { %17673 = vmatprep.mubr.f32.mxu0 %v34472_v54  ;;  %17744 = vmatprep.mubr.f32.mxu1 %v34472_v54  ;;  %v17915_v41 = vunpack.c.l.bf16 %v17863_v11  ;;  %v17900_v11 = vunpack.c.h.bf16 %v17855_v9 }
0x113e   :  { %v18007_v1 = vrot.slane %v17896_v32, 4  ;;  %v33063_v28 = vrot.slane %v17916_v2, 4  ;;  %v18003_v31 = vrot.slane %v17875_v61, 4  ;;  %v17899_v32 = vunpack.c.l.bf16 %v17855_v9  ;;  %v17846_v2 = vld [vmem:[#allocation7 + $0xbb8] sm:$0xcc] }
0x113f   :  { %25095 = vmatpush1.msk.msra.mxu0 %vm2634_vm3, %v16974_v36  ;;  %25098 = vmatpush1.msk.msra.mxu1 %vm2634_vm3, %v16976_v33  ;;  %v17877_v36 = vunpack.c.l.bf16 %v17844_v42  ;;  %v18006_v33 = vrot.slane %v17876_v35, 4  ;;  %v33065_v25 = vrot.slane %v17915_v41, 4  ;;  %v17856_v42 = vld [vmem:[#allocation7 + $0xc08] sm:$0xff]  ;;  %v17866_v61 = vld [vmem:[#allocation7 + $0xc58] sm:$0xff] }
0x1140   :  { %25096 = vmatmul.mubr.msk.f32.vlgmr.msra.gmra.mrb[26].mxu0 %vm2775_vm4, %v32985_v59  ;;  %25099 = vmatmul.mubr.msk.f32.vlgmr.msra.gmra.mrb[36].mxu1 %vm2775_vm4, %v32985_v59  ;;  %v17842_v59 = vld [vmem:[#allocation7 + $0xb98] sm:$0xcc]  ;;  %v17901_v60 = vunpack.c.l.bf16 %v17856_v42 }
0x1141   :  { %28411 = vmatprep.subr.bf16.mxu1 %v32885_v51  ;;  %17835 = vmatprep.mubr.f32.mxu1 %v2181_v34  ;;  %v17874_v27 = vunpack.c.h.bf16 %v17842_v59  ;;  %v17873_v30 = vunpack.c.l.bf16 %v17842_v59  ;;  %v18062_v59 = vsel %vm2634_vm3, %v18007_v1, %v33063_v28  ;;  %v18009_v53 = vrot.slane %v17877_v36, 4 }
0x1142   :  { %28413 = vmatpush3.bf16.msra.mxu1 %v32891_v3  ;;  %28443 = vmatprep.subr.bf16.mxu0 %v28442_v15  ;;  %v18004_v15 = vrot.slane %v17895_v38, 4 }
0x1143   :  { %28415 = vmatprep.subr.bf16.mxu1 %v32897_v10  ;;  %28445 = vmatpush1.bf16.msra.mxu0 %v28444_v5  ;;  %v18000_v57 = vrot.slane %v17874_v27, 4  ;;  %v17997_v55 = vrot.slane %v17873_v30, 4  ;;  %v18008_v5 = vsel %vm2634_vm3, %v18006_v33, %v18007_v1  ;;  %v17881_v33 = vunpack.c.l.bf16 %v17846_v2 }
0x1144   :  { %25100 = vmatprep.subr.msk.mxu0 %vm2634_vm3, %v18053_v17  ;;  %18238 = vmatprep.mubr.f32.mxu0 %v34472_v54  ;;  %v17854_v17 = vld [vmem:[#allocation7 + $0xbf8] sm:$0xff]  ;;  %v28450_v27 = vpack.c.bf16 %v18062_v59, %v18008_v5  ;;  %v17882_v1 = vunpack.c.h.bf16 %v17846_v2  ;;  %v18016_v5 = vrot.slane %v17899_v32, 4  ;;  %v17902_v59 = vunpack.c.h.bf16 %v17856_v42 }
0x1145   :  { %v18002_v37 = vsel %vm2634_vm3, %v18000_v57, %v18001_v0  ;;  %v17999_v22 = vsel %vm2634_vm3, %v17997_v55, %v17998_v63  ;;  %v17897_v34 = vunpack.c.l.bf16 %v17854_v17  ;;  %v17898_v26 = vunpack.c.h.bf16 %v17854_v17 }
0x1146   :  { %28417 = vmatpush3.bf16.msra.mxu1 %v32904_v50  ;;  %v28446_v47 = vpack.c.bf16 %v18058_v21, %v18002_v37  ;;  %v28448_v6 = vpack.c.bf16 %v18056_v4, %v17999_v22  ;;  %v33073_v0 = vsel %vm2634_vm3, %v18003_v31, %v18004_v15  ;;  %v33079_v55 = vsel %vm2634_vm3, %v18004_v15, %v33065_v25  ;;  %v17847_v31 = vld [vmem:[#allocation7 + $0xbc0] sm:$0xcc]  ;;  %v17857_v15 = vld [vmem:[#allocation7 + $0xc10] sm:$0xff] }
0x1147   :  { %28419 = vmatprep.subr.bf16.mxu1 %v32910_v58  ;;  %25101 = vmatpush1.msk.msra.mxu0 %vm2634_vm3, %v18051_v20  ;;  %v17864_v20 = vld [vmem:[#allocation7 + $0xc48] sm:$0xff]  ;;  %v18010_v30 = vrot.slane %v17897_v34, 4  ;;  %v18013_v45 = vrot.slane %v17898_v26, 4  ;;  %v28452_v37 = vpack.c.bf16 %v33079_v55, %v33073_v0  ;;  %v17867_v34 = vld [vmem:[#allocation7 + $0xc60] sm:$0xff]  ;;  %v17921_v26 = vunpack.c.l.bf16 %v17866_v61 }
0x1148   :  { %v17917_v39 = vunpack.c.l.bf16 %v17864_v20  ;;  %v17918_v18 = vunpack.c.h.bf16 %v17864_v20  ;;  %28451 = vmatprep.subr.bf16.mxu0 %v28450_v27  ;;  %v18019_v20 = vrot.slane %v17900_v11, 4  ;;  %v18025_v9 = vrot.slane %v17902_v59, 4  ;;  %v17858_v11 = vld [vmem:[#allocation7 + $0xc18] sm:$0xff] }
0x1149   :  { %v33082_v63 = vsel %vm2634_vm3, %v18009_v53, %v18010_v30  ;;  %v17884_v53 = vunpack.c.h.bf16 %v17847_v31  ;;  %v17883_v2 = vunpack.c.l.bf16 %v17847_v31  ;;  %v17903_v42 = vunpack.c.l.bf16 %v17857_v15 }
0x114a   :  { %28421 = vmatpush3.bf16.msra.mxu1 %v32916_v40  ;;  %v33070_v57 = vrot.slane %v17917_v39, 4  ;;  %v17922_v39 = vunpack.c.h.bf16 %v17866_v61  ;;  %v17905_v59 = vunpack.c.l.bf16 %v17858_v11 }
0x114b   :  { %28423 = vmatprep.subr.bf16.mxu1 %v32922_v16  ;;  %v18030_v61 = vrot.slane %v17884_v53, 4 }
0x114c   :  { %v33089_v21 = vsel %vm2634_vm3, %v18010_v30, %v33070_v57  ;;  %v17904_v30 = vunpack.c.h.bf16 %v17857_v15 }
0x114e   :  { %28425 = vmatpush3.bf16.msra.mxu1 %v32928_v23 }
0x114f   :  { %28427 = vmatprep.subr.bf16.mxu1 %v32934_v13 }
0x1152   :  { %28429 = vmatpush3.bf16.msra.mxu1 %v32940_v24 }
0x1153   :  { %28431 = vmatprep.subr.bf16.mxu1 %v32946_v56 }
0x1156   :  { %28433 = vmatpush3.bf16.msra.mxu1 %v32952_v19 }
0x1157   :  { %28435 = vmatprep.subr.bf16.mxu1 %v32958_v44 }
0x115a   :  { %28437 = vmatpush3.bf16.msra.mxu1 %v32964_v7 }
0x115b   :  { %28439 = vmatprep.subr.bf16.mxu1 %v32970_v12 }
0x115e   :  { %28441 = vmatpush3.bf16.msra.mxu1 %v32976_v49 }
0x115f   :  { %28447 = vmatprep.subr.bf16.mxu1 %v28446_v47 }
0x1161   :  { %17836 = vmatmul.mubr.f32.vlgmr.msra.gmra.mrb[50].mxu1 %v2180_v14  ;;  %v17865_v14 = vld [vmem:[#allocation7 + $0xc50] sm:$0xff] }
0x1162   :  { %28449 = vmatpush1.bf16.msra.mxu1 %v28448_v6  ;;  %18309 = vmatprep.mubr.f32.mxu1 %v34472_v54  ;;  %v17845_v6 = vld [vmem:[#allocation7 + $0xbb0] sm:$0xcc]  ;;  %v17920_v35 = vunpack.c.h.bf16 %v17865_v14  ;;  %v17919_v17 = vunpack.c.l.bf16 %v17865_v14  ;;  %v33106_v14 = vrot.slane %v17921_v26, 4  ;;  %v17906_v26 = vunpack.c.h.bf16 %v17858_v11 }
0x1163   :  { %25103 = vmatprep.subr.msk.mxu1 %vm2634_vm3, %v18057_v8  ;;  %v33075_v8 = vrot.slane %v17918_v18, 4  ;;  %v17879_v46 = vunpack.c.l.bf16 %v17845_v6  ;;  %v17880_v43 = vunpack.c.h.bf16 %v17845_v6  ;;  %v17848_v6 = vld [vmem:[#allocation7 + $0xbc8] sm:$0xcc] }
0x1164   :  { %v33095_v36 = vrot.slane %v17920_v35, 4  ;;  %v33097_v27 = vrot.slane %v17919_v17, 4  ;;  %v17868_v35 = vld [vmem:[#allocation7 + $0xc68] sm:$0xff]  ;;  %v17923_v17 = vunpack.c.l.bf16 %v17867_v34 }
0x1165   :  { %v18066_v47 = vsel %vm2634_vm3, %v18013_v45, %v33075_v8  ;;  %v18015_v38 = vrot.slane %v17879_v46, 4  ;;  %v18018_v41 = vrot.slane %v17880_v43, 4  ;;  %v33108_v46 = vrot.slane %v17922_v39, 4 }
0x1166   :  { %25104 = vmatpush1.msk.msra.mxu1 %vm2634_vm3, %v18055_v62  ;;  %v18014_v62 = vsel %vm2634_vm3, %v18012_v29, %v18013_v45  ;;  %v17924_v29 = vunpack.c.h.bf16 %v17867_v34  ;;  %v33104_v45 = vsel %vm2634_vm3, %v18019_v20, %v33095_v36  ;;  %v33115_v32 = vsel %vm2634_vm3, %v18016_v5, %v33097_v27 }
0x1167   :  { %v28454_v4 = vpack.c.bf16 %v18066_v47, %v18014_v62  ;;  %v33100_v18 = vsel %vm2634_vm3, %v18018_v41, %v18019_v20  ;;  %v18021_v62 = vrot.slane %v17881_v33, 4  ;;  %v18022_v47 = vrot.slane %v17901_v60, 4 }
0x1168   :  { %v33111_v43 = vsel %vm2634_vm3, %v18015_v38, %v18016_v5  ;;  %v18031_v41 = vrot.slane %v17904_v30, 4  ;;  %v33117_v20 = vrot.slane %v17924_v29, 4  ;;  %v17885_v33 = vunpack.c.l.bf16 %v17848_v6 }
0x1169   :  { %28455 = vmatprep.subr.bf16.mxu1 %v28454_v4  ;;  %v18024_v4 = vrot.slane %v17882_v1, 4  ;;  %v17886_v60 = vunpack.c.h.bf16 %v17848_v6  ;;  %v17926_v38 = vunpack.c.h.bf16 %v17868_v35  ;;  %v18074_v5 = vsel %vm2634_vm3, %v18025_v9, %v33108_v46 }
0x116a   :  { %v18023_v31 = vsel %vm2634_vm3, %v18021_v62, %v18022_v47  ;;  %v17925_v15 = vunpack.c.l.bf16 %v17868_v35  ;;  %v18072_v53 = vsel %vm2634_vm3, %v18022_v47, %v33106_v14  ;;  %v18027_v30 = vrot.slane %v17883_v2, 4 }
0x116b   :  { %v18026_v22 = vsel %vm2634_vm3, %v18024_v4, %v18025_v9  ;;  %v18028_v29 = vrot.slane %v17903_v42, 4  ;;  %v33128_v6 = vsel %vm2634_vm3, %v18030_v61, %v18031_v41  ;;  %v33130_v11 = vrot.slane %v17923_v17, 4 }
0x116c   :  { %v33134_v4 = vsel %vm2634_vm3, %v18031_v41, %v33117_v20  ;;  %v18033_v9 = vrot.slane %v17885_v33, 4  ;;  %v18034_v62 = vrot.slane %v17905_v59, 4  ;;  %v18036_v47 = vrot.slane %v17886_v60, 4  ;;  %v17849_v41 = vld [vmem:[#allocation7 + $0xbd0] sm:$0xcc] }
0x116d   :  { %v18037_v35 = vrot.slane %v17906_v26, 4  ;;  %v33140_v2 = vrot.slane %v17926_v38, 4  ;;  %v34502_v42 = vpack.c.bf16 %v33089_v21, %v33082_v63  ;;  %v28458_v17 = vpack.c.bf16 %v33104_v45, %v33100_v18  ;;  %v17869_v63 = vld [vmem:[#allocation7 + $0xc70] sm:$0xff]  ;;  %v17870_v45 = vld [vmem:[#allocation7 + $0xc78] sm:$0xff] }
0x116e   :  { %v33150_v61 = vrot.slane %v17925_v15, 4  ;;  %v28462_v33 = vpack.c.bf16 %v18074_v5, %v18026_v22  ;;  %v28460_v0 = vpack.c.bf16 %v33115_v32, %v33111_v43  ;;  %v28464_v55 = vpack.c.bf16 %v18072_v53, %v18023_v31  ;;  %v17860_v22 = vld [vmem:[#allocation7 + $0xc28] sm:$0xff] }
0x116f   :  { %v28466_v21 = vpack.c.bf16 %v33134_v4, %v33128_v6  ;;  %v18029_v18 = vsel %vm2634_vm3, %v18027_v30, %v18028_v29  ;;  %v18038_v43 = vsel %vm2634_vm3, %v18036_v47, %v18037_v35  ;;  %v18082_v32 = vsel %vm2634_vm3, %v18037_v35, %v33140_v2 }
0x1170   :  { %v17887_v60 = vunpack.c.l.bf16 %v17849_v41  ;;  %v18080_v59 = vsel %vm2634_vm3, %v18034_v62, %v33150_v61  ;;  %v17888_v26 = vunpack.c.h.bf16 %v17849_v41  ;;  %v17910_v15 = vunpack.c.h.bf16 %v17860_v22 }
0x1171   :  { %v17930_v53 = vunpack.c.h.bf16 %v17870_v45  ;;  %v17909_v30 = vunpack.c.l.bf16 %v17860_v22  ;;  %v28470_v6 = vpack.c.bf16 %v18082_v32, %v18038_v43  ;;  %v30106_v32 = vld [vmem:[#allocation5 + $0x20] sm:$0xff] }
0x1172   :  { %v18042_v47 = vrot.slane %v17888_v26, 4  ;;  %v29967_v26 = vld [vmem:[#allocation7 + $0xc88] ss:$80 sps:$4 sm:$0xff]  }
0x1234   :  { %v26730_v1 = vpop.f32.mrb[50].mxu1 }
0x1235   :  { %v26731_v39 = vpop.f32.mrb[51].mxu1 }
0x1236   :  { %v33123_v34 = vadd.f32 %v26731_v39, %v26730_v1  ;;  %v18035_v1 = vsel %vm2634_vm3, %v18033_v9, %v18034_v62  ;;  %v17928_v39 = vunpack.c.h.bf16 %v17869_v63  ;;  %v18039_v62 = vrot.slane %v17887_v60, 4 }
0x1237   :  { %v28472_v9 = vpack.c.bf16 %v18080_v59, %v18035_v1  ;;  %v540_v1 = vrot.slane %v30106_v32, %v30606_v52 }
0x1238   :  { %25102 = vmatmul.mubr.msk.f32.vlgmr.msra.gmra.mrb[18].mxu0 %vm2775_vm4, %v33123_v34  ;;  %25105 = vmatmul.mubr.msk.f32.vlgmr.msra.gmra.mrb[28].mxu1 %vm2775_vm4, %v33123_v34 }
0x1239   :  { %28453 = vmatpush1.bf16.msra.mxu0 %v28452_v37  ;;  %28457 = vmatpush1.bf16.msra.mxu1 %v34502_v42  ;;  %v17859_v37 = vld [vmem:[#allocation7 + $0xc20] sm:$0xff]  ;;  %v18085_v42 = vrot.slane %v17928_v39, 4 }
0x123a   :  { %25106 = vmatprep.subr.msk.mxu0 %vm2634_vm3, %v33063_v28  ;;  %25109 = vmatprep.subr.msk.mxu1 %vm2634_vm3, %v33075_v8  ;;  %v18076_v28 = vsel %vm2634_vm3, %v18028_v29, %v33130_v11  ;;  %v17850_v8 = vld [vmem:[#allocation7 + $0xbd8] sm:$0xcc]  ;;  %v17908_v38 = vunpack.c.h.bf16 %v17859_v37  ;;  %v17907_v5 = vunpack.c.l.bf16 %v17859_v37  ;;  %v17929_v29 = vunpack.c.l.bf16 %v17870_v45  ;;  %v29970_v39 = vld [vmem:[#allocation7 + $0xc90] ss:$80 sps:$4 sm:$0xff]  }
0x123b   :  { %18380 = vmatprep.mubr.f32.mxu0 %v34472_v54  ;;  %18451 = vmatprep.mubr.f32.mxu1 %v34472_v54  ;;  %v17890_v31 = vunpack.c.h.bf16 %v17850_v8  ;;  %v28468_v4 = vpack.c.bf16 %v18076_v28, %v18029_v18 }
0x123c   :  { %v18043_v35 = vrot.slane %v17908_v38, 4  ;;  %v18087_v18 = vrot.slane %v17929_v29, 4  ;;  %v18999_v29 = vld [vmem:[#allocation7 + $0xd48] sm:$0x33] }
0x123d   :  { %25107 = vmatpush1.msk.msra.mxu0 %vm2634_vm3, %v33065_v25  ;;  %25110 = vmatpush1.msk.msra.mxu1 %vm2634_vm3, %v33070_v57  ;;  %v17927_v25 = vunpack.c.l.bf16 %v17869_v63  ;;  %v17889_v57 = vunpack.c.l.bf16 %v17850_v8  ;;  %v18048_v41 = vrot.slane %v17890_v31, 4  ;;  %v18046_v63 = vrot.slane %v17909_v30, 4  ;;  %v18998_v30 = vld [vmem:[#allocation7 + $0xd40] sm:$0x33] }
0x123e   :  { %25108 = vmatmul.mubr.msk.f32.vlgmr.msra.gmra.mrb[20].mxu0 %vm2775_vm4, %v33123_v34  ;;  %25111 = vmatmul.mubr.msk.f32.vlgmr.msra.gmra.mrb[30].mxu1 %vm2775_vm4, %v33123_v34 }
0x123f   :  { %28459 = vmatprep.subr.bf16.mxu0 %v28458_v17  ;;  %28463 = vmatprep.subr.bf16.mxu1 %v28462_v33  ;;  %v18040_v17 = vrot.slane %v17907_v5, 4  ;;  %v18049_v33 = vrot.slane %v17910_v15, 4  ;;  %v18045_v37 = vrot.slane %v17889_v57, 4  ;;  %v18088_v45 = vsel %vm2634_vm3, %v18046_v63, %v18087_v18  ;;  %v29973_v5 = vld [vmem:[#allocation7 + $0xc98] ss:$80 sps:$4 sm:$0xff]  }
0x1240   :  { %28461 = vmatpush1.bf16.msra.mxu0 %v28460_v0  ;;  %28465 = vmatpush1.bf16.msra.mxu1 %v28464_v55  ;;  %v18089_v0 = vrot.slane %v17930_v53, 4  ;;  %v18083_v55 = vrot.slane %v17927_v25, 4 }
0x1241   :  { %25112 = vmatprep.subr.msk.mxu0 %vm2634_vm3, %v33095_v36  ;;  %25115 = vmatprep.subr.msk.mxu1 %vm2634_vm3, %v33108_v46  ;;  %v18044_v36 = vsel %vm2634_vm3, %v18042_v47, %v18043_v35  ;;  %v18086_v46 = vsel %vm2634_vm3, %v18043_v35, %v18085_v42  ;;  %v18050_v28 = vsel %vm2634_vm3, %v18048_v41, %v18049_v33  ;;  %v19053_v47 = vunpack.c.h.bf16 %v18998_v30  ;;  %v29980_v41 = vld [vmem:[#allocation7 + $0xcb4] ss:$80 sps:$4 sm:$0xff]  }
0x1242   :  { %18522 = vmatprep.mubr.f32.mxu0 %v34472_v54  ;;  %18593 = vmatprep.mubr.f32.mxu1 %v34472_v54  ;;  %v18090_v8 = vsel %vm2634_vm3, %v18049_v33, %v18089_v0  ;;  %v18047_v22 = vsel %vm2634_vm3, %v18045_v37, %v18046_v63  ;;  %v19055_v35 = vunpack.c.h.bf16 %v18999_v29  ;;  %v19000_v33 = vld [vmem:[#allocation7 + $0xd50] sm:$0x33]  ;;  %v29983_v37 = vld [vmem:[#allocation7 + $0xcbc] ss:$80 sps:$4 sm:$0xff]   ;;  %v29985_v63 = vld [vmem:[#allocation7 + $0xcb8] ss:$80 sps:$4 sm:$0xff]  }
0x1243   :  { %v28478_v43 = vpack.c.bf16 %v18090_v8, %v18050_v28  ;;  %v28480_v59 = vpack.c.bf16 %v18088_v45, %v18047_v22  ;;  %v19057_v28 = vunpack.c.h.bf16 %v19000_v33 }
0x1244   :  { %25113 = vmatpush1.msk.msra.mxu0 %vm2634_vm3, %v33097_v27  ;;  %25116 = vmatpush1.msk.msra.mxu1 %vm2634_vm3, %v33106_v14  ;;  %v18041_v27 = vsel %vm2634_vm3, %v18039_v62, %v18040_v17  ;;  %v18084_v14 = vsel %vm2634_vm3, %v18040_v17, %v18083_v55  ;;  %v29979_v62 = vld [vmem:[#allocation7 + $0xca8] ss:$80 sps:$4 sm:$0xff]   ;;  %v19054_v17 = vunpack.c.l.bf16 %v18999_v29 }
0x1245   :  { %25114 = vmatmul.mubr.msk.f32.vlgmr.msra.gmra.mrb[22].mxu0 %vm2775_vm4, %v33123_v34  ;;  %25117 = vmatmul.mubr.msk.f32.vlgmr.msra.gmra.mrb[32].mxu1 %vm2775_vm4, %v33123_v34  ;;  %v28476_v60 = vpack.c.bf16 %v18084_v14, %v18041_v27  ;;  %v19056_v27 = vunpack.c.l.bf16 %v19000_v33  ;;  %v19948_v29 = vld [vmem:[#allocation7 + $0xdc8] sm:$0xff] }
0x1246   :  { %28467 = vmatprep.subr.bf16.mxu0 %v28466_v21  ;;  %28471 = vmatprep.subr.bf16.mxu1 %v28470_v6  ;;  %v28474_v21 = vpack.c.bf16 %v18086_v46, %v18044_v36  ;;  %v29974_v6 = vld [vmem:[#allocation7 + $0xca4] ss:$80 sps:$4 sm:$0xff]   ;;  %v19999_v33 = vunpack.c.l.bf16 %v19948_v29 }
0x1247   :  { %28469 = vmatpush1.bf16.msra.mxu0 %v28468_v4  ;;  %28473 = vmatpush1.bf16.msra.mxu1 %v28472_v9  ;;  %v29977_v4 = vld [vmem:[#allocation7 + $0xcac] ss:$80 sps:$4 sm:$0xff]   ;;  %v29976_v9 = vld [vmem:[#allocation7 + $0xca0] ss:$80 sps:$4 sm:$0xff]  }
0x1248   :  { %25118 = vmatprep.subr.msk.mxu0 %vm2634_vm3, %v33117_v20  ;;  %25121 = vmatprep.subr.msk.mxu1 %vm2634_vm3, %v33140_v2  ;;  %v34503_v20 = vld [vmem:[#allocation34_spill] sm:$0xff]  ;;  %v19937_v36 = vld [vmem:[#allocation7 + $0xd70] sm:$0xff]  ;;  %v19947_v46 = vld [vmem:[#allocation7 + $0xdc0] sm:$0xff] }
0x1249   :  { %18664 = vmatprep.mubr.f32.mxu0 %v34472_v54  ;;  %18735 = vmatprep.mubr.f32.mxu1 %v34472_v54  ;;  %v1935_v2 = vadd.f32 %v34503_v20, %v540_v1  ;;  %v19978_v22 = vunpack.c.h.bf16 %v19937_v36  ;;  %v19998_v45 = vunpack.c.h.bf16 %v19947_v46  ;;  %v19977_v1 = vunpack.c.l.bf16 %v19937_v36  ;;  %v29986_v20 = vld [vmem:[#allocation7 + $0xcc4] ss:$80 sps:$4 sm:$0xff]  }
0x124b   :  { %25119 = vmatpush1.msk.msra.mxu0 %vm2634_vm3, %v33130_v11  ;;  %25122 = vmatpush1.msk.msra.mxu1 %vm2634_vm3, %v33150_v61  ;;  %v29965_v11 = vld [vmem:[#allocation7 + $0xc8c] ss:$80 sps:$4 sm:$0xff]   ;;  %v2183_v61 = vmax.f32 %v1935_v2, 0.0  ;;  %v29988_v2 = vld [vmem:[#allocation7 + $0xcc0] ss:$80 sps:$4 sm:$0xff]  }
0x124c   :  { %25120 = vmatmul.mubr.msk.f32.vlgmr.msra.gmra.mrb[24].mxu0 %vm2775_vm4, %v33123_v34  ;;  %25123 = vmatmul.mubr.msk.f32.vlgmr.msra.gmra.mrb[34].mxu1 %vm2775_vm4, %v33123_v34 }
0x124d   :  { %28475 = vmatprep.subr.bf16.mxu0 %v28474_v21  ;;  %28479 = vmatprep.subr.bf16.mxu1 %v28478_v43  ;;  %v19002_v43 = vld [vmem:[#allocation7 + $0xd60] sm:$0x33] }
0x124e   :  { %28477 = vmatpush1.bf16.msra.mxu0 %v28476_v60  ;;  %28481 = vmatpush1.bf16.msra.mxu1 %v28480_v59  ;;  %v19997_v60 = vunpack.c.l.bf16 %v19947_v46  ;;  %v19003_v59 = vld [vmem:[#allocation7 + $0xd68] sm:$0x33] }
0x124f   :  { %25124 = vmatprep.subr.msk.mxu0 %vm2634_vm3, %v18085_v42  ;;  %25127 = vmatprep.subr.msk.mxu1 %vm2634_vm3, %v18089_v0  ;;  %v19052_v42 = vunpack.c.l.bf16 %v18998_v30  ;;  %v19001_v0 = vld [vmem:[#allocation7 + $0xd58] sm:$0x33] }
0x1250   :  { %18806 = vmatprep.mubr.f32.mxu0 %v34472_v54  ;;  %18877 = vmatprep.mubr.f32.mxu1 %v34472_v54  ;;  %v19059_v8 = vunpack.c.h.bf16 %v19001_v0  ;;  %v19058_v21 = vunpack.c.l.bf16 %v19001_v0  ;;  %v19938_v30 = vld [vmem:[#allocation7 + $0xd78] sm:$0xff] }
0x1252   :  { %25125 = vmatpush1.msk.msra.mxu0 %vm2634_vm3, %v18083_v55  ;;  %25128 = vmatpush1.msk.msra.mxu1 %vm2634_vm3, %v18087_v18  ;;  %v29982_v55 = vld [vmem:[#allocation7 + $0xcb0] ss:$80 sps:$4 sm:$0xff]  }
0x1253   :  { %25126 = vmatmul.mubr.msk.f32.vlgmr.msra.gmra.mrb[26].mxu0 %vm2775_vm4, %v33123_v34  ;;  %25129 = vmatmul.mubr.msk.f32.vlgmr.msra.gmra.mrb[36].mxu1 %vm2775_vm4, %v33123_v34  ;;  %v19927_v18 = vld [vmem:[#allocation7 + $0xd20] sm:$0xcc] }
0x1254   :  { %28483 = vmatprep.subr.bf16.mxu0 %v32885_v51  ;;  %18968 = vmatprep.mubr.f32.mxu0 %v2183_v61  ;;  %v536_v51 = vrot.slane %v30106_v32, %v30596_v48  ;;  %v19958_v14 = vunpack.c.h.bf16 %v19927_v18  ;;  %v19957_v32 = vunpack.c.l.bf16 %v19927_v18  ;;  %v29991_v61 = vld [vmem:[#allocation7 + $0xcc8] ss:$80 sps:$4 sm:$0xff]  }
0x1255   :  { %28485 = vmatpush3.bf16.msra.mxu0 %v32891_v3  ;;  %28519 = vmatprep.subr.bf16.mxu1 %v29965_v11  ;;  %v34504_v3 = vld [vmem:[#allocation31_spill] sm:$0xff]  ;;  %v29989_v11 = vld [vmem:[#allocation7 + $0xccc] ss:$80 sps:$4 sm:$0xff]  }
0x1256   :  { %28487 = vmatprep.subr.bf16.mxu0 %v32897_v10  ;;  %28521 = vmatpush1.bf16.msra.mxu1 %v29967_v26  ;;  %v1933_v10 = vadd.f32 %v34504_v3, %v536_v51  ;;  %v19061_v26 = vunpack.c.h.bf16 %v19002_v43  ;;  %v20080_v51 = vrot.slane %v19958_v14, 4  ;;  %v20081_v3 = vrot.slane %v19978_v22, 4  ;;  %v33380_v18 = vld [vmem:[%s34413_s4 + $0x70] sm:$0xff]   ;;  %v33394_v22 = vld [vmem:[%s34413_s4 + $0x78] sm:$0xff]  }
0x1257   :  { %19262 = vmatprep.mubr.f32.mxu1 %v34472_v54  ;;  %v33388_v14 = vld [vmem:[%s34413_s4 + $0x30] sm:$0xff]  }
0x1259   :  { %28489 = vmatpush3.bf16.msra.mxu0 %v32904_v50  ;;  %v29962_v50 = vld [vmem:[#allocation7 + $0xc84] ss:$80 sps:$4 sm:$0xff]  }
0x125a   :  { %28491 = vmatprep.subr.bf16.mxu0 %v32910_v58  ;;  %v29964_v58 = vld [vmem:[#allocation7 + $0xc80] ss:$80 sps:$4 sm:$0xff]  }
0x125d   :  { %28493 = vmatpush3.bf16.msra.mxu0 %v32916_v40  ;;  %v2182_v40 = vmax.f32 %v1933_v10, 0.0  ;;  %v20139_v10 = vrot.slane %v19998_v45, 4 }
0x125e   :  { %28495 = vmatprep.subr.bf16.mxu0 %v32922_v16  ;;  %v18994_v16 = vld [vmem:[#allocation7 + $0xd20] sm:$0x33] }
0x1261   :  { %28497 = vmatpush3.bf16.msra.mxu0 %v32928_v23  ;;  %v18995_v23 = vld [vmem:[#allocation7 + $0xd28] sm:$0x33] }
0x1262   :  { %28499 = vmatprep.subr.bf16.mxu0 %v32934_v13  ;;  %v19045_v13 = vunpack.c.h.bf16 %v18994_v16 }
0x1265   :  { %28501 = vmatpush3.bf16.msra.mxu0 %v32940_v24  ;;  %v19047_v24 = vunpack.c.h.bf16 %v18995_v23 }
0x1266   :  { %28503 = vmatprep.subr.bf16.mxu0 %v32946_v56  ;;  %v19044_v56 = vunpack.c.l.bf16 %v18994_v16  ;;  %v20137_v16 = vrot.slane %v19997_v60, 4  ;;  %v34506_v60 = vld [vmem:[#allocation48_spill] sm:$0xff] }
0x1267   :  { %25133 = vmatprep.subr.msk.mxu1 %vm2634_vm3, %v19047_v24  ;;  %v20082_v24 = vsel %vm2634_vm3, %v20080_v51, %v20081_v3 }
0x1269   :  { %28505 = vmatpush3.bf16.msra.mxu0 %v32952_v19  ;;  %v19046_v19 = vunpack.c.l.bf16 %v18995_v23  ;;  %v19060_v23 = vunpack.c.l.bf16 %v19002_v43 }
0x126a   :  { %28507 = vmatprep.subr.bf16.mxu0 %v32958_v44  ;;  %v29968_v44 = vld [vmem:[#allocation7 + $0xc94] ss:$80 sps:$4 sm:$0xff]  }
0x126b   :  { %25134 = vmatpush1.msk.msra.mxu1 %vm2634_vm3, %v19046_v19 }
0x126d   :  { %28509 = vmatpush3.bf16.msra.mxu0 %v32964_v7  ;;  %v29971_v7 = vld [vmem:[#allocation7 + $0xc9c] ss:$80 sps:$4 sm:$0xff]  }
0x126e   :  { %28511 = vmatprep.subr.bf16.mxu0 %v32970_v12  ;;  %28527 = vmatprep.subr.bf16.mxu1 %v29971_v7  ;;  %v18996_v12 = vld [vmem:[#allocation7 + $0xd30] sm:$0x33] }
0x126f   :  { %v19049_v15 = vunpack.c.h.bf16 %v18996_v12  ;;  %v19048_v25 = vunpack.c.l.bf16 %v18996_v12  ;;  %v34505_v12 = vld [vmem:[#allocation49_spill] sm:$0xff] }
0x1271   :  { %28513 = vmatpush3.bf16.msra.mxu0 %v32976_v49  ;;  %v18997_v49 = vld [vmem:[#allocation7 + $0xd38] sm:$0x33] }
0x1272   :  { %28515 = vmatprep.subr.bf16.mxu0 %v29962_v50  ;;  %v19051_v53 = vunpack.c.h.bf16 %v18997_v49  ;;  %v19050_v57 = vunpack.c.l.bf16 %v18997_v49  ;;  %v19063_v50 = vunpack.c.h.bf16 %v19003_v59  ;;  %v2185_v49 = vmax.f32 %v34505_v12, 0.0 }
0x1274   :  { %18969 = vmatmul.mubr.f32.vlgmr.msra.gmra.mrb[42].mxu0 %v2182_v40  ;;  %v20078_v40 = vrot.slane %v19977_v1, 4 }
0x1275   :  { %28517 = vmatpush1.bf16.msra.mxu0 %v29964_v58  ;;  %19191 = vmatprep.mubr.f32.mxu0 %v34472_v54  ;;  %v20077_v58 = vrot.slane %v19957_v32, 4  ;;  %v33402_v32 = vld [vmem:[%s34413_s4 + $0x38] sm:$0xff]  }
0x1276   :  { %25130 = vmatprep.subr.msk.mxu0 %vm2634_vm3, %v19045_v13  ;;  %v19062_v13 = vunpack.c.l.bf16 %v19003_v59  ;;  %v2184_v59 = vmax.f32 %v34506_v60, 0.0  ;;  %v19941_v60 = vld [vmem:[#allocation7 + $0xd90] sm:$0xff] }
0x1277   :  { %v20079_v19 = vsel %vm2634_vm3, %v20077_v58, %v20078_v40 }
0x1279   :  { %25131 = vmatpush1.msk.msra.mxu0 %vm2634_vm3, %v19044_v56  ;;  %v20140_v56 = vsel %vm2634_vm3, %v20081_v3, %v20139_v10  ;;  %v19930_v3 = vld [vmem:[#allocation7 + $0xd38] sm:$0xcc] }
0x127a   :  { %28523 = vmatprep.subr.bf16.mxu0 %v29968_v44  ;;  %v20138_v44 = vsel %vm2634_vm3, %v20078_v40, %v20137_v16  ;;  %v28586_v7 = vpack.c.bf16 %v20140_v56, %v20082_v24 }
0x1347   :  { %v26765_v34 = vpop.f32.mrb[42].mxu0 }
0x1348   :  { %v26766_v38 = vpop.f32.mrb[43].mxu0 }
0x1349   :  { %v33251_v31 = vadd.f32 %v26766_v38, %v26765_v34  ;;  %v28588_v34 = vpack.c.bf16 %v20138_v44, %v20079_v19  ;;  %v33305_v38 = vld [vmem:[%s34413_s4 + $0x40] sm:$0xff]   ;;  %v19964_v19 = vunpack.c.h.bf16 %v19930_v3 }
0x134b   :  { %25132 = vmatmul.mubr.msk.f32.vlgmr.msra.gmra.mrb[18].mxu0 %vm2775_vm4, %v33251_v31  ;;  %25135 = vmatmul.mubr.msk.f32.vlgmr.msra.gmra.mrb[28].mxu1 %vm2775_vm4, %v33251_v31 }
0x134c   :  { %28525 = vmatpush1.bf16.msra.mxu0 %v29970_v39  ;;  %28529 = vmatpush1.bf16.msra.mxu1 %v29973_v5  ;;  %v33311_v39 = vld [vmem:[%s34413_s4] sm:$0xff]   ;;  %v33317_v5 = vld [vmem:[%s34413_s4 + $0x48] sm:$0xff]  }
0x134d   :  { %25136 = vmatprep.subr.msk.mxu0 %vm2634_vm3, %v19049_v15  ;;  %25139 = vmatprep.subr.msk.mxu1 %vm2634_vm3, %v19051_v53  ;;  %v33331_v15 = vld [vmem:[%s34413_s4 + $0x50] sm:$0xff]  }
0x134e   :  { %19333 = vmatprep.mubr.f32.mxu0 %v34472_v54  ;;  %19404 = vmatprep.mubr.f32.mxu1 %v34472_v54  ;;  %v33338_v53 = vld [vmem:[%s34413_s4 + $0x10] sm:$0xff]  }
0x1350   :  { %25137 = vmatpush1.msk.msra.mxu0 %vm2634_vm3, %v19048_v25  ;;  %25140 = vmatpush1.msk.msra.mxu1 %vm2634_vm3, %v19050_v57  ;;  %v33344_v25 = vld [vmem:[%s34413_s4 + $0x58] sm:$0xff]   ;;  %v19928_v57 = vld [vmem:[#allocation7 + $0xd28] sm:$0xcc] }
0x1351   :  { %25138 = vmatmul.mubr.msk.f32.vlgmr.msra.gmra.mrb[20].mxu0 %vm2775_vm4, %v33251_v31  ;;  %25141 = vmatmul.mubr.msk.f32.vlgmr.msra.gmra.mrb[30].mxu1 %vm2775_vm4, %v33251_v31 }
0x1352   :  { %28531 = vmatprep.subr.bf16.mxu0 %v29974_v6  ;;  %28535 = vmatprep.subr.bf16.mxu1 %v29977_v4  ;;  %v33350_v6 = vld [vmem:[%s34413_s4 + $0x18] sm:$0xff]   ;;  %v33356_v4 = vld [vmem:[%s34413_s4 + $0x60] sm:$0xff]  }
0x1353   :  { %28533 = vmatpush1.bf16.msra.mxu0 %v29976_v9  ;;  %28537 = vmatpush1.bf16.msra.mxu1 %v29979_v62  ;;  %v19960_v9 = vunpack.c.h.bf16 %v19928_v57  ;;  %v19980_v62 = vunpack.c.h.bf16 %v19938_v30 }
0x1354   :  { %25142 = vmatprep.subr.msk.mxu0 %vm2634_vm3, %v19053_v47  ;;  %25145 = vmatprep.subr.msk.mxu1 %vm2634_vm3, %v19055_v35  ;;  %v20000_v47 = vunpack.c.h.bf16 %v19948_v29  ;;  %v33362_v35 = vld [vmem:[%s34413_s4 + $0x20] sm:$0xff]  }
0x1355   :  { %19475 = vmatprep.mubr.f32.mxu0 %v34472_v54  ;;  %19546 = vmatprep.mubr.f32.mxu1 %v34472_v54  ;;  %v20086_v0 = vrot.slane %v19960_v9, 4 }
0x1357   :  { %25143 = vmatpush1.msk.msra.mxu0 %vm2634_vm3, %v19052_v42  ;;  %25146 = vmatpush1.msk.msra.mxu1 %vm2634_vm3, %v19054_v17  ;;  %v33368_v42 = vld [vmem:[%s34413_s4 + $0x68] sm:$0xff]   ;;  %v19959_v17 = vunpack.c.l.bf16 %v19928_v57 }
0x1358   :  { %25144 = vmatmul.mubr.msk.f32.vlgmr.msra.gmra.mrb[22].mxu0 %vm2775_vm4, %v33251_v31  ;;  %25147 = vmatmul.mubr.msk.f32.vlgmr.msra.gmra.mrb[32].mxu1 %vm2775_vm4, %v33251_v31 }
0x1359   :  { %28539 = vmatprep.subr.bf16.mxu0 %v29980_v41  ;;  %28543 = vmatprep.subr.bf16.mxu1 %v29983_v37  ;;  %v19979_v41 = vunpack.c.l.bf16 %v19938_v30  ;;  %v20143_v37 = vrot.slane %v20000_v47, 4  ;;  %v20083_v36 = vrot.slane %v19959_v17, 4 }
0x135a   :  { %28541 = vmatpush1.bf16.msra.mxu0 %v29982_v55  ;;  %28545 = vmatpush1.bf16.msra.mxu1 %v29985_v63  ;;  %v20087_v55 = vrot.slane %v19980_v62, 4  ;;  %v33374_v63 = vld [vmem:[%s34413_s4 + $0x28] sm:$0xff]  }
0x135b   :  { %25148 = vmatprep.subr.msk.mxu0 %vm2634_vm3, %v19057_v28  ;;  %25151 = vmatprep.subr.msk.mxu1 %vm2634_vm3, %v19059_v8  ;;  %v20084_v46 = vrot.slane %v19979_v41, 4  ;;  %v20141_v28 = vrot.slane %v19999_v33, 4  ;;  %v20098_v41 = vrot.slane %v19964_v19, 4 }
0x135c   :  { %19617 = vmatprep.mubr.f32.mxu0 %v34472_v54  ;;  %19688 = vmatprep.mubr.f32.mxu1 %v34472_v54  ;;  %v20088_v8 = vsel %vm2634_vm3, %v20086_v0, %v20087_v55 }
0x135d   :  { %v20142_v43 = vsel %vm2634_vm3, %v20084_v46, %v20141_v28 }
0x135e   :  { %25149 = vmatpush1.msk.msra.mxu0 %vm2634_vm3, %v19056_v27  ;;  %25152 = vmatpush1.msk.msra.mxu1 %vm2634_vm3, %v19058_v21  ;;  %v20144_v27 = vsel %vm2634_vm3, %v20087_v55, %v20143_v37  ;;  %v20085_v21 = vsel %vm2634_vm3, %v20083_v36, %v20084_v46 }
0x135f   :  { %25150 = vmatmul.mubr.msk.f32.vlgmr.msra.gmra.mrb[24].mxu0 %vm2775_vm4, %v33251_v31  ;;  %25153 = vmatmul.mubr.msk.f32.vlgmr.msra.gmra.mrb[34].mxu1 %vm2775_vm4, %v33251_v31  ;;  %v28590_v45 = vpack.c.bf16 %v20144_v27, %v20088_v8  ;;  %v28592_v1 = vpack.c.bf16 %v20142_v43, %v20085_v21 }
0x1360   :  { %28547 = vmatprep.subr.bf16.mxu0 %v29986_v20  ;;  %28551 = vmatprep.subr.bf16.mxu1 %v29989_v11  ;;  %v19929_v20 = vld [vmem:[#allocation7 + $0xd30] sm:$0xcc] }
0x1361   :  { %28549 = vmatpush1.bf16.msra.mxu0 %v29988_v2  ;;  %28553 = vmatpush1.bf16.msra.mxu1 %v29991_v61  ;;  %v19939_v2 = vld [vmem:[#allocation7 + $0xd80] sm:$0xff]  ;;  %v19949_v11 = vld [vmem:[#allocation7 + $0xdd0] sm:$0xff]  ;;  %v19962_v61 = vunpack.c.h.bf16 %v19929_v20 }
0x1362   :  { %25154 = vmatprep.subr.msk.mxu0 %vm2634_vm3, %v19061_v26  ;;  %25157 = vmatprep.subr.msk.mxu1 %vm2634_vm3, %v19063_v50  ;;  %v19982_v26 = vunpack.c.h.bf16 %v19939_v2  ;;  %v20002_v51 = vunpack.c.h.bf16 %v19949_v11  ;;  %v19961_v50 = vunpack.c.l.bf16 %v19929_v20  ;;  %v19981_v58 = vunpack.c.l.bf16 %v19939_v2 }
0x1363   :  { %19759 = vmatprep.mubr.f32.mxu0 %v34472_v54  ;;  %19830 = vmatprep.mubr.f32.mxu1 %v34472_v54  ;;  %v20001_v40 = vunpack.c.l.bf16 %v19949_v11  ;;  %v19986_v11 = vunpack.c.h.bf16 %v19941_v60 }
0x1364   :  { %v20093_v24 = vrot.slane %v19982_v26, 4  ;;  %v33409_v56 = vrot.slane %v20002_v51, 4  ;;  %v20089_v44 = vrot.slane %v19961_v50, 4  ;;  %v19985_v26 = vunpack.c.l.bf16 %v19941_v60  ;;  %v19932_v51 = vld [vmem:[#allocation7 + $0xd48] sm:$0xcc] }
0x1365   :  { %25155 = vmatpush1.msk.msra.mxu0 %vm2634_vm3, %v19060_v23  ;;  %25158 = vmatpush1.msk.msra.mxu1 %vm2634_vm3, %v19062_v13  ;;  %v19963_v23 = vunpack.c.l.bf16 %v19930_v3  ;;  %v20092_v13 = vrot.slane %v19962_v61, 4  ;;  %v33411_v12 = vrot.slane %v20001_v40, 4  ;;  %v19942_v3 = vld [vmem:[#allocation7 + $0xd98] sm:$0xff]  ;;  %v19952_v50 = vld [vmem:[#allocation7 + $0xde8] sm:$0xff] }
0x1366   :  { %25156 = vmatmul.mubr.msk.f32.vlgmr.msra.gmra.mrb[26].mxu0 %vm2775_vm4, %v33251_v31  ;;  %25159 = vmatmul.mubr.msk.f32.vlgmr.msra.gmra.mrb[36].mxu1 %vm2775_vm4, %v33251_v31  ;;  %v33325_v31 = vld [vmem:[%s34413_s4 + $0x8] sm:$0xff]   ;;  %v20148_v57 = vsel %vm2634_vm3, %v20093_v24, %v33409_v56  ;;  %v19987_v19 = vunpack.c.l.bf16 %v19942_v3 }
0x1367   :  { %28555 = vmatprep.subr.bf16.mxu1 %v33305_v38  ;;  %19921 = vmatprep.mubr.f32.mxu1 %v2185_v49  ;;  %v20095_v47 = vrot.slane %v19963_v23, 4 }
0x1368   :  { %28557 = vmatpush3.bf16.msra.mxu1 %v33311_v39  ;;  %28587 = vmatprep.subr.bf16.mxu0 %v28586_v7  ;;  %v20090_v7 = vrot.slane %v19981_v58, 4 }
0x1369   :  { %28559 = vmatprep.subr.bf16.mxu1 %v33317_v5  ;;  %28589 = vmatpush1.bf16.msra.mxu0 %v28588_v34  ;;  %v20094_v34 = vsel %vm2634_vm3, %v20092_v13, %v20093_v24  ;;  %v19967_v13 = vunpack.c.l.bf16 %v19932_v51  ;;  %v19968_v24 = vunpack.c.h.bf16 %v19932_v51 }
0x136a   :  { %25160 = vmatprep.subr.msk.mxu0 %vm2634_vm3, %v20139_v10  ;;  %20324 = vmatprep.mubr.f32.mxu0 %v34472_v54  ;;  %v19940_v10 = vld [vmem:[#allocation7 + $0xd88] sm:$0xff]  ;;  %v28594_v9 = vpack.c.bf16 %v20148_v57, %v20094_v34  ;;  %v33419_v55 = vsel %vm2634_vm3, %v20089_v44, %v20090_v7  ;;  %v33425_v36 = vsel %vm2634_vm3, %v20090_v7, %v33411_v12  ;;  %v19933_v44 = vld [vmem:[#allocation7 + $0xd50] sm:$0xcc]  ;;  %v19943_v7 = vld [vmem:[#allocation7 + $0xda0] sm:$0xff]  ;;  %v20102_v34 = vrot.slane %v19985_v26, 4 }
0x136b   :  { %v19983_v49 = vunpack.c.l.bf16 %v19940_v10  ;;  %v19984_v30 = vunpack.c.h.bf16 %v19940_v10  ;;  %v28596_v8 = vpack.c.bf16 %v33425_v36, %v33419_v55  ;;  %v19988_v57 = vunpack.c.h.bf16 %v19942_v3 }
0x136c   :  { %28561 = vmatpush3.bf16.msra.mxu1 %v33325_v31  ;;  %v19969_v51 = vunpack.c.l.bf16 %v19933_v44  ;;  %v19989_v3 = vunpack.c.l.bf16 %v19943_v7 }
0x136d   :  { %28563 = vmatprep.subr.bf16.mxu1 %v33331_v15  ;;  %25161 = vmatpush1.msk.msra.mxu0 %vm2634_vm3, %v20137_v16  ;;  %v19950_v16 = vld [vmem:[#allocation7 + $0xdd8] sm:$0xff]  ;;  %v20096_v17 = vrot.slane %v19983_v49, 4  ;;  %v20099_v33 = vrot.slane %v19984_v30, 4  ;;  %v19953_v49 = vld [vmem:[#allocation7 + $0xdf0] sm:$0xff]  ;;  %v20007_v30 = vunpack.c.l.bf16 %v19952_v50  ;;  %v20111_v60 = vrot.slane %v19988_v57, 4 }
0x136e   :  { %v20003_v29 = vunpack.c.l.bf16 %v19950_v16  ;;  %v20004_v62 = vunpack.c.h.bf16 %v19950_v16  ;;  %28595 = vmatprep.subr.bf16.mxu0 %v28594_v9  ;;  %v20105_v16 = vrot.slane %v19986_v11, 4  ;;  %v19944_v11 = vld [vmem:[#allocation7 + $0xda8] sm:$0xff] }
0x136f   :  { %v33428_v46 = vsel %vm2634_vm3, %v20095_v47, %v20096_v17  ;;  %v19970_v47 = vunpack.c.h.bf16 %v19933_v44  ;;  %v19991_v57 = vunpack.c.l.bf16 %v19944_v11 }
0x1370   :  { %28565 = vmatpush3.bf16.msra.mxu1 %v33338_v53  ;;  %v33416_v0 = vrot.slane %v20003_v29, 4  ;;  %v20008_v29 = vunpack.c.h.bf16 %v19952_v50 }
0x1371   :  { %28567 = vmatprep.subr.bf16.mxu1 %v33344_v25  ;;  %v20116_v50 = vrot.slane %v19970_v47, 4 }
0x1372   :  { %v33435_v27 = vsel %vm2634_vm3, %v20096_v17, %v33416_v0  ;;  %v19990_v17 = vunpack.c.h.bf16 %v19943_v7 }
0x1374   :  { %28569 = vmatpush3.bf16.msra.mxu1 %v33350_v6 }
0x1375   :  { %28571 = vmatprep.subr.bf16.mxu1 %v33356_v4 }
0x1378   :  { %28573 = vmatpush3.bf16.msra.mxu1 %v33362_v35 }
0x1379   :  { %28575 = vmatprep.subr.bf16.mxu1 %v33368_v42 }
0x137c   :  { %28577 = vmatpush3.bf16.msra.mxu1 %v33374_v63 }
0x137d   :  { %28579 = vmatprep.subr.bf16.mxu1 %v33380_v18 }
0x1380   :  { %28581 = vmatpush3.bf16.msra.mxu1 %v33388_v14 }
0x1381   :  { %28583 = vmatprep.subr.bf16.mxu1 %v33394_v22 }
0x1384   :  { %28585 = vmatpush3.bf16.msra.mxu1 %v33402_v32 }
0x1385   :  { %28591 = vmatprep.subr.bf16.mxu1 %v28590_v45 }
0x1387   :  { %19922 = vmatmul.mubr.f32.vlgmr.msra.gmra.mrb[52].mxu1 %v2184_v59  ;;  %v19951_v59 = vld [vmem:[#allocation7 + $0xde0] sm:$0xff] }
0x1388   :  { %28593 = vmatpush1.bf16.msra.mxu1 %v28592_v1  ;;  %20395 = vmatprep.mubr.f32.mxu1 %v34472_v54  ;;  %v19931_v1 = vld [vmem:[#allocation7 + $0xd40] sm:$0xcc]  ;;  %v20006_v61 = vunpack.c.h.bf16 %v19951_v59  ;;  %v20005_v10 = vunpack.c.l.bf16 %v19951_v59  ;;  %v33452_v59 = vrot.slane %v20007_v30, 4  ;;  %v19992_v30 = vunpack.c.h.bf16 %v19944_v11 }
0x1389   :  { %25163 = vmatprep.subr.msk.mxu1 %vm2634_vm3, %v20143_v37  ;;  %v33421_v37 = vrot.slane %v20004_v62, 4  ;;  %v19965_v20 = vunpack.c.l.bf16 %v19931_v1  ;;  %v19966_v2 = vunpack.c.h.bf16 %v19931_v1  ;;  %v19934_v1 = vld [vmem:[#allocation7 + $0xd58] sm:$0xcc] }
0x138a   :  { %v33441_v23 = vrot.slane %v20006_v61, 4  ;;  %v33443_v9 = vrot.slane %v20005_v10, 4  ;;  %v19954_v61 = vld [vmem:[#allocation7 + $0xdf8] sm:$0xff]  ;;  %v20009_v10 = vunpack.c.l.bf16 %v19953_v49 }
0x138b   :  { %v20152_v45 = vsel %vm2634_vm3, %v20099_v33, %v33421_v37  ;;  %v20101_v58 = vrot.slane %v19965_v20, 4  ;;  %v20104_v40 = vrot.slane %v19966_v2, 4  ;;  %v33454_v20 = vrot.slane %v20008_v29, 4 }
0x138c   :  { %25164 = vmatpush1.msk.msra.mxu1 %vm2634_vm3, %v20141_v28  ;;  %v20100_v28 = vsel %vm2634_vm3, %v20098_v41, %v20099_v33  ;;  %v20010_v41 = vunpack.c.h.bf16 %v19953_v49  ;;  %v33450_v33 = vsel %vm2634_vm3, %v20105_v16, %v33441_v23  ;;  %v33461_v26 = vsel %vm2634_vm3, %v20102_v34, %v33443_v9 }
0x138d   :  { %v28598_v43 = vpack.c.bf16 %v20152_v45, %v20100_v28  ;;  %v33446_v62 = vsel %vm2634_vm3, %v20104_v40, %v20105_v16  ;;  %v20107_v28 = vrot.slane %v19967_v13, 4  ;;  %v20108_v45 = vrot.slane %v19987_v19, 4 }
0x138e   :  { %v33457_v2 = vsel %vm2634_vm3, %v20101_v58, %v20102_v34  ;;  %v20117_v40 = vrot.slane %v19990_v17, 4  ;;  %v33463_v16 = vrot.slane %v20010_v41, 4  ;;  %v19971_v13 = vunpack.c.l.bf16 %v19934_v1 }
0x138f   :  { %28599 = vmatprep.subr.bf16.mxu1 %v28598_v43  ;;  %v20110_v43 = vrot.slane %v19968_v24, 4  ;;  %v19972_v19 = vunpack.c.h.bf16 %v19934_v1  ;;  %v20012_v58 = vunpack.c.h.bf16 %v19954_v61  ;;  %v20160_v34 = vsel %vm2634_vm3, %v20111_v60, %v33454_v20 }
0x1390   :  { %v20109_v44 = vsel %vm2634_vm3, %v20107_v28, %v20108_v45  ;;  %v20011_v7 = vunpack.c.l.bf16 %v19954_v61  ;;  %v20158_v47 = vsel %vm2634_vm3, %v20108_v45, %v33452_v59  ;;  %v20113_v17 = vrot.slane %v19969_v51, 4 }
0x1391   :  { %v20112_v21 = vsel %vm2634_vm3, %v20110_v43, %v20111_v60  ;;  %v20114_v41 = vrot.slane %v19989_v3, 4  ;;  %v33474_v1 = vsel %vm2634_vm3, %v20116_v50, %v20117_v40  ;;  %v33476_v11 = vrot.slane %v20009_v10, 4 }
0x1392   :  { %v33480_v43 = vsel %vm2634_vm3, %v20117_v40, %v33463_v16  ;;  %v20119_v60 = vrot.slane %v19971_v13, 4  ;;  %v20120_v28 = vrot.slane %v19991_v57, 4  ;;  %v20122_v45 = vrot.slane %v19972_v19, 4  ;;  %v19935_v40 = vld [vmem:[#allocation7 + $0xd60] sm:$0xcc] }
0x1393   :  { %v20123_v61 = vrot.slane %v19992_v30, 4  ;;  %v33486_v51 = vrot.slane %v20012_v58, 4  ;;  %v34507_v3 = vpack.c.bf16 %v33435_v27, %v33428_v46  ;;  %v28602_v10 = vpack.c.bf16 %v33450_v33, %v33446_v62  ;;  %v19955_v46 = vld [vmem:[#allocation7 + $0xe00] sm:$0xff]  ;;  %v19956_v33 = vld [vmem:[#allocation7 + $0xe08] sm:$0xff] }
0x1394   :  { %v33496_v50 = vrot.slane %v20011_v7, 4  ;;  %v28606_v13 = vpack.c.bf16 %v20160_v34, %v20112_v21  ;;  %v28604_v55 = vpack.c.bf16 %v33461_v26, %v33457_v2  ;;  %v28608_v36 = vpack.c.bf16 %v20158_v47, %v20109_v44  ;;  %v19946_v21 = vld [vmem:[#allocation7 + $0xdb8] sm:$0xff] }
0x1395   :  { %v28610_v27 = vpack.c.bf16 %v33480_v43, %v33474_v1  ;;  %v20115_v62 = vsel %vm2634_vm3, %v20113_v17, %v20114_v41  ;;  %v20124_v2 = vsel %vm2634_vm3, %v20122_v45, %v20123_v61  ;;  %v20168_v26 = vsel %vm2634_vm3, %v20123_v61, %v33486_v51 }
0x1396   :  { %v19973_v19 = vunpack.c.l.bf16 %v19935_v40  ;;  %v20166_v57 = vsel %vm2634_vm3, %v20120_v28, %v33496_v50  ;;  %v19974_v30 = vunpack.c.h.bf16 %v19935_v40  ;;  %v19996_v7 = vunpack.c.h.bf16 %v19946_v21 }
0x1397   :  { %v20016_v47 = vunpack.c.h.bf16 %v19956_v33  ;;  %v19995_v17 = vunpack.c.l.bf16 %v19946_v21  ;;  %v28614_v1 = vpack.c.bf16 %v20168_v26, %v20124_v2 }
0x1398   :  { %v20128_v45 = vrot.slane %v19974_v30, 4 }
0x145a   :  { %v26800_v24 = vpop.f32.mrb[52].mxu1 }
0x145b   :  { %v26801_v29 = vpop.f32.mrb[53].mxu1 }
0x145c   :  { %v33469_v49 = vadd.f32 %v26801_v29, %v26800_v24  ;;  %v20121_v24 = vsel %vm2634_vm3, %v20119_v60, %v20120_v28  ;;  %v20014_v29 = vunpack.c.h.bf16 %v19955_v46  ;;  %v20125_v28 = vrot.slane %v19973_v19, 4  ;;  %v29994_v19 = vld [vmem:[#allocation7 + $0xe10] ss:$80 sps:$4 sm:$0xff]  }
0x145d   :  { %v28616_v60 = vpack.c.bf16 %v20166_v57, %v20121_v24  ;;  %v34509_v57 = vld [vmem:[#allocation37_spill] sm:$0xff] }
0x145e   :  { %25162 = vmatmul.mubr.msk.f32.vlgmr.msra.gmra.mrb[18].mxu0 %vm2775_vm4, %v33469_v49  ;;  %25165 = vmatmul.mubr.msk.f32.vlgmr.msra.gmra.mrb[28].mxu1 %vm2775_vm4, %v33469_v49  ;;  %v2186_v30 = vmax.f32 %v34509_v57, 0.0 }
0x145f   :  { %28597 = vmatpush1.bf16.msra.mxu0 %v28596_v8  ;;  %28601 = vmatpush1.bf16.msra.mxu1 %v34507_v3  ;;  %v19945_v8 = vld [vmem:[#allocation7 + $0xdb0] sm:$0xff]  ;;  %v20171_v3 = vrot.slane %v20014_v29, 4  ;;  %v21081_v29 = vld [vmem:[#allocation7 + $0xeb8] sm:$0x33] }
0x1460   :  { %25166 = vmatprep.subr.msk.mxu0 %vm2634_vm3, %v33409_v56  ;;  %25169 = vmatprep.subr.msk.mxu1 %vm2634_vm3, %v33421_v37  ;;  %v20162_v56 = vsel %vm2634_vm3, %v20114_v41, %v33476_v11  ;;  %v19936_v37 = vld [vmem:[#allocation7 + $0xd68] sm:$0xcc]  ;;  %v19994_v58 = vunpack.c.h.bf16 %v19945_v8  ;;  %v19993_v34 = vunpack.c.l.bf16 %v19945_v8  ;;  %v20015_v41 = vunpack.c.l.bf16 %v19956_v33 }
0x1461   :  { %20466 = vmatprep.mubr.f32.mxu0 %v34472_v54  ;;  %20537 = vmatprep.mubr.f32.mxu1 %v34472_v54  ;;  %v19976_v44 = vunpack.c.h.bf16 %v19936_v37  ;;  %v28612_v43 = vpack.c.bf16 %v20162_v56, %v20115_v62 }
0x1462   :  { %v20129_v61 = vrot.slane %v19994_v58, 4  ;;  %v20173_v62 = vrot.slane %v20015_v41, 4  ;;  %v21080_v58 = vld [vmem:[#allocation7 + $0xeb0] sm:$0x33]  ;;  %v21083_v41 = vld [vmem:[#allocation7 + $0xec8] sm:$0x33] }
0x1463   :  { %25167 = vmatpush1.msk.msra.mxu0 %vm2634_vm3, %v33411_v12  ;;  %25170 = vmatpush1.msk.msra.mxu1 %vm2634_vm3, %v33416_v0  ;;  %v20013_v12 = vunpack.c.l.bf16 %v19955_v46  ;;  %v19975_v0 = vunpack.c.l.bf16 %v19936_v37  ;;  %v20134_v40 = vrot.slane %v19976_v44, 4  ;;  %v20132_v46 = vrot.slane %v19995_v17, 4  ;;  %v21082_v17 = vld [vmem:[#allocation7 + $0xec0] sm:$0x33] }
0x1464   :  { %25168 = vmatmul.mubr.msk.f32.vlgmr.msra.gmra.mrb[20].mxu0 %vm2775_vm4, %v33469_v49  ;;  %25171 = vmatmul.mubr.msk.f32.vlgmr.msra.gmra.mrb[30].mxu1 %vm2775_vm4, %v33469_v49  ;;  %v21133_v44 = vunpack.c.h.bf16 %v21081_v29 }
0x1465   :  { %28603 = vmatprep.subr.bf16.mxu0 %v28602_v10  ;;  %28607 = vmatprep.subr.bf16.mxu1 %v28606_v13  ;;  %v20126_v10 = vrot.slane %v19993_v34, 4  ;;  %v20135_v13 = vrot.slane %v19996_v7, 4  ;;  %v20131_v8 = vrot.slane %v19975_v0, 4  ;;  %v20174_v33 = vsel %vm2634_vm3, %v20132_v46, %v20173_v62  ;;  %v30001_v0 = vld [vmem:[#allocation7 + $0xe2c] ss:$80 sps:$4 sm:$0xff]  }
0x1466   :  { %28605 = vmatpush1.bf16.msra.mxu0 %v28604_v55  ;;  %28609 = vmatpush1.bf16.msra.mxu1 %v28608_v36  ;;  %v20175_v55 = vrot.slane %v20016_v47, 4  ;;  %v20169_v36 = vrot.slane %v20013_v12, 4  ;;  %v21131_v34 = vunpack.c.h.bf16 %v21080_v58  ;;  %v21130_v7 = vunpack.c.l.bf16 %v21080_v58  ;;  %v29998_v12 = vld [vmem:[#allocation7 + $0xe24] ss:$80 sps:$4 sm:$0xff]  }
0x1467   :  { %25172 = vmatprep.subr.msk.mxu0 %vm2634_vm3, %v33441_v23  ;;  %25175 = vmatprep.subr.msk.mxu1 %vm2634_vm3, %v33454_v20  ;;  %v20130_v23 = vsel %vm2634_vm3, %v20128_v45, %v20129_v61  ;;  %v20172_v20 = vsel %vm2634_vm3, %v20129_v61, %v20171_v3  ;;  %v20136_v56 = vsel %vm2634_vm3, %v20134_v40, %v20135_v13  ;;  %v21132_v47 = vunpack.c.l.bf16 %v21081_v29  ;;  %v21088_v58 = vld [vmem:[#allocation7 + $0xef0] sm:$0x33] }
0x1468   :  { %20608 = vmatprep.mubr.f32.mxu0 %v34472_v54  ;;  %20679 = vmatprep.mubr.f32.mxu1 %v34472_v54  ;;  %v20176_v37 = vsel %vm2634_vm3, %v20135_v13, %v20175_v55  ;;  %v20133_v21 = vsel %vm2634_vm3, %v20131_v8, %v20132_v46  ;;  %v21135_v61 = vunpack.c.h.bf16 %v21082_v17  ;;  %v21136_v40 = vunpack.c.l.bf16 %v21083_v41  ;;  %v21084_v13 = vld [vmem:[#allocation7 + $0xed0] sm:$0x33]  ;;  %v30007_v8 = vld [vmem:[#allocation7 + $0xe3c] ss:$80 sps:$4 sm:$0xff]  }
0x1469   :  { %v28622_v2 = vpack.c.bf16 %v20176_v37, %v20136_v56  ;;  %v28624_v24 = vpack.c.bf16 %v20174_v33, %v20133_v21  ;;  %v30006_v46 = vld [vmem:[#allocation7 + $0xe30] ss:$80 sps:$4 sm:$0xff]   ;;  %v21138_v56 = vunpack.c.l.bf16 %v21084_v13  ;;  %v21087_v21 = vld [vmem:[#allocation7 + $0xee8] sm:$0x33] }
0x146a   :  { %25173 = vmatpush1.msk.msra.mxu0 %vm2634_vm3, %v33443_v9  ;;  %25176 = vmatpush1.msk.msra.mxu1 %vm2634_vm3, %v33452_v59  ;;  %v20127_v9 = vsel %vm2634_vm3, %v20125_v28, %v20126_v10  ;;  %v20170_v59 = vsel %vm2634_vm3, %v20126_v10, %v20169_v36  ;;  %v30003_v28 = vld [vmem:[#allocation7 + $0xe28] ss:$80 sps:$4 sm:$0xff]   ;;  %v21134_v10 = vunpack.c.l.bf16 %v21082_v17  ;;  %v30012_v33 = vld [vmem:[#allocation7 + $0xe40] ss:$80 sps:$4 sm:$0xff]  }
0x146b   :  { %25174 = vmatmul.mubr.msk.f32.vlgmr.msra.gmra.mrb[22].mxu0 %vm2775_vm4, %v33469_v49  ;;  %25177 = vmatmul.mubr.msk.f32.vlgmr.msra.gmra.mrb[32].mxu1 %vm2775_vm4, %v33469_v49  ;;  %v28620_v26 = vpack.c.bf16 %v20170_v59, %v20127_v9  ;;  %v30010_v9 = vld [vmem:[#allocation7 + $0xe44] ss:$80 sps:$4 sm:$0xff]   ;;  %v30021_v17 = vld [vmem:[#allocation7 + $0xe58] ss:$80 sps:$4 sm:$0xff]  }
0x146c   :  { %28611 = vmatprep.subr.bf16.mxu0 %v28610_v27  ;;  %28615 = vmatprep.subr.bf16.mxu1 %v28614_v1  ;;  %v28618_v27 = vpack.c.bf16 %v20172_v20, %v20130_v23  ;;  %v21139_v23 = vunpack.c.h.bf16 %v21084_v13  ;;  %v21086_v59 = vld [vmem:[#allocation7 + $0xee0] sm:$0x33] }
0x146d   :  { %28613 = vmatpush1.bf16.msra.mxu0 %v28612_v43  ;;  %28617 = vmatpush1.bf16.msra.mxu1 %v28616_v60  ;;  %v30000_v60 = vld [vmem:[#allocation7 + $0xe20] ss:$80 sps:$4 sm:$0xff]  }
0x146e   :  { %25178 = vmatprep.subr.msk.mxu0 %vm2634_vm3, %v33463_v16  ;;  %25181 = vmatprep.subr.msk.mxu1 %vm2634_vm3, %v33486_v51  ;;  %v29995_v16 = vld [vmem:[#allocation7 + $0xe1c] ss:$80 sps:$4 sm:$0xff]  }
0x146f   :  { %20750 = vmatprep.mubr.f32.mxu0 %v34472_v54  ;;  %20821 = vmatprep.mubr.f32.mxu1 %v34472_v54 }
0x1471   :  { %25179 = vmatpush1.msk.msra.mxu0 %vm2634_vm3, %v33476_v11  ;;  %25182 = vmatpush1.msk.msra.mxu1 %vm2634_vm3, %v33496_v50  ;;  %v34508_v11 = vld [vmem:[#allocation39_spill] sm:$0xff]  ;;  %v29997_v50 = vld [vmem:[#allocation7 + $0xe18] ss:$80 sps:$4 sm:$0xff]  }
0x1472   :  { %25180 = vmatmul.mubr.msk.f32.vlgmr.msra.gmra.mrb[24].mxu0 %vm2775_vm4, %v33469_v49  ;;  %25183 = vmatmul.mubr.msk.f32.vlgmr.msra.gmra.mrb[34].mxu1 %vm2775_vm4, %v33469_v49  ;;  %v2187_v51 = vmax.f32 %v34508_v11, 0.0  ;;  %v21143_v11 = vunpack.c.h.bf16 %v21086_v59 }
0x1473   :  { %28619 = vmatprep.subr.bf16.mxu0 %v28618_v27  ;;  %28623 = vmatprep.subr.bf16.mxu1 %v28622_v2  ;;  %v30013_v27 = vld [vmem:[#allocation7 + $0xe4c] ss:$80 sps:$4 sm:$0xff]   ;;  %v30015_v2 = vld [vmem:[#allocation7 + $0xe48] ss:$80 sps:$4 sm:$0xff]  }
0x1474   :  { %28621 = vmatpush1.bf16.msra.mxu0 %v28620_v26  ;;  %28625 = vmatpush1.bf16.msra.mxu1 %v28624_v24  ;;  %v22013_v26 = vld [vmem:[#allocation7 + $0xeb0] sm:$0xcc]  ;;  %v22023_v24 = vld [vmem:[#allocation7 + $0xf00] sm:$0xff] }
0x1475   :  { %25184 = vmatprep.subr.msk.mxu0 %vm2634_vm3, %v20171_v3  ;;  %25187 = vmatprep.subr.msk.mxu1 %vm2634_vm3, %v20175_v55  ;;  %v21137_v3 = vunpack.c.h.bf16 %v21083_v41  ;;  %v21085_v55 = vld [vmem:[#allocation7 + $0xed8] sm:$0x33]  ;;  %v22043_v29 = vunpack.c.l.bf16 %v22013_v26  ;;  %v21147_v41 = vunpack.c.h.bf16 %v21088_v58 }
0x1476   :  { %20892 = vmatprep.mubr.f32.mxu0 %v34472_v54  ;;  %20963 = vmatprep.mubr.f32.mxu1 %v34472_v54  ;;  %v21141_v20 = vunpack.c.h.bf16 %v21085_v55  ;;  %v21140_v37 = vunpack.c.l.bf16 %v21085_v55 }
0x1478   :  { %25185 = vmatpush1.msk.msra.mxu0 %vm2634_vm3, %v20169_v36  ;;  %25188 = vmatpush1.msk.msra.mxu1 %vm2634_vm3, %v20173_v62  ;;  %v30004_v36 = vld [vmem:[#allocation7 + $0xe34] ss:$80 sps:$4 sm:$0xff]   ;;  %v30009_v62 = vld [vmem:[#allocation7 + $0xe38] ss:$80 sps:$4 sm:$0xff]  }
0x1479   :  { %25186 = vmatmul.mubr.msk.f32.vlgmr.msra.gmra.mrb[26].mxu0 %vm2775_vm4, %v33469_v49  ;;  %25189 = vmatmul.mubr.msk.f32.vlgmr.msra.gmra.mrb[36].mxu1 %vm2775_vm4, %v33469_v49  ;;  %v29992_v49 = vld [vmem:[#allocation7 + $0xe14] ss:$80 sps:$4 sm:$0xff]  }
0x147a   :  { %28627 = vmatprep.subr.bf16.mxu0 %v33305_v38  ;;  %21054 = vmatprep.mubr.f32.mxu0 %v2187_v51  ;;  %v21145_v51 = vunpack.c.h.bf16 %v21087_v21 }
0x147b   :  { %28629 = vmatpush3.bf16.msra.mxu0 %v33311_v39  ;;  %28663 = vmatprep.subr.bf16.mxu1 %v29995_v16  ;;  %v22033_v16 = vld [vmem:[#allocation7 + $0xf50] sm:$0xff] }
0x147c   :  { %28631 = vmatprep.subr.bf16.mxu0 %v33317_v5  ;;  %28665 = vmatpush1.bf16.msra.mxu1 %v29997_v50  ;;  %v21142_v50 = vunpack.c.l.bf16 %v21086_v59  ;;  %v22084_v57 = vunpack.c.h.bf16 %v22033_v16 }
0x147d   :  { %21348 = vmatprep.mubr.f32.mxu1 %v34472_v54  ;;  %25193 = vmatprep.subr.msk.mxu1 %vm2634_vm3, %v21133_v44  ;;  %v22083_v44 = vunpack.c.l.bf16 %v22033_v16  ;;  %v22035_v16 = vld [vmem:[#allocation7 + $0xf60] sm:$0xff] }
0x147f   :  { %28633 = vmatpush3.bf16.msra.mxu0 %v33325_v31 }
0x1480   :  { %28635 = vmatprep.subr.bf16.mxu0 %v33331_v15  ;;  %25194 = vmatpush1.msk.msra.mxu1 %vm2634_vm3, %v21132_v47  ;;  %v30016_v47 = vld [vmem:[#allocation7 + $0xe54] ss:$80 sps:$4 sm:$0xff]  }
0x1481   :  { %28671 = vmatprep.subr.bf16.mxu1 %v30001_v0  ;;  %v30019_v0 = vld [vmem:[#allocation7 + $0xe5c] ss:$80 sps:$4 sm:$0xff]  }
0x1483   :  { %28637 = vmatpush3.bf16.msra.mxu0 %v33338_v53 }
0x1484   :  { %28639 = vmatprep.subr.bf16.mxu0 %v33344_v25 }
0x1487   :  { %28641 = vmatpush3.bf16.msra.mxu0 %v33350_v6 }
0x1488   :  { %28643 = vmatprep.subr.bf16.mxu0 %v33356_v4 }
0x148b   :  { %28645 = vmatpush3.bf16.msra.mxu0 %v33362_v35 }
0x148c   :  { %28647 = vmatprep.subr.bf16.mxu0 %v33368_v42 }
0x148f   :  { %28649 = vmatpush3.bf16.msra.mxu0 %v33374_v63 }
0x1490   :  { %28651 = vmatprep.subr.bf16.mxu0 %v33380_v18 }
0x1493   :  { %28653 = vmatpush3.bf16.msra.mxu0 %v33388_v14 }
0x1494   :  { %28655 = vmatprep.subr.bf16.mxu0 %v33394_v22 }
0x1497   :  { %28657 = vmatpush3.bf16.msra.mxu0 %v33402_v32 }
0x1498   :  { %28659 = vmatprep.subr.bf16.mxu0 %v29992_v49  ;;  %v22044_v49 = vunpack.c.h.bf16 %v22013_v26 }
0x149a   :  { %21055 = vmatmul.mubr.f32.vlgmr.msra.gmra.mrb[44].mxu0 %v2186_v30  ;;  %v21144_v30 = vunpack.c.l.bf16 %v21087_v21 }
0x149b   :  { %28661 = vmatpush1.bf16.msra.mxu0 %v29994_v19  ;;  %21277 = vmatprep.mubr.f32.mxu0 %v34472_v54  ;;  %v22064_v19 = vunpack.c.h.bf16 %v22023_v24 }
0x149c   :  { %25190 = vmatprep.subr.msk.mxu0 %vm2634_vm3, %v21131_v34  ;;  %v22063_v34 = vunpack.c.l.bf16 %v22023_v24 }
0x149f   :  { %25191 = vmatpush1.msk.msra.mxu0 %vm2634_vm3, %v21130_v7  ;;  %v21089_v7 = vld [vmem:[#allocation7 + $0xef8] sm:$0x33] }
0x14a0   :  { %28667 = vmatprep.subr.bf16.mxu0 %v29998_v12  ;;  %v30018_v12 = vld [vmem:[#allocation7 + $0xe50] ss:$80 sps:$4 sm:$0xff]   ;;  %v21148_v13 = vunpack.c.l.bf16 %v21089_v7 }
0x156d   :  { %v26835_v1 = vpop.f32.mrb[44].mxu0 }
0x156e   :  { %v26836_v43 = vpop.f32.mrb[45].mxu0 }
0x156f   :  { %v33595_v45 = vadd.f32 %v26836_v43, %v26835_v1  ;;  %v22166_v1 = vrot.slane %v22044_v49, 4  ;;  %v22167_v43 = vrot.slane %v22064_v19, 4  ;;  %v22016_v49 = vld [vmem:[#allocation7 + $0xec8] sm:$0xcc] }
0x1571   :  { %25192 = vmatmul.mubr.msk.f32.vlgmr.msra.gmra.mrb[18].mxu0 %vm2775_vm4, %v33595_v45  ;;  %25195 = vmatmul.mubr.msk.f32.vlgmr.msra.gmra.mrb[28].mxu1 %vm2775_vm4, %v33595_v45  ;;  %v22168_v55 = vsel %vm2634_vm3, %v22166_v1, %v22167_v43 }
0x1572   :  { %28669 = vmatpush1.bf16.msra.mxu0 %v30000_v60  ;;  %28673 = vmatpush1.bf16.msra.mxu1 %v30003_v28  ;;  %v22225_v60 = vrot.slane %v22084_v57, 4  ;;  %v21149_v28 = vunpack.c.h.bf16 %v21089_v7 }
0x1573   :  { %25196 = vmatprep.subr.msk.mxu0 %vm2634_vm3, %v21135_v61  ;;  %25199 = vmatprep.subr.msk.mxu1 %vm2634_vm3, %v21137_v3  ;;  %v22163_v61 = vrot.slane %v22043_v29, 4  ;;  %v22164_v3 = vrot.slane %v22063_v34, 4  ;;  %v22049_v29 = vunpack.c.l.bf16 %v22016_v49 }
0x1574   :  { %21419 = vmatprep.mubr.f32.mxu0 %v34472_v54  ;;  %21490 = vmatprep.mubr.f32.mxu1 %v34472_v54 }
0x1576   :  { %25197 = vmatpush1.msk.msra.mxu0 %vm2634_vm3, %v21134_v10  ;;  %25200 = vmatpush1.msk.msra.mxu1 %vm2634_vm3, %v21136_v40  ;;  %v22223_v10 = vrot.slane %v22083_v44, 4  ;;  %v21146_v40 = vunpack.c.l.bf16 %v21088_v58  ;;  %v22036_v58 = vld [vmem:[#allocation7 + $0xf68] sm:$0xff] }
0x1577   :  { %25198 = vmatmul.mubr.msk.f32.vlgmr.msra.gmra.mrb[20].mxu0 %vm2775_vm4, %v33595_v45  ;;  %25201 = vmatmul.mubr.msk.f32.vlgmr.msra.gmra.mrb[30].mxu1 %vm2775_vm4, %v33595_v45 }
0x1578   :  { %28675 = vmatprep.subr.bf16.mxu0 %v30004_v36  ;;  %28679 = vmatprep.subr.bf16.mxu1 %v30007_v8  ;;  %v22226_v36 = vsel %vm2634_vm3, %v22167_v43, %v22225_v60  ;;  %v22165_v8 = vsel %vm2634_vm3, %v22163_v61, %v22164_v3 }
0x1579   :  { %28677 = vmatpush1.bf16.msra.mxu0 %v30006_v46  ;;  %28681 = vmatpush1.bf16.msra.mxu1 %v30009_v62  ;;  %v22224_v46 = vsel %vm2634_vm3, %v22164_v3, %v22223_v10  ;;  %v28730_v62 = vpack.c.bf16 %v22226_v36, %v22168_v55  ;;  %v22090_v3 = vunpack.c.h.bf16 %v22036_v58 }
0x157a   :  { %25202 = vmatprep.subr.msk.mxu0 %vm2634_vm3, %v21139_v23  ;;  %25205 = vmatprep.subr.msk.mxu1 %vm2634_vm3, %v21141_v20  ;;  %v34510_v23 = vld [vmem:[#allocation51_spill] sm:$0xff] }
0x157b   :  { %21561 = vmatprep.mubr.f32.mxu0 %v34472_v54  ;;  %21632 = vmatprep.mubr.f32.mxu1 %v34472_v54  ;;  %v2189_v20 = vmax.f32 %v34510_v23, 0.0 }
0x157d   :  { %25203 = vmatpush1.msk.msra.mxu0 %vm2634_vm3, %v21138_v56  ;;  %25206 = vmatpush1.msk.msra.mxu1 %vm2634_vm3, %v21140_v37  ;;  %v28732_v56 = vpack.c.bf16 %v22224_v46, %v22165_v8  ;;  %v33685_v46 = vrot.slane %v22090_v3, 4 }
0x157e   :  { %25204 = vmatmul.mubr.msk.f32.vlgmr.msra.gmra.mrb[22].mxu0 %vm2775_vm4, %v33595_v45  ;;  %25207 = vmatmul.mubr.msk.f32.vlgmr.msra.gmra.mrb[32].mxu1 %vm2775_vm4, %v33595_v45 }
0x157f   :  { %28683 = vmatprep.subr.bf16.mxu0 %v30010_v9  ;;  %28687 = vmatprep.subr.bf16.mxu1 %v30013_v27 }
0x1580   :  { %28685 = vmatpush1.bf16.msra.mxu0 %v30012_v33  ;;  %28689 = vmatpush1.bf16.msra.mxu1 %v30015_v2 }
0x1581   :  { %25208 = vmatprep.subr.msk.mxu0 %vm2634_vm3, %v21143_v11  ;;  %25211 = vmatprep.subr.msk.mxu1 %vm2634_vm3, %v21145_v51 }
0x1582   :  { %21703 = vmatprep.mubr.f32.mxu0 %v34472_v54  ;;  %21774 = vmatprep.mubr.f32.mxu1 %v34472_v54 }
0x1584   :  { %25209 = vmatpush1.msk.msra.mxu0 %vm2634_vm3, %v21142_v50  ;;  %25212 = vmatpush1.msk.msra.mxu1 %vm2634_vm3, %v21144_v30  ;;  %v22088_v50 = vunpack.c.h.bf16 %v22035_v16  ;;  %v22087_v30 = vunpack.c.l.bf16 %v22035_v16  ;;  %v22039_v16 = vld [vmem:[#allocation7 + $0xf80] sm:$0xff] }
0x1585   :  { %25210 = vmatmul.mubr.msk.f32.vlgmr.msra.gmra.mrb[24].mxu0 %vm2775_vm4, %v33595_v45  ;;  %25213 = vmatmul.mubr.msk.f32.vlgmr.msra.gmra.mrb[34].mxu1 %vm2775_vm4, %v33595_v45 }
0x1586   :  { %28691 = vmatprep.subr.bf16.mxu0 %v30016_v47  ;;  %28695 = vmatprep.subr.bf16.mxu1 %v30019_v0  ;;  %v33673_v7 = vrot.slane %v22088_v50, 4  ;;  %v22050_v47 = vunpack.c.h.bf16 %v22016_v49 }
0x1587   :  { %28693 = vmatpush1.bf16.msra.mxu0 %v30018_v12  ;;  %28697 = vmatpush1.bf16.msra.mxu1 %v30021_v17  ;;  %v33675_v17 = vrot.slane %v22087_v30, 4 }
0x1588   :  { %25214 = vmatprep.subr.msk.mxu0 %vm2634_vm3, %v21147_v41  ;;  %25217 = vmatprep.subr.msk.mxu1 %vm2634_vm3, %v21149_v28  ;;  %v22089_v28 = vunpack.c.l.bf16 %v22036_v58  ;;  %v22096_v58 = vunpack.c.h.bf16 %v22039_v16 }
0x1589   :  { %21845 = vmatprep.mubr.f32.mxu0 %v34472_v54  ;;  %21916 = vmatprep.mubr.f32.mxu1 %v34472_v54 }
0x158a   :  { %v33680_v36 = vrot.slane %v22089_v28, 4  ;;  %v22040_v28 = vld [vmem:[#allocation7 + $0xf88] sm:$0xff] }
0x158b   :  { %25215 = vmatpush1.msk.msra.mxu0 %vm2634_vm3, %v21146_v40  ;;  %25218 = vmatpush1.msk.msra.mxu1 %vm2634_vm3, %v21148_v13  ;;  %v22184_v13 = vrot.slane %v22050_v47, 4 }
0x158c   :  { %25216 = vmatmul.mubr.msk.f32.vlgmr.msra.gmra.mrb[26].mxu0 %vm2775_vm4, %v33595_v45  ;;  %25219 = vmatmul.mubr.msk.f32.vlgmr.msra.gmra.mrb[36].mxu1 %vm2775_vm4, %v33595_v45  ;;  %v22034_v45 = vld [vmem:[#allocation7 + $0xf58] sm:$0xff] }
0x158d   :  { %28699 = vmatprep.subr.bf16.mxu1 %v33305_v38  ;;  %22007 = vmatprep.mubr.f32.mxu1 %v2189_v20  ;;  %v22014_v38 = vld [vmem:[#allocation7 + $0xeb8] sm:$0xcc]  ;;  %v22086_v9 = vunpack.c.h.bf16 %v22034_v45  ;;  %v22085_v59 = vunpack.c.l.bf16 %v22034_v45 }
0x158e   :  { %28701 = vmatpush3.bf16.msra.mxu1 %v33311_v39  ;;  %28731 = vmatprep.subr.bf16.mxu0 %v28730_v62  ;;  %v22024_v39 = vld [vmem:[#allocation7 + $0xf08] sm:$0xff] }
0x158f   :  { %28703 = vmatprep.subr.bf16.mxu1 %v33317_v5  ;;  %28733 = vmatpush1.bf16.msra.mxu0 %v28732_v56  ;;  %v22046_v5 = vunpack.c.h.bf16 %v22014_v38  ;;  %v22066_v37 = vunpack.c.h.bf16 %v22024_v39 }
0x1590   :  { %25220 = vmatprep.subr.msk.mxu0 %vm2634_vm3, %v22225_v60  ;;  %22410 = vmatprep.mubr.f32.mxu0 %v34472_v54 }
0x1591   :  { %v22173_v21 = vrot.slane %v22066_v37, 4  ;;  %v22017_v37 = vld [vmem:[#allocation7 + $0xed0] sm:$0xcc] }
0x1592   :  { %28705 = vmatpush3.bf16.msra.mxu1 %v33325_v31  ;;  %v22045_v31 = vunpack.c.l.bf16 %v22014_v38 }
0x1593   :  { %28707 = vmatprep.subr.bf16.mxu1 %v33331_v15  ;;  %25221 = vmatpush1.msk.msra.mxu0 %vm2634_vm3, %v22223_v10  ;;  %v22065_v15 = vunpack.c.l.bf16 %v22024_v39  ;;  %v22181_v10 = vrot.slane %v22049_v29, 4 }
0x1595   :  { %v22170_v33 = vrot.slane %v22065_v15, 4  ;;  %v22051_v15 = vunpack.c.l.bf16 %v22017_v37 }
0x1596   :  { %28709 = vmatpush3.bf16.msra.mxu1 %v33338_v53  ;;  %v22172_v53 = vrot.slane %v22046_v5, 4 }
0x1597   :  { %28711 = vmatprep.subr.bf16.mxu1 %v33344_v25  ;;  %v22229_v25 = vrot.slane %v22086_v9, 4  ;;  %v22027_v9 = vld [vmem:[#allocation7 + $0xf20] sm:$0xff] }
0x1598   :  { %v22174_v27 = vsel %vm2634_vm3, %v22172_v53, %v22173_v21  ;;  %v22072_v53 = vunpack.c.h.bf16 %v22027_v9 }
0x1599   :  { %v22230_v2 = vsel %vm2634_vm3, %v22173_v21, %v22229_v25 }
0x159a   :  { %28713 = vmatpush3.bf16.msra.mxu1 %v33350_v6  ;;  %v22169_v6 = vrot.slane %v22045_v31, 4  ;;  %v22037_v31 = vld [vmem:[#allocation7 + $0xf70] sm:$0xff] }
0x159b   :  { %28715 = vmatprep.subr.bf16.mxu1 %v33356_v4  ;;  %v22227_v4 = vrot.slane %v22085_v59, 4  ;;  %v22052_v59 = vunpack.c.h.bf16 %v22017_v37  ;;  %v22092_v21 = vunpack.c.h.bf16 %v22037_v31 }
0x159d   :  { %v22228_v26 = vsel %vm2634_vm3, %v22170_v33, %v22227_v4 }
0x159e   :  { %28717 = vmatpush3.bf16.msra.mxu1 %v33362_v35  ;;  %v28734_v35 = vpack.c.bf16 %v22230_v2, %v22174_v27  ;;  %v22038_v27 = vld [vmem:[#allocation7 + $0xf78] sm:$0xff]  ;;  %v22187_v2 = vrot.slane %v22051_v15, 4  ;;  %v22098_v15 = vunpack.c.h.bf16 %v22040_v28 }
0x159f   :  { %28719 = vmatprep.subr.bf16.mxu1 %v33368_v42  ;;  %v22171_v42 = vsel %vm2634_vm3, %v22169_v6, %v22170_v33  ;;  %v22018_v6 = vld [vmem:[#allocation7 + $0xed8] sm:$0xcc]  ;;  %v22028_v33 = vld [vmem:[#allocation7 + $0xf28] sm:$0xff]  ;;  %v22093_v50 = vunpack.c.l.bf16 %v22038_v27  ;;  %v22094_v49 = vunpack.c.h.bf16 %v22038_v27 }
0x15a2   :  { %28721 = vmatpush3.bf16.msra.mxu1 %v33374_v63  ;;  %v28736_v63 = vpack.c.bf16 %v22228_v26, %v22171_v42  ;;  %v22191_v42 = vrot.slane %v22072_v53, 4  ;;  %v33705_v26 = vrot.slane %v22092_v21, 4 }
0x15a3   :  { %28723 = vmatprep.subr.bf16.mxu1 %v33380_v18  ;;  %v34511_v18 = vld [vmem:[#allocation50_spill] sm:$0xff] }
0x15a4   :  { %v2188_v24 = vmax.f32 %v34511_v18, 0.0  ;;  %v22054_v18 = vunpack.c.h.bf16 %v22018_v6  ;;  %v33714_v29 = vsel %vm2634_vm3, %v22191_v42, %v33705_v26 }
0x15a6   :  { %28725 = vmatpush3.bf16.msra.mxu1 %v33388_v14  ;;  %v22015_v14 = vld [vmem:[#allocation7 + $0xec0] sm:$0xcc]  ;;  %v22196_v47 = vrot.slane %v22054_v18, 4 }
0x15a7   :  { %28727 = vmatprep.subr.bf16.mxu1 %v33394_v22  ;;  %v22025_v22 = vld [vmem:[#allocation7 + $0xf10] sm:$0xff]  ;;  %v22048_v11 = vunpack.c.h.bf16 %v22015_v14  ;;  %v22047_v19 = vunpack.c.l.bf16 %v22015_v14  ;;  %v22019_v14 = vld [vmem:[#allocation7 + $0xee0] sm:$0xcc] }
0x15a8   :  { %v22068_v51 = vunpack.c.h.bf16 %v22025_v22  ;;  %v22067_v57 = vunpack.c.l.bf16 %v22025_v22  ;;  %v22029_v22 = vld [vmem:[#allocation7 + $0xf30] sm:$0xff]  ;;  %v22055_v3 = vunpack.c.l.bf16 %v22019_v14 }
0x15a9   :  { %v22178_v34 = vrot.slane %v22048_v11, 4  ;;  %v22175_v12 = vrot.slane %v22047_v19, 4  ;;  %v22076_v30 = vunpack.c.h.bf16 %v22029_v22 }
0x15aa   :  { %28729 = vmatpush3.bf16.msra.mxu1 %v33402_v32  ;;  %v22026_v32 = vld [vmem:[#allocation7 + $0xf18] sm:$0xff]  ;;  %v22179_v44 = vrot.slane %v22068_v51, 4  ;;  %v22176_v0 = vrot.slane %v22067_v57, 4  ;;  %v22074_v51 = vunpack.c.h.bf16 %v22028_v33  ;;  %v22056_v57 = vunpack.c.h.bf16 %v22019_v14 }
0x15ab   :  { %28735 = vmatprep.subr.bf16.mxu1 %v28734_v35  ;;  %v22069_v41 = vunpack.c.l.bf16 %v22026_v32  ;;  %v22070_v60 = vunpack.c.h.bf16 %v22026_v32  ;;  %v22190_v35 = vrot.slane %v22052_v59, 4  ;;  %v22199_v27 = vrot.slane %v22055_v3, 4 }
0x15ac   :  { %v22180_v1 = vsel %vm2634_vm3, %v22178_v34, %v22179_v44  ;;  %v22234_v43 = vsel %vm2634_vm3, %v22179_v44, %v33673_v7  ;;  %v33683_v8 = vsel %vm2634_vm3, %v22175_v12, %v22176_v0  ;;  %v33689_v62 = vsel %vm2634_vm3, %v22176_v0, %v33675_v17  ;;  %v22020_v12 = vld [vmem:[#allocation7 + $0xee8] sm:$0xcc] }
0x15ad   :  { %22008 = vmatmul.mubr.f32.vlgmr.msra.gmra.mrb[54].mxu1 %v2188_v24  ;;  %v28738_v61 = vpack.c.bf16 %v22234_v43, %v22180_v1  ;;  %v22182_v40 = vrot.slane %v22069_v41, 4  ;;  %v22185_v55 = vrot.slane %v22070_v60, 4  ;;  %v28740_v56 = vpack.c.bf16 %v33689_v62, %v33683_v8  ;;  %v22030_v60 = vld [vmem:[#allocation7 + $0xf38] sm:$0xff] }
0x15ae   :  { %28737 = vmatpush1.bf16.msra.mxu1 %v28736_v63  ;;  %22481 = vmatprep.mubr.f32.mxu1 %v34472_v54  ;;  %v22053_v63 = vunpack.c.l.bf16 %v22018_v6  ;;  %v22073_v24 = vunpack.c.l.bf16 %v22028_v33  ;;  %v33710_v19 = vsel %vm2634_vm3, %v22190_v35, %v22191_v42  ;;  %v22197_v0 = vrot.slane %v22074_v51, 4 }
0x15af   :  { %25223 = vmatprep.subr.msk.mxu1 %vm2634_vm3, %v22229_v25  ;;  %28739 = vmatprep.subr.bf16.mxu0 %v28738_v61  ;;  %v33692_v23 = vsel %vm2634_vm3, %v22181_v10, %v22182_v40  ;;  %v22186_v20 = vsel %vm2634_vm3, %v22184_v13, %v22185_v55  ;;  %v33699_v38 = vsel %vm2634_vm3, %v22182_v40, %v33680_v36  ;;  %v22071_v25 = vunpack.c.l.bf16 %v22027_v9 }
0x15b0   :  { %v22238_v39 = vsel %vm2634_vm3, %v22185_v55, %v33685_v46  ;;  %v28744_v45 = vpack.c.bf16 %v33699_v38, %v33692_v23  ;;  %v22193_v34 = vrot.slane %v22053_v63, 4  ;;  %v22194_v44 = vrot.slane %v22073_v24, 4  ;;  %v22041_v23 = vld [vmem:[#allocation7 + $0xf90] sm:$0xff] }
0x15b1   :  { %v28742_v5 = vpack.c.bf16 %v22238_v39, %v22186_v20  ;;  %v22188_v11 = vrot.slane %v22071_v25, 4  ;;  %v33716_v41 = vrot.slane %v22093_v50, 4  ;;  %v33718_v1 = vrot.slane %v22094_v49, 4  ;;  %v22021_v50 = vld [vmem:[#allocation7 + $0xef0] sm:$0xcc] }
0x15b2   :  { %25224 = vmatpush1.msk.msra.mxu1 %vm2634_vm3, %v22227_v4  ;;  %v22091_v4 = vunpack.c.l.bf16 %v22037_v31  ;;  %v22075_v10 = vunpack.c.l.bf16 %v22029_v22  ;;  %v22095_v40 = vunpack.c.l.bf16 %v22039_v16  ;;  %v22202_v13 = vrot.slane %v22056_v57, 4  ;;  %v22042_v57 = vld [vmem:[#allocation7 + $0xf98] sm:$0xff] }
0x15b3   :  { %28743 = vmatprep.subr.bf16.mxu1 %v28742_v5  ;;  %v33721_v43 = vsel %vm2634_vm3, %v22187_v2, %v22188_v11  ;;  %v22203_v55 = vrot.slane %v22076_v30, 4  ;;  %v33727_v20 = vrot.slane %v22096_v58, 4  ;;  %v22057_v39 = vunpack.c.l.bf16 %v22020_v12 }
0x15b4   :  { %v33707_v32 = vrot.slane %v22091_v4, 4  ;;  %v22058_v37 = vunpack.c.h.bf16 %v22020_v12  ;;  %v22077_v9 = vunpack.c.l.bf16 %v22030_v60  ;;  %v22078_v31 = vunpack.c.h.bf16 %v22030_v60 }
0x15b5   :  { %v22198_v53 = vsel %vm2634_vm3, %v22196_v47, %v22197_v0  ;;  %v22246_v21 = vsel %vm2634_vm3, %v22197_v0, %v33718_v1  ;;  %v22195_v25 = vsel %vm2634_vm3, %v22193_v34, %v22194_v44  ;;  %v22097_v6 = vunpack.c.l.bf16 %v22040_v28 }
0x15b6   :  { %v33725_v61 = vsel %vm2634_vm3, %v22188_v11, %v33707_v32  ;;  %v22244_v4 = vsel %vm2634_vm3, %v22194_v44, %v33716_v41  ;;  %v22200_v2 = vrot.slane %v22075_v10, 4  ;;  %v33738_v35 = vsel %vm2634_vm3, %v22202_v13, %v22203_v55 }
0x15b7   :  { %v33740_v42 = vrot.slane %v22095_v40, 4  ;;  %v33744_v63 = vsel %vm2634_vm3, %v22203_v55, %v33727_v20  ;;  %v22205_v18 = vrot.slane %v22057_v39, 4  ;;  %v22206_v24 = vrot.slane %v22077_v9, 4 }
0x15b8   :  { %v22208_v14 = vrot.slane %v22058_v37, 4  ;;  %v22209_v22 = vrot.slane %v22078_v31, 4  ;;  %v33750_v16 = vrot.slane %v22098_v15, 4  ;;  %v28746_v11 = vpack.c.bf16 %v33714_v29, %v33710_v19  ;;  %v22032_v19 = vld [vmem:[#allocation7 + $0xf48] sm:$0xff] }
0x15b9   :  { %v33760_v51 = vrot.slane %v22097_v6, 4  ;;  %v28750_v49 = vpack.c.bf16 %v22246_v21, %v22198_v53  ;;  %v28748_v8 = vpack.c.bf16 %v33725_v61, %v33721_v43  ;;  %v28752_v62 = vpack.c.bf16 %v22244_v4, %v22195_v25 }
0x15ba   :  { %v28754_v38 = vpack.c.bf16 %v33744_v63, %v33738_v35  ;;  %v22210_v30 = vsel %vm2634_vm3, %v22208_v14, %v22209_v22  ;;  %v22254_v58 = vsel %vm2634_vm3, %v22209_v22, %v33750_v16  ;;  %v22207_v29 = vsel %vm2634_vm3, %v22205_v18, %v22206_v24 }
0x15bb   :  { %v22059_v34 = vunpack.c.l.bf16 %v22021_v50  ;;  %v22252_v44 = vsel %vm2634_vm3, %v22206_v24, %v33760_v51  ;;  %v22060_v47 = vunpack.c.h.bf16 %v22021_v50  ;;  %v22100_v0 = vunpack.c.h.bf16 %v22041_v23  ;;  %v26014_v50 = vld [vmem:[%s34416_s7 + $0x8] sm:$0xff]  }
0x15bc   :  { %v22082_v28 = vunpack.c.h.bf16 %v22032_v19  ;;  %v22102_v61 = vunpack.c.h.bf16 %v22042_v57  ;;  %v22081_v3 = vunpack.c.l.bf16 %v22032_v19  ;;  %v22101_v10 = vunpack.c.l.bf16 %v22042_v57  ;;  %v26041_v19 = vld [vmem:[%s34416_s7 + $0xe0] sm:$0xff]  }
0x15bd   :  { %v28758_v40 = vpack.c.bf16 %v22254_v58, %v22210_v30  ;;  %v28760_v55 = vpack.c.bf16 %v22252_v44, %v22207_v29  ;;  %v22211_v39 = vrot.slane %v22059_v34, 4  ;;  %v22257_v9 = vrot.slane %v22100_v0, 4  ;;  %v26017_v57 = vld [vmem:[%s34416_s7 + $0x20] sm:$0xff]   ;;  %v26026_v58 = vld [vmem:[%s34416_s7 + $0x68] sm:$0xff]   ;;  %v26019_v0 = vld [vmem:[%s34416_s7 + $0x30] sm:$0xff]  }
0x15be   :  { %v22261_v53 = vrot.slane %v22102_v61, 4  ;;  %v22218_v6 = vrot.slane %v22081_v3, 4  ;;  %v22259_v4 = vrot.slane %v22101_v10, 4  ;;  %v26033_v30 = vld [vmem:[%s34416_s7 + $0xa0] sm:$0xff]   ;;  %v26042_v29 = vld [vmem:[%s34416_s7 + $0xe8] sm:$0xff]   ;;  %v26020_v61 = vld [vmem:[%s34416_s7 + $0x38] sm:$0xff]  }
0x15bf   :  { %v26018_v34 = vld [vmem:[%s34416_s7 + $0x28] sm:$0xff]   ;;  %v26069_v3 = vld [vmem:[%s34416_s7 + $0x1c0] sm:$0xff]  }
0x15c0   :  { %v22260_v63 = vsel %vm2634_vm3, %v22218_v6, %v22259_v4  ;;  %v26034_v44 = vld [vmem:[%s34416_s7 + $0xa8] sm:$0xff]  }
0x15c1   :  { %v33937_v10 = vld [vmem:[#allocation8] sm:$0xff] }
0x1680   :  { %v26870_v5 = vpop.f32.mrb[54].mxu1 }
0x1681   :  { %v26871_v59 = vpop.f32.mrb[55].mxu1 }
0x1682   :  { %v33733_v33 = vadd.f32 %v26871_v59, %v26870_v5  ;;  %v22214_v5 = vrot.slane %v22060_v47, 4  ;;  %v22221_v59 = vrot.slane %v22082_v28, 4  ;;  %v26027_v47 = vld [vmem:[%s34416_s7 + $0x70] sm:$0xff]   ;;  %v26044_v28 = vld [vmem:[%s34416_s7 + $0xf8] sm:$0xff]  }
0x1684   :  { %25222 = vmatmul.mubr.msk.f32.vlgmr.msra.gmra.mrb[18].mxu0 %vm2775_vm4, %v33733_v33  ;;  %25225 = vmatmul.mubr.msk.f32.vlgmr.msra.gmra.mrb[28].mxu1 %vm2775_vm4, %v33733_v33 }
0x1685   :  { %28741 = vmatpush1.bf16.msra.mxu0 %v28740_v56  ;;  %28745 = vmatpush1.bf16.msra.mxu1 %v28744_v45  ;;  %v22031_v56 = vld [vmem:[#allocation7 + $0xf40] sm:$0xff]  ;;  %v22201_v45 = vsel %vm2634_vm3, %v22199_v27, %v22200_v2 }
0x1686   :  { %25226 = vmatprep.subr.msk.mxu0 %vm2634_vm3, %v33673_v7  ;;  %25229 = vmatprep.subr.msk.mxu1 %vm2634_vm3, %v33685_v46  ;;  %v22248_v7 = vsel %vm2634_vm3, %v22200_v2, %v33740_v42  ;;  %v22022_v46 = vld [vmem:[#allocation7 + $0xef8] sm:$0xcc]  ;;  %v22080_v12 = vunpack.c.h.bf16 %v22031_v56  ;;  %v22079_v43 = vunpack.c.l.bf16 %v22031_v56  ;;  %v22262_v2 = vsel %vm2634_vm3, %v22221_v59, %v22261_v53  ;;  %v26031_v56 = vld [vmem:[%s34416_s7 + $0x90] sm:$0xff]  }
0x1687   :  { %22552 = vmatprep.mubr.f32.mxu0 %v34472_v54  ;;  %22623 = vmatprep.mubr.f32.mxu1 %v34472_v54  ;;  %v22062_v60 = vunpack.c.h.bf16 %v22022_v46  ;;  %v28756_v13 = vpack.c.bf16 %v22248_v7, %v22201_v45  ;;  %v26016_v45 = vld [vmem:[%s34416_s7 + $0x18] sm:$0xff]  }
0x1688   :  { %v22215_v37 = vrot.slane %v22080_v12, 4  ;;  %v22212_v31 = vrot.slane %v22079_v43, 4  ;;  %v26032_v7 = vld [vmem:[%s34416_s7 + $0x98] sm:$0xff]   ;;  %v26043_v12 = vld [vmem:[%s34416_s7 + $0xf0] sm:$0xff]  }
0x1689   :  { %25227 = vmatpush1.msk.msra.mxu0 %vm2634_vm3, %v33675_v17  ;;  %25230 = vmatpush1.msk.msra.mxu1 %vm2634_vm3, %v33680_v36  ;;  %v22099_v17 = vunpack.c.l.bf16 %v22041_v23  ;;  %v22061_v36 = vunpack.c.l.bf16 %v22022_v46  ;;  %v22220_v15 = vrot.slane %v22062_v60, 4  ;;  %v26024_v23 = vld [vmem:[%s34416_s7 + $0x58] sm:$0xff]   ;;  %v26025_v46 = vld [vmem:[%s34416_s7 + $0x60] sm:$0xff]   ;;  %v26035_v43 = vld [vmem:[%s34416_s7 + $0xb0] sm:$0xff]  }
0x168a   :  { %25228 = vmatmul.mubr.msk.f32.vlgmr.msra.gmra.mrb[20].mxu0 %vm2775_vm4, %v33733_v33  ;;  %25231 = vmatmul.mubr.msk.f32.vlgmr.msra.gmra.mrb[30].mxu1 %vm2775_vm4, %v33733_v33  ;;  %v26028_v60 = vld [vmem:[%s34416_s7 + $0x78] sm:$0xff]  }
0x168b   :  { %28747 = vmatprep.subr.bf16.mxu0 %v28746_v11  ;;  %28751 = vmatprep.subr.bf16.mxu1 %v28750_v49  ;;  %v22255_v21 = vrot.slane %v22099_v17, 4  ;;  %v22217_v25 = vrot.slane %v22061_v36, 4  ;;  %v22222_v27 = vsel %vm2634_vm3, %v22220_v15, %v22221_v59  ;;  %v26022_v11 = vld [vmem:[%s34416_s7 + $0x48] sm:$0xff]   ;;  %v26023_v49 = vld [vmem:[%s34416_s7 + $0x50] sm:$0xff]   ;;  %v26036_v17 = vld [vmem:[%s34416_s7 + $0xb8] sm:$0xff]  }
0x168c   :  { %28749 = vmatpush1.bf16.msra.mxu0 %v28748_v8  ;;  %28753 = vmatpush1.bf16.msra.mxu1 %v28752_v62  ;;  %v28766_v24 = vpack.c.bf16 %v22262_v2, %v22222_v27  ;;  %v26039_v8 = vld [vmem:[%s34416_s7 + $0xd0] sm:$0xff]   ;;  %v26053_v36 = vld [vmem:[%s34416_s7 + $0x140] sm:$0xff]   ;;  %v34515_v2 = vld [vmem:[#allocation35_spill] sm:$0xff] }
0x168d   :  { %25232 = vmatprep.subr.msk.mxu0 %vm2634_vm3, %v33705_v26  ;;  %25235 = vmatprep.subr.msk.mxu1 %vm2634_vm3, %v33718_v1  ;;  %v22216_v26 = vsel %vm2634_vm3, %v22214_v5, %v22215_v37  ;;  %v22258_v1 = vsel %vm2634_vm3, %v22215_v37, %v22257_v9  ;;  %v22219_v35 = vsel %vm2634_vm3, %v22217_v25, %v22218_v6  ;;  %v26015_v62 = vld [vmem:[%s34416_s7 + $0x10] sm:$0xff]   ;;  %v34513_v5 = vld [vmem:[#allocation19_spill] sm:$0xff] }
0x168e   :  { %22694 = vmatprep.mubr.f32.mxu0 %v34472_v54  ;;  %22765 = vmatprep.mubr.f32.mxu1 %v34472_v54  ;;  %v28762_v18 = vpack.c.bf16 %v22258_v1, %v22216_v26  ;;  %v28768_v22 = vpack.c.bf16 %v22260_v63, %v22219_v35  ;;  %v23097_v37 = vrot.slane %v33937_v10, %v34513_v5  ;;  %v34514_v1 = vld [vmem:[#allocation17_spill] sm:$0xff]  ;;  %v26045_v63 = vld [vmem:[%s34416_s7 + $0x100] sm:$0xff]  }
0x168f   :  { %v23105_v27 = vrot.slane %v33937_v10, %v34514_v1 }
0x1690   :  { %25233 = vmatpush1.msk.msra.mxu0 %vm2634_vm3, %v33707_v32  ;;  %25236 = vmatpush1.msk.msra.mxu1 %vm2634_vm3, %v33716_v41  ;;  %v22213_v32 = vsel %vm2634_vm3, %v22211_v39, %v22212_v31  ;;  %v22256_v41 = vsel %vm2634_vm3, %v22212_v31, %v22255_v21  ;;  %v23089_v39 = vrot.slane %v33937_v10, %v30606_v52 }
0x1691   :  { %25234 = vmatmul.mubr.msk.f32.vlgmr.msra.gmra.mrb[22].mxu0 %vm2775_vm4, %v33733_v33  ;;  %25237 = vmatmul.mubr.msk.f32.vlgmr.msra.gmra.mrb[32].mxu1 %vm2775_vm4, %v33733_v33  ;;  %v28764_v14 = vpack.c.bf16 %v22256_v41, %v22213_v32  ;;  %v23113_v32 = vrot.slane %v33937_v10, %v34515_v2 }
0x1692   :  { %28755 = vmatprep.subr.bf16.mxu0 %v28754_v38  ;;  %28759 = vmatprep.subr.bf16.mxu1 %v28758_v40  ;;  %v26040_v38 = vld [vmem:[%s34416_s7 + $0xd8] sm:$0xff]   ;;  %v23085_v40 = vrot.slane %v33937_v10, %v30596_v48 }
0x1693   :  { %28757 = vmatpush1.bf16.msra.mxu0 %v28756_v13  ;;  %28761 = vmatpush1.bf16.msra.mxu1 %v28760_v55  ;;  %v34512_v13 = vld [vmem:[#allocation18_spill] sm:$0xff] }
0x1694   :  { %25238 = vmatprep.subr.msk.mxu0 %vm2634_vm3, %v33727_v20  ;;  %25241 = vmatprep.subr.msk.mxu1 %vm2634_vm3, %v33750_v16  ;;  %v26021_v20 = vld [vmem:[%s34416_s7 + $0x40] sm:$0xff]   ;;  %v23093_v55 = vrot.slane %v33937_v10, %v34512_v13 }
0x1695   :  { %22836 = vmatprep.mubr.f32.mxu0 %v34472_v54  ;;  %22907 = vmatprep.mubr.f32.mxu1 %v34472_v54  ;;  %v25352_v16 = vld [vmem:[%s34416_s7] sm:$0xff]  }
0x1697   :  { %25239 = vmatpush1.msk.msra.mxu0 %vm2634_vm3, %v33740_v42  ;;  %25242 = vmatpush1.msk.msra.mxu1 %vm2634_vm3, %v33760_v51  ;;  %v26037_v42 = vld [vmem:[%s34416_s7 + $0xc0] sm:$0xff]   ;;  %v26038_v51 = vld [vmem:[%s34416_s7 + $0xc8] sm:$0xff]  }
0x1698   :  { %25240 = vmatmul.mubr.msk.f32.vlgmr.msra.gmra.mrb[24].mxu0 %vm2775_vm4, %v33733_v33  ;;  %25243 = vmatmul.mubr.msk.f32.vlgmr.msra.gmra.mrb[34].mxu1 %vm2775_vm4, %v33733_v33 }
0x1699   :  { %28763 = vmatprep.subr.bf16.mxu0 %v28762_v18  ;;  %28767 = vmatprep.subr.bf16.mxu1 %v28766_v24  ;;  %v26061_v18 = vld [vmem:[%s34416_s7 + $0x180] sm:$0xff]  }
0x169a   :  { %28765 = vmatpush1.bf16.msra.mxu0 %v28764_v14  ;;  %28769 = vmatpush1.bf16.msra.mxu1 %v28768_v22  ;;  %v26054_v22 = vld [vmem:[%s34416_s7 + $0x148] sm:$0xff]  }
0x169b   :  { %25244 = vmatprep.subr.msk.mxu0 %vm2634_vm3, %v22257_v9  ;;  %25247 = vmatprep.subr.msk.mxu1 %vm2634_vm3, %v22261_v53 }
0x169c   :  { %22978 = vmatprep.mubr.f32.mxu0 %v34472_v54  ;;  %23049 = vmatprep.mubr.f32.mxu1 %v34472_v54  ;;  %v26029_v54 = vld [vmem:[%s34416_s7 + $0x80] sm:$0xff]  }
0x169e   :  { %25245 = vmatpush1.msk.msra.mxu0 %vm2634_vm3, %v22255_v21  ;;  %25248 = vmatpush1.msk.msra.mxu1 %vm2634_vm3, %v22259_v4 }
0x169f   :  { %25246 = vmatmul.mubr.msk.f32.vlgmr.msra.gmra.mrb[26].mxu0 %vm2775_vm4, %v33733_v33  ;;  %25249 = vmatmul.mubr.msk.f32.vlgmr.msra.gmra.mrb[36].mxu1 %vm2775_vm4, %v33733_v33  ;;  %v26030_v33 = vld [vmem:[%s34416_s7 + $0x88] sm:$0xff]  }
0x16a0   :  { %28771 = vmatprep.subr.bf16.mxu0 %v26021_v20  ;;  %28803 = vmatprep.subr.bf16.mxu1 %v26037_v42  ;;  %v26070_v20 = vld [vmem:[%s34416_s7 + $0x1c8] sm:$0xff]  }
0x16a1   :  { %28773 = vmatpush3.bf16.msra.mxu0 %v25352_v16  ;;  %28805 = vmatpush3.bf16.msra.mxu1 %v26029_v54 }
0x16a2   :  { %28775 = vmatprep.subr.bf16.mxu0 %v26022_v11  ;;  %28807 = vmatprep.subr.bf16.mxu1 %v26038_v51  ;;  %v26046_v51 = vld [vmem:[%s34416_s7 + $0x108] sm:$0xff]  }
0x16a5   :  { %28777 = vmatpush3.bf16.msra.mxu0 %v26014_v50  ;;  %28809 = vmatpush3.bf16.msra.mxu1 %v26030_v33 }
0x16a6   :  { %28779 = vmatprep.subr.bf16.mxu0 %v26023_v49  ;;  %28811 = vmatprep.subr.bf16.mxu1 %v26039_v8  ;;  %v26062_v49 = vld [vmem:[%s34416_s7 + $0x188] sm:$0xff]   ;;  %v26055_v8 = vld [vmem:[%s34416_s7 + $0x150] sm:$0xff]  }
0x16a9   :  { %28781 = vmatpush3.bf16.msra.mxu0 %v26015_v62  ;;  %28813 = vmatpush3.bf16.msra.mxu1 %v26031_v56  ;;  %v26071_v62 = vld [vmem:[%s34416_s7 + $0x1d0] sm:$0xff]  }
0x16aa   :  { %28783 = vmatprep.subr.bf16.mxu0 %v26024_v23  ;;  %28815 = vmatprep.subr.bf16.mxu1 %v26040_v38  ;;  %v26047_v38 = vld [vmem:[%s34416_s7 + $0x110] sm:$0xff]  }
0x16ad   :  { %28785 = vmatpush3.bf16.msra.mxu0 %v26016_v45  ;;  %28817 = vmatpush3.bf16.msra.mxu1 %v26032_v7 }
0x16ae   :  { %28787 = vmatprep.subr.bf16.mxu0 %v26025_v46  ;;  %28819 = vmatprep.subr.bf16.mxu1 %v26041_v19  ;;  %v26063_v46 = vld [vmem:[%s34416_s7 + $0x190] sm:$0xff]   ;;  %v26056_v19 = vld [vmem:[%s34416_s7 + $0x158] sm:$0xff]  }
0x16b1   :  { %28789 = vmatpush3.bf16.msra.mxu0 %v26017_v57  ;;  %28821 = vmatpush3.bf16.msra.mxu1 %v26033_v30  ;;  %v26072_v57 = vld [vmem:[%s34416_s7 + $0x1d8] sm:$0xff]  }
0x16b2   :  { %28791 = vmatprep.subr.bf16.mxu0 %v26026_v58  ;;  %28823 = vmatprep.subr.bf16.mxu1 %v26042_v29  ;;  %v26048_v30 = vld [vmem:[%s34416_s7 + $0x118] sm:$0xff]   ;;  %v26057_v29 = vld [vmem:[%s34416_s7 + $0x160] sm:$0xff]  }
0x16b3   :  { %v26064_v58 = vld [vmem:[%s34416_s7 + $0x198] sm:$0xff]  }
0x16b5   :  { %28793 = vmatpush3.bf16.msra.mxu0 %v26018_v34  ;;  %28825 = vmatpush3.bf16.msra.mxu1 %v26034_v44  ;;  %v26073_v34 = vld [vmem:[%s34416_s7 + $0x1e0] sm:$0xff]  }
0x16b6   :  { %28795 = vmatprep.subr.bf16.mxu0 %v26027_v47  ;;  %28827 = vmatprep.subr.bf16.mxu1 %v26043_v12 }
0x16b9   :  { %28797 = vmatpush3.bf16.msra.mxu0 %v26019_v0  ;;  %28829 = vmatpush3.bf16.msra.mxu1 %v26035_v43  ;;  %v26049_v43 = vld [vmem:[%s34416_s7 + $0x120] sm:$0xff]  }
0x16ba   :  { %28799 = vmatprep.subr.bf16.mxu0 %v26028_v60  ;;  %28831 = vmatprep.subr.bf16.mxu1 %v26044_v28  ;;  %v26065_v60 = vld [vmem:[%s34416_s7 + $0x1a0] sm:$0xff]   ;;  %v26058_v28 = vld [vmem:[%s34416_s7 + $0x168] sm:$0xff]  }
0x16bd   :  { %28801 = vmatpush3.bf16.msra.mxu0 %v26020_v61  ;;  %28833 = vmatpush3.bf16.msra.mxu1 %v26036_v17  ;;  %v26074_v61 = vld [vmem:[%s34416_s7 + $0x1e8] sm:$0xff]  }
0x16be   :  { %28835 = vmatprep.subr.bf16.mxu0 %v26053_v36  ;;  %28867 = vmatprep.subr.bf16.mxu1 %v26069_v3  ;;  %v26050_v17 = vld [vmem:[%s34416_s7 + $0x128] sm:$0xff]   ;;  %v26059_v3 = vld [vmem:[%s34416_s7 + $0x170] sm:$0xff]  }
0x16bf   :  { %v26066_v36 = vld [vmem:[%s34416_s7 + $0x1a8] sm:$0xff]  }
0x1757   :  { %v22412_v9 = vpop.f32.mrb[18].mxu0  ;;  %v22483_v31 = vpop.f32.mrb[28].mxu1 }
0x1758   :  { %v23182_v15 = vadd.f32 %v23085_v40, %v22412_v9  ;;  %v23184_v59 = vadd.f32 %v23093_v55, %v22483_v31  ;;  %v22414_v53 = vpop.f32.mrb[19].mxu0  ;;  %v22485_v21 = vpop.f32.mrb[29].mxu1 }
0x1759   :  { %v23183_v25 = vadd.f32 %v23089_v39, %v22414_v53  ;;  %v23185_v6 = vadd.f32 %v23097_v37, %v22485_v21  ;;  %v26075_v39 = vld [vmem:[%s34416_s7 + $0x1f0] sm:$0xff]   ;;  %v34517_v21 = vld [vmem:[#allocation32_spill] sm:$0xff] }
0x175a   :  { %v23202_v41 = vmax.f32 %v23182_v15, 0.0  ;;  %v23204_v35 = vmax.f32 %v23184_v59, 0.0  ;;  %v34043_v37 = vld [vmem:[#allocation8 + $0x8] sm:$0xff]  ;;  %v34516_v15 = vld [vmem:[#allocation16_spill] sm:$0xff] }
0x175b   :  { %v23203_v4 = vmax.f32 %v23183_v25, 0.0  ;;  %v23205_v26 = vmax.f32 %v23185_v6, 0.0  ;;  %v23101_v59 = vrot.slane %v33937_v10, %v34516_v15  ;;  %v26051_v53 = vld [vmem:[%s34416_s7 + $0x130] sm:$0xff]   ;;  %v23109_v25 = vrot.slane %v33937_v10, %v34517_v21 }
0x175c   :  { %v26067_v6 = vld [vmem:[%s34416_s7 + $0x1b0] sm:$0xff]  }
0x175d   :  { %v33957_v24 = vpop.f32.mrb[20].mxu0  ;;  %v33959_v14 = vpop.f32.mrb[30].mxu1  ;;  %23933 = vmatprep.mubr.f32.mxu0 %v23203_v4  ;;  %24003 = vmatprep.mubr.f32.mxu1 %v23205_v26  ;;  %v26060_v4 = vld [vmem:[%s34416_s7 + $0x178] sm:$0xff]   ;;  %v23121_v26 = vrot.slane %v34043_v37, %v30606_v52 }
0x175e   :  { %v22556_v42 = vpop.f32.mrb[21].mxu0  ;;  %v22627_v16 = vpop.f32.mrb[31].mxu1  ;;  %23934 = vmatmul.mubr.f32.vlgmr.msra.gmra.mrb[46].mxu0 %v23202_v41  ;;  %24004 = vmatmul.mubr.f32.vlgmr.msra.gmra.mrb[56].mxu1 %v23204_v35  ;;  %v23186_v10 = vadd.f32 %v23101_v59, %v33957_v24  ;;  %v26052_v41 = vld [vmem:[%s34416_s7 + $0x138] sm:$0xff]   ;;  %v23188_v35 = vadd.f32 %v23109_v25, %v33959_v14  ;;  %v26101_v24 = vld [vmem:[%s34416_s7 + $0x2c0] sm:$0xff]   ;;  %v26083_v59 = vld [vmem:[%s34416_s7 + $0x230] sm:$0xff]  }
0x175f   :  { %v23187_v54 = vadd.f32 %v23105_v27, %v22556_v42  ;;  %v23189_v11 = vadd.f32 %v23113_v32, %v22627_v16  ;;  %28837 = vmatpush3.bf16.msra.mxu0 %v26045_v63  ;;  %28869 = vmatpush3.bf16.msra.mxu1 %v26061_v18  ;;  %v26076_v27 = vld [vmem:[%s34416_s7 + $0x1f8] sm:$0xff]   ;;  %v23129_v32 = vrot.slane %v34043_v37, %v34513_v5  ;;  %v26085_v18 = vld [vmem:[%s34416_s7 + $0x240] sm:$0xff]   ;;  %v26099_v25 = vld [vmem:[%s34416_s7 + $0x2b0] sm:$0xff]  }
0x1760   :  { %28839 = vmatprep.subr.bf16.mxu0 %v26054_v22  ;;  %28871 = vmatprep.subr.bf16.mxu1 %v26070_v20  ;;  %v26068_v63 = vld [vmem:[%s34416_s7 + $0x1b8] sm:$0xff]   ;;  %v23206_v42 = vmax.f32 %v23186_v10, 0.0  ;;  %v26077_v14 = vld [vmem:[%s34416_s7 + $0x200] sm:$0xff]   ;;  %v23208_v16 = vmax.f32 %v23188_v35, 0.0 }
0x1761   :  { %v23207_v50 = vmax.f32 %v23187_v54, 0.0  ;;  %v23209_v33 = vmax.f32 %v23189_v11, 0.0  ;;  %v26093_v54 = vld [vmem:[%s34416_s7 + $0x280] sm:$0xff]   ;;  %v26084_v10 = vld [vmem:[%s34416_s7 + $0x238] sm:$0xff]  }
0x1763   :  { %28841 = vmatpush3.bf16.msra.mxu0 %v26046_v51  ;;  %24073 = vmatprep.mubr.f32.mxu0 %v23207_v50  ;;  %v26086_v51 = vld [vmem:[%s34416_s7 + $0x248] sm:$0xff]  }
0x1764   :  { %v33979_v56 = vpop.f32.mrb[22].mxu0  ;;  %v33981_v23 = vpop.f32.mrb[32].mxu1  ;;  %28873 = vmatpush3.bf16.msra.mxu1 %v26062_v49  ;;  %24143 = vmatprep.mubr.f32.mxu1 %v23209_v33  ;;  %v26102_v33 = vld [vmem:[%s34416_s7 + $0x2c8] sm:$0xff]  }
0x1765   :  { %v22698_v45 = vpop.f32.mrb[23].mxu0  ;;  %v22769_v7 = vpop.f32.mrb[33].mxu1  ;;  %28843 = vmatprep.subr.bf16.mxu0 %v26055_v8  ;;  %28875 = vmatprep.subr.bf16.mxu1 %v26071_v62  ;;  %v26078_v49 = vld [vmem:[%s34416_s7 + $0x208] sm:$0xff]   ;;  %v26087_v62 = vld [vmem:[%s34416_s7 + $0x250] sm:$0xff]  }
0x1766   :  { %v23191_v22 = vadd.f32 %v23121_v26, %v22698_v45  ;;  %v23193_v20 = vadd.f32 %v23129_v32, %v22769_v7  ;;  %v26094_v8 = vld [vmem:[%s34416_s7 + $0x288] sm:$0xff]   ;;  %v26079_v45 = vld [vmem:[%s34416_s7 + $0x210] sm:$0xff]   ;;  %v26108_v26 = vld [vmem:[%s34416_s7 + $0x2f8] sm:$0xff]  }
0x1767   :  { %28845 = vmatpush3.bf16.msra.mxu0 %v26047_v38  ;;  %v26103_v38 = vld [vmem:[%s34416_s7 + $0x2d0] sm:$0xff]  }
0x1768   :  { %28877 = vmatpush3.bf16.msra.mxu1 %v26063_v46  ;;  %28847 = vmatprep.subr.bf16.mxu0 %v26056_v19  ;;  %v23211_v11 = vmax.f32 %v23191_v22, 0.0  ;;  %v23213_v50 = vmax.f32 %v23193_v20, 0.0  ;;  %v26095_v7 = vld [vmem:[%s34416_s7 + $0x290] sm:$0xff]   ;;  %v26088_v46 = vld [vmem:[%s34416_s7 + $0x258] sm:$0xff]  }
0x1769   :  { %28879 = vmatprep.subr.bf16.mxu1 %v26072_v57  ;;  %v26104_v19 = vld [vmem:[%s34416_s7 + $0x2d8] sm:$0xff]  }
0x176a   :  { %v26080_v57 = vld [vmem:[%s34416_s7 + $0x218] sm:$0xff]  }
0x176b   :  { %v34007_v44 = vpop.f32.mrb[24].mxu0  ;;  %v34009_v47 = vpop.f32.mrb[34].mxu1  ;;  %28849 = vmatpush3.bf16.msra.mxu0 %v26048_v30  ;;  %v26096_v30 = vld [vmem:[%s34416_s7 + $0x298] sm:$0xff]  }
0x176c   :  { %v34011_v12 = vpop.f32.mrb[25].mxu0  ;;  %v34013_v0 = vpop.f32.mrb[35].mxu1  ;;  %28881 = vmatpush3.bf16.msra.mxu1 %v26064_v58  ;;  %28851 = vmatprep.subr.bf16.mxu0 %v26057_v29  ;;  %v26089_v58 = vld [vmem:[%s34416_s7 + $0x260] sm:$0xff]  }
0x176d   :  { %28883 = vmatprep.subr.bf16.mxu1 %v26073_v34  ;;  %v26105_v29 = vld [vmem:[%s34416_s7 + $0x2e0] sm:$0xff]  }
0x176e   :  { %v26081_v34 = vld [vmem:[%s34416_s7 + $0x220] sm:$0xff]  }
0x176f   :  { %28853 = vmatpush3.bf16.msra.mxu0 %v26049_v43  ;;  %v26097_v43 = vld [vmem:[%s34416_s7 + $0x2a0] sm:$0xff]  }
0x1770   :  { %28885 = vmatpush3.bf16.msra.mxu1 %v26065_v60  ;;  %28855 = vmatprep.subr.bf16.mxu0 %v26058_v28  ;;  %v26090_v60 = vld [vmem:[%s34416_s7 + $0x268] sm:$0xff]  }
0x1771   :  { %28887 = vmatprep.subr.bf16.mxu1 %v26074_v61  ;;  %v26106_v28 = vld [vmem:[%s34416_s7 + $0x2e8] sm:$0xff]  }
0x1772   :  { %v34036_v40 = vpop.f32.mrb[26].mxu0  ;;  %v34038_v55 = vpop.f32.mrb[36].mxu1  ;;  %v26082_v61 = vld [vmem:[%s34416_s7 + $0x228] sm:$0xff]  }
0x1773   :  { %v34045_v9 = vpop.f32.mrb[27].mxu0  ;;  %v34047_v31 = vpop.f32.mrb[37].mxu1  ;;  %28857 = vmatpush3.bf16.msra.mxu0 %v26050_v17  ;;  %v26098_v17 = vld [vmem:[%s34416_s7 + $0x2a8] sm:$0xff]  }
0x1774   :  { %28889 = vmatpush3.bf16.msra.mxu1 %v26066_v36  ;;  %28859 = vmatprep.subr.bf16.mxu0 %v26059_v3  ;;  %v26091_v36 = vld [vmem:[%s34416_s7 + $0x270] sm:$0xff]  }
0x1775   :  { %28891 = vmatprep.subr.bf16.mxu1 %v26075_v39  ;;  %v26107_v3 = vld [vmem:[%s34416_s7 + $0x2f0] sm:$0xff]   ;;  %v23117_v39 = vrot.slane %v34043_v37, %v30596_v48 }
0x1777   :  { %28861 = vmatpush3.bf16.msra.mxu0 %v26051_v53  ;;  %v23125_v53 = vrot.slane %v34043_v37, %v34512_v13  ;;  %v23190_v32 = vadd.f32 %v23117_v39, %v33979_v56  ;;  %v26133_v56 = vld [vmem:[%s34416_s7 + $0x3c0] sm:$0xff]  }
0x1778   :  { %28893 = vmatpush3.bf16.msra.mxu1 %v26067_v6  ;;  %28863 = vmatprep.subr.bf16.mxu0 %v26060_v4  ;;  %v26092_v6 = vld [vmem:[%s34416_s7 + $0x278] sm:$0xff]   ;;  %v23137_v4 = vrot.slane %v34043_v37, %v34514_v1 }
0x1779   :  { %28895 = vmatprep.subr.bf16.mxu1 %v26076_v27  ;;  %v23145_v27 = vrot.slane %v34043_v37, %v34515_v2  ;;  %v26100_v1 = vld [vmem:[%s34416_s7 + $0x2b8] sm:$0xff]   ;;  %v26117_v2 = vld [vmem:[%s34416_s7 + $0x340] sm:$0xff]  }
0x177a   :  { %v23195_v35 = vadd.f32 %v23137_v4, %v34011_v12  ;;  %v26125_v12 = vld [vmem:[%s34416_s7 + $0x380] sm:$0xff]  }
0x177b   :  { %28865 = vmatpush3.bf16.msra.mxu0 %v26052_v41  ;;  %v23192_v41 = vadd.f32 %v23125_v53, %v33981_v23  ;;  %v26109_v23 = vld [vmem:[%s34416_s7 + $0x300] sm:$0xff]  }
0x177c   :  { %28897 = vmatpush3.bf16.msra.mxu1 %v26068_v63  ;;  %28899 = vmatprep.subr.bf16.mxu0 %v26085_v18  ;;  %v23197_v63 = vadd.f32 %v23145_v27, %v34013_v0  ;;  %v23210_v18 = vmax.f32 %v23190_v32, 0.0  ;;  %v26118_v0 = vld [vmem:[%s34416_s7 + $0x348] sm:$0xff]  }
0x177d   :  { %28931 = vmatprep.subr.bf16.mxu1 %v26101_v24  ;;  %v23212_v22 = vmax.f32 %v23192_v41, 0.0  ;;  %v23215_v24 = vmax.f32 %v23195_v35, 0.0  ;;  %v26166_v32 = vld [vmem:[%s34416_s7 + $0x4c8] sm:$0xff]   ;;  %v26143_v35 = vld [vmem:[%s34416_s7 + $0x410] sm:$0xff]  }
0x177e   :  { %24074 = vmatmul.mubr.f32.vlgmr.msra.gmra.mrb[48].mxu0 %v23206_v42  ;;  %v23217_v20 = vmax.f32 %v23197_v63, 0.0  ;;  %v26134_v42 = vld [vmem:[%s34416_s7 + $0x3c8] sm:$0xff]   ;;  %v26152_v63 = vld [vmem:[%s34416_s7 + $0x458] sm:$0xff]  }
0x177f   :  { %24144 = vmatmul.mubr.f32.vlgmr.msra.gmra.mrb[58].mxu1 %v23208_v16  ;;  %28901 = vmatpush3.bf16.msra.mxu0 %v26077_v14  ;;  %v26110_v14 = vld [vmem:[%s34416_s7 + $0x308] sm:$0xff]  }
0x1780   :  { %24213 = vmatprep.mubr.f32.mxu0 %v23211_v11  ;;  %28933 = vmatpush3.bf16.msra.mxu1 %v26093_v54  ;;  %v26126_v16 = vld [vmem:[%s34416_s7 + $0x388] sm:$0xff]   ;;  %v26119_v54 = vld [vmem:[%s34416_s7 + $0x350] sm:$0xff]  }
0x1781   :  { %24283 = vmatprep.mubr.f32.mxu1 %v23213_v50  ;;  %28903 = vmatprep.subr.bf16.mxu0 %v26086_v51  ;;  %v26135_v11 = vld [vmem:[%s34416_s7 + $0x3d0] sm:$0xff]   ;;  %v26158_v41 = vld [vmem:[%s34416_s7 + $0x488] sm:$0xff]  }
0x1782   :  { %28935 = vmatprep.subr.bf16.mxu1 %v26102_v33  ;;  %v26111_v51 = vld [vmem:[%s34416_s7 + $0x310] sm:$0xff]   ;;  %v26120_v33 = vld [vmem:[%s34416_s7 + $0x358] sm:$0xff]  }
0x1783   :  { %28905 = vmatpush3.bf16.msra.mxu0 %v26078_v49  ;;  %v26127_v50 = vld [vmem:[%s34416_s7 + $0x390] sm:$0xff]   ;;  %v26136_v49 = vld [vmem:[%s34416_s7 + $0x3d8] sm:$0xff]  }
0x1784   :  { %28937 = vmatpush3.bf16.msra.mxu1 %v26094_v8  ;;  %28907 = vmatprep.subr.bf16.mxu0 %v26087_v62  ;;  %v26112_v8 = vld [vmem:[%s34416_s7 + $0x318] sm:$0xff]  }
0x1785   :  { %28939 = vmatprep.subr.bf16.mxu1 %v26103_v38  ;;  %v26128_v62 = vld [vmem:[%s34416_s7 + $0x398] sm:$0xff]   ;;  %v26121_v38 = vld [vmem:[%s34416_s7 + $0x360] sm:$0xff]  }
0x1787   :  { %28909 = vmatpush3.bf16.msra.mxu0 %v26079_v45  ;;  %v26137_v45 = vld [vmem:[%s34416_s7 + $0x3e0] sm:$0xff]  }
0x1788   :  { %28941 = vmatpush3.bf16.msra.mxu1 %v26095_v7  ;;  %28911 = vmatprep.subr.bf16.mxu0 %v26088_v46  ;;  %v26113_v7 = vld [vmem:[%s34416_s7 + $0x320] sm:$0xff]  }
0x1789   :  { %28943 = vmatprep.subr.bf16.mxu1 %v26104_v19  ;;  %v26129_v46 = vld [vmem:[%s34416_s7 + $0x3a0] sm:$0xff]   ;;  %v26122_v19 = vld [vmem:[%s34416_s7 + $0x368] sm:$0xff]  }
0x178b   :  { %28913 = vmatpush3.bf16.msra.mxu0 %v26080_v57  ;;  %v26138_v57 = vld [vmem:[%s34416_s7 + $0x3e8] sm:$0xff]  }
0x178c   :  { %28945 = vmatpush3.bf16.msra.mxu1 %v26096_v30  ;;  %28915 = vmatprep.subr.bf16.mxu0 %v26089_v58  ;;  %v26114_v30 = vld [vmem:[%s34416_s7 + $0x328] sm:$0xff]  }
0x178d   :  { %28947 = vmatprep.subr.bf16.mxu1 %v26105_v29  ;;  %v26130_v58 = vld [vmem:[%s34416_s7 + $0x3a8] sm:$0xff]   ;;  %v26123_v29 = vld [vmem:[%s34416_s7 + $0x370] sm:$0xff]  }
0x178f   :  { %28917 = vmatpush3.bf16.msra.mxu0 %v26081_v34  ;;  %v26139_v34 = vld [vmem:[%s34416_s7 + $0x3f0] sm:$0xff]  }
0x1790   :  { %28949 = vmatpush3.bf16.msra.mxu1 %v26097_v43  ;;  %28919 = vmatprep.subr.bf16.mxu0 %v26090_v60  ;;  %v34263_v43 = vld [vmem:[#allocation8 + $0x10] sm:$0xf]  ;;  %v23133_v60 = vrot.slane %v34043_v37, %v34516_v15 }
0x1791   :  { %28951 = vmatprep.subr.bf16.mxu1 %v26106_v28  ;;  %v26115_v28 = vld [vmem:[%s34416_s7 + $0x330] sm:$0xff]   ;;  %v23153_v15 = vrot.slane %v34263_v43, %v30606_v52  ;;  %v23161_v39 = vrot.slane %v34263_v43, %v34513_v5  ;;  %v26132_v52 = vld [vmem:[%s34416_s7 + $0x3b8] sm:$0xff]   ;;  %v26149_v5 = vld [vmem:[%s34416_s7 + $0x440] sm:$0xff]  }
0x1793   :  { %28921 = vmatpush3.bf16.msra.mxu0 %v26082_v61  ;;  %v23141_v61 = vrot.slane %v34043_v37, %v34517_v21  ;;  %v23194_v37 = vadd.f32 %v23133_v60, %v34007_v44  ;;  %v26116_v21 = vld [vmem:[%s34416_s7 + $0x338] sm:$0xff]   ;;  %v23199_v53 = vadd.f32 %v23153_v15, %v34045_v9  ;;  %v26165_v44 = vld [vmem:[%s34416_s7 + $0x4c0] sm:$0xff]  }
0x1794   :  { %28953 = vmatpush3.bf16.msra.mxu1 %v26098_v17  ;;  %28923 = vmatprep.subr.bf16.mxu0 %v26091_v36  ;;  %v26131_v17 = vld [vmem:[%s34416_s7 + $0x3b0] sm:$0xff]   ;;  %v26124_v36 = vld [vmem:[%s34416_s7 + $0x378] sm:$0xff]   ;;  %v26157_v9 = vld [vmem:[%s34416_s7 + $0x480] sm:$0xff]  }
0x1795   :  { %28955 = vmatprep.subr.bf16.mxu1 %v26107_v3  ;;  %v26140_v3 = vld [vmem:[%s34416_s7 + $0x3f8] sm:$0xff]  }
0x1797   :  { %28925 = vmatpush3.bf16.msra.mxu0 %v26083_v59  ;;  %v23196_v59 = vadd.f32 %v23141_v61, %v34009_v47  ;;  %v26141_v47 = vld [vmem:[%s34416_s7 + $0x400] sm:$0xff]  }
0x1798   :  { %28957 = vmatpush3.bf16.msra.mxu1 %v26099_v25  ;;  %28927 = vmatprep.subr.bf16.mxu0 %v26092_v6  ;;  %v23201_v25 = vadd.f32 %v23161_v39, %v34047_v31  ;;  %v23214_v6 = vmax.f32 %v23194_v37, 0.0  ;;  %v26150_v31 = vld [vmem:[%s34416_s7 + $0x448] sm:$0xff]  }
0x1799   :  { %28959 = vmatprep.subr.bf16.mxu1 %v26108_v26  ;;  %v23216_v4 = vmax.f32 %v23196_v59, 0.0  ;;  %v23219_v26 = vmax.f32 %v23199_v53, 0.0 }
0x179a   :  { %v23221_v27 = vmax.f32 %v23201_v25, 0.0 }
0x179b   :  { %28929 = vmatpush3.bf16.msra.mxu0 %v26084_v10  ;;  %v26142_v10 = vld [vmem:[%s34416_s7 + $0x408] sm:$0xff]  }
0x179c   :  { %28961 = vmatpush3.bf16.msra.mxu1 %v26100_v1  ;;  %28963 = vmatprep.subr.bf16.mxu0 %v26117_v2  ;;  %v26151_v1 = vld [vmem:[%s34416_s7 + $0x450] sm:$0xff]  }
0x179d   :  { %28995 = vmatprep.subr.bf16.mxu1 %v26133_v56  ;;  %v26167_v2 = vld [vmem:[%s34416_s7 + $0x4d0] sm:$0xff]  }
0x179e   :  { %24214 = vmatmul.mubr.f32.vlgmr.msra.gmra.mrb[50].mxu0 %v23210_v18  ;;  %v26159_v56 = vld [vmem:[%s34416_s7 + $0x490] sm:$0xff]   ;;  %v26168_v18 = vld [vmem:[%s34416_s7 + $0x4d8] sm:$0xff]  }
0x179f   :  { %24284 = vmatmul.mubr.f32.vlgmr.msra.gmra.mrb[60].mxu1 %v23212_v22  ;;  %28965 = vmatpush3.bf16.msra.mxu0 %v26109_v23  ;;  %v26144_v23 = vld [vmem:[%s34416_s7 + $0x418] sm:$0xff]  }
0x17a0   :  { %24353 = vmatprep.mubr.f32.mxu0 %v23215_v24  ;;  %28997 = vmatpush3.bf16.msra.mxu1 %v26125_v12  ;;  %v26160_v22 = vld [vmem:[%s34416_s7 + $0x498] sm:$0xff]   ;;  %v26153_v12 = vld [vmem:[%s34416_s7 + $0x460] sm:$0xff]  }
0x17a1   :  { %24423 = vmatprep.mubr.f32.mxu1 %v23217_v20  ;;  %28967 = vmatprep.subr.bf16.mxu0 %v26118_v0  ;;  %v26169_v24 = vld [vmem:[%s34416_s7 + $0x4e0] sm:$0xff]  }
0x17a2   :  { %28999 = vmatprep.subr.bf16.mxu1 %v26134_v42  ;;  %v26145_v0 = vld [vmem:[%s34416_s7 + $0x420] sm:$0xff]   ;;  %v26154_v42 = vld [vmem:[%s34416_s7 + $0x468] sm:$0xff]  }
0x17a3   :  { %28969 = vmatpush3.bf16.msra.mxu0 %v26110_v14  ;;  %v26161_v20 = vld [vmem:[%s34416_s7 + $0x4a0] sm:$0xff]   ;;  %v26170_v14 = vld [vmem:[%s34416_s7 + $0x4e8] sm:$0xff]  }
0x17a4   :  { %29001 = vmatpush3.bf16.msra.mxu1 %v26126_v16  ;;  %28971 = vmatprep.subr.bf16.mxu0 %v26119_v54  ;;  %v26146_v16 = vld [vmem:[%s34416_s7 + $0x428] sm:$0xff]  }
0x17a5   :  { %29003 = vmatprep.subr.bf16.mxu1 %v26135_v11  ;;  %v26162_v54 = vld [vmem:[%s34416_s7 + $0x4a8] sm:$0xff]   ;;  %v26155_v11 = vld [vmem:[%s34416_s7 + $0x470] sm:$0xff]  }
0x17a7   :  { %28973 = vmatpush3.bf16.msra.mxu0 %v26111_v51  ;;  %v26171_v51 = vld [vmem:[%s34416_s7 + $0x4f0] sm:$0xff]  }
0x17a8   :  { %29005 = vmatpush3.bf16.msra.mxu1 %v26127_v50  ;;  %28975 = vmatprep.subr.bf16.mxu0 %v26120_v33  ;;  %v23149_v50 = vrot.slane %v34263_v43, %v30596_v48  ;;  %v26147_v33 = vld [vmem:[%s34416_s7 + $0x430] sm:$0xff]   ;;  %v26172_v48 = vld [vmem:[%s34416_s7 + $0x4f8] sm:$0xff]  }
0x17a9   :  { %29007 = vmatprep.subr.bf16.mxu1 %v26136_v49  ;;  %v23157_v49 = vrot.slane %v34263_v43, %v34512_v13  ;;  %v26148_v13 = vld [vmem:[%s34416_s7 + $0x438] sm:$0xff]  }
0x17ab   :  { %28977 = vmatpush3.bf16.msra.mxu0 %v26112_v8  ;;  %v26163_v8 = vld [vmem:[%s34416_s7 + $0x4b0] sm:$0xff]  }
0x17ac   :  { %29009 = vmatpush3.bf16.msra.mxu1 %v26128_v62  ;;  %28979 = vmatprep.subr.bf16.mxu0 %v26121_v38  ;;  %v26156_v62 = vld [vmem:[%s34416_s7 + $0x478] sm:$0xff]   ;;  %v23198_v38 = vadd.f32 %v23149_v50, %v34036_v40 }
0x17ad   :  { %29011 = vmatprep.subr.bf16.mxu1 %v26137_v45  ;;  %v23200_v45 = vadd.f32 %v23157_v49, %v34038_v55 }
0x17af   :  { %28981 = vmatpush3.bf16.msra.mxu0 %v26113_v7  ;;  %v26164_v7 = vld [vmem:[%s34416_s7 + $0x4b8] sm:$0xff]   ;;  %s30274_s7 = smov [#allocation11]  }
0x17b0   :  { %29013 = vmatpush3.bf16.msra.mxu1 %v26129_v46  ;;  %28983 = vmatprep.subr.bf16.mxu0 %v26122_v19  ;;  %v23218_v46 = vmax.f32 %v23198_v38, 0.0  ;;  %v23220_v19 = vmax.f32 %v23200_v45, 0.0  ;;  %s24577_s1 = sshll.u32 %s30274_s7, 4  ;;  %s24578_s1 = int_to_ptr.vmem [resolvable:$true] %s24577_s1 }
0x17b1   :  { %29015 = vmatprep.subr.bf16.mxu1 %v26138_v57  ;;  %s30233_s6 = scalar_lea.vmem %s24578_s1, 32  ;;  %p30238_p13 = scmp.lt.s32.totalorder %s24578_s1, %s24578_s1 }
0x17b2   :  { %p30234_p12 = scmp.ne.s32.totalorder %s24578_s1, %s30233_s6  ;;  %p30239_p0 = scmp.lt.s32.totalorder %s30233_s6, %s30233_s6 }
0x17b3   :  { %28985 = vmatpush3.bf16.msra.mxu0 %v26114_v30  ;;  %v25250_v30 = vld [vmem:[#allocation10] ss:$0 sm:$0xff] }
0x17b4   :  { %29017 = vmatpush3.bf16.msra.mxu1 %v26130_v58  ;;  %28987 = vmatprep.subr.bf16.mxu0 %v26123_v29  ;;  %p30240_p1 = por %p30239_p0, %p30238_p13 }
0x17b5   :  { %29019 = vmatprep.subr.bf16.mxu1 %v26139_v34 }
0x17b6   :  { %p30241_p2 = pnand %p30240_p1, %p30234_p12 }
0x17b7   :  { %28989 = vmatpush3.bf16.msra.mxu0 %v26115_v28 }
0x17b8   :  { %29021 = vmatpush3.bf16.msra.mxu1 %v26131_v17  ;;  %28991 = vmatprep.subr.bf16.mxu0 %v26124_v36 }
0x17b9   :  { %29023 = vmatprep.subr.bf16.mxu1 %v26140_v3 }
0x17bb   :  { %28993 = vmatpush3.bf16.msra.mxu0 %v26116_v21 }
0x17bc   :  { %29025 = vmatpush3.bf16.msra.mxu1 %v26132_v52  ;;  %29027 = vmatprep.subr.bf16.mxu0 %v26149_v5 }
0x17bd   :  { %29059 = vmatprep.subr.bf16.mxu1 %v26165_v44 }
0x17be   :  { %24354 = vmatmul.mubr.f32.vlgmr.msra.gmra.mrb[52].mxu0 %v23214_v6 }
0x17bf   :  { %24424 = vmatmul.mubr.f32.vlgmr.msra.gmra.mrb[62].mxu1 %v23216_v4  ;;  %29029 = vmatpush3.bf16.msra.mxu0 %v26141_v47 }
0x17c0   :  { %24493 = vmatprep.mubr.f32.mxu0 %v23219_v26  ;;  %29061 = vmatpush3.bf16.msra.mxu1 %v26157_v9 }
0x17c1   :  { %24563 = vmatprep.mubr.f32.mxu1 %v23221_v27  ;;  %29031 = vmatprep.subr.bf16.mxu0 %v26150_v31 }
0x17c2   :  { %29063 = vmatprep.subr.bf16.mxu1 %v26166_v32 }
0x17c3   :  { %29033 = vmatpush3.bf16.msra.mxu0 %v26142_v10 }
0x17c4   :  { %29065 = vmatpush3.bf16.msra.mxu1 %v26158_v41  ;;  %29035 = vmatprep.subr.bf16.mxu0 %v26151_v1 }
0x17c5   :  { %29067 = vmatprep.subr.bf16.mxu1 %v26167_v2 }
0x17c7   :  { %29037 = vmatpush3.bf16.msra.mxu0 %v26143_v35 }
0x17c8   :  { %29069 = vmatpush3.bf16.msra.mxu1 %v26159_v56  ;;  %29039 = vmatprep.subr.bf16.mxu0 %v26152_v63 }
0x17c9   :  { %29071 = vmatprep.subr.bf16.mxu1 %v26168_v18 }
0x17cb   :  { %29041 = vmatpush3.bf16.msra.mxu0 %v26144_v23 }
0x17cc   :  { %29073 = vmatpush3.bf16.msra.mxu1 %v26160_v22  ;;  %29043 = vmatprep.subr.bf16.mxu0 %v26153_v12 }
0x17cd   :  { %29075 = vmatprep.subr.bf16.mxu1 %v26169_v24 }
0x17cf   :  { %29045 = vmatpush3.bf16.msra.mxu0 %v26145_v0 }
0x17d0   :  { %29077 = vmatpush3.bf16.msra.mxu1 %v26161_v20  ;;  %29047 = vmatprep.subr.bf16.mxu0 %v26154_v42 }
0x17d1   :  { %29079 = vmatprep.subr.bf16.mxu1 %v26170_v14 }
0x17d3   :  { %29049 = vmatpush3.bf16.msra.mxu0 %v26146_v16 }
0x17d4   :  { %29081 = vmatpush3.bf16.msra.mxu1 %v26162_v54  ;;  %29051 = vmatprep.subr.bf16.mxu0 %v26155_v11 }
0x17d5   :  { %29083 = vmatprep.subr.bf16.mxu1 %v26171_v51 }
0x17d7   :  { %29053 = vmatpush3.bf16.msra.mxu0 %v26147_v33 }
0x17d8   :  { %29085 = vmatpush3.bf16.msra.mxu1 %v26163_v8  ;;  %29055 = vmatprep.subr.bf16.mxu0 %v26156_v62 }
0x17d9   :  { %29087 = vmatprep.subr.bf16.mxu1 %v26172_v48 }
0x17db   :  { %29057 = vmatpush3.bf16.msra.mxu0 %v26148_v13 }
0x17dc   :  { %29089 = vmatpush3.bf16.msra.mxu1 %v26164_v7 }
0x17de   :  { %24494 = vmatmul.mubr.f32.vlgmr.msra.gmra.mrb[54].mxu0 %v23218_v46 }
0x17df   :  { %24564 = vmatmul.mubr.f32.vlgmr.msra.gmra.mrb[64].mxu1 %v23220_v19 }
0x1831   :  { %v26905_v40 = vpop.f32.mrb[46].mxu0  ;;  %v26940_v57 = vpop.f32.mrb[56].mxu1 }
0x1832   :  { %v26906_v58 = vpop.f32.mrb[47].mxu0  ;;  %v26941_v29 = vpop.f32.mrb[57].mxu1 }
0x1833   :  { %v26907_v34 = vadd.f32 %v26906_v58, %v26905_v40  ;;  %v26942_v43 = vadd.f32 %v26941_v29, %v26940_v57 }
0x1835   :  { %v23936_v60 = vadd.f32 %v26907_v34, %v25250_v30 }
0x1837   :  { %v24006_v55 = vadd.f32 %v26942_v43, %v23936_v60 }
0x1851   :  { %v26975_v28 = vpop.f32.mrb[48].mxu0 }
0x1852   :  { %v27010_v61 = vpop.f32.mrb[58].mxu1  ;;  %v26976_v17 = vpop.f32.mrb[49].mxu0 }
0x1853   :  { %v26977_v36 = vadd.f32 %v26976_v17, %v26975_v28  ;;  %v27011_v15 = vpop.f32.mrb[59].mxu1 }
0x1854   :  { %v27012_v3 = vadd.f32 %v27011_v15, %v27010_v61 }
0x1855   :  { %v24076_v39 = vadd.f32 %v26977_v36, %v24006_v55 }
0x1857   :  { %v24146_v37 = vadd.f32 %v27012_v3, %v24076_v39 }
0x1871   :  { %v27045_v21 = vpop.f32.mrb[50].mxu0 }
0x1872   :  { %v27080_v59 = vpop.f32.mrb[60].mxu1  ;;  %v27046_v52 = vpop.f32.mrb[51].mxu0 }
0x1873   :  { %v27047_v5 = vadd.f32 %v27046_v52, %v27045_v21  ;;  %v27081_v53 = vpop.f32.mrb[61].mxu1 }
0x1874   :  { %v27082_v44 = vadd.f32 %v27081_v53, %v27080_v59 }
0x1875   :  { %v24216_v25 = vadd.f32 %v27047_v5, %v24146_v37 }
0x1877   :  { %v24286_v6 = vadd.f32 %v27082_v44, %v24216_v25 }
0x1891   :  { %v27115_v47 = vpop.f32.mrb[52].mxu0 }
0x1892   :  { %v27150_v4 = vpop.f32.mrb[62].mxu1  ;;  %v27116_v9 = vpop.f32.mrb[53].mxu0 }
0x1893   :  { %v27117_v26 = vadd.f32 %v27116_v9, %v27115_v47  ;;  %v27151_v31 = vpop.f32.mrb[63].mxu1 }
0x1894   :  { %v27152_v27 = vadd.f32 %v27151_v31, %v27150_v4 }
0x1895   :  { %v24356_v32 = vadd.f32 %v27117_v26, %v24286_v6 }
0x1897   :  { %v24426_v10 = vadd.f32 %v27152_v27, %v24356_v32 }
0x18b1   :  { %v27185_v41 = vpop.f32.mrb[54].mxu0 }
0x18b2   :  { %v27220_v1 = vpop.f32.mrb[64].mxu1  ;;  %v27186_v2 = vpop.f32.mrb[55].mxu0 }
0x18b3   :  { %v27187_v35 = vadd.f32 %v27186_v2, %v27185_v41  ;;  %v27221_v56 = vpop.f32.mrb[65].mxu1 }
0x18b4   :  { %v27222_v63 = vadd.f32 %v27221_v56, %v27220_v1 }
0x18b5   :  { %v24496_v18 = vadd.f32 %v27187_v35, %v24426_v10 }
0x18b7   :  { %v24566_v23 = vadd.f32 %v27222_v63, %v24496_v18 }
0x18b9   :  { %24570 = vst.msk [vmem:[#allocation11] sm:$0x3] %vm24569_vm5, %v24566_v23 }
0x18ba   :  { %30244 = shalt.err (!%p30241_p2)
}
0x18bb   :  { %s30245_s23 = scalar_lea.hbm %s34418_s9, 32 }
0x18bc   :  { %p30246_p3 = scmp.ne.s32.totalorder %s34418_s9, %s30245_s23  ;;  %p30249_p4 = scmp.lt.u32.totalorder %s30245_s23, %s34418_s9 }
0x18be   :  { %p30251_p5 = pnand %p30249_p4, %p30246_p3 }
0x18c0   :  { %30254 = shalt.err (!%p30251_p5)
}
0x18c1   :  { %24580 = dma.vmem_to_hbm [thread:$0]  %s24578_s1, 32, %s34418_s9, [#allocation4]  }
0x18c2   :  { %30261 = dma.done.wait [#allocation4], 32  }
0x18c3   :  { %30262 = vsyncadd [#allocation4], 4294967264 }
0x18c4   :  { %24584 = vsyncpa [#allocation3], 1 }
0x18c5   :  { %24585 = vsyncpa [#allocation6], 1 }
0x18c6   :  { %24586 = vsyncpa [#allocation9], 1 }
0x18c7   :  { %24587 = vsyncpa [#allocation4], 1 }

</bundles_post_ra>
